<compile_context>
chip_gen: v5e
topology: v5e:2x2
jax: 0.10.0
libtpu: 0.0.40
codegen_flags: <defaults>
</compile_context>

<pallas_src>
import functools

import jax
import jax.numpy as jnp
from jax.experimental import pallas as pl
from jax.experimental.pallas import tpu as pltpu

D_IN = 3
D_IN_PAD = 8             # K padded to 8 for the MXU path
D_HID = 128
D_MID = 512
D_OUT = 12
LN_EPS = 1e-5            # PyTorch nn.LayerNorm default


def _round_up(n, m):
    return (n + m - 1) // m * m


def _is_legacy_vpu_chip():
    """True on chips without packed bf16 VPU/EUP (v2-v5)."""
    try:
        kind = jax.devices()[0].device_kind.lower()
    except Exception:
        return False
    return any(tag in kind for tag in ("v2", "v3", "v4", "v5"))


def _vmem_limit_bytes():
    """Scoped-VMEM limit: ~3/4 of physical VMEM, capped at 96 MiB.

    v7x (64 MiB/TC) -> 48 MiB; v5e/v6e (128 MiB) -> 96 MiB.
    """
    cap = 64 * 1024 * 1024
    try:
        info = pltpu.get_tpu_info()
        cap = int(getattr(info, "vmem_capacity_bytes", cap))
    except Exception:
        pass
    return int(min(cap * 3 // 4, 96 * 1024 * 1024))


def _ln_f32(x, gamma, beta):
    """LayerNorm, single-pass stats, fully f32 (clamped variance)."""
    mu = jnp.mean(x, axis=-1, keepdims=True)
    ms = jnp.mean(x * x, axis=-1, keepdims=True)
    var = jnp.maximum(ms - mu * mu, 0.0)
    return (x - mu) * jax.lax.rsqrt(var + LN_EPS) * gamma + beta


def _pinn_mlp_kernel(
    x_ref,
    w1_ref, b1_ref, g0_ref, t0_ref,             # initial_layer: Linear(3->128)+LN(128)
    w2_ref, b2_ref, g1_ref, t1_ref,             # res_block1: Linear(128,512)+LN(512)
    w3_ref, b3_ref, g2_ref, t2_ref,             # res_block1: Linear(512,128)+LN(128)
    w4_ref, b4_ref, g3_ref, t3_ref,             # res_block2: Linear(128,512)+LN(512)
    w5_ref, b5_ref, g4_ref, t4_ref,             # res_block2: Linear(512,128)+LN(128)
    wo_ref, bo_ref,                             # 12 fused heads: (128, 12)
    o_ref,
    *, use_bf16_vpu, use_mxu_init,
):
    f32 = jnp.float32
    bf16 = jnp.bfloat16

    x = x_ref[...]                                              # (tm, 8) f32; cols 3..7 are zero

    # ---- initial_layer -------------------------------------------------------
    if use_mxu_init:
        # v6e/v7x: MXU has large slack; push the K=8 (padded) matmul there.
        h = jnp.dot(x.astype(bf16), w1_ref[...],
                    preferred_element_type=f32) + b1_ref[...]
    else:
        # v5e and older: MXU is nearly co-bound with the VPU; three rank-1
        # FMAs avoid wasting systolic depth on K=3.
        w1 = w1_ref[...]                                        # (8, 128) f32
        h = (x[:, 0:1] * w1[0:1, :]
             + x[:, 1:2] * w1[1:2, :]
             + x[:, 2:3] * w1[2:3, :]
             + b1_ref[...])

    # First LN stays fully f32: its output is also the residual carrier.
    h = _ln_f32(h, g0_ref[...], t0_ref[...])                    # (tm, 128) f32

    def res_block(h, w_up, b_up, g_up, t_up, w_dn, b_dn, g_dn, t_dn):
        residual = h
        if use_bf16_vpu:
            t = jnp.tanh(h.astype(bf16))                        # bf16 EUP tanh
        else:
            t = jnp.tanh(h).astype(bf16)
        u = jnp.dot(t, w_up, preferred_element_type=f32) + b_up  # (tm, 512) f32

        # LN(512): f32 stats; affine (+ following tanh) in bf16 on v6e/v7x.
        # This LN feeds only the next matmul operand, never the residual.
        mu = jnp.mean(u, axis=-1, keepdims=True)
        ms = jnp.mean(u * u, axis=-1, keepdims=True)
        var = jnp.maximum(ms - mu * mu, 0.0)
        xhat = (u - mu) * jax.lax.rsqrt(var + LN_EPS)
        if use_bf16_vpu:
            y = xhat.astype(bf16) * g_up.astype(bf16) + t_up.astype(bf16)
            t2 = jnp.tanh(y)                                    # bf16
        else:
            y = xhat * g_up + t_up
            t2 = jnp.tanh(y).astype(bf16)

        v = jnp.dot(t2, w_dn, preferred_element_type=f32) + b_dn  # (tm, 128) f32
        # Down-projection LN feeds the f32 residual add -> keep f32.
        v = _ln_f32(v, g_dn, t_dn)
        return v + residual

    h = res_block(h, w2_ref[...], b2_ref[...], g1_ref[...], t1_ref[...],
                  w3_ref[...], b3_ref[...], g2_ref[...], t2_ref[...])
    h = res_block(h, w4_ref[...], b4_ref[...], g3_ref[...], t3_ref[...],
                  w5_ref[...], b5_ref[...], g4_ref[...], t4_ref[...])

    if use_bf16_vpu:
        hf = jnp.tanh(h.astype(bf16))
    else:
        hf = jnp.tanh(h).astype(bf16)

    # 12 fused output heads written as a narrow (tm, 12) block: the tile is a
    # contiguous HBM region, and no post-kernel lane slice is needed.
    o_ref[...] = jnp.dot(hf, wo_ref[...], preferred_element_type=f32) + bo_ref[...]


def init_params(key):
    """Deterministic parameter init matching the module's shapes (f32)."""
    ks = jax.random.split(key, 12)

    def lin(kw, kb, fan_in, fan_out):
        bound = 1.0 / jnp.sqrt(fan_in)
        w = jax.random.uniform(kw, (fan_in, fan_out), jnp.float32, -bound, bound)
        b = jax.random.uniform(kb, (1, fan_out), jnp.float32, -bound, bound)
        return w, b

    params = {}
    params["w1"], params["b1"] = lin(ks[0], ks[1], D_IN, D_HID)
    params["g0"] = jnp.ones((1, D_HID), jnp.float32)
    params["t0"] = jnp.zeros((1, D_HID), jnp.float32)

    params["w2"], params["b2"] = lin(ks[2], ks[3], D_HID, D_MID)
    params["g1"] = jnp.ones((1, D_MID), jnp.float32)
    params["t1"] = jnp.zeros((1, D_MID), jnp.float32)

    params["w3"], params["b3"] = lin(ks[4], ks[5], D_MID, D_HID)
    params["g2"] = jnp.ones((1, D_HID), jnp.float32)
    params["t2"] = jnp.zeros((1, D_HID), jnp.float32)

    params["w4"], params["b4"] = lin(ks[6], ks[7], D_HID, D_MID)
    params["g3"] = jnp.ones((1, D_MID), jnp.float32)
    params["t3"] = jnp.zeros((1, D_MID), jnp.float32)

    params["w5"], params["b5"] = lin(ks[8], ks[9], D_MID, D_HID)
    params["g4"] = jnp.ones((1, D_HID), jnp.float32)
    params["t4"] = jnp.zeros((1, D_HID), jnp.float32)

    # 12 independent Linear(128, 1) heads -> stacked into (128, 12)
    params["wo"], params["bo"] = lin(ks[10], ks[11], D_HID, D_OUT)
    return params


@functools.partial(jax.jit, static_argnames=("tm",))
def multi_physics_pinn_forward(params, inputs, coords, tm=2048):
    """Forward pass equivalent of MultiPhysicsPINN.forward.

    inputs: (B, 1, H, W) float32   (NCHW)
    coords: (B, 2, H, W) float32   (NCHW)
    returns: (B, 12, H, W) float32 (NCHW)
    """
    B, _, H, W = inputs.shape
    N = B * H * W

    # Glue in plain JAX: flatten exactly like the PyTorch code.
    x_flat = inputs.reshape(-1, 1)                               # (N, 1)
    c_flat = jnp.transpose(coords, (0, 2, 3, 1)).reshape(-1, 2)  # (N, 2)
    input_data = jnp.concatenate([x_flat, c_flat], axis=1)       # (N, 3)

    # Per-generation static choices (resolved at trace time).
    legacy = _is_legacy_vpu_chip()
    use_bf16_vpu = not legacy       # bf16 tanh / LN-affine only on v6e/v7x
    use_mxu_init = not legacy       # initial layer on MXU only on v6e/v7x

    # --- Row-tile selection --------------------------------------------------
    # Large tiles amortize the ~0.35 us per-grid-step overhead.  Clamp for
    # small problems, but keep >= 4 grid steps when possible so v7x's two
    # TensorCores each get >= 2 steps (load balance + per-TC DMA overlap).
    n128 = _round_up(max(N, 1), 128)
    tm_eff = min(tm, n128)
    desired_steps = 4
    if n128 >= desired_steps * 128:
        tm_eff = min(tm_eff, _round_up(pl.cdiv(n128, desired_steps), 128))
    tm_eff = max(tm_eff, 128)
    n_rows = _round_up(N, tm_eff)

    # Pad rows to a tile multiple and features to 8 (MXU-friendly K).
    input_data = jnp.pad(input_data, ((0, n_rows - N), (0, D_IN_PAD - D_IN)))

    # --- Parameter preprocessing ---------------------------------------------
    # bf16 matmul operands (f32 accumulation inside the kernel); biases and LN
    # params stay f32 (the kernel casts the two up-projection LN affines to
    # bf16 on chips with packed bf16 VALU).
    w1_dtype = jnp.bfloat16 if use_mxu_init else jnp.float32
    w1 = (jnp.zeros((D_IN_PAD, D_HID), jnp.float32)
          .at[:D_IN, :].set(params["w1"])
          .astype(w1_dtype))
    w2 = params["w2"].astype(jnp.bfloat16)
    w3 = params["w3"].astype(jnp.bfloat16)
    w4 = params["w4"].astype(jnp.bfloat16)
    w5 = params["w5"].astype(jnp.bfloat16)
    wo = params["wo"].astype(jnp.bfloat16)                       # (128, 12)
    bo = params["bo"]                                            # (1, 12) f32

    param_vals = [
        w1, params["b1"], params["g0"], params["t0"],
        w2, params["b2"], params["g1"], params["t1"],
        w3, params["b3"], params["g2"], params["t2"],
        w4, params["b4"], params["g3"], params["t3"],
        w5, params["b5"], params["g4"], params["t4"],
        wo, bo,
    ]

    def rows_spec(feat):
        return pl.BlockSpec((tm_eff, feat), lambda i: (i, 0))

    def const_spec(arr):
        # Constant (0, 0) block index -> stays resident across grid steps.
        # TODO(synk): mark these pl.Buffered(1) once single-buffering of
        # constant operands is confirmed safe on the deployed JAX version.
        return pl.BlockSpec(arr.shape, lambda i: (0, 0))

    # Advisory cost estimate so XLA schedules the surrounding glue sensibly.
    matmul_flops = 2 * n_rows * (D_IN_PAD * D_HID
                                 + 2 * D_HID * D_MID
                                 + 2 * D_MID * D_HID
                                 + D_HID * D_OUT)
    transcendentals = n_rows * (3 * D_HID + 2 * D_MID)
    weight_bytes = sum(int(p.size) * p.dtype.itemsize for p in param_vals)
    bytes_accessed = n_rows * (D_IN_PAD + D_OUT) * 4 + weight_bytes
    cost = pl.CostEstimate(
        flops=int(matmul_flops),
        transcendentals=int(transcendentals),
        bytes_accessed=int(bytes_accessed),
    )

    kernel = functools.partial(
        _pinn_mlp_kernel,
        use_bf16_vpu=use_bf16_vpu,
        use_mxu_init=use_mxu_init,
    )

    out_flat = pl.pallas_call(
        kernel,
        out_shape=jax.ShapeDtypeStruct((n_rows, D_OUT), jnp.float32),
        grid_spec=pltpu.PrefetchScalarGridSpec(
            num_scalar_prefetch=0,
            grid=(n_rows // tm_eff,),
            in_specs=[rows_spec(D_IN_PAD)] + [const_spec(p) for p in param_vals],
            out_specs=rows_spec(D_OUT),
        ),
        compiler_params=pltpu.CompilerParams(
            dimension_semantics=("parallel",),
            vmem_limit_bytes=_vmem_limit_bytes(),
        ),
        cost_estimate=cost,
    )(input_data, *param_vals)

    out_flat = out_flat[:N]                                      # drop row padding only
    # Equivalent of `.view(B, H, W, 12).permute(0, 3, 1, 2)` (H=W=128 in the
    # original; generalized here).
    out = out_flat.reshape(B, H, W, D_OUT)
    out = jnp.transpose(out, (0, 3, 1, 2))                       # (B, 12, H, W)
    return out


def _reference_forward(params, inputs, coords):
    """Pure-JAX f32 reference for correctness checking."""
    B, _, H, W = inputs.shape
    x_flat = inputs.reshape(-1, 1)
    c_flat = jnp.transpose(coords, (0, 2, 3, 1)).reshape(-1, 2)
    x = jnp.concatenate([x_flat, c_flat], axis=1)

    def ln(x, g, t):
        mu = jnp.mean(x, axis=-1, keepdims=True)
        var = jnp.mean((x - mu) ** 2, axis=-1, keepdims=True)
        return (x - mu) / jnp.sqrt(var + LN_EPS) * g + t

    h = ln(x @ params["w1"] + params["b1"], params["g0"], params["t0"])
    r = h
    u = ln(jnp.tanh(h) @ params["w2"] + params["b2"], params["g1"], params["t1"])
    v = ln(jnp.tanh(u) @ params["w3"] + params["b3"], params["g2"], params["t2"])
    h = v + r
    r = h
    u = ln(jnp.tanh(h) @ params["w4"] + params["b4"], params["g3"], params["t3"])
    v = ln(jnp.tanh(u) @ params["w5"] + params["b5"], params["g4"], params["t4"])
    h = v + r
    h = jnp.tanh(h)
    out = h @ params["wo"] + params["bo"]
    return jnp.transpose(out.reshape(B, H, W, D_OUT), (0, 3, 1, 2))


if __name__ == "__main__":
    key = jax.random.PRNGKey(0)
    k_param, k_in, k_co = jax.random.split(key, 3)

    B, H, W = 2, 16, 16
    params = init_params(k_param)
    inputs = jax.random.uniform(k_in, (B, 1, H, W), jnp.float32, -0.9, 0.9)
    coords = jax.random.uniform(k_co, (B, 2, H, W), jnp.float32, -1.0, 1.0)

    out = multi_physics_pinn_forward(params, inputs, coords)
    out = jax.block_until_ready(out)

    ref = _reference_forward(params, inputs, coords)
    assert out.shape == (B, 12, H, W), out.shape
    assert bool(jnp.all(jnp.isfinite(out)))
    # bf16 matmul operands + (on v6e/v7x) bf16 tanh / LN-affine with f32
    # accumulation and f32 residual path -> relaxed tolerance vs f32 ref.
    max_err = float(jnp.max(jnp.abs(out - ref)))
    assert jnp.allclose(out, ref, atol=8e-2, rtol=8e-2), max_err

    print("KERNEL_OK")
</pallas_src>

<mosaic_0001>
module attributes {stable_mosaic.version = 11 : i64} {
  func.func @_pinn_mlp_kernel(%arg0: i32, %arg1: memref<128x8xf32, #tpu.memory_space<vmem>>, %arg2: memref<8x128xbf16, #tpu.memory_space<vmem>>, %arg3: memref<1x128xf32, #tpu.memory_space<vmem>>, %arg4: memref<1x128xf32, #tpu.memory_space<vmem>>, %arg5: memref<1x128xf32, #tpu.memory_space<vmem>>, %arg6: memref<128x512xbf16, #tpu.memory_space<vmem>>, %arg7: memref<1x512xf32, #tpu.memory_space<vmem>>, %arg8: memref<1x512xf32, #tpu.memory_space<vmem>>, %arg9: memref<1x512xf32, #tpu.memory_space<vmem>>, %arg10: memref<512x128xbf16, #tpu.memory_space<vmem>>, %arg11: memref<1x128xf32, #tpu.memory_space<vmem>>, %arg12: memref<1x128xf32, #tpu.memory_space<vmem>>, %arg13: memref<1x128xf32, #tpu.memory_space<vmem>>, %arg14: memref<128x512xbf16, #tpu.memory_space<vmem>>, %arg15: memref<1x512xf32, #tpu.memory_space<vmem>>, %arg16: memref<1x512xf32, #tpu.memory_space<vmem>>, %arg17: memref<1x512xf32, #tpu.memory_space<vmem>>, %arg18: memref<512x128xbf16, #tpu.memory_space<vmem>>, %arg19: memref<1x128xf32, #tpu.memory_space<vmem>>, %arg20: memref<1x128xf32, #tpu.memory_space<vmem>>, %arg21: memref<1x128xf32, #tpu.memory_space<vmem>>, %arg22: memref<128x12xbf16, #tpu.memory_space<vmem>>, %arg23: memref<1x12xf32, #tpu.memory_space<vmem>>, %arg24: memref<128x12xf32, #tpu.memory_space<vmem>>) attributes {dimension_semantics = [#tpu.dimension_semantics<parallel>], iteration_bounds = array<i64: 4>, scalar_prefetch = 0 : i64, scratch_operands = 0 : i64, tpu.core_type = #tpu.core_type<tc>, window_params = [{transform_indices = @transform_0, window_bounds = array<i64: 128, 8>}, {pipeline_mode = #tpu.pipeline_mode<synchronous>, transform_indices = @transform_1, window_bounds = array<i64: 8, 128>}, {pipeline_mode = #tpu.pipeline_mode<synchronous>, transform_indices = @transform_2, window_bounds = array<i64: 1, 128>}, {pipeline_mode = #tpu.pipeline_mode<synchronous>, transform_indices = @transform_3, window_bounds = array<i64: 1, 128>}, {pipeline_mode = #tpu.pipeline_mode<synchronous>, transform_indices = @transform_4, window_bounds = array<i64: 1, 128>}, {pipeline_mode = #tpu.pipeline_mode<synchronous>, transform_indices = @transform_5, window_bounds = array<i64: 128, 512>}, {pipeline_mode = #tpu.pipeline_mode<synchronous>, transform_indices = @transform_6, window_bounds = array<i64: 1, 512>}, {pipeline_mode = #tpu.pipeline_mode<synchronous>, transform_indices = @transform_7, window_bounds = array<i64: 1, 512>}, {pipeline_mode = #tpu.pipeline_mode<synchronous>, transform_indices = @transform_8, window_bounds = array<i64: 1, 512>}, {pipeline_mode = #tpu.pipeline_mode<synchronous>, transform_indices = @transform_9, window_bounds = array<i64: 512, 128>}, {pipeline_mode = #tpu.pipeline_mode<synchronous>, transform_indices = @transform_10, window_bounds = array<i64: 1, 128>}, {pipeline_mode = #tpu.pipeline_mode<synchronous>, transform_indices = @transform_11, window_bounds = array<i64: 1, 128>}, {pipeline_mode = #tpu.pipeline_mode<synchronous>, transform_indices = @transform_12, window_bounds = array<i64: 1, 128>}, {pipeline_mode = #tpu.pipeline_mode<synchronous>, transform_indices = @transform_13, window_bounds = array<i64: 128, 512>}, {pipeline_mode = #tpu.pipeline_mode<synchronous>, transform_indices = @transform_14, window_bounds = array<i64: 1, 512>}, {pipeline_mode = #tpu.pipeline_mode<synchronous>, transform_indices = @transform_15, window_bounds = array<i64: 1, 512>}, {pipeline_mode = #tpu.pipeline_mode<synchronous>, transform_indices = @transform_16, window_bounds = array<i64: 1, 512>}, {pipeline_mode = #tpu.pipeline_mode<synchronous>, transform_indices = @transform_17, window_bounds = array<i64: 512, 128>}, {pipeline_mode = #tpu.pipeline_mode<synchronous>, transform_indices = @transform_18, window_bounds = array<i64: 1, 128>}, {pipeline_mode = #tpu.pipeline_mode<synchronous>, transform_indices = @transform_19, window_bounds = array<i64: 1, 128>}, {pipeline_mode = #tpu.pipeline_mode<synchronous>, transform_indices = @transform_20, window_bounds = array<i64: 1, 128>}, {pipeline_mode = #tpu.pipeline_mode<synchronous>, transform_indices = @transform_21, window_bounds = array<i64: 128, 12>}, {pipeline_mode = #tpu.pipeline_mode<synchronous>, transform_indices = @transform_22, window_bounds = array<i64: 1, 12>}, {transform_indices = @transform_23, window_bounds = array<i64: 128, 12>}]} {
    %c0 = arith.constant 0 : index
    %c0_0 = arith.constant 0 : index
    %0 = vector.load %arg1[%c0, %c0_0] : memref<128x8xf32, #tpu.memory_space<vmem>>, vector<128x8xf32>
    %1 = arith.truncf %0 : vector<128x8xf32> to vector<128x8xbf16>
    %c0_1 = arith.constant 0 : index
    %c0_2 = arith.constant 0 : index
    %2 = vector.load %arg2[%c0_1, %c0_2] : memref<8x128xbf16, #tpu.memory_space<vmem>>, vector<8x128xbf16>
    %cst = arith.constant dense<0.000000e+00> : vector<128x128xf32>
    %3 = tpu.matmul %1, %2, %cst {dimension_numbers = #tpu.dot_dimension_numbers<[1], [0], [0], [1], [0, 0, 1, 1], [], []>} : vector<128x8xbf16>, vector<8x128xbf16>, vector<128x128xf32> -> vector<128x128xf32>
    %c0_3 = arith.constant 0 : index
    %c0_4 = arith.constant 0 : index
    %4 = vector.load %arg3[%c0_3, %c0_4] : memref<1x128xf32, #tpu.memory_space<vmem>>, vector<1x128xf32>
    %5 = vector.broadcast %4 : vector<1x128xf32> to vector<128x128xf32>
    %6 = arith.addf %3, %5 : vector<128x128xf32>
    %c0_5 = arith.constant 0 : index
    %c0_6 = arith.constant 0 : index
    %7 = vector.load %arg4[%c0_5, %c0_6] : memref<1x128xf32, #tpu.memory_space<vmem>>, vector<1x128xf32>
    %c0_7 = arith.constant 0 : index
    %c0_8 = arith.constant 0 : index
    %8 = vector.load %arg5[%c0_7, %c0_8] : memref<1x128xf32, #tpu.memory_space<vmem>>, vector<1x128xf32>
    %cst_9 = arith.constant dense<0.000000e+00> : vector<128xf32>
    %9 = vector.multi_reduction <add>, %6, %cst_9 [1] : vector<128x128xf32> to vector<128xf32>
    %10 = vector.shape_cast %9 : vector<128xf32> to vector<128x1xf32>
    %cst_10 = arith.constant 1.280000e+02 : f32
    %11 = vector.broadcast %cst_10 : f32 to vector<128x1xf32>
    %12 = arith.divf %10, %11 : vector<128x1xf32>
    %13 = arith.mulf %6, %6 : vector<128x128xf32>
    %cst_11 = arith.constant dense<0.000000e+00> : vector<128xf32>
    %14 = vector.multi_reduction <add>, %13, %cst_11 [1] : vector<128x128xf32> to vector<128xf32>
    %15 = vector.shape_cast %14 : vector<128xf32> to vector<128x1xf32>
    %cst_12 = arith.constant 1.280000e+02 : f32
    %16 = vector.broadcast %cst_12 : f32 to vector<128x1xf32>
    %17 = arith.divf %15, %16 : vector<128x1xf32>
    %18 = arith.mulf %12, %12 : vector<128x1xf32>
    %19 = arith.subf %17, %18 : vector<128x1xf32>
    %cst_13 = arith.constant 0.000000e+00 : f32
    %20 = vector.broadcast %cst_13 : f32 to vector<128x1xf32>
    %21 = arith.maximumf %19, %20 : vector<128x1xf32>
    %22 = vector.broadcast %12 : vector<128x1xf32> to vector<128x128xf32>
    %23 = arith.subf %6, %22 : vector<128x128xf32>
    %cst_14 = arith.constant 9.99999974E-6 : f32
    %24 = vector.broadcast %cst_14 : f32 to vector<128x1xf32>
    %25 = arith.addf %21, %24 : vector<128x1xf32>
    %26 = math.rsqrt %25 : vector<128x1xf32>
    %27 = vector.broadcast %26 : vector<128x1xf32> to vector<128x128xf32>
    %28 = arith.mulf %23, %27 : vector<128x128xf32>
    %29 = vector.broadcast %7 : vector<1x128xf32> to vector<128x128xf32>
    %30 = arith.mulf %28, %29 : vector<128x128xf32>
    %31 = vector.broadcast %8 : vector<1x128xf32> to vector<128x128xf32>
    %32 = arith.addf %30, %31 : vector<128x128xf32>
    %c0_15 = arith.constant 0 : index
    %c0_16 = arith.constant 0 : index
    %33 = vector.load %arg6[%c0_15, %c0_16] : memref<128x512xbf16, #tpu.memory_space<vmem>>, vector<128x512xbf16>
    %c0_17 = arith.constant 0 : index
    %c0_18 = arith.constant 0 : index
    %34 = vector.load %arg7[%c0_17, %c0_18] : memref<1x512xf32, #tpu.memory_space<vmem>>, vector<1x512xf32>
    %c0_19 = arith.constant 0 : index
    %c0_20 = arith.constant 0 : index
    %35 = vector.load %arg8[%c0_19, %c0_20] : memref<1x512xf32, #tpu.memory_space<vmem>>, vector<1x512xf32>
    %c0_21 = arith.constant 0 : index
    %c0_22 = arith.constant 0 : index
    %36 = vector.load %arg9[%c0_21, %c0_22] : memref<1x512xf32, #tpu.memory_space<vmem>>, vector<1x512xf32>
    %c0_23 = arith.constant 0 : index
    %c0_24 = arith.constant 0 : index
    %37 = vector.load %arg10[%c0_23, %c0_24] : memref<512x128xbf16, #tpu.memory_space<vmem>>, vector<512x128xbf16>
    %c0_25 = arith.constant 0 : index
    %c0_26 = arith.constant 0 : index
    %38 = vector.load %arg11[%c0_25, %c0_26] : memref<1x128xf32, #tpu.memory_space<vmem>>, vector<1x128xf32>
    %c0_27 = arith.constant 0 : index
    %c0_28 = arith.constant 0 : index
    %39 = vector.load %arg12[%c0_27, %c0_28] : memref<1x128xf32, #tpu.memory_space<vmem>>, vector<1x128xf32>
    %c0_29 = arith.constant 0 : index
    %c0_30 = arith.constant 0 : index
    %40 = vector.load %arg13[%c0_29, %c0_30] : memref<1x128xf32, #tpu.memory_space<vmem>>, vector<1x128xf32>
    %41 = arith.truncf %32 : vector<128x128xf32> to vector<128x128xbf16>
    %42 = math.tanh %41 : vector<128x128xbf16>
    %cst_31 = arith.constant dense<0.000000e+00> : vector<128x512xf32>
    %43 = tpu.matmul %42, %33, %cst_31 {dimension_numbers = #tpu.dot_dimension_numbers<[1], [0], [0], [1], [0, 0, 1, 1], [], []>} : vector<128x128xbf16>, vector<128x512xbf16>, vector<128x512xf32> -> vector<128x512xf32>
    %44 = vector.broadcast %34 : vector<1x512xf32> to vector<128x512xf32>
    %45 = arith.addf %43, %44 : vector<128x512xf32>
    %cst_32 = arith.constant dense<0.000000e+00> : vector<128xf32>
    %46 = vector.multi_reduction <add>, %45, %cst_32 [1] : vector<128x512xf32> to vector<128xf32>
    %47 = vector.shape_cast %46 : vector<128xf32> to vector<128x1xf32>
    %cst_33 = arith.constant 5.120000e+02 : f32
    %48 = vector.broadcast %cst_33 : f32 to vector<128x1xf32>
    %49 = arith.divf %47, %48 : vector<128x1xf32>
    %50 = arith.mulf %45, %45 : vector<128x512xf32>
    %cst_34 = arith.constant dense<0.000000e+00> : vector<128xf32>
    %51 = vector.multi_reduction <add>, %50, %cst_34 [1] : vector<128x512xf32> to vector<128xf32>
    %52 = vector.shape_cast %51 : vector<128xf32> to vector<128x1xf32>
    %cst_35 = arith.constant 5.120000e+02 : f32
    %53 = vector.broadcast %cst_35 : f32 to vector<128x1xf32>
    %54 = arith.divf %52, %53 : vector<128x1xf32>
    %55 = arith.mulf %49, %49 : vector<128x1xf32>
    %56 = arith.subf %54, %55 : vector<128x1xf32>
    %cst_36 = arith.constant 0.000000e+00 : f32
    %57 = vector.broadcast %cst_36 : f32 to vector<128x1xf32>
    %58 = arith.maximumf %56, %57 : vector<128x1xf32>
    %59 = vector.broadcast %49 : vector<128x1xf32> to vector<128x512xf32>
    %60 = arith.subf %45, %59 : vector<128x512xf32>
    %cst_37 = arith.constant 9.99999974E-6 : f32
    %61 = vector.broadcast %cst_37 : f32 to vector<128x1xf32>
    %62 = arith.addf %58, %61 : vector<128x1xf32>
    %63 = math.rsqrt %62 : vector<128x1xf32>
    %64 = vector.broadcast %63 : vector<128x1xf32> to vector<128x512xf32>
    %65 = arith.mulf %60, %64 : vector<128x512xf32>
    %66 = arith.truncf %65 : vector<128x512xf32> to vector<128x512xbf16>
    %67 = arith.truncf %35 : vector<1x512xf32> to vector<1x512xbf16>
    %68 = vector.broadcast %67 : vector<1x512xbf16> to vector<128x512xbf16>
    %69 = arith.mulf %66, %68 : vector<128x512xbf16>
    %70 = arith.truncf %36 : vector<1x512xf32> to vector<1x512xbf16>
    %71 = vector.broadcast %70 : vector<1x512xbf16> to vector<128x512xbf16>
    %72 = arith.addf %69, %71 : vector<128x512xbf16>
    %73 = math.tanh %72 : vector<128x512xbf16>
    %cst_38 = arith.constant dense<0.000000e+00> : vector<128x128xf32>
    %74 = tpu.matmul %73, %37, %cst_38 {dimension_numbers = #tpu.dot_dimension_numbers<[1], [0], [0], [1], [0, 0, 1, 1], [], []>} : vector<128x512xbf16>, vector<512x128xbf16>, vector<128x128xf32> -> vector<128x128xf32>
    %75 = vector.broadcast %38 : vector<1x128xf32> to vector<128x128xf32>
    %76 = arith.addf %74, %75 : vector<128x128xf32>
    %cst_39 = arith.constant dense<0.000000e+00> : vector<128xf32>
    %77 = vector.multi_reduction <add>, %76, %cst_39 [1] : vector<128x128xf32> to vector<128xf32>
    %78 = vector.shape_cast %77 : vector<128xf32> to vector<128x1xf32>
    %cst_40 = arith.constant 1.280000e+02 : f32
    %79 = vector.broadcast %cst_40 : f32 to vector<128x1xf32>
    %80 = arith.divf %78, %79 : vector<128x1xf32>
    %81 = arith.mulf %76, %76 : vector<128x128xf32>
    %cst_41 = arith.constant dense<0.000000e+00> : vector<128xf32>
    %82 = vector.multi_reduction <add>, %81, %cst_41 [1] : vector<128x128xf32> to vector<128xf32>
    %83 = vector.shape_cast %82 : vector<128xf32> to vector<128x1xf32>
    %cst_42 = arith.constant 1.280000e+02 : f32
    %84 = vector.broadcast %cst_42 : f32 to vector<128x1xf32>
    %85 = arith.divf %83, %84 : vector<128x1xf32>
    %86 = arith.mulf %80, %80 : vector<128x1xf32>
    %87 = arith.subf %85, %86 : vector<128x1xf32>
    %cst_43 = arith.constant 0.000000e+00 : f32
    %88 = vector.broadcast %cst_43 : f32 to vector<128x1xf32>
    %89 = arith.maximumf %87, %88 : vector<128x1xf32>
    %90 = vector.broadcast %80 : vector<128x1xf32> to vector<128x128xf32>
    %91 = arith.subf %76, %90 : vector<128x128xf32>
    %cst_44 = arith.constant 9.99999974E-6 : f32
    %92 = vector.broadcast %cst_44 : f32 to vector<128x1xf32>
    %93 = arith.addf %89, %92 : vector<128x1xf32>
    %94 = math.rsqrt %93 : vector<128x1xf32>
    %95 = vector.broadcast %94 : vector<128x1xf32> to vector<128x128xf32>
    %96 = arith.mulf %91, %95 : vector<128x128xf32>
    %97 = vector.broadcast %39 : vector<1x128xf32> to vector<128x128xf32>
    %98 = arith.mulf %96, %97 : vector<128x128xf32>
    %99 = vector.broadcast %40 : vector<1x128xf32> to vector<128x128xf32>
    %100 = arith.addf %98, %99 : vector<128x128xf32>
    %101 = arith.addf %100, %32 : vector<128x128xf32>
    %c0_45 = arith.constant 0 : index
    %c0_46 = arith.constant 0 : index
    %102 = vector.load %arg14[%c0_45, %c0_46] : memref<128x512xbf16, #tpu.memory_space<vmem>>, vector<128x512xbf16>
    %c0_47 = arith.constant 0 : index
    %c0_48 = arith.constant 0 : index
    %103 = vector.load %arg15[%c0_47, %c0_48] : memref<1x512xf32, #tpu.memory_space<vmem>>, vector<1x512xf32>
    %c0_49 = arith.constant 0 : index
    %c0_50 = arith.constant 0 : index
    %104 = vector.load %arg16[%c0_49, %c0_50] : memref<1x512xf32, #tpu.memory_space<vmem>>, vector<1x512xf32>
    %c0_51 = arith.constant 0 : index
    %c0_52 = arith.constant 0 : index
    %105 = vector.load %arg17[%c0_51, %c0_52] : memref<1x512xf32, #tpu.memory_space<vmem>>, vector<1x512xf32>
    %c0_53 = arith.constant 0 : index
    %c0_54 = arith.constant 0 : index
    %106 = vector.load %arg18[%c0_53, %c0_54] : memref<512x128xbf16, #tpu.memory_space<vmem>>, vector<512x128xbf16>
    %c0_55 = arith.constant 0 : index
    %c0_56 = arith.constant 0 : index
    %107 = vector.load %arg19[%c0_55, %c0_56] : memref<1x128xf32, #tpu.memory_space<vmem>>, vector<1x128xf32>
    %c0_57 = arith.constant 0 : index
    %c0_58 = arith.constant 0 : index
    %108 = vector.load %arg20[%c0_57, %c0_58] : memref<1x128xf32, #tpu.memory_space<vmem>>, vector<1x128xf32>
    %c0_59 = arith.constant 0 : index
    %c0_60 = arith.constant 0 : index
    %109 = vector.load %arg21[%c0_59, %c0_60] : memref<1x128xf32, #tpu.memory_space<vmem>>, vector<1x128xf32>
    %110 = arith.truncf %101 : vector<128x128xf32> to vector<128x128xbf16>
    %111 = math.tanh %110 : vector<128x128xbf16>
    %cst_61 = arith.constant dense<0.000000e+00> : vector<128x512xf32>
    %112 = tpu.matmul %111, %102, %cst_61 {dimension_numbers = #tpu.dot_dimension_numbers<[1], [0], [0], [1], [0, 0, 1, 1], [], []>} : vector<128x128xbf16>, vector<128x512xbf16>, vector<128x512xf32> -> vector<128x512xf32>
    %113 = vector.broadcast %103 : vector<1x512xf32> to vector<128x512xf32>
    %114 = arith.addf %112, %113 : vector<128x512xf32>
    %cst_62 = arith.constant dense<0.000000e+00> : vector<128xf32>
    %115 = vector.multi_reduction <add>, %114, %cst_62 [1] : vector<128x512xf32> to vector<128xf32>
    %116 = vector.shape_cast %115 : vector<128xf32> to vector<128x1xf32>
    %cst_63 = arith.constant 5.120000e+02 : f32
    %117 = vector.broadcast %cst_63 : f32 to vector<128x1xf32>
    %118 = arith.divf %116, %117 : vector<128x1xf32>
    %119 = arith.mulf %114, %114 : vector<128x512xf32>
    %cst_64 = arith.constant dense<0.000000e+00> : vector<128xf32>
    %120 = vector.multi_reduction <add>, %119, %cst_64 [1] : vector<128x512xf32> to vector<128xf32>
    %121 = vector.shape_cast %120 : vector<128xf32> to vector<128x1xf32>
    %cst_65 = arith.constant 5.120000e+02 : f32
    %122 = vector.broadcast %cst_65 : f32 to vector<128x1xf32>
    %123 = arith.divf %121, %122 : vector<128x1xf32>
    %124 = arith.mulf %118, %118 : vector<128x1xf32>
    %125 = arith.subf %123, %124 : vector<128x1xf32>
    %cst_66 = arith.constant 0.000000e+00 : f32
    %126 = vector.broadcast %cst_66 : f32 to vector<128x1xf32>
    %127 = arith.maximumf %125, %126 : vector<128x1xf32>
    %128 = vector.broadcast %118 : vector<128x1xf32> to vector<128x512xf32>
    %129 = arith.subf %114, %128 : vector<128x512xf32>
    %cst_67 = arith.constant 9.99999974E-6 : f32
    %130 = vector.broadcast %cst_67 : f32 to vector<128x1xf32>
    %131 = arith.addf %127, %130 : vector<128x1xf32>
    %132 = math.rsqrt %131 : vector<128x1xf32>
    %133 = vector.broadcast %132 : vector<128x1xf32> to vector<128x512xf32>
    %134 = arith.mulf %129, %133 : vector<128x512xf32>
    %135 = arith.truncf %134 : vector<128x512xf32> to vector<128x512xbf16>
    %136 = arith.truncf %104 : vector<1x512xf32> to vector<1x512xbf16>
    %137 = vector.broadcast %136 : vector<1x512xbf16> to vector<128x512xbf16>
    %138 = arith.mulf %135, %137 : vector<128x512xbf16>
    %139 = arith.truncf %105 : vector<1x512xf32> to vector<1x512xbf16>
    %140 = vector.broadcast %139 : vector<1x512xbf16> to vector<128x512xbf16>
    %141 = arith.addf %138, %140 : vector<128x512xbf16>
    %142 = math.tanh %141 : vector<128x512xbf16>
    %cst_68 = arith.constant dense<0.000000e+00> : vector<128x128xf32>
    %143 = tpu.matmul %142, %106, %cst_68 {dimension_numbers = #tpu.dot_dimension_numbers<[1], [0], [0], [1], [0, 0, 1, 1], [], []>} : vector<128x512xbf16>, vector<512x128xbf16>, vector<128x128xf32> -> vector<128x128xf32>
    %144 = vector.broadcast %107 : vector<1x128xf32> to vector<128x128xf32>
    %145 = arith.addf %143, %144 : vector<128x128xf32>
    %cst_69 = arith.constant dense<0.000000e+00> : vector<128xf32>
    %146 = vector.multi_reduction <add>, %145, %cst_69 [1] : vector<128x128xf32> to vector<128xf32>
    %147 = vector.shape_cast %146 : vector<128xf32> to vector<128x1xf32>
    %cst_70 = arith.constant 1.280000e+02 : f32
    %148 = vector.broadcast %cst_70 : f32 to vector<128x1xf32>
    %149 = arith.divf %147, %148 : vector<128x1xf32>
    %150 = arith.mulf %145, %145 : vector<128x128xf32>
    %cst_71 = arith.constant dense<0.000000e+00> : vector<128xf32>
    %151 = vector.multi_reduction <add>, %150, %cst_71 [1] : vector<128x128xf32> to vector<128xf32>
    %152 = vector.shape_cast %151 : vector<128xf32> to vector<128x1xf32>
    %cst_72 = arith.constant 1.280000e+02 : f32
    %153 = vector.broadcast %cst_72 : f32 to vector<128x1xf32>
    %154 = arith.divf %152, %153 : vector<128x1xf32>
    %155 = arith.mulf %149, %149 : vector<128x1xf32>
    %156 = arith.subf %154, %155 : vector<128x1xf32>
    %cst_73 = arith.constant 0.000000e+00 : f32
    %157 = vector.broadcast %cst_73 : f32 to vector<128x1xf32>
    %158 = arith.maximumf %156, %157 : vector<128x1xf32>
    %159 = vector.broadcast %149 : vector<128x1xf32> to vector<128x128xf32>
    %160 = arith.subf %145, %159 : vector<128x128xf32>
    %cst_74 = arith.constant 9.99999974E-6 : f32
    %161 = vector.broadcast %cst_74 : f32 to vector<128x1xf32>
    %162 = arith.addf %158, %161 : vector<128x1xf32>
    %163 = math.rsqrt %162 : vector<128x1xf32>
    %164 = vector.broadcast %163 : vector<128x1xf32> to vector<128x128xf32>
    %165 = arith.mulf %160, %164 : vector<128x128xf32>
    %166 = vector.broadcast %108 : vector<1x128xf32> to vector<128x128xf32>
    %167 = arith.mulf %165, %166 : vector<128x128xf32>
    %168 = vector.broadcast %109 : vector<1x128xf32> to vector<128x128xf32>
    %169 = arith.addf %167, %168 : vector<128x128xf32>
    %170 = arith.addf %169, %101 : vector<128x128xf32>
    %171 = arith.truncf %170 : vector<128x128xf32> to vector<128x128xbf16>
    %172 = math.tanh %171 : vector<128x128xbf16>
    %c0_75 = arith.constant 0 : index
    %c0_76 = arith.constant 0 : index
    %173 = vector.load %arg22[%c0_75, %c0_76] : memref<128x12xbf16, #tpu.memory_space<vmem>>, vector<128x12xbf16>
    %cst_77 = arith.constant dense<0.000000e+00> : vector<128x12xf32>
    %174 = tpu.matmul %172, %173, %cst_77 {dimension_numbers = #tpu.dot_dimension_numbers<[1], [0], [0], [1], [0, 0, 1, 1], [], []>} : vector<128x128xbf16>, vector<128x12xbf16>, vector<128x12xf32> -> vector<128x12xf32>
    %c0_78 = arith.constant 0 : index
    %c0_79 = arith.constant 0 : index
    %175 = vector.load %arg23[%c0_78, %c0_79] : memref<1x12xf32, #tpu.memory_space<vmem>>, vector<1x12xf32>
    %176 = vector.broadcast %175 : vector<1x12xf32> to vector<128x12xf32>
    %177 = arith.addf %174, %176 : vector<128x12xf32>
    %c0_80 = arith.constant 0 : index
    %c0_81 = arith.constant 0 : index
    %178 = vector.load %arg24[%c0_80, %c0_81] : memref<128x12xf32, #tpu.memory_space<vmem>>, vector<128x12xf32>
    tpu.vector_store %arg24[%c0_80, %c0_81], %177 {strides = array<i32>} : memref<128x12xf32, #tpu.memory_space<vmem>>, vector<128x12xf32>,
    return
  }
  func.func @transform_0(%arg0: i32) -> (i32, i32) {
    %c0_i32 = arith.constant 0 : i32
    %c0_i32_0 = arith.constant 0 : i32
    return %arg0, %c0_i32 : i32, i32
  }
  func.func @transform_1(%arg0: i32) -> (i32, i32) {
    %c0_i32 = arith.constant 0 : i32
    %c0_i32_0 = arith.constant 0 : i32
    %c0_i32_1 = arith.constant 0 : i32
    return %c0_i32, %c0_i32_0 : i32, i32
  }
  func.func @transform_2(%arg0: i32) -> (i32, i32) {
    %c0_i32 = arith.constant 0 : i32
    %c0_i32_0 = arith.constant 0 : i32
    %c0_i32_1 = arith.constant 0 : i32
    return %c0_i32, %c0_i32_0 : i32, i32
  }
  func.func @transform_3(%arg0: i32) -> (i32, i32) {
    %c0_i32 = arith.constant 0 : i32
    %c0_i32_0 = arith.constant 0 : i32
    %c0_i32_1 = arith.constant 0 : i32
    return %c0_i32, %c0_i32_0 : i32, i32
  }
  func.func @transform_4(%arg0: i32) -> (i32, i32) {
    %c0_i32 = arith.constant 0 : i32
    %c0_i32_0 = arith.constant 0 : i32
    %c0_i32_1 = arith.constant 0 : i32
    return %c0_i32, %c0_i32_0 : i32, i32
  }
  func.func @transform_5(%arg0: i32) -> (i32, i32) {
    %c0_i32 = arith.constant 0 : i32
    %c0_i32_0 = arith.constant 0 : i32
    %c0_i32_1 = arith.constant 0 : i32
    return %c0_i32, %c0_i32_0 : i32, i32
  }
  func.func @transform_6(%arg0: i32) -> (i32, i32) {
    %c0_i32 = arith.constant 0 : i32
    %c0_i32_0 = arith.constant 0 : i32
    %c0_i32_1 = arith.constant 0 : i32
    return %c0_i32, %c0_i32_0 : i32, i32
  }
  func.func @transform_7(%arg0: i32) -> (i32, i32) {
    %c0_i32 = arith.constant 0 : i32
    %c0_i32_0 = arith.constant 0 : i32
    %c0_i32_1 = arith.constant 0 : i32
    return %c0_i32, %c0_i32_0 : i32, i32
  }
  func.func @transform_8(%arg0: i32) -> (i32, i32) {
    %c0_i32 = arith.constant 0 : i32
    %c0_i32_0 = arith.constant 0 : i32
    %c0_i32_1 = arith.constant 0 : i32
    return %c0_i32, %c0_i32_0 : i32, i32
  }
  func.func @transform_9(%arg0: i32) -> (i32, i32) {
    %c0_i32 = arith.constant 0 : i32
    %c0_i32_0 = arith.constant 0 : i32
    %c0_i32_1 = arith.constant 0 : i32
    return %c0_i32, %c0_i32_0 : i32, i32
  }
  func.func @transform_10(%arg0: i32) -> (i32, i32) {
    %c0_i32 = arith.constant 0 : i32
    %c0_i32_0 = arith.constant 0 : i32
    %c0_i32_1 = arith.constant 0 : i32
    return %c0_i32, %c0_i32_0 : i32, i32
  }
  func.func @transform_11(%arg0: i32) -> (i32, i32) {
    %c0_i32 = arith.constant 0 : i32
    %c0_i32_0 = arith.constant 0 : i32
    %c0_i32_1 = arith.constant 0 : i32
    return %c0_i32, %c0_i32_0 : i32, i32
  }
  func.func @transform_12(%arg0: i32) -> (i32, i32) {
    %c0_i32 = arith.constant 0 : i32
    %c0_i32_0 = arith.constant 0 : i32
    %c0_i32_1 = arith.constant 0 : i32
    return %c0_i32, %c0_i32_0 : i32, i32
  }
  func.func @transform_13(%arg0: i32) -> (i32, i32) {
    %c0_i32 = arith.constant 0 : i32
    %c0_i32_0 = arith.constant 0 : i32
    %c0_i32_1 = arith.constant 0 : i32
    return %c0_i32, %c0_i32_0 : i32, i32
  }
  func.func @transform_14(%arg0: i32) -> (i32, i32) {
    %c0_i32 = arith.constant 0 : i32
    %c0_i32_0 = arith.constant 0 : i32
    %c0_i32_1 = arith.constant 0 : i32
    return %c0_i32, %c0_i32_0 : i32, i32
  }
  func.func @transform_15(%arg0: i32) -> (i32, i32) {
    %c0_i32 = arith.constant 0 : i32
    %c0_i32_0 = arith.constant 0 : i32
    %c0_i32_1 = arith.constant 0 : i32
    return %c0_i32, %c0_i32_0 : i32, i32
  }
  func.func @transform_16(%arg0: i32) -> (i32, i32) {
    %c0_i32 = arith.constant 0 : i32
    %c0_i32_0 = arith.constant 0 : i32
    %c0_i32_1 = arith.constant 0 : i32
    return %c0_i32, %c0_i32_0 : i32, i32
  }
  func.func @transform_17(%arg0: i32) -> (i32, i32) {
    %c0_i32 = arith.constant 0 : i32
    %c0_i32_0 = arith.constant 0 : i32
    %c0_i32_1 = arith.constant 0 : i32
    return %c0_i32, %c0_i32_0 : i32, i32
  }
  func.func @transform_18(%arg0: i32) -> (i32, i32) {
    %c0_i32 = arith.constant 0 : i32
    %c0_i32_0 = arith.constant 0 : i32
    %c0_i32_1 = arith.constant 0 : i32
    return %c0_i32, %c0_i32_0 : i32, i32
  }
  func.func @transform_19(%arg0: i32) -> (i32, i32) {
    %c0_i32 = arith.constant 0 : i32
    %c0_i32_0 = arith.constant 0 : i32
    %c0_i32_1 = arith.constant 0 : i32
    return %c0_i32, %c0_i32_0 : i32, i32
  }
  func.func @transform_20(%arg0: i32) -> (i32, i32) {
    %c0_i32 = arith.constant 0 : i32
    %c0_i32_0 = arith.constant 0 : i32
    %c0_i32_1 = arith.constant 0 : i32
    return %c0_i32, %c0_i32_0 : i32, i32
  }
  func.func @transform_21(%arg0: i32) -> (i32, i32) {
    %c0_i32 = arith.constant 0 : i32
    %c0_i32_0 = arith.constant 0 : i32
    %c0_i32_1 = arith.constant 0 : i32
    return %c0_i32, %c0_i32_0 : i32, i32
  }
  func.func @transform_22(%arg0: i32) -> (i32, i32) {
    %c0_i32 = arith.constant 0 : i32
    %c0_i32_0 = arith.constant 0 : i32
    %c0_i32_1 = arith.constant 0 : i32
    return %c0_i32, %c0_i32_0 : i32, i32
  }
  func.func @transform_23(%arg0: i32) -> (i32, i32) {
    %c0_i32 = arith.constant 0 : i32
    %c0_i32_0 = arith.constant 0 : i32
    return %arg0, %c0_i32 : i32, i32
  }
}

</mosaic_0001>

<bundles_post_ra>
// kernel: multi_physics_pinn_forward.1
= control target key start
LH: loop header
LB: loop body
LE: loop exit
PB: predicated region body
PF: predicated region fallthrough
CT: control target
= control target key end

     0   :  { %s12626_s0 = inlined_call_operand.vmem [shape: f32[512,8], index: 0, kind: input, shape index: {}]   ;;  %s12627_s1 = inlined_call_operand.vmem [shape: bf16[8,128], index: 1, kind: input, shape index: {}]   ;;  %s12628_s2 = inlined_call_operand.vmem [shape: f32[1,128], index: 2, kind: input, shape index: {}]   ;;  %s12629_s3 = inlined_call_operand.vmem [shape: f32[1,128], index: 3, kind: input, shape index: {}]   ;;  %s12630_s4 = inlined_call_operand.vmem [shape: f32[1,128], index: 4, kind: input, shape index: {}]   ;;  %s12631_s5 = inlined_call_operand.vmem [shape: bf16[128,512], index: 5, kind: input, shape index: {}]   ;;  %s12632_s6 = inlined_call_operand.vmem [shape: f32[1,512], index: 6, kind: input, shape index: {}]   ;;  %s12633_s7 = inlined_call_operand.vmem [shape: f32[1,512], index: 7, kind: input, shape index: {}]   ;;  %s12634_s8 = inlined_call_operand.vmem [shape: f32[1,512], index: 8, kind: input, shape index: {}]   ;;  %s12635_s9 = inlined_call_operand.vmem [shape: bf16[512,128], index: 9, kind: input, shape index: {}]   ;;  %s12636_s10 = inlined_call_operand.vmem [shape: f32[1,128], index: 10, kind: input, shape index: {}]   ;;  %s12637_s11 = inlined_call_operand.vmem [shape: f32[1,128], index: 11, kind: input, shape index: {}]   ;;  %s12638_s12 = inlined_call_operand.vmem [shape: f32[1,128], index: 12, kind: input, shape index: {}]   ;;  %s12639_s13 = inlined_call_operand.vmem [shape: bf16[128,512], index: 13, kind: input, shape index: {}]   ;;  %s12640_s14 = inlined_call_operand.vmem [shape: f32[1,512], index: 14, kind: input, shape index: {}]   ;;  %s12641_s15 = inlined_call_operand.vmem [shape: f32[1,512], index: 15, kind: input, shape index: {}]   ;;  %s12642_s16 = inlined_call_operand.vmem [shape: f32[1,512], index: 16, kind: input, shape index: {}]   ;;  %s12643_s17 = inlined_call_operand.vmem [shape: bf16[512,128], index: 17, kind: input, shape index: {}]   ;;  %s12644_s18 = inlined_call_operand.vmem [shape: f32[1,128], index: 18, kind: input, shape index: {}]   ;;  %s12645_s19 = inlined_call_operand.vmem [shape: f32[1,128], index: 19, kind: input, shape index: {}]   ;;  %s12646_s20 = inlined_call_operand.vmem [shape: f32[1,128], index: 20, kind: input, shape index: {}]   ;;  %s12647_s21 = inlined_call_operand.vmem [shape: bf16[128,12], index: 21, kind: input, shape index: {}]   ;;  %s12648_s22 = inlined_call_operand.vmem [shape: f32[1,12], index: 22, kind: input, shape index: {}]   ;;  %s12649_s23 = inlined_call_operand.vmem [shape: f32[512,12], index: 23, kind: output, shape index: {}]  }
   0x1   :  { %12816 = sst [smem:[#allocation53_spill]] %s12626_s0 }
   0x2   :  { %12817 = sst [smem:[#allocation54_spill]] %s12627_s1 }
   0x3   :  { %12818 = sst [smem:[#allocation55_spill]] %s12628_s2 }
   0x4   :  { %12819 = sst [smem:[#allocation56_spill]] %s12629_s3 }
   0x5   :  { %12820 = sst [smem:[#allocation57_spill]] %s12630_s4  ;;  %s7924_s4 = smov 0  }
   0x6   :  { %12821 = sst [smem:[#allocation58_spill]] %s12631_s5 }
   0x7   :  { %12822 = sst [smem:[#allocation59_spill]] %s12632_s6 }
   0x8   :  { %12823 = sst [smem:[#allocation60_spill]] %s12633_s7 }
   0x9 LB: > { %s6542_s30 = sadd.s32 4294967295, %s7800_s4   ;;  %p6546_p0 = scmp.ge.s32.totalorder %s7800_s4, 1  ;;  %s7800_s4 = sphi %s7924_s4, %s33_s4  }
   0xa   : > { %p638_p1 = scmp.lt.s32.totalorder %s7800_s4, 5 }
   0xc   : > { %p639_p2 = pnand %p6546_p0, %p638_p1 }
   0xe   : > { %642 = sbr.rel (%p639_p2) target bundleno = 2111 (0x83f), region = 112 }
  0x13   : > { %s12824_s5 = sld [smem:[#allocation54_spill]]  ;;  %vm769_vm0 = vcmask 1043456   ;;  %s6547_s1 = sshll.u32 %s6542_s30, 4  ;;  %vm744_vm1 = vcmask 64512  }
  0x14   : > { %p703_p3 = scmp.lt.s32.totalorder %s6547_s1, 63  ;;  %s12825_s27 = sld [smem:[#allocation53_spill]] }
  0x15   : > { %s12826_s3 = sld [smem:[#allocation55_spill]] }
  0x16   : > { %s13173_s1 = smov (!%p703_p3, %s6547_s1), 63  ;;  %s12827_s24 = sld [smem:[#allocation58_spill]] }
  0x17   : > { %s6548_s26 = sshll.u32 %s13173_s1, 3  ;;  %s12829_s30 = sld [smem:[#allocation56_spill]] }
  0x18   : > { %s12830_s2 = sld [smem:[#allocation57_spill]] }
  0x19   : > { %v739_v0 = vld [vmem:[%s12824_s5] sm:$0xf]  ;;  %s12888_s25 = sld [smem:[#allocation60_spill]] }
  0x1a   : > { %v771_v1 = vsel %vm769_vm0, %v739_v0, 0  ;;  %s7943_s7 = scalar_lea.vmem %s12825_s27, %s6548_s26 }
  0x1b   : > { %780 = vmatpush.bf16.msra.mxu0 %v771_v1  ;;  %7241 = vmatpush.bf16.msra.mxu3 %v771_v1  ;;  %v715_v2 = vld [vmem:[%s7943_s7] sm:$0xff]  ;;  %v716_v3 = vld [vmem:[%s7943_s7 + $0x8] sm:$0xff]  ;;  %v725_v5 = vld [vmem:[%s7943_s7 + $0x50] sm:$0xff] }
  0x1c   : > { %v731_v4 = vpack.c.bf16 %v716_v3, %v715_v2  ;;  %v726_v6 = vld [vmem:[%s7943_s7 + $0x58] sm:$0xff]  ;;  %v717_v8 = vld [vmem:[%s7943_s7 + $0x10] sm:$0xff]  ;;  %v727_v10 = vld [vmem:[%s7943_s7 + $0x60] sm:$0xff] }
  0x1d   : > { %v736_v7 = vpack.c.bf16 %v726_v6, %v725_v5  ;;  %v718_v9 = vld [vmem:[%s7943_s7 + $0x18] sm:$0xff]  ;;  %v728_v11 = vld [vmem:[%s7943_s7 + $0x68] sm:$0xff]  ;;  %v719_v14 = vld [vmem:[%s7943_s7 + $0x20] sm:$0xff] }
  0x1e   : > { %6551 = vmatmul.msk.bf16.vlgmr.msra.gmra.mxu0 %vm744_vm1, %v731_v4  ;;  %v732_v12 = vpack.c.bf16 %v718_v9, %v717_v8  ;;  %v737_v13 = vpack.c.bf16 %v728_v11, %v727_v10  ;;  %v720_v15 = vld [vmem:[%s7943_s7 + $0x28] sm:$0xff]  ;;  %v729_v17 = vld [vmem:[%s7943_s7 + $0x70] sm:$0xff]  ;;  %v730_v18 = vld [vmem:[%s7943_s7 + $0x78] sm:$0xff]  ;;  %v7802_v11 = vmov 128.0  }
  0x1f   : > { %6556 = vmatmul.msk.bf16.vlgmr.msra.gmra.mxu3 %vm744_vm1, %v736_v7  ;;  %v733_v16 = vpack.c.bf16 %v720_v15, %v719_v14  ;;  %v738_v19 = vpack.c.bf16 %v730_v18, %v729_v17  ;;  %v721_v20 = vld [vmem:[%s7943_s7 + $0x30] sm:$0xff]  ;;  %v722_v21 = vld [vmem:[%s7943_s7 + $0x38] sm:$0xff]  ;;  %v723_v23 = vld [vmem:[%s7943_s7 + $0x40] sm:$0xff]  ;;  %7278 = vrcp.f32 %v7802_v11 }
  0x20   : > { %v734_v22 = vpack.c.bf16 %v722_v21, %v721_v20  ;;  %v724_v24 = vld [vmem:[%s7943_s7 + $0x48] sm:$0xff]  ;;  %v7980_v30 = vld [vmem:[%s12826_s3] ss:$0 sm:$0xff]  ;;  %v7135_v17 = vld [vmem:[%s12827_s24 + $0xec] sm:$0xf0]  ;;  %s12589_s7 = scalar_lea.vmem %s12649_s23, %s6548_s26 }
  0x21   : > { %v735_v25 = vpack.c.bf16 %v724_v24, %v723_v23  ;;  %v6657_v20 = vld [vmem:[%s12827_s24 + $0xc0] sm:$0xf]  ;;  %v7131_v21 = vld [vmem:[%s12827_s24 + $0xcc] sm:$0xf0] }
  0x22   : > { %v6641_v24 = vld [vmem:[%s12827_s24 + $0xa0] sm:$0xf] }
  0x2e   : > { %6552 = vmatmul.msk.bf16.gmra.mxu0 %vm744_vm1, %v732_v12  ;;  %v7279_v12 = vpop.eup %7278 }
  0x2f   : > { %6557 = vmatmul.msk.bf16.gmra.mxu3 %vm744_vm1, %v737_v13  ;;  %v857_v13 = vmul.f32 128.0, %v7279_v12  ;;  %vm861_vm2 = vweird.f32 %v7279_v12 }
  0x31   : > { %v858_v14 = vsub.f32 1.0, %v857_v13 }
  0x33   : > { %v859_v15 = vmul.f32 %v7279_v12, %v858_v14 }
  0x3e   : > { %6553 = vmatmul.msk.bf16.gmra.mxu0 %vm744_vm1, %v733_v16  ;;  %v6673_v16 = vld [vmem:[%s12827_s24 + $0xe0] sm:$0xf] }
  0x3f   : > { %6558 = vmatmul.msk.bf16.gmra.mxu3 %vm744_vm1, %v738_v19  ;;  %v6674_v18 = vor.u32 %v7135_v17, %v6673_v16  ;;  %v860_v19 = vadd.f32 %v7279_v12, %v859_v15  ;;  %v6561_v15 = vld [vmem:[%s12827_s24] sm:$0xf]  ;;  %v7107_v16 = vld [vmem:[%s12827_s24 + $0xc] sm:$0xf0] }
  0x41   : > { %7242 = vmatpush.bf16.msra.mxu2 %v6674_v18  ;;  %7243 = vmatpush.bf16.msrb.mxu3 %v6674_v18  ;;  %v8094_v23 = vsel %vm861_vm2, %v7279_v12, %v860_v19 }
  0x42   : > { %1556 = vmatpush.bf16.msra.mxu1 %v6674_v18  ;;  %12828 = vst [vmem:[#allocation2_spill] sm:$0xff] %v8094_v23  ;;  %v6562_v18 = vor.u32 %v7107_v16, %v6561_v15 }
  0x4e   : > { %6554 = vmatmul.msk.bf16.gmra.mxu0 %vm744_vm1, %v734_v22  ;;  %v6658_v22 = vor.u32 %v7131_v21, %v6657_v20 }
  0x50   : > { %7244 = vmatpush.bf16.msra.mxu2 %v6658_v22  ;;  %7245 = vmatpush.bf16.msrb.mxu3 %v6658_v22 }
  0x51   : > { %1557 = vmatpush.bf16.msra.mxu1 %v6658_v22 }
  0x5e   : > { %6555 = vmatmul.msk.bf16.gmra.mxu0 %vm744_vm1, %v735_v25  ;;  %v7127_v25 = vld [vmem:[%s12827_s24 + $0xac] sm:$0xf0] }
  0x9b   : > { %v7969_v26 = vpop.f32.mrf.mxu0 }
  0x9c   : > { %v8056_v3 = vadd.f32 %v7980_v30, %v7969_v26 }
  0x9e   : > { %v879_v5 = vmul.f32 %v8056_v3, %v8056_v3 }
  0xa2   : > { %v807_v32 = vpop.f32.mrf.mxu3 }
  0xa3   : > { %v7971_v27 = vpop.f32.mrf.mxu0  ;;  %v8028_v57 = vadd.f32 %v7980_v30, %v807_v32  ;;  %v6625_v32 = vld [vmem:[%s12827_s24 + $0x80] sm:$0xf] }
  0xa4   : > { %v8060_v4 = vadd.f32 %v7980_v30, %v7971_v27  ;;  %v6642_v27 = vor.u32 %v7127_v25, %v6641_v24 }
  0xa5   : > { %v889_v63 = vmul.f32 %v8028_v57, %v8028_v57 }
  0xa6   : > { %v880_v7 = vmul.f32 %v8060_v4, %v8060_v4  ;;  %7246 = vmatpush.bf16.msra.mxu2 %v6642_v27  ;;  %7247 = vmatpush.bf16.msrb.mxu3 %v6642_v27 }
  0xa7   : > { %1558 = vmatpush.bf16.msra.mxu1 %v6642_v27 }
  0xaa   : > { %v809_v37 = vpop.f32.mrf.mxu3 }
  0xab   : > { %v7973_v28 = vpop.f32.mrf.mxu0  ;;  %v8035_v60 = vadd.f32 %v7980_v30, %v809_v37 }
  0xac   : > { %v8068_v6 = vadd.f32 %v7980_v30, %v7973_v28 }
  0xad   : > { %v890_v0 = vmul.f32 %v8035_v60, %v8035_v60 }
  0xae   : > { %v881_v10 = vmul.f32 %v8068_v6, %v8068_v6 }
  0xb2   : > { %v812_v42 = vpop.f32.mrf.mxu3 }
  0xb3   : > { %v7975_v29 = vpop.f32.mrf.mxu0  ;;  %v8013_v50 = vadd.f32 %v7980_v30, %v812_v42 }
  0xb4   : > { %v8075_v8 = vadd.f32 %v7980_v30, %v7975_v29 }
  0xb5   : > { %v891_v54 = vmul.f32 %v8013_v50, %v8013_v50 }
  0xb6   : > { %v882_v9 = vmul.f32 %v8075_v8, %v8075_v8 }
  0xba   : > { %v814_v46 = vpop.f32.mrf.mxu3 }
  0xbb   : > { %v792_v31 = vpop.f32.mrf.mxu0  ;;  %v8007_v48 = vadd.f32 %v7980_v30, %v814_v46 }
  0xbc   : > { %v7983_v33 = vadd.f32 %v7980_v30, %v792_v31 }
  0xbd   : > { %v892_v58 = vmul.f32 %v8007_v48, %v8007_v48 }
  0xbe   : > { %832 = vadd.xlane.f32.xlu0 %v7983_v33  ;;  %v883_v34 = vmul.f32 %v7983_v33, %v7983_v33 }
  0xc0   : > { %903 = vadd.xlane.f32.xlu1 %v883_v34  ;;  %v7123_v34 = vld [vmem:[%s12827_s24 + $0x8c] sm:$0xf0] }
  0xc2   : > { %v817_v56 = vpop.f32.mrf.mxu3 }
  0xc3   : > { %v794_v35 = vpop.f32.mrf.mxu0  ;;  %v8038_v61 = vadd.f32 %v7980_v30, %v817_v56 }
  0xc4   : > { %v7989_v36 = vadd.f32 %v7980_v30, %v794_v35  ;;  %v6626_v35 = vor.u32 %v7123_v34, %v6625_v32 }
  0xc5   : > { %v893_v1 = vmul.f32 %v8038_v61, %v8038_v61 }
  0xc6   : > { %834 = vadd.xlane.f32.xlu0 %v7989_v36  ;;  %v884_v38 = vmul.f32 %v7989_v36, %v7989_v36  ;;  %7248 = vmatpush.bf16.msra.mxu2 %v6626_v35 }
  0xc7   : > { %7249 = vmatpush.bf16.msrb.mxu3 %v6626_v35  ;;  %1559 = vmatpush.bf16.msra.mxu1 %v6626_v35 }
  0xc8   : > { %905 = vadd.xlane.f32.xlu1 %v884_v38 }
  0xca   : > { %v819_v59 = vpop.f32.mrf.mxu3 }
  0xcb   : > { %v797_v39 = vpop.f32.mrf.mxu0  ;;  %v8041_v62 = vadd.f32 %v7980_v30, %v819_v59 }
  0xcc   : > { %v7995_v40 = vadd.f32 %v7980_v30, %v797_v39  ;;  %v6609_v39 = vld [vmem:[%s12827_s24 + $0x60] sm:$0xf] }
  0xcd   : > { %v894_v2 = vmul.f32 %v8041_v62, %v8041_v62 }
  0xce   : > { %836 = vadd.xlane.f32.xlu2 %v7995_v40  ;;  %v885_v41 = vmul.f32 %v7995_v40, %v7995_v40 }
  0xd0   : > { %907 = vadd.xlane.f32.xlu0 %v885_v41  ;;  %v7119_v41 = vld [vmem:[%s12827_s24 + $0x6c] sm:$0xf0] }
  0xd3   : > { %v799_v43 = vpop.f32.mrf.mxu0 }
  0xd4   : > { %v8001_v44 = vadd.f32 %v7980_v30, %v799_v43  ;;  %v6610_v43 = vor.u32 %v7119_v41, %v6609_v39 }
  0xd6   : > { %838 = vadd.xlane.f32.xlu2 %v8001_v44  ;;  %v886_v45 = vmul.f32 %v8001_v44, %v8001_v44  ;;  %7250 = vmatpush.bf16.msra.mxu2 %v6610_v43 }
  0xd7   : > { %7251 = vmatpush.bf16.msrb.mxu3 %v6610_v43  ;;  %1560 = vmatpush.bf16.msra.mxu1 %v6610_v43 }
  0xd8   : > { %909 = vadd.xlane.f32.xlu1 %v886_v45 }
  0xdb   : > { %v802_v47 = vpop.f32.mrf.mxu0 }
  0xdc   : > { %v8010_v49 = vadd.f32 %v7980_v30, %v802_v47 }
  0xde   : > { %850 = vadd.xlane.f32.xlu2 %v8007_v48  ;;  %v887_v51 = vmul.f32 %v8010_v49, %v8010_v49 }
  0xe0   : > { %911 = vadd.xlane.f32.xlu0 %v887_v51  ;;  %848 = vadd.xlane.f32.xlu1 %v8013_v50 }
  0xe3   : > { %v804_v52 = vpop.f32.mrf.mxu0 }
  0xe4   : > { %v8020_v53 = vadd.f32 %v7980_v30, %v804_v52  ;;  %v6593_v52 = vld [vmem:[%s12827_s24 + $0x40] sm:$0xf] }
  0xe6   : > { %919 = vadd.xlane.f32.xlu2 %v891_v54  ;;  %v888_v55 = vmul.f32 %v8020_v53, %v8020_v53  ;;  %v7115_v54 = vld [vmem:[%s12827_s24 + $0x4c] sm:$0xf0] }
  0xe7   : > { %v6594_v56 = vor.u32 %v7115_v54, %v6593_v52 }
  0xe8   : > { %842 = vadd.xlane.f32.xlu0 %v8020_v53  ;;  %913 = vadd.xlane.f32.xlu1 %v888_v55 }
  0xe9   : > { %7252 = vmatpush.bf16.msra.mxu2 %v6594_v56  ;;  %7253 = vmatpush.bf16.msrb.mxu3 %v6594_v56 }
  0xea   : > { %1561 = vmatpush.bf16.msra.mxu1 %v6594_v56 }
  0xee   : > { %840 = vadd.xlane.f32.xlu2 %v8010_v49 }
  0xf0   : > { %921 = vadd.xlane.f32.xlu0 %v892_v58  ;;  %844 = vadd.xlane.f32.xlu1 %v8028_v57 }
  0xf6   : > { %846 = vadd.xlane.f32.xlu2 %v8035_v60 }
  0xf8   : > { %852 = vadd.xlane.f32.xlu0 %v8038_v61  ;;  %854 = vadd.xlane.f32.xlu1 %v8041_v62 }
  0xfe   : > { %915 = vadd.xlane.f32.xlu2 %v889_v63 }
 0x100   : > { %917 = vadd.xlane.f32.xlu0 %v890_v0  ;;  %923 = vadd.xlane.f32.xlu1 %v893_v1  ;;  %v6577_v0 = vld [vmem:[%s12827_s24 + $0x20] sm:$0xf]  ;;  %v7111_v1 = vld [vmem:[%s12827_s24 + $0x2c] sm:$0xf0] }
 0x106   : > { %925 = vadd.xlane.f32.xlu2 %v894_v2 }
 0x108   : > { %826 = vadd.xlane.f32.xlu1 %v8060_v4  ;;  %824 = vadd.xlane.f32.xlu0 %v8056_v3 }
 0x10e   : > { %895 = vadd.xlane.f32.xlu2 %v879_v5 }
 0x110   : > { %828 = vadd.xlane.f32.xlu1 %v8068_v6  ;;  %897 = vadd.xlane.f32.xlu0 %v880_v7  ;;  %v6578_v7 = vor.u32 %v7111_v1, %v6577_v0  ;;  %v8179_v0 = vld [vmem:[%s12830_s2] ss:$0 sm:$0xff]  ;;  %s12859_s2 = sld [smem:[#allocation59_spill]] }
 0x112   : > { %7254 = vmatpush.bf16.msra.mxu2 %v6578_v7  ;;  %7255 = vmatpush.bf16.msrb.mxu3 %v6578_v7 }
 0x113   : > { %1562 = vmatpush.bf16.msra.mxu1 %v6578_v7 }
 0x116   : > { %830 = vadd.xlane.f32.xlu2 %v8075_v8  ;;  %7256 = vmatpush.bf16.msra.mxu2 %v6562_v18 }
 0x117   : > { %7257 = vmatpush.bf16.msrb.mxu3 %v6562_v18  ;;  %1563 = vmatpush.bf16.msra.mxu1 %v6562_v18 }
 0x118   : > { %901 = vadd.xlane.f32.xlu1 %v882_v9  ;;  %899 = vadd.xlane.f32.xlu0 %v881_v10 }
 0x131   : > { %v833_v26 = vpop.xlane.xlu0 %832 }
 0x132   : > { %v8103_v28 = vmul.f32 %v8094_v23, %v833_v26 }
 0x133   : > { %v904_v29 = vpop.xlane.xlu1 %903 }
 0x134   : > { %v947_v30 = vmul.f32 %v8103_v28, %v8103_v28  ;;  %v931_v31 = vmul.f32 %v904_v29, %v8094_v23  ;;  %v995_v39 = vsub.f32 %v7983_v33, %v8103_v28 }
 0x136   : > { %v963_v37 = vsub.f32 %v931_v31, %v947_v30 }
 0x138   : > { %v979_v38 = vmax.f32 %v963_v37, 0.0 }
 0x139   : > { %v835_v42 = vpop.xlane.xlu0 %834 }
 0x13a   : > { %v1011_v45 = vadd.f32 1e-05, %v979_v38  ;;  %v8121_v46 = vmul.f32 %v8094_v23, %v835_v42 }
 0x13b   : > { %v906_v47 = vpop.xlane.xlu1 %905 }
 0x13c   : > { %7280 = vrsqrt.f32 %v1011_v45  ;;  %v948_v51 = vmul.f32 %v8121_v46, %v8121_v46  ;;  %v932_v55 = vmul.f32 %v906_v47, %v8094_v23  ;;  %vm1069_vm4 = vweird.f32 %v1011_v45 }
 0x13d   : > { %v996_v33 = vsub.f32 %v7989_v36, %v8121_v46 }
 0x13e   : > { %v964_v58 = vsub.f32 %v932_v55, %v948_v51  ;;  %v8166_v51 = vld [vmem:[%s12829_s30] ss:$0 sm:$0xff] }
 0x140   : > { %v980_v59 = vmax.f32 %v964_v58, 0.0 }
 0x141   : > { %v837_v63 = vpop.xlane.xlu2 %836 }
 0x142   : > { %v7281_v2 = vpop.eup %7280  ;;  %v8139_v5 = vmul.f32 %v8094_v23, %v837_v63  ;;  %v1012_v10 = vadd.f32 1e-05, %v980_v59 }
 0x143   : > { %v1064_v9 = vmul.f32 %v7281_v2, %v1011_v45  ;;  %v908_v11 = vpop.xlane.xlu0 %907  ;;  %vm1070_vm3 = vweird.f32 %v7281_v2 }
 0x144   : > { %v949_v12 = vmul.f32 %v8139_v5, %v8139_v5  ;;  %v933_v13 = vmul.f32 %v908_v11, %v8094_v23  ;;  %7282 = vrsqrt.f32 %v1012_v10  ;;  %vm1071_vm5 = vmor %vm1069_vm4, %vm1070_vm3  ;;  %vm1079_vm7 = vweird.f32 %v1012_v10 }
 0x145   : > { %v1065_v14 = vmul.f32 %v7281_v2, %v1064_v9 }
 0x146   : > { %v965_v17 = vsub.f32 %v933_v13, %v949_v12 }
 0x147   : > { %v1066_v19 = vmul.f32 0.5, %v1065_v14 }
 0x148   : > { %v981_v20 = vmax.f32 %v965_v17, 0.0 }
 0x149   : > { %v1067_v21 = vsub.f32 1.5, %v1066_v19  ;;  %v839_v22 = vpop.xlane.xlu2 %838 }
 0x14a   : > { %v8150_v24 = vadd.f32 1e-05, %v981_v20  ;;  %v8153_v25 = vmul.f32 %v8094_v23, %v839_v22  ;;  %v7283_v26 = vpop.eup %7282 }
 0x14b   : > { %v910_v27 = vpop.xlane.xlu1 %909  ;;  %v1068_v29 = vmul.f32 %v7281_v2, %v1067_v21  ;;  %v1074_v30 = vmul.f32 %v7283_v26, %v1012_v10  ;;  %vm1080_vm6 = vweird.f32 %v7283_v26 }
 0x14c   : > { %7284 = vrsqrt.f32 %v8150_v24  ;;  %v950_v31 = vmul.f32 %v8153_v25, %v8153_v25  ;;  %v934_v32 = vmul.f32 %v910_v27, %v8094_v23  ;;  %vm1081_vm8 = vmor %vm1079_vm7, %vm1080_vm6  ;;  %vm1089_vm10 = vweird.f32 %v8150_v24 }
 0x14d   : > { %v1075_v34 = vmul.f32 %v7283_v26, %v1074_v30  ;;  %v1072_v37 = vsel %vm1071_vm5, %v7281_v2, %v1068_v29 }
 0x14e   : > { %v966_v35 = vsub.f32 %v934_v32, %v950_v31  ;;  %v1187_v45 = vmul.f32 %v1072_v37, %v995_v39 }
 0x14f   : > { %v1076_v38 = vmul.f32 0.5, %v1075_v34 }
 0x150   : > { %v982_v41 = vmax.f32 %v966_v35, 0.0  ;;  %v1206_v1 = vmul.f32 %v8166_v51, %v1187_v45 }
 0x151   : > { %v851_v42 = vpop.xlane.xlu2 %850  ;;  %v1077_v47 = vsub.f32 1.5, %v1076_v38 }
 0x152   : > { %v8161_v43 = vpop.eup %7284  ;;  %v1014_v54 = vadd.f32 1e-05, %v982_v41  ;;  %v8187_v13 = vadd.f32 %v8179_v0, %v1206_v1  ;;  %v8204_v30 = vmul.f32 %v8094_v23, %v851_v42 }
 0x153   : > { %v1084_v52 = vmul.f32 %v8161_v43, %v8150_v24  ;;  %v912_v55 = vpop.xlane.xlu0 %911  ;;  %v849_v56 = vpop.xlane.xlu1 %848  ;;  %v1078_v58 = vmul.f32 %v7283_v26, %v1077_v47  ;;  %vm1090_vm9 = vweird.f32 %v8161_v43  ;;  %v997_v24 = vsub.f32 %v7995_v40, %v8139_v5 }
 0x154   : > { %7286 = vrsqrt.f32 %v1014_v54  ;;  %v8174_v63 = vmul.f32 %v8094_v23, %v849_v56  ;;  %12831 = vst [vmem:[#allocation3_spill] sm:$0xff] %v8187_v13  ;;  %vm8206_vm11 = vmor %vm1089_vm10, %vm1090_vm9  ;;  %v956_v47 = vmul.f32 %v8204_v30, %v8204_v30  ;;  %vm1099_vm13 = vweird.f32 %v1014_v54 }
 0x155   : > { %v1085_v28 = vmul.f32 %v8161_v43, %v1084_v52  ;;  %v1082_v59 = vsel %vm1081_vm8, %v7283_v26, %v1078_v58  ;;  %v998_v40 = vsub.f32 %v8001_v44, %v8153_v25  ;;  %v935_v5 = vmul.f32 %v912_v55, %v8094_v23 }
 0x156   : > { %v1188_v2 = vmul.f32 %v1082_v59, %v996_v33  ;;  %v955_v10 = vmul.f32 %v8174_v63, %v8174_v63 }
 0x157   : > { %v1086_v7 = vmul.f32 0.5, %v1085_v28 }
 0x158   : > { %v1207_v9 = vmul.f32 %v8166_v51, %v1188_v2 }
 0x159   : > { %v1087_v36 = vsub.f32 1.5, %v1086_v7  ;;  %v920_v46 = vpop.xlane.xlu2 %919 }
 0x15a   : > { %v939_v11 = vmul.f32 %v920_v46, %v8094_v23  ;;  %v7287_v12 = vpop.eup %7286  ;;  %v8190_v14 = vadd.f32 %v8179_v0, %v1207_v9 }
 0x15b   : > { %v843_v15 = vpop.xlane.xlu0 %842  ;;  %v914_v16 = vpop.xlane.xlu1 %913  ;;  %v1094_v17 = vmul.f32 %v7287_v12, %v1014_v54  ;;  %v1088_v20 = vmul.f32 %v8161_v43, %v1087_v36  ;;  %vm1100_vm12 = vweird.f32 %v7287_v12 }
 0x15c   : > { %12832 = vst [vmem:[#allocation4_spill] sm:$0xff] %v8190_v14  ;;  %v971_v18 = vsub.f32 %v939_v11, %v955_v10  ;;  %v8193_v19 = vmul.f32 %v8094_v23, %v843_v15  ;;  %v1341_v21 = vpack.c.bf16 %v8190_v14, %v8187_v13  ;;  %v936_v29 = vmul.f32 %v914_v16, %v8094_v23  ;;  %vm1101_vm14 = vmor %vm1099_vm13, %vm1100_vm12 }
 0x15d   : > { %v1095_v22 = vmul.f32 %v7287_v12, %v1094_v17  ;;  %v1092_v39 = vsel %vm8206_vm11, %v8161_v43, %v1088_v20  ;;  %v6683_v20 = vld [vmem:[%s12827_s24 + $0xf8] sm:$0xf0] }
 0x15e   : > { %v987_v26 = vmax.f32 %v971_v18, 0.0  ;;  %v952_v27 = vmul.f32 %v8193_v19, %v8193_v19  ;;  %v1351_v31 = vunpack.c.l.bf16 %v1341_v21  ;;  %v1352_v32 = vunpack.c.h.bf16 %v1341_v21  ;;  %v7134_v18 = vld [vmem:[%s12827_s24 + $0xec] sm:$0xf] }
 0x15f   : > { %v1096_v35 = vmul.f32 0.5, %v1095_v22  ;;  %v1189_v43 = vmul.f32 %v1092_v39, %v997_v24 }
 0x160   : > { %v8210_v37 = vadd.f32 1e-05, %v987_v26  ;;  %v968_v38 = vsub.f32 %v936_v29, %v952_v27  ;;  %7288 = vtanh.f32 %v1351_v31  ;;  %v6686_v31 = vor.u32 %v7134_v18, %v6683_v20 }
 0x161   : > { %v841_v41 = vpop.xlane.xlu2 %840  ;;  %v1097_v42 = vsub.f32 1.5, %v1096_v35  ;;  %v1208_v10 = vmul.f32 %v8166_v51, %v1189_v43 }
 0x162   : > { %7290 = vrsqrt.f32 %v8210_v37  ;;  %v984_v45 = vmax.f32 %v968_v38, 0.0  ;;  %v8221_v52 = vmul.f32 %v8094_v23, %v841_v41  ;;  %1703 = vmatpush.bf16.msrb.mxu0 %v6686_v31  ;;  %vm1149_vm15 = vweird.f32 %v8210_v37 }
 0x163   : > { %v922_v56 = vpop.xlane.xlu0 %921  ;;  %v845_v58 = vpop.xlane.xlu1 %844  ;;  %7292 = vtanh.f32 %v1352_v32  ;;  %v1098_v33 = vmul.f32 %v7287_v12, %v1097_v42  ;;  %v8255_v32 = vadd.f32 %v8179_v0, %v1208_v10 }
 0x164   : > { %v940_v28 = vmul.f32 %v922_v56, %v8094_v23  ;;  %v8227_v59 = vadd.f32 1e-05, %v984_v45  ;;  %v951_v1 = vmul.f32 %v8221_v52, %v8221_v52  ;;  %v8263_v38 = vmul.f32 %v8094_v23, %v845_v58 }
 0x165   : > { %v1102_v2 = vsel %vm1101_vm14, %v7287_v12, %v1098_v33  ;;  %12836 = vst [vmem:[#allocation6_spill] sm:$0xff] %v8255_v32  ;;  %v1000_v56 = vsub.f32 %v8020_v53, %v8193_v19 }
 0x166   : > { %v972_v7 = vsub.f32 %v940_v28, %v956_v47  ;;  %v7289_v9 = vpop.eup %7288  ;;  %v1190_v36 = vmul.f32 %v1102_v2, %v998_v40  ;;  %7294 = vrsqrt.f32 %v8227_v59  ;;  %v967_v54 = vsub.f32 %v935_v5, %v951_v1  ;;  %v7133_v2 = vld [vmem:[%s12827_s24 + $0xe4] sm:$0xf] }
 0x167   : > { %v1003_v47 = vsub.f32 %v8013_v50, %v8174_v63  ;;  %vm1119_vm1 = vweird.f32 %v8227_v59  ;;  %v953_v50 = vmul.f32 %v8263_v38, %v8263_v38 }
 0x168   : > { %v8232_v46 = vpop.eup %7290  ;;  %v988_v44 = vmax.f32 %v972_v7, 0.0  ;;  %v1209_v55 = vmul.f32 %v8166_v51, %v1190_v36  ;;  %v983_v15 = vmax.f32 %v967_v54, 0.0  ;;  %v6675_v7 = vld [vmem:[%s12827_s24 + $0xf0] sm:$0xf0] }
 0x169   : > { %v7293_v25 = vpop.eup %7292  ;;  %v1144_v11 = vmul.f32 %v8232_v46, %v8210_v37  ;;  %v847_v16 = vpop.xlane.xlu2 %846  ;;  %vm1150_vm0 = vweird.f32 %v8232_v46 }
 0x16a   : > { %v8238_v12 = vadd.f32 1e-05, %v988_v44  ;;  %v8240_v17 = vpack.c.bf16 %v7293_v25, %v7289_v9  ;;  %v8249_v21 = vadd.f32 %v8179_v0, %v1209_v55  ;;  %v8252_v26 = vadd.f32 1e-05, %v983_v15  ;;  %vm8309_vm3 = vmor %vm1149_vm15, %vm1150_vm0 }
 0x16b   : > { %v1145_v22 = vmul.f32 %v8232_v46, %v1144_v11  ;;  %v853_v27 = vpop.xlane.xlu0 %852  ;;  %v855_v29 = vpop.xlane.xlu1 %854  ;;  %v8266_v39 = vmul.f32 %v8094_v23, %v847_v16  ;;  %v6678_v55 = vor.u32 %v7133_v2, %v6675_v7 }
 0x16c   : > { %12835 = vst [vmem:[#allocation5_spill] sm:$0xff] %v8249_v21  ;;  %7296 = vrsqrt.f32 %v8238_v12  ;;  %1574 = vmatmul.bf16.vlgmr.msra.gmra.mxu2 %v8240_v17  ;;  %v8259_v34 = vpop.eup %7294  ;;  %v8271_v24 = vmul.f32 %v8094_v23, %v853_v27  ;;  %v1342_v42 = vpack.c.bf16 %v8249_v21, %v8255_v32  ;;  %v8280_v58 = vmul.f32 %v8094_v23, %v855_v29  ;;  %v7130_v29 = vld [vmem:[%s12827_s24 + $0xcc] sm:$0xf] }
 0x16d   : > { %v1146_v35 = vmul.f32 0.5, %v1145_v22  ;;  %7298 = vrsqrt.f32 %v8252_v26  ;;  %v1114_v41 = vmul.f32 %v8259_v34, %v8227_v59  ;;  %v954_v53 = vmul.f32 %v8266_v39, %v8266_v39  ;;  %1605 = vmatpush.bf16.msrb.mxu2 %v6678_v55 }
 0x16e   : > { %v1353_v33 = vunpack.c.l.bf16 %v1342_v42  ;;  %vm1120_vm2 = vweird.f32 %v8259_v34  ;;  %v957_v5 = vmul.f32 %v8271_v24, %v8271_v24  ;;  %v8317_v10 = vmul.f32 %v8280_v58, %v8280_v58 }
 0x16f   : > { %v1147_v45 = vsub.f32 1.5, %v1146_v35  ;;  %v1115_v43 = vmul.f32 %v8259_v34, %v1114_v41  ;;  %v1354_v11 = vunpack.c.h.bf16 %v1342_v42  ;;  %vm8340_vm5 = vmor %vm1119_vm1, %vm1120_vm2  ;;  %vm1109_vm7 = vweird.f32 %v8252_v26 }
 0x170   : > { %7300 = vtanh.f32 %v1353_v33  ;;  %vm1159_vm8 = vweird.f32 %v8238_v12 }
 0x171   : > { %v1148_v28 = vmul.f32 %v8232_v46, %v1147_v45  ;;  %v916_v63 = vpop.xlane.xlu2 %915  ;;  %v1116_v40 = vmul.f32 0.5, %v1115_v43  ;;  %7302 = vtanh.f32 %v1354_v11 }
 0x172   : > { %v8291_v19 = vpop.eup %7296  ;;  %v937_v1 = vmul.f32 %v916_v63, %v8094_v23 }
 0x173   : > { %v8303_v9 = vpop.eup %7298  ;;  %v1154_v54 = vmul.f32 %v8291_v19, %v8238_v12  ;;  %v918_v44 = vpop.xlane.xlu0 %917  ;;  %v1152_v15 = vsel %vm8309_vm3, %v8232_v46, %v1148_v28  ;;  %v1117_v37 = vsub.f32 1.5, %v1116_v40  ;;  %v6667_v46 = vld [vmem:[%s12827_s24 + $0xd8] sm:$0xf0]  ;;  %vm1160_vm4 = vweird.f32 %v8291_v19 }
 0x174   : > { %v924_v25 = vpop.xlane.xlu1 %923  ;;  %v1104_v16 = vmul.f32 %v8303_v9, %v8252_v26  ;;  %v969_v20 = vsub.f32 %v937_v1, %v953_v50  ;;  %v938_v22 = vmul.f32 %v918_v44, %v8094_v23  ;;  %v6670_v41 = vor.u32 %v7130_v29, %v6667_v46  ;;  %vm8358_vm9 = vmor %vm1159_vm8, %vm1160_vm4 }
 0x175   : > { %v1155_v18 = vmul.f32 %v8291_v19, %v1154_v54  ;;  %v941_v27 = vmul.f32 %v924_v25, %v8094_v23  ;;  %v1118_v31 = vmul.f32 %v8259_v34, %v1117_v37  ;;  %v1195_v50 = vmul.f32 %v1152_v15, %v1003_v47 }
 0x176   : > { %v1105_v35 = vmul.f32 %v8303_v9, %v1104_v16  ;;  %v985_v43 = vmax.f32 %v969_v20, 0.0  ;;  %v970_v33 = vsub.f32 %v938_v22, %v954_v53  ;;  %1704 = vmatpush.bf16.msrb.mxu0 %v6670_v41  ;;  %vm1110_vm6 = vweird.f32 %v8303_v9  ;;  %v7301_v36 = vpop.eup %7300 }
 0x177   : > { %v1156_v45 = vmul.f32 0.5, %v1155_v18  ;;  %v973_v28 = vsub.f32 %v941_v27, %v957_v5  ;;  %v1122_v63 = vsel %vm8340_vm5, %v8259_v34, %v1118_v31  ;;  %v1004_v12 = vsub.f32 %v8007_v48, %v8204_v30  ;;  %vm1111_vm10 = vmor %vm1109_vm7, %vm1110_vm6  ;;  %v7303_v20 = vpop.eup %7302 }
 0x178   : > { %v1106_v40 = vmul.f32 0.5, %v1105_v35  ;;  %v8348_v59 = vadd.f32 1e-05, %v985_v43  ;;  %v986_v2 = vmax.f32 %v970_v33, 0.0  ;;  %v1192_v54 = vmul.f32 %v1122_v63, %v1000_v56 }
 0x179   : > { %v1157_v1 = vsub.f32 1.5, %v1156_v45  ;;  %v926_v7 = vpop.xlane.xlu2 %925  ;;  %v989_v53 = vmax.f32 %v973_v28, 0.0  ;;  %v1214_v37 = vmul.f32 %v8166_v51, %v1195_v50  ;;  %v999_v16 = vsub.f32 %v8010_v49, %v8221_v52  ;;  %v7126_v28 = vld [vmem:[%s12827_s24 + $0xac] sm:$0xf]  ;;  %v6651_v50 = vld [vmem:[%s12827_s24 + $0xb8] sm:$0xf0] }
 0x17a   : > { %v1107_v44 = vsub.f32 1.5, %v1106_v40  ;;  %v942_v47 = vmul.f32 %v926_v7, %v8094_v23  ;;  %7304 = vrsqrt.f32 %v8348_v59  ;;  %v8362_v11 = vadd.f32 1e-05, %v986_v2 }
 0x17b   : > { %v1158_v34 = vmul.f32 %v8291_v19, %v1157_v1  ;;  %v825_v25 = vpop.xlane.xlu0 %824  ;;  %v8364_v15 = vadd.f32 1e-05, %v989_v53  ;;  %v1001_v18 = vsub.f32 %v8028_v57, %v8263_v38  ;;  %v1211_v22 = vmul.f32 %v8166_v51, %v1192_v54 }
 0x17c   : > { %v827_v5 = vpop.xlane.xlu1 %826  ;;  %v1108_v55 = vmul.f32 %v8303_v9, %v1107_v44  ;;  %v974_v26 = vsub.f32 %v942_v47, %v8317_v10  ;;  %7306 = vrsqrt.f32 %v8362_v11  ;;  %v8384_v52 = vmul.f32 %v8094_v23, %v825_v25  ;;  %v7129_v10 = vld [vmem:[%s12827_s24 + $0xc4] sm:$0xf] }
 0x17d   : > { %v1162_v48 = vsel %vm8358_vm9, %v8291_v19, %v1158_v34  ;;  %7308 = vrsqrt.f32 %v8364_v15  ;;  %v1002_v19 = vsub.f32 %v8035_v60, %v8266_v39  ;;  %v1005_v29 = vsub.f32 %v8038_v61, %v8271_v24 }
 0x17e   : > { %v1112_v27 = vsel %vm1111_vm10, %v8303_v9, %v1108_v55  ;;  %v990_v49 = vmax.f32 %v974_v26, 0.0  ;;  %v6659_v9 = vld [vmem:[%s12827_s24 + $0xd0] sm:$0xf0]  ;;  %v1006_v46 = vsub.f32 %v8041_v62, %v8280_v58  ;;  %v8398_v31 = vpack.c.bf16 %v7303_v20, %v7301_v36  ;;  %v6665_v62 = vld [vmem:[%s12827_s24 + $0xc8] sm:$0xf] }
 0x17f   : > { %v1191_v30 = vmul.f32 %v1112_v27, %v999_v16  ;;  %v8403_v41 = vadd.f32 %v8179_v0, %v1214_v37  ;;  %v1196_v45 = vmul.f32 %v1162_v48, %v1004_v12  ;;  %v8415_v63 = vadd.f32 %v8179_v0, %v1211_v22  ;;  %v7125_v48 = vld [vmem:[%s12827_s24 + $0xa4] sm:$0xf]  ;;  %v7132_v58 = vld [vmem:[%s12827_s24 + $0xd4] sm:$0xf0] }
 0x180   : > { %v8400_v35 = vpop.eup %7304  ;;  %v8406_v43 = vadd.f32 1e-05, %v990_v49  ;;  %1579 = vmatmul.bf16.gmra.mxu2 %v8398_v31  ;;  %v8421_v1 = vmul.f32 %v8094_v23, %v827_v5  ;;  %v6662_v2 = vor.u32 %v7129_v10, %v6659_v9  ;;  %v943_v36 = vmul.f32 %v8384_v52, %v8384_v52 }
 0x181   : > { %12843 = vst [vmem:[#allocation7_spill] sm:$0xff] %v8403_v41  ;;  %v1210_v42 = vmul.f32 %v8166_v51, %v1191_v30  ;;  %v896_v33 = vpop.xlane.xlu2 %895  ;;  %v1124_v40 = vmul.f32 %v8400_v35, %v8348_v59  ;;  %vm1129_vm11 = vweird.f32 %v8348_v59  ;;  %v6654_v5 = vor.u32 %v7126_v28, %v6651_v50  ;;  %v6643_v30 = vld [vmem:[%s12827_s24 + $0xb0] sm:$0xf0] }
 0x182   : > { %12844 = vst [vmem:[#allocation8_spill] sm:$0xff] %v8415_v63  ;;  %7310 = vrsqrt.f32 %v8406_v43  ;;  %v927_v54 = vmul.f32 %v896_v33, %v8094_v23  ;;  %v8430_v47 = vpop.eup %7306  ;;  %1606 = vmatpush.bf16.msrb.mxu2 %v6662_v2  ;;  %v8440_v26 = vmul.f32 %v8166_v51, %v1196_v45  ;;  %vm1139_vm12 = vweird.f32 %v8362_v11 }
 0x183   : > { %v8424_v7 = vadd.f32 %v8179_v0, %v1210_v42  ;;  %v898_v53 = vpop.xlane.xlu0 %897  ;;  %v1125_v34 = vmul.f32 %v8400_v35, %v1124_v40  ;;  %v8435_v55 = vpop.eup %7308  ;;  %v1134_v12 = vmul.f32 %v8430_v47, %v8362_v11  ;;  %v944_v22 = vmul.f32 %v8421_v1, %v8421_v1  ;;  %1705 = vmatpush.bf16.msrb.mxu0 %v6654_v5 }
 0x184   : > { %v829_v44 = vpop.xlane.xlu1 %828  ;;  %v928_v25 = vmul.f32 %v898_v53, %v8094_v23  ;;  %v959_v37 = vsub.f32 %v927_v54, %v943_v36  ;;  %v1164_v20 = vmul.f32 %v8435_v55, %v8364_v15  ;;  %v991_v27 = vsub.f32 %v8056_v3, %v8384_v52 }
 0x185   : > { %12845 = vst [vmem:[#allocation9_spill] sm:$0xff] %v8424_v7  ;;  %v1343_v56 = vpack.c.bf16 %v8415_v63, %v8424_v7  ;;  %v1126_v16 = vmul.f32 0.5, %v1125_v34  ;;  %v1135_v9 = vmul.f32 %v8430_v47, %v1134_v12  ;;  %vm1130_vm13 = vweird.f32 %v8400_v35 }
 0x186   : > { %v975_v42 = vmax.f32 %v959_v37, 0.0  ;;  %v1165_v33 = vmul.f32 %v8435_v55, %v1164_v20  ;;  %vm1169_vm14 = vweird.f32 %v8364_v15  ;;  %v960_v28 = vsub.f32 %v928_v25, %v944_v22  ;;  %vm1131_vm15 = vmor %vm1129_vm11, %vm1130_vm13 }
 0x187   : > { %v1355_v49 = vunpack.c.l.bf16 %v1343_v56  ;;  %v1356_v10 = vunpack.c.h.bf16 %v1343_v56  ;;  %v1127_v45 = vsub.f32 1.5, %v1126_v16  ;;  %v1136_v40 = vmul.f32 0.5, %v1135_v9 }
 0x188   : > { %v8461_v50 = vpop.eup %7310  ;;  %v8463_v2 = vadd.f32 1e-05, %v975_v42  ;;  %v6646_v36 = vor.u32 %v7125_v48, %v6643_v30  ;;  %v1166_v53 = vmul.f32 0.5, %v1165_v33  ;;  %vm1140_vm0 = vweird.f32 %v8430_v47 }
 0x189   : > { %7312 = vtanh.f32 %v1355_v49  ;;  %v1128_v54 = vmul.f32 %v8400_v35, %v1127_v45  ;;  %v1174_v34 = vmul.f32 %v8461_v50, %v8406_v43  ;;  %v831_v5 = vpop.xlane.xlu2 %830  ;;  %v1137_v56 = vsub.f32 1.5, %v1136_v40  ;;  %vm1141_vm1 = vmor %vm1139_vm12, %vm1140_vm0  ;;  %v7121_v40 = vld [vmem:[%s12827_s24 + $0x84] sm:$0xf] }
 0x18a   : > { %7314 = vtanh.f32 %v1356_v10  ;;  %v8473_v25 = vmul.f32 %v8094_v23, %v829_v44  ;;  %1607 = vmatpush.bf16.msrb.mxu2 %v6646_v36  ;;  %v1167_v16 = vsub.f32 1.5, %v1166_v53  ;;  %v976_v22 = vmax.f32 %v960_v28, 0.0  ;;  %v7122_v53 = vld [vmem:[%s12827_s24 + $0x8c] sm:$0xf] }
 0x18b   : > { %7316 = vrsqrt.f32 %v8463_v2  ;;  %v1132_v37 = vsel %vm1131_vm15, %v8400_v35, %v1128_v54  ;;  %v1175_v20 = vmul.f32 %v8461_v50, %v1174_v34  ;;  %v900_v48 = vpop.xlane.xlu0 %899  ;;  %v1138_v30 = vmul.f32 %v8430_v47, %v1137_v56 }
 0x18c   : > { %v902_v12 = vpop.xlane.xlu1 %901  ;;  %v1193_v59 = vmul.f32 %v1132_v37, %v1001_v18  ;;  %v8482_v49 = vmul.f32 %v8094_v23, %v831_v5  ;;  %v1168_v35 = vmul.f32 %v8435_v55, %v1167_v16  ;;  %vm1170_vm2 = vweird.f32 %v8435_v55  ;;  %v6611_v16 = vld [vmem:[%s12827_s24 + $0x70] sm:$0xf0] }
 0x18d   : > { %v930_v44 = vmul.f32 %v902_v12, %v8094_v23  ;;  %v1176_v10 = vmul.f32 0.5, %v1175_v20  ;;  %v8489_v9 = vadd.f32 1e-05, %v976_v22  ;;  %v1142_v38 = vsel %vm1141_vm1, %v8430_v47, %v1138_v30  ;;  %v6627_v47 = vld [vmem:[%s12827_s24 + $0x90] sm:$0xf0]  ;;  %vm8517_vm4 = vmor %vm1169_vm14, %vm1170_vm2 }
 0x18e   : > { %v1212_v57 = vmul.f32 %v8166_v51, %v1193_v59  ;;  %v946_v18 = vmul.f32 %v8482_v49, %v8482_v49  ;;  %v929_v45 = vmul.f32 %v900_v48, %v8094_v23  ;;  %v1194_v11 = vmul.f32 %v1142_v38, %v1002_v19  ;;  %v6681_v30 = vld [vmem:[%s12827_s24 + $0xe8] sm:$0xf] }
 0x18f   : > { %v7313_v42 = vpop.eup %7312  ;;  %v1177_v28 = vsub.f32 1.5, %v1176_v10  ;;  %vm1180_vm3 = vweird.f32 %v8461_v50  ;;  %7318 = vrsqrt.f32 %v8489_v9  ;;  %v8511_v54 = vadd.f32 %v8179_v0, %v8440_v26  ;;  %v6635_v26 = vld [vmem:[%s12827_s24 + $0x98] sm:$0xf0] }
 0x190   : > { %v7315_v33 = vpop.eup %7314  ;;  %vm1179_vm5 = vweird.f32 %v8406_v43  ;;  %v945_v39 = vmul.f32 %v8473_v25, %v8473_v25  ;;  %v962_v19 = vsub.f32 %v930_v44, %v946_v18  ;;  %v1172_v15 = vsel %vm8517_vm4, %v8435_v55, %v1168_v35  ;;  %v7117_v55 = vld [vmem:[%s12827_s24 + $0x64] sm:$0xf] }
 0x191   : > { %v8507_v36 = vpop.eup %7316  ;;  %12846 = vst [vmem:[#allocation10_spill] sm:$0xff] %v8511_v54  ;;  %v1178_v34 = vmul.f32 %v8461_v50, %v1177_v28  ;;  %vm1029_vm6 = vweird.f32 %v8463_v2  ;;  %v8538_v5 = vadd.f32 %v8179_v0, %v1212_v57  ;;  %vm1181_vm7 = vmor %vm1179_vm5, %vm1180_vm3  ;;  %v6630_v37 = vor.u32 %v7121_v40, %v6627_v47 }
 0x192   : > { %v1024_v43 = vmul.f32 %v8507_v36, %v8463_v2  ;;  %v978_v56 = vmax.f32 %v962_v19, 0.0  ;;  %v961_v12 = vsub.f32 %v929_v45, %v945_v39  ;;  %v1213_v20 = vmul.f32 %v8166_v51, %v1194_v11  ;;  %v7113_v11 = vld [vmem:[%s12827_s24 + $0x44] sm:$0xf]  ;;  %v6595_v39 = vld [vmem:[%s12827_s24 + $0x50] sm:$0xf0] }
 0x193   : > { %12849 = vst [vmem:[#allocation11_spill] sm:$0xff] %v8538_v5  ;;  %v1182_v22 = vsel %vm1181_vm7, %v8461_v50, %v1178_v34  ;;  %v6638_v59 = vor.u32 %v7122_v53, %v6635_v26  ;;  %v1197_v44 = vmul.f32 %v1172_v15, %v1005_v29  ;;  %1608 = vmatpush.bf16.msrb.mxu2 %v6630_v37  ;;  %v7136_v50 = vld [vmem:[%s12827_s24 + $0xf4] sm:$0xf0]  ;;  %vm1030_vm8 = vweird.f32 %v8507_v36  ;;  %v6603_v37 = vld [vmem:[%s12827_s24 + $0x58] sm:$0xf0] }
 0x194   : > { %v1025_v48 = vmul.f32 %v8507_v36, %v1024_v43  ;;  %v1198_v35 = vmul.f32 %v1182_v22, %v1006_v46  ;;  %v8560_v10 = vadd.f32 1e-05, %v978_v56  ;;  %v977_v57 = vmax.f32 %v961_v12, 0.0  ;;  %v7114_v12 = vld [vmem:[%s12827_s24 + $0x4c] sm:$0xf]  ;;  %vm8617_vm9 = vmor %vm1029_vm6, %vm1030_vm8 }
 0x195   : > { %v8565_v38 = vpop.eup %7318  ;;  %1706 = vmatpush.bf16.msrb.mxu0 %v6638_v59  ;;  %v8567_v45 = vpack.c.bf16 %v7315_v33, %v7313_v42  ;;  %v1345_v61 = vpack.c.bf16 %v8511_v54, %v8403_v41  ;;  %v6614_v24 = vor.u32 %v7117_v55, %v6611_v16  ;;  %v7118_v42 = vld [vmem:[%s12827_s24 + $0x6c] sm:$0xf]  ;;  %v6619_v33 = vld [vmem:[%s12827_s24 + $0x78] sm:$0xf0]  ;;  %v8592_v28 = vadd.f32 %v8179_v0, %v1213_v20  ;;  %v7128_v2 = vld [vmem:[%s12827_s24 + $0xb4] sm:$0xf0] }
 0x196   : > { %v1026_v18 = vmul.f32 0.5, %v1025_v48  ;;  %v1217_v29 = vmul.f32 %v8166_v51, %v1198_v35  ;;  %v1034_v46 = vmul.f32 %v8565_v38, %v8489_v9  ;;  %7320 = vrsqrt.f32 %v8560_v10  ;;  %v6649_v48 = vld [vmem:[%s12827_s24 + $0xa8] sm:$0xf]  ;;  %v6579_v35 = vld [vmem:[%s12827_s24 + $0x30] sm:$0xf0] }
 0x197   : > { %12850 = vst [vmem:[#allocation12_spill] sm:$0xff] %v8592_v28  ;;  %v8594_v47 = vadd.f32 1e-05, %v977_v57  ;;  %1584 = vmatmul.bf16.gmra.mxu2 %v8567_v45  ;;  %v1359_v60 = vunpack.c.l.bf16 %v1345_v61  ;;  %v1216_v19 = vmul.f32 %v8166_v51, %v1197_v44  ;;  %v1360_v26 = vunpack.c.h.bf16 %v1345_v61  ;;  %v7109_v44 = vld [vmem:[%s12827_s24 + $0x24] sm:$0xf] }
 0x198   : > { %v1027_v40 = vsub.f32 1.5, %v1026_v18  ;;  %v1035_v53 = vmul.f32 %v8565_v38, %v1034_v46  ;;  %1609 = vmatpush.bf16.msrb.mxu2 %v6614_v24  ;;  %v6682_v15 = vor.u32 %v7136_v50, %v6681_v30  ;;  %v8603_v34 = vadd.f32 %v8179_v0, %v1217_v29  ;;  %v7110_v61 = vld [vmem:[%s12827_s24 + $0x2c] sm:$0xf]  ;;  %v6587_v24 = vld [vmem:[%s12827_s24 + $0x38] sm:$0xf0] }
 0x199   : > { %7322 = vrsqrt.f32 %v8594_v47  ;;  %v6622_v56 = vor.u32 %v7118_v42, %v6619_v33  ;;  %v6666_v20 = vor.u32 %v7132_v58, %v6665_v62  ;;  %v6598_v22 = vor.u32 %v7113_v11, %v6595_v39  ;;  %v6633_v42 = vld [vmem:[%s12827_s24 + $0x88] sm:$0xf]  ;;  %v7124_v33 = vld [vmem:[%s12827_s24 + $0x94] sm:$0xf0]  ;;  %v6571_v55 = vld [vmem:[%s12827_s24 + $0x18] sm:$0xf0] }
 0x19a   : > { %12851 = vst [vmem:[#allocation13_spill] sm:$0xff] %v8603_v34  ;;  %v1028_v43 = vmul.f32 %v8507_v36, %v1027_v40  ;;  %v1036_v16 = vmul.f32 0.5, %v1035_v53  ;;  %7324 = vtanh.f32 %v1359_v60  ;;  %1654 = vmatpush.bf16.msra.mxu3 %v6682_v15  ;;  %vm1039_vm10 = vweird.f32 %v8489_v9 }
 0x19b   : > { %7326 = vtanh.f32 %v1360_v26  ;;  %1707 = vmatpush.bf16.msrb.mxu0 %v6622_v56  ;;  %v1344_v30 = vpack.c.bf16 %v8592_v28, %v8538_v5  ;;  %v8642_v57 = vadd.f32 %v8179_v0, %v1216_v19  ;;  %vm1040_vm11 = vweird.f32 %v8565_v38 }
 0x19c   : > { %v1032_v59 = vsel %vm8617_vm9, %v8507_v36, %v1028_v43  ;;  %v8639_v36 = vpop.eup %7320  ;;  %v1037_v50 = vsub.f32 1.5, %v1036_v16  ;;  %1610 = vmatpush.bf16.msrb.mxu2 %v6598_v22  ;;  %v6606_v18 = vor.u32 %v7114_v12, %v6603_v37  ;;  %v6650_v40 = vor.u32 %v7128_v2, %v6649_v48  ;;  %vm1041_vm12 = vmor %vm1039_vm10, %vm1040_vm11 }
 0x19d   : > { %12854 = vst [vmem:[#allocation14_spill] sm:$0xff] %v8642_v57  ;;  %v1183_v62 = vmul.f32 %v1032_v59, %v991_v27  ;;  %v1054_v58 = vmul.f32 %v8639_v36, %v8560_v10  ;;  %v1357_v29 = vunpack.c.l.bf16 %v1344_v30  ;;  %v1358_v46 = vunpack.c.h.bf16 %v1344_v30  ;;  %v6617_v30 = vld [vmem:[%s12827_s24 + $0x68] sm:$0xf] }
 0x19e   : > { %v1038_v11 = vmul.f32 %v8565_v38, %v1037_v50  ;;  %1655 = vmatpush.bf16.msra.mxu3 %v6666_v20  ;;  %v6582_v60 = vor.u32 %v7109_v44, %v6579_v35  ;;  %v1346_v3 = vpack.c.bf16 %v8603_v34, %v8642_v57  ;;  %v992_v27 = vsub.f32 %v8060_v4, %v8421_v1  ;;  %v7105_v4 = vld [vmem:[%s12827_s24 + $0x4] sm:$0xf]  ;;  %v6563_v1 = vld [vmem:[%s12827_s24 + $0x10] sm:$0xf0]  ;;  %v7120_v44 = vld [vmem:[%s12827_s24 + $0x74] sm:$0xf0] }
 0x19f   : > { %v8665_v52 = vpop.eup %7322  ;;  %v1055_v39 = vmul.f32 %v8639_v36, %v1054_v58  ;;  %7328 = vtanh.f32 %v1357_v29  ;;  %1708 = vmatpush.bf16.msrb.mxu0 %v6606_v18  ;;  %v6590_v19 = vor.u32 %v7110_v61, %v6587_v24  ;;  %v6634_v43 = vor.u32 %v7124_v33, %v6633_v42  ;;  %v6601_v33 = vld [vmem:[%s12827_s24 + $0x48] sm:$0xf] }
 0x1a0   : > { %v7325_v53 = vpop.eup %7324  ;;  %v1042_v26 = vsel %vm1041_vm12, %v8565_v38, %v1038_v11  ;;  %v1044_v15 = vmul.f32 %v8665_v52, %v8594_v47  ;;  %1611 = vmatpush.bf16.msrb.mxu2 %v6582_v60  ;;  %v1202_v56 = vmul.f32 %v8166_v51, %v1183_v62  ;;  %7330 = vtanh.f32 %v1358_v46  ;;  %v7106_v38 = vld [vmem:[%s12827_s24 + $0xc] sm:$0xf] }
 0x1a1   : > { %v7327_v9 = vpop.eup %7326  ;;  %v1184_v12 = vmul.f32 %v1042_v26, %v992_v27  ;;  %v1056_v37 = vmul.f32 0.5, %v1055_v39  ;;  %vm1060_vm13 = vweird.f32 %v8639_v36  ;;  %v1361_v22 = vunpack.c.l.bf16 %v1346_v3 }
 0x1a2   : > { %v1045_v16 = vmul.f32 %v8665_v52, %v1044_v15  ;;  %v8692_v20 = vpack.c.bf16 %v7327_v9, %v7325_v53  ;;  %1656 = vmatpush.bf16.msra.mxu3 %v6650_v40  ;;  %v1362_v2 = vunpack.c.h.bf16 %v1346_v3  ;;  %v6566_v35 = vor.u32 %v7105_v4, %v6563_v1 }
 0x1a3   : > { %v1203_v48 = vmul.f32 %v8166_v51, %v1184_v12  ;;  %v1057_v59 = vsub.f32 1.5, %v1056_v37  ;;  %1709 = vmatpush.bf16.msrb.mxu0 %v6590_v19  ;;  %v994_v50 = vsub.f32 %v8075_v8, %v8482_v49  ;;  %v6574_v61 = vor.u32 %v7106_v38, %v6571_v55  ;;  %v7108_v12 = vld [vmem:[%s12827_s24 + $0x14] sm:$0xf0] }
 0x1a4   : > { %v1046_v18 = vmul.f32 0.5, %v1045_v16  ;;  %1594 = vmatmul.bf16.vlgmr.msrb.gmra.mxu3 %v8692_v20  ;;  %v8705_v62 = vadd.f32 %v8179_v0, %v1202_v56  ;;  %vm1059_vm14 = vweird.f32 %v8560_v10  ;;  %1612 = vmatpush.bf16.msrb.mxu2 %v6566_v35  ;;  %vm1050_vm0 = vweird.f32 %v8665_v52  ;;  %v7116_v10 = vld [vmem:[%s12827_s24 + $0x54] sm:$0xf0]  ;;  %v6569_v56 = vld [vmem:[%s12827_s24 + $0x8] sm:$0xf] }
 0x1a5   : > { %v7329_v24 = vpop.eup %7328  ;;  %v8708_v58 = vadd.f32 %v8179_v0, %v1203_v48  ;;  %v1058_v29 = vmul.f32 %v8639_v36, %v1057_v59  ;;  %vm1061_vm15 = vmor %vm1059_vm14, %vm1060_vm13  ;;  %7332 = vtanh.f32 %v1361_v22  ;;  %v6618_v49 = vor.u32 %v7120_v44, %v6617_v30 }
 0x1a6   : > { %12855 = vst [vmem:[#allocation15_spill] sm:$0xff] %v8705_v62  ;;  %v1047_v8 = vsub.f32 1.5, %v1046_v18  ;;  %1657 = vmatpush.bf16.msra.mxu3 %v6634_v43  ;;  %v7331_v46 = vpop.eup %7330  ;;  %7334 = vtanh.f32 %v1362_v2  ;;  %vm1049_vm1 = vweird.f32 %v8594_v47  ;;  %v6602_v26 = vor.u32 %v7116_v10, %v6601_v33  ;;  %v6585_v47 = vld [vmem:[%s12827_s24 + $0x28] sm:$0xf] }
 0x1a7   : > { %12856 = vst [vmem:[#allocation16_spill] sm:$0xff] %v8708_v58  ;;  %v1062_v42 = vsel %vm1061_vm15, %v8639_v36, %v1058_v29  ;;  %1710 = vmatpush.bf16.msrb.mxu0 %v6574_v61  ;;  %v1339_v11 = vpack.c.bf16 %v8708_v58, %v8705_v62  ;;  %v1384_v3 = vpack.c.bf16 %v7331_v46, %v7329_v24  ;;  %vm1051_vm2 = vmor %vm1049_vm1, %vm1050_vm0 }
 0x1a8   : > { %v1186_v40 = vmul.f32 %v1062_v42, %v994_v50  ;;  %v1048_v60 = vmul.f32 %v8665_v52, %v1047_v8  ;;  %v993_v36 = vsub.f32 %v8068_v6, %v8473_v25  ;;  %v7112_v6 = vld [vmem:[%s12827_s24 + $0x34] sm:$0xf0] }
 0x1a9   : > { %v1347_v27 = vunpack.c.l.bf16 %v1339_v11  ;;  %v1348_v39 = vunpack.c.h.bf16 %v1339_v11  ;;  %1589 = vmatmul.bf16.gmra.mxu2 %v1384_v3  ;;  %v6586_v1 = vor.u32 %v7112_v6, %v6585_v47 }
 0x1aa   : > { %v1205_v19 = vmul.f32 %v8166_v51, %v1186_v40  ;;  %v1052_v53 = vsel %vm1051_vm2, %v8665_v52, %v1048_v60  ;;  %1658 = vmatpush.bf16.msra.mxu3 %v6618_v49 }
 0x1ab   : > { %v1185_v15 = vmul.f32 %v1052_v53, %v993_v36  ;;  %7336 = vtanh.f32 %v1347_v27  ;;  %v7333_v25 = vpop.eup %7332 }
 0x1ac   : > { %7338 = vtanh.f32 %v1348_v39  ;;  %v7335_v43 = vpop.eup %7334  ;;  %v8739_v4 = vadd.f32 %v8179_v0, %v1205_v19 }
 0x1ad   : > { %v1204_v52 = vmul.f32 %v8166_v51, %v1185_v15  ;;  %v1386_v37 = vpack.c.bf16 %v7335_v43, %v7333_v25  ;;  %v6570_v51 = vor.u32 %v7108_v12, %v6569_v56 }
 0x1ae   : > { %12857 = vst [vmem:[#allocation17_spill] sm:$0xff] %v8739_v4  ;;  %1659 = vmatpush.bf16.msra.mxu3 %v6602_v26 }
 0x1af   : > { %v8743_v9 = vadd.f32 %v8179_v0, %v1204_v52 }
 0x1b1   : > { %12858 = vst [vmem:[#allocation18_spill] sm:$0xff] %v8743_v9  ;;  %v7337_v38 = vpop.eup %7336  ;;  %v1340_v55 = vpack.c.bf16 %v8739_v4, %v8743_v9 }
 0x1b2   : > { %v7339_v16 = vpop.eup %7338  ;;  %1660 = vmatpush.bf16.msra.mxu3 %v6586_v1 }
 0x1b3   : > { %v1379_v22 = vpack.c.bf16 %v7339_v16, %v7337_v38  ;;  %v1349_v0 = vunpack.c.l.bf16 %v1340_v55  ;;  %v1350_v48 = vunpack.c.h.bf16 %v1340_v55 }
 0x1b4   : > { %1599 = vmatmul.bf16.gmra.mxu3 %v1386_v37 }
 0x1b5   : > { %1564 = vmatmul.bf16.vlgmr.msra.gmra.mxu1 %v1379_v22  ;;  %1711 = vmatmul.bf16.vlgmr.msrb.gmra.mxu0 %v1379_v22  ;;  %7340 = vtanh.f32 %v1349_v0 }
 0x1b6   : > { %1661 = vmatpush.bf16.msra.mxu3 %v6570_v51  ;;  %7342 = vtanh.f32 %v1350_v48 }
 0x1b9   : > { %1613 = vmatmul.bf16.vlgmr.msrb.gmra.mxu2 %v1379_v22 }
 0x1bb   : > { %v7341_v59 = vpop.eup %7340 }
 0x1bc   : > { %v7343_v2 = vpop.eup %7342 }
 0x1bd   : > { %v1380_v30 = vpack.c.bf16 %v7343_v2, %v7341_v59 }
 0x1c4   : > { %1662 = vmatmul.bf16.vlgmr.msra.gmra.mxu3 %v1379_v22 }
 0x1c5   : > { %1569 = vmatmul.bf16.gmra.mxu1 %v1380_v30  ;;  %1716 = vmatmul.bf16.gmra.mxu0 %v1380_v30 }
 0x1c9   : > { %1618 = vmatmul.bf16.gmra.mxu2 %v1380_v30 }
 0x1d4   : > { %1667 = vmatmul.bf16.gmra.mxu3 %v1380_v30 }
 0x1d5   : > { %1721 = vmatmul.bf16.gmra.mxu0 %v8240_v17 }
 0x1d9   : > { %1623 = vmatmul.bf16.gmra.mxu2 %v8240_v17 }
 0x1e4   : > { %1672 = vmatmul.bf16.gmra.mxu3 %v8240_v17 }
 0x1e5   : > { %1726 = vmatmul.bf16.gmra.mxu0 %v8398_v31 }
 0x1e9   : > { %1628 = vmatmul.bf16.gmra.mxu2 %v8398_v31 }
 0x1ef   : > { %v8759_v44 = vpop.f32.mrf.mxu2 }
 0x1f4   : > { %1677 = vmatmul.bf16.gmra.mxu3 %v8398_v31 }
 0x1f5   : > { %1731 = vmatmul.bf16.gmra.mxu0 %v8567_v45 }
 0x1f7   : > { %v8763_v35 = vpop.f32.mrf.mxu2 }
 0x1f9   : > { %1633 = vmatmul.bf16.gmra.mxu2 %v8567_v45 }
 0x203   : > { %v8766_v50 = vpop.f32.mrf.mxu2 }
 0x204   : > { %1682 = vmatmul.bf16.gmra.mxu3 %v8567_v45 }
 0x205   : > { %1736 = vmatmul.bf16.gmra.mxu0 %v1384_v3 }
 0x209   : > { %1638 = vmatmul.bf16.gmra.mxu2 %v1384_v3 }
 0x20b   : > { %v8768_v17 = vpop.f32.mrf.mxu2 }
 0x214   : > { %1687 = vmatmul.bf16.gmra.mxu3 %v1384_v3 }
 0x215   : > { %1741 = vmatmul.bf16.gmra.mxu0 %v8692_v20 }
 0x219   : > { %1643 = vmatmul.bf16.gmra.mxu2 %v8692_v20 }
 0x21a   : > { %v8772_v31 = vpop.f32.mrf.mxu2 }
 0x222   : > { %v8774_v18 = vpop.f32.mrf.mxu2 }
 0x224   : > { %1692 = vmatmul.bf16.gmra.mxu3 %v8692_v20  ;;  %v1269_v20 = vld [vmem:[%s12859_s2] sm:$0xf] }
 0x225   : > { %1746 = vmatmul.bf16.gmra.mxu0 %v1386_v37  ;;  %v8790_v10 = vperm.slane %v1269_v20, 1  ;;  %v8794_v40 = vperm.slane %v1269_v20, 0  ;;  %v8802_v27 = vperm.slane %v1269_v20, 3  ;;  %v8804_v19 = vperm.slane %v1269_v20, 2 }
 0x227   : > { %v8777_v61 = vpop.f32.mrf.mxu3 }
 0x229   : > { %1648 = vmatmul.bf16.gmra.mxu2 %v1386_v37 }
 0x22c   : > { %v8779_v45 = vpop.f32.mrf.mxu2 }
 0x22f   : > { %v8781_v24 = vpop.f32.mrf.mxu3 }
 0x232   : > { %v1712_v29 = vpop.f32.mrf.mxu0  ;;  %v1565_v46 = vpop.f32.mrf.mxu1 }
 0x233   : > { %v8800_v36 = vadd.f32 %v1565_v46, %v8794_v40  ;;  %v8811_v6 = vadd.f32 %v1712_v29, %v8802_v27 }
 0x234   : > { %1697 = vmatmul.bf16.gmra.mxu3 %v1386_v37  ;;  %v8783_v8 = vpop.f32.mrf.mxu2 }
 0x235   : > { %v1855_v47 = vmul.f32 %v8800_v36, %v8800_v36  ;;  %v1858_v16 = vmul.f32 %v8811_v6, %v8811_v6 }
 0x237   : > { %v8785_v49 = vpop.f32.mrf.mxu3 }
 0x23a   : > { %v1714_v42 = vpop.f32.mrf.mxu0  ;;  %v1567_v39 = vpop.f32.mrf.mxu1 }
 0x23b   : > { %v8825_v38 = vadd.f32 %v1567_v39, %v8794_v40  ;;  %v8835_v29 = vadd.f32 %v1714_v42, %v8802_v27 }
 0x23c   : > { %v1614_v33 = vpop.f32.mrf.mxu2 }
 0x23d   : > { %v8797_v60 = vadd.f32 %v1614_v33, %v8790_v10  ;;  %v1859_v30 = vmul.f32 %v8825_v38, %v8825_v38 }
 0x23f   : > { %v8792_v11 = vpop.f32.mrf.mxu3  ;;  %v1856_v26 = vmul.f32 %v8797_v60, %v8797_v60  ;;  %v1752_v25 = vadd.f32 %v8797_v60, %v8800_v36 }
 0x241   : > { %v1919_v12 = vadd.f32 %v1856_v26, %v1855_v47 }
 0x242   : > { %v1717_v3 = vpop.f32.mrf.mxu0  ;;  %v1570_v48 = vpop.f32.mrf.mxu1 }
 0x243   : > { %v8849_v42 = vadd.f32 %v1570_v48, %v8794_v40 }
 0x244   : > { %v1616_v53 = vpop.f32.mrf.mxu2 }
 0x245   : > { %v8821_v1 = vadd.f32 %v1616_v53, %v8790_v10 }
 0x247   : > { %v1663_v15 = vpop.f32.mrf.mxu3  ;;  %v1860_v0 = vmul.f32 %v8821_v1, %v8821_v1  ;;  %v1757_v20 = vadd.f32 %v8821_v1, %v8825_v38 }
 0x248   : > { %v8816_v43 = vadd.f32 %v1663_v15, %v8804_v19 }
 0x249   : > { %v1924_v26 = vadd.f32 %v1860_v0, %v1859_v30 }
 0x24a   : > { %v1857_v52 = vmul.f32 %v8816_v43, %v8816_v43  ;;  %v1753_v56 = vadd.f32 %v1752_v25, %v8816_v43  ;;  %v1719_v37 = vpop.f32.mrf.mxu0  ;;  %v1862_v25 = vmul.f32 %v8835_v29, %v8835_v29  ;;  %v1572_v48 = vpop.f32.mrf.mxu1 }
 0x24c   : > { %v1754_v55 = vadd.f32 %v1753_v56, %v8811_v6  ;;  %v1920_v51 = vadd.f32 %v1919_v12, %v1857_v52  ;;  %v1619_v22 = vpop.f32.mrf.mxu2 }
 0x24d   : > { %v8843_v33 = vadd.f32 %v1619_v22, %v8790_v10  ;;  %v8859_v22 = vadd.f32 %v1717_v3, %v8802_v27  ;;  %v8873_v3 = vadd.f32 %v1572_v48, %v8794_v40 }
 0x24e   : > { %1755 = vadd.xlane.f32.xlu2 %v1754_v55  ;;  %v1921_v59 = vadd.f32 %v1920_v51, %v1858_v16  ;;  %v1863_v51 = vmul.f32 %v8849_v42, %v8849_v42 }
 0x24f   : > { %v1665_v2 = vpop.f32.mrf.mxu3  ;;  %v1864_v12 = vmul.f32 %v8843_v33, %v8843_v33  ;;  %v1762_v0 = vadd.f32 %v8843_v33, %v8849_v42 }
 0x250   : > { %v8838_v46 = vadd.f32 %v1665_v2, %v8804_v19  ;;  %1922 = vadd.xlane.f32.xlu1 %v1921_v59 }
 0x252   : > { %v1758_v39 = vadd.f32 %v1757_v20, %v8838_v46  ;;  %v1861_v53 = vmul.f32 %v8838_v46, %v8838_v46  ;;  %v1722_v15 = vpop.f32.mrf.mxu0 }
 0x254   : > { %v1759_v47 = vadd.f32 %v1758_v39, %v8835_v29  ;;  %v1925_v52 = vadd.f32 %v1924_v26, %v1861_v53  ;;  %v1621_v56 = vpop.f32.mrf.mxu2  ;;  %v1929_v39 = vadd.f32 %v1864_v12, %v1863_v51  ;;  %v8883_v51 = vadd.f32 %v1719_v37, %v8802_v27 }
 0x255   : > { %v8867_v2 = vadd.f32 %v1621_v56, %v8790_v10 }
 0x256   : > { %1760 = vadd.xlane.f32.xlu0 %v1759_v47  ;;  %v1926_v55 = vadd.f32 %v1925_v52, %v1862_v25  ;;  %v1866_v47 = vmul.f32 %v8859_v22, %v8859_v22 }
 0x257   : > { %v1668_v16 = vpop.f32.mrf.mxu3  ;;  %v1868_v52 = vmul.f32 %v8867_v2, %v8867_v2  ;;  %v1767_v48 = vadd.f32 %v8867_v2, %v8873_v3 }
 0x258   : > { %v8864_v59 = vadd.f32 %v1668_v16, %v8804_v19  ;;  %1927 = vadd.xlane.f32.xlu2 %v1926_v55  ;;  %v1867_v16 = vmul.f32 %v8873_v3, %v8873_v3 }
 0x25a   : > { %v1865_v30 = vmul.f32 %v8864_v59, %v8864_v59  ;;  %v1763_v20 = vadd.f32 %v1762_v0, %v8864_v59  ;;  %v1724_v53 = vpop.f32.mrf.mxu0 }
 0x25c   : > { %v1764_v26 = vadd.f32 %v1763_v20, %v8859_v22  ;;  %v1930_v25 = vadd.f32 %v1929_v39, %v1865_v30  ;;  %v1624_v56 = vpop.f32.mrf.mxu2  ;;  %v7152_v30 = vld [vmem:[%s12635_s9 + $0x78] sm:$0xff]  ;;  %v1934_v39 = vadd.f32 %v1868_v52, %v1867_v16  ;;  %v1870_v52 = vmul.f32 %v8883_v51, %v8883_v51 }
 0x25d   : > { %v7160_v20 = vld [vmem:[%s12635_s9 + $0xb8] sm:$0xff]  ;;  %3205 = vmatpush.bf16.msra.mxu2 %v7152_v30 }
 0x25e   : > { %1765 = vadd.xlane.f32.xlu0 %v1764_v26  ;;  %v1931_v55 = vadd.f32 %v1930_v25, %v1866_v47  ;;  %v8897_v26 = vadd.f32 %v1624_v56, %v8790_v10  ;;  %3254 = vmatpush.bf16.msrb.mxu3 %v7160_v20  ;;  %v8914_v20 = vadd.f32 %v1722_v15, %v8802_v27  ;;  %v7168_v15 = vld [vmem:[%s12635_s9 + $0xf8] sm:$0xff] }
 0x25f   : > { %v1670_v12 = vpop.f32.mrf.mxu3  ;;  %3303 = vmatpush.bf16.msra.mxu0 %v7168_v15  ;;  %v7159_v15 = vld [vmem:[%s12635_s9 + $0xb0] sm:$0xff] }
 0x260   : > { %v8886_v0 = vadd.f32 %v1670_v12, %v8804_v19  ;;  %1932 = vadd.xlane.f32.xlu2 %v1931_v55  ;;  %v8904_v55 = vadd.f32 %v8759_v44, %v8794_v40 }
 0x262   : > { %v1768_v37 = vadd.f32 %v1767_v48, %v8886_v0  ;;  %v1869_v47 = vmul.f32 %v8886_v0, %v8886_v0  ;;  %v1727_v25 = vpop.f32.mrf.mxu0  ;;  %v1872_v48 = vmul.f32 %v8897_v26, %v8897_v26  ;;  %v1871_v30 = vmul.f32 %v8904_v55, %v8904_v55  ;;  %3255 = vmatpush.bf16.msrb.mxu3 %v7159_v15 }
 0x263   : > { %v1772_v44 = vadd.f32 %v8897_v26, %v8904_v55 }
 0x264   : > { %v1769_v12 = vadd.f32 %v1768_v37, %v8883_v51  ;;  %v1935_v16 = vadd.f32 %v1934_v39, %v1869_v47  ;;  %v1626_v56 = vpop.f32.mrf.mxu2 }
 0x265   : > { %v8922_v39 = vadd.f32 %v1626_v56, %v8790_v10 }
 0x266   : > { %1770 = vadd.xlane.f32.xlu1 %v1769_v12  ;;  %v1936_v34 = vadd.f32 %v1935_v16, %v1870_v52  ;;  %v1939_v52 = vadd.f32 %v1872_v48, %v1871_v30  ;;  %v8932_v16 = vadd.f32 %v8763_v35, %v8794_v40  ;;  %v8942_v35 = vadd.f32 %v1724_v53, %v8802_v27 }
 0x267   : > { %v1673_v57 = vpop.f32.mrf.mxu3  ;;  %v1876_v54 = vmul.f32 %v8922_v39, %v8922_v39 }
 0x268   : > { %v8919_v37 = vadd.f32 %v1673_v57, %v8804_v19  ;;  %1937 = vadd.xlane.f32.xlu0 %v1936_v34  ;;  %v1874_v34 = vmul.f32 %v8914_v20, %v8914_v20  ;;  %v1875_v41 = vmul.f32 %v8932_v16, %v8932_v16  ;;  %v1878_v5 = vmul.f32 %v8942_v35, %v8942_v35 }
 0x26a   : > { %v1873_v47 = vmul.f32 %v8919_v37, %v8919_v37  ;;  %v1773_v12 = vadd.f32 %v1772_v44, %v8919_v37  ;;  %v1729_v48 = vpop.f32.mrf.mxu0 }
 0x26c   : > { %v1774_v57 = vadd.f32 %v1773_v12, %v8914_v20  ;;  %v1940_v56 = vadd.f32 %v1939_v52, %v1873_v47  ;;  %v1629_v44 = vpop.f32.mrf.mxu2  ;;  %v1777_v47 = vadd.f32 %v8922_v39, %v8932_v16  ;;  %v7151_v52 = vld [vmem:[%s12635_s9 + $0x70] sm:$0xff] }
 0x26d   : > { %3206 = vmatpush.bf16.msra.mxu2 %v7151_v52 }
 0x26e   : > { %1775 = vadd.xlane.f32.xlu1 %v1774_v57  ;;  %v1941_v30 = vadd.f32 %v1940_v56, %v1874_v34  ;;  %v1944_v57 = vadd.f32 %v1876_v54, %v1875_v41  ;;  %v8956_v34 = vadd.f32 %v1629_v44, %v8790_v10  ;;  %v8963_v56 = vadd.f32 %v8766_v50, %v8794_v40 }
 0x26f   : > { %v1675_v28 = vpop.f32.mrf.mxu3  ;;  %v8973_v50 = vadd.f32 %v1727_v25, %v8802_v27  ;;  %v7167_v25 = vld [vmem:[%s12635_s9 + $0xf0] sm:$0xff] }
 0x270   : > { %v8945_v12 = vadd.f32 %v1675_v28, %v8804_v19  ;;  %1942 = vadd.xlane.f32.xlu0 %v1941_v30  ;;  %v1880_v44 = vmul.f32 %v8956_v34, %v8956_v34  ;;  %v1879_v52 = vmul.f32 %v8963_v56, %v8963_v56  ;;  %v1782_v15 = vadd.f32 %v8956_v34, %v8963_v56 }
 0x271   : > { %3304 = vmatpush.bf16.msra.mxu0 %v7167_v25  ;;  %v7158_v25 = vld [vmem:[%s12635_s9 + $0xa8] sm:$0xff] }
 0x272   : > { %v1778_v53 = vadd.f32 %v1777_v47, %v8945_v12  ;;  %v1877_v28 = vmul.f32 %v8945_v12, %v8945_v12  ;;  %v1732_v63 = vpop.f32.mrf.mxu0  ;;  %3256 = vmatpush.bf16.msrb.mxu3 %v7158_v25 }
 0x273   : > { %v9032_v25 = vadd.f32 %v1732_v63, %v8802_v27  ;;  %v7166_v63 = vld [vmem:[%s12635_s9 + $0xe8] sm:$0xff] }
 0x274   : > { %v1779_v30 = vadd.f32 %v1778_v53, %v8942_v35  ;;  %v1945_v41 = vadd.f32 %v1944_v57, %v1877_v28  ;;  %v1631_v54 = vpop.f32.mrf.mxu2 }
 0x275   : > { %v8981_v57 = vadd.f32 %v1631_v54, %v8790_v10  ;;  %v1882_v54 = vmul.f32 %v8973_v50, %v8973_v50  ;;  %12861 = vst [vmem:[#allocation20_spill] sm:$0xff] %v9032_v25  ;;  %3305 = vmatpush.bf16.msra.mxu0 %v7166_v63 }
 0x276   : > { %1780 = vadd.xlane.f32.xlu2 %v1779_v30  ;;  %v1946_v47 = vadd.f32 %v1945_v41, %v1878_v5  ;;  %v1949_v30 = vadd.f32 %v1880_v44, %v1879_v52  ;;  %v8991_v41 = vadd.f32 %v8768_v17, %v8794_v40  ;;  %v9001_v17 = vadd.f32 %v1729_v48, %v8802_v27 }
 0x277   : > { %v1678_v7 = vpop.f32.mrf.mxu3  ;;  %v1884_v21 = vmul.f32 %v8981_v57, %v8981_v57 }
 0x278   : > { %v8978_v53 = vadd.f32 %v1678_v7, %v8804_v19  ;;  %1947 = vadd.xlane.f32.xlu1 %v1946_v47  ;;  %v1883_v52 = vmul.f32 %v8991_v41, %v8991_v41  ;;  %v1886_v14 = vmul.f32 %v9001_v17, %v9001_v17 }
 0x27a   : > { %v1881_v5 = vmul.f32 %v8978_v53, %v8978_v53  ;;  %v1783_v28 = vadd.f32 %v1782_v15, %v8978_v53 }
 0x27c   : > { %v1784_v7 = vadd.f32 %v1783_v28, %v8973_v50  ;;  %v1950_v47 = vadd.f32 %v1949_v30, %v1881_v5  ;;  %v1634_v15 = vpop.f32.mrf.mxu2  ;;  %v1787_v5 = vadd.f32 %v8981_v57, %v8991_v41  ;;  %v7150_v30 = vld [vmem:[%s12635_s9 + $0x68] sm:$0xff] }
 0x27d   : > { %v9015_v48 = vadd.f32 %v1634_v15, %v8790_v10  ;;  %3207 = vmatpush.bf16.msra.mxu2 %v7150_v30 }
 0x27e   : > { %1785 = vadd.xlane.f32.xlu2 %v1784_v7  ;;  %v1951_v44 = vadd.f32 %v1950_v47, %v1882_v54  ;;  %v1734_v7 = vpop.f32.mrf.mxu0  ;;  %v1954_v54 = vadd.f32 %v1884_v21, %v1883_v52 }
 0x27f   : > { %v1680_v32 = vpop.f32.mrf.mxu3  ;;  %12860 = vst [vmem:[#allocation19_spill] sm:$0xff] %v9015_v48  ;;  %v1888_v15 = vmul.f32 %v9015_v48, %v9015_v48 }
 0x280   : > { %v9004_v28 = vadd.f32 %v1680_v32, %v8804_v19  ;;  %1952 = vadd.xlane.f32.xlu1 %v1951_v44  ;;  %v9022_v44 = vadd.f32 %v8772_v31, %v8794_v40 }
 0x282   : > { %v1788_v32 = vadd.f32 %v1787_v5, %v9004_v28  ;;  %v1885_v47 = vmul.f32 %v9004_v28, %v9004_v28  ;;  %v1887_v30 = vmul.f32 %v9022_v44, %v9022_v44  ;;  %v1792_v31 = vadd.f32 %v9015_v48, %v9022_v44 }
 0x284   : > { %v1789_v13 = vadd.f32 %v1788_v32, %v9001_v17  ;;  %v1955_v21 = vadd.f32 %v1954_v54, %v1885_v47  ;;  %v1636_v52 = vpop.f32.mrf.mxu2  ;;  %v1959_v47 = vadd.f32 %v1888_v15, %v1887_v30 }
 0x285   : > { %v9040_v54 = vadd.f32 %v1636_v52, %v8790_v10  ;;  %v1890_v52 = vmul.f32 %v9032_v25, %v9032_v25 }
 0x286   : > { %1790 = vadd.xlane.f32.xlu0 %v1789_v13  ;;  %v1956_v5 = vadd.f32 %v1955_v21, %v1886_v14  ;;  %v9050_v21 = vadd.f32 %v8774_v18, %v8794_v40  ;;  %v9060_v18 = vadd.f32 %v1734_v7, %v8802_v27 }
 0x287   : > { %v1683_v9 = vpop.f32.mrf.mxu3  ;;  %12863 = vst [vmem:[#allocation22_spill] sm:$0xff] %v9040_v54 }
 0x288   : > { %v9037_v32 = vadd.f32 %v1683_v9, %v8804_v19  ;;  %1957 = vadd.xlane.f32.xlu2 %v1956_v5  ;;  %12864 = vst [vmem:[#allocation23_spill] sm:$0xff] %v9050_v21  ;;  %v1737_v9 = vpop.f32.mrf.mxu0  ;;  %v1891_v62 = vmul.f32 %v9050_v21, %v9050_v21  ;;  %v1894_v23 = vmul.f32 %v9060_v18, %v9060_v18 }
 0x289   : > { %12865 = vst [vmem:[#allocation24_spill] sm:$0xff] %v9060_v18 }
 0x28a   : > { %12862 = vst [vmem:[#allocation21_spill] sm:$0xff] %v9037_v32  ;;  %v1889_v13 = vmul.f32 %v9037_v32, %v9037_v32  ;;  %v1793_v14 = vadd.f32 %v1792_v31, %v9037_v32  ;;  %v1892_v31 = vmul.f32 %v9040_v54, %v9040_v54 }
 0x28c   : > { %v1794_v5 = vadd.f32 %v1793_v14, %v9032_v25  ;;  %v1960_v4 = vadd.f32 %v1959_v47, %v1889_v13  ;;  %v1639_v15 = vpop.f32.mrf.mxu2  ;;  %v1797_v13 = vadd.f32 %v9040_v54, %v9050_v21  ;;  %v7149_v47 = vld [vmem:[%s12635_s9 + $0x60] sm:$0xff]  ;;  %v1964_v63 = vadd.f32 %v1892_v31, %v1891_v62 }
 0x28d   : > { %3208 = vmatpush.bf16.msra.mxu2 %v7149_v47 }
 0x28e   : > { %1795 = vadd.xlane.f32.xlu0 %v1794_v5  ;;  %v1961_v30 = vadd.f32 %v1960_v4, %v1890_v52  ;;  %v7157_v4 = vld [vmem:[%s12635_s9 + $0xa0] sm:$0xff]  ;;  %v9074_v5 = vadd.f32 %v1639_v15, %v8790_v10  ;;  %v9081_v52 = vadd.f32 %v8779_v45, %v8794_v40  ;;  %v9091_v45 = vadd.f32 %v1737_v9, %v8802_v27 }
 0x28f   : > { %v1685_v58 = vpop.f32.mrf.mxu3  ;;  %3257 = vmatpush.bf16.msrb.mxu3 %v7157_v4  ;;  %v7165_v9 = vld [vmem:[%s12635_s9 + $0xe0] sm:$0xff] }
 0x290   : > { %v9063_v14 = vadd.f32 %v1685_v58, %v8804_v19  ;;  %1962 = vadd.xlane.f32.xlu2 %v1961_v30  ;;  %12867 = vst [vmem:[#allocation26_spill] sm:$0xff] %v9074_v5  ;;  %v1739_v31 = vpop.f32.mrf.mxu0  ;;  %v1895_v47 = vmul.f32 %v9081_v52, %v9081_v52  ;;  %v1802_v4 = vadd.f32 %v9074_v5, %v9081_v52 }
 0x291   : > { %12868 = vst [vmem:[#allocation27_spill] sm:$0xff] %v9081_v52  ;;  %3306 = vmatpush.bf16.msra.mxu0 %v7165_v9 }
 0x292   : > { %12866 = vst [vmem:[#allocation25_spill] sm:$0xff] %v9063_v14  ;;  %v1798_v7 = vadd.f32 %v1797_v13, %v9063_v14  ;;  %v1893_v58 = vmul.f32 %v9063_v14, %v9063_v14  ;;  %v1896_v13 = vmul.f32 %v9074_v5, %v9074_v5 }
 0x293   : > { %12869 = vst [vmem:[#allocation28_spill] sm:$0xff] %v9091_v45 }
 0x294   : > { %v1799_v30 = vadd.f32 %v1798_v7, %v9060_v18  ;;  %v1965_v62 = vadd.f32 %v1964_v63, %v1893_v58  ;;  %v1641_v15 = vpop.f32.mrf.mxu2 }
 0x295   : > { %v9101_v58 = vadd.f32 %v1641_v15, %v8790_v10 }
 0x296   : > { %1800 = vadd.xlane.f32.xlu1 %v1799_v30  ;;  %v1966_v54 = vadd.f32 %v1965_v62, %v1894_v23  ;;  %v1969_v30 = vadd.f32 %v1896_v13, %v1895_v47  ;;  %v9109_v62 = vadd.f32 %v8783_v8, %v8794_v40  ;;  %v9119_v8 = vadd.f32 %v1739_v31, %v8802_v27 }
 0x297   : > { %v1688_v14 = vpop.f32.mrf.mxu3  ;;  %12871 = vst [vmem:[#allocation30_spill] sm:$0xff] %v9101_v58 }
 0x298   : > { %v9096_v7 = vadd.f32 %v1688_v14, %v8804_v19  ;;  %1967 = vadd.xlane.f32.xlu0 %v1966_v54  ;;  %12872 = vst [vmem:[#allocation31_spill] sm:$0xff] %v9109_v62  ;;  %v1898_v54 = vmul.f32 %v9091_v45, %v9091_v45  ;;  %v1742_v47 = vpop.f32.mrf.mxu0  ;;  %v1899_v52 = vmul.f32 %v9109_v62, %v9109_v62 }
 0x299   : > { %12873 = vst [vmem:[#allocation32_spill] sm:$0xff] %v9119_v8 }
 0x29a   : > { %12870 = vst [vmem:[#allocation29_spill] sm:$0xff] %v9096_v7  ;;  %v1897_v63 = vmul.f32 %v9096_v7, %v9096_v7  ;;  %v1803_v23 = vadd.f32 %v1802_v4, %v9096_v7  ;;  %v1900_v4 = vmul.f32 %v9101_v58, %v9101_v58 }
 0x29c   : > { %v1804_v14 = vadd.f32 %v1803_v23, %v9091_v45  ;;  %v1970_v5 = vadd.f32 %v1969_v30, %v1897_v63  ;;  %v1644_v15 = vpop.f32.mrf.mxu2  ;;  %v1807_v63 = vadd.f32 %v9101_v58, %v9109_v62  ;;  %v7148_v30 = vld [vmem:[%s12635_s9 + $0x58] sm:$0xff] }
 0x29d   : > { %3209 = vmatpush.bf16.msra.mxu2 %v7148_v30 }
 0x29e   : > { %1805 = vadd.xlane.f32.xlu1 %v1804_v14  ;;  %v1971_v13 = vadd.f32 %v1970_v5, %v1898_v54  ;;  %v9130_v5 = vadd.f32 %v1644_v15, %v8790_v10  ;;  %v1974_v14 = vadd.f32 %v1900_v4, %v1899_v52  ;;  %v7156_v15 = vld [vmem:[%s12635_s9 + $0x98] sm:$0xff]  ;;  %v7803_v4 = vmov 512.0  }
 0x29f   : > { %v1690_v7 = vpop.f32.mrf.mxu3  ;;  %7344 = vrcp.f32 %v7803_v4  ;;  %3258 = vmatpush.bf16.msrb.mxu3 %v7156_v15 }
 0x2a0   : > { %v9122_v23 = vadd.f32 %v1690_v7, %v8804_v19  ;;  %1972 = vadd.xlane.f32.xlu0 %v1971_v13  ;;  %12875 = vst [vmem:[#allocation34_spill] sm:$0xff] %v9130_v5  ;;  %v9137_v7 = vadd.f32 %v8777_v61, %v8794_v40  ;;  %v1902_v13 = vmul.f32 %v9119_v8, %v9119_v8 }
 0x2a2   : > { %12874 = vst [vmem:[#allocation33_spill] sm:$0xff] %v9122_v23  ;;  %v1808_v9 = vadd.f32 %v1807_v63, %v9122_v23  ;;  %v1901_v31 = vmul.f32 %v9122_v23, %v9122_v23  ;;  %v1904_v23 = vmul.f32 %v9130_v5, %v9130_v5  ;;  %v1903_v30 = vmul.f32 %v9137_v7, %v9137_v7 }
 0x2a3   : > { %12876 = vst [vmem:[#allocation35_spill] sm:$0xff] %v9137_v7 }
 0x2a4   : > { %v1809_v54 = vadd.f32 %v1808_v9, %v9119_v8  ;;  %v1975_v58 = vadd.f32 %v1974_v14, %v1901_v31  ;;  %v1646_v63 = vpop.f32.mrf.mxu2  ;;  %v9150_v9 = vadd.f32 %v1742_v47, %v8802_v27  ;;  %v1812_v31 = vadd.f32 %v9130_v5, %v9137_v7  ;;  %v1744_v8 = vpop.f32.mrf.mxu0 }
 0x2a5   : > { %v1979_v15 = vadd.f32 %v1904_v23, %v1903_v30  ;;  %v7345_v4 = vpop.eup %7344  ;;  %v9165_v47 = vadd.f32 %v8781_v24, %v8794_v40  ;;  %v9175_v24 = vadd.f32 %v1744_v8, %v8802_v27  ;;  %v9190_v8 = vadd.f32 %v8785_v49, %v8794_v40 }
 0x2a6   : > { %1810 = vadd.xlane.f32.xlu2 %v1809_v54  ;;  %v1976_v52 = vadd.f32 %v1975_v58, %v1902_v13  ;;  %12877 = vst [vmem:[#allocation36_spill] sm:$0xff] %v9150_v9  ;;  %v9160_v54 = vadd.f32 %v1646_v63, %v8790_v10  ;;  %vm1837_vm3 = vweird.f32 %v7345_v4 }
 0x2a7   : > { %v1693_v61 = vpop.f32.mrf.mxu3  ;;  %12880 = vst [vmem:[#allocation39_spill] sm:$0xff] %v9165_v47  ;;  %v1907_v23 = vmul.f32 %v9165_v47, %v9165_v47 }
 0x2a8   : > { %v9155_v14 = vadd.f32 %v1693_v61, %v8804_v19  ;;  %1977 = vadd.xlane.f32.xlu1 %v1976_v52  ;;  %12879 = vst [vmem:[#allocation38_spill] sm:$0xff] %v9160_v54  ;;  %v1906_v52 = vmul.f32 %v9150_v9, %v9150_v9  ;;  %v1908_v7 = vmul.f32 %v9160_v54, %v9160_v54 }
 0x2a9   : > { %12881 = vst [vmem:[#allocation40_spill] sm:$0xff] %v9175_v24 }
 0x2aa   : > { %12878 = vst [vmem:[#allocation37_spill] sm:$0xff] %v9155_v14  ;;  %v1905_v58 = vmul.f32 %v9155_v14, %v9155_v14  ;;  %v1813_v13 = vadd.f32 %v1812_v31, %v9155_v14  ;;  %v1833_v31 = vmul.f32 512.0, %v7345_v4 }
 0x2ab   : > { %12884 = vst [vmem:[#allocation43_spill] sm:$0xff] %v9190_v8 }
 0x2ac   : > { %v1814_v5 = vadd.f32 %v1813_v13, %v9150_v9  ;;  %v1980_v61 = vadd.f32 %v1979_v15, %v1905_v58  ;;  %v1649_v62 = vpop.f32.mrf.mxu2  ;;  %v1817_v58 = vadd.f32 %v9160_v54, %v9165_v47  ;;  %v1834_v9 = vsub.f32 1.0, %v1833_v31 }
 0x2ad   : > { %v9183_v13 = vadd.f32 %v1649_v62, %v8790_v10 }
 0x2ae   : > { %1815 = vadd.xlane.f32.xlu2 %v1814_v5  ;;  %v1981_v63 = vadd.f32 %v1980_v61, %v1906_v52  ;;  %v1984_v52 = vadd.f32 %v1908_v7, %v1907_v23  ;;  %v1747_v61 = vpop.f32.mrf.mxu0  ;;  %v1911_v7 = vmul.f32 %v9190_v8, %v9190_v8 }
 0x2af   : > { %v1695_v45 = vpop.f32.mrf.mxu3  ;;  %12883 = vst [vmem:[#allocation42_spill] sm:$0xff] %v9183_v13  ;;  %v1912_v62 = vmul.f32 %v9183_v13, %v9183_v13  ;;  %v9200_v31 = vadd.f32 %v1747_v61, %v8802_v27  ;;  %v1822_v49 = vadd.f32 %v9183_v13, %v9190_v8  ;;  %v1270_v61 = vld [vmem:[%s12888_s25] sm:$0xf]  ;;  %v9221_v13 = vadd.f32 %v8792_v11, %v8794_v40 }
 0x2b0   : > { %v9178_v30 = vadd.f32 %v1695_v45, %v8804_v19  ;;  %1982 = vadd.xlane.f32.xlu1 %v1981_v63  ;;  %v1910_v63 = vmul.f32 %v9175_v24, %v9175_v24  ;;  %v2403_v11 = vperm.slane %v1270_v61, 3 }
 0x2b1   : > { %12885 = vst [vmem:[#allocation44_spill] sm:$0xff] %v9200_v31 }
 0x2b2   : > { %12882 = vst [vmem:[#allocation41_spill] sm:$0xff] %v9178_v30  ;;  %v1818_v5 = vadd.f32 %v1817_v58, %v9178_v30  ;;  %v1909_v15 = vmul.f32 %v9178_v30, %v9178_v30  ;;  %v1835_v30 = vmul.f32 %v7345_v4, %v1834_v9  ;;  %v1989_v9 = vadd.f32 %v1912_v62, %v1911_v7 }
 0x2b3   : > { %12889 = vst [vmem:[#allocation47_spill] sm:$0xff] %v9221_v13  ;;  %v2400_v7 = vperm.slane %v1270_v61, 0 }
 0x2b4   : > { %v1819_v45 = vadd.f32 %v1818_v5, %v9175_v24  ;;  %v1985_v54 = vadd.f32 %v1984_v52, %v1909_v15  ;;  %v1651_v5 = vpop.f32.mrf.mxu2 }
 0x2b5   : > { %v9211_v52 = vadd.f32 %v1651_v5, %v8790_v10 }
 0x2b6   : > { %1820 = vadd.xlane.f32.xlu0 %v1819_v45  ;;  %v1986_v58 = vadd.f32 %v1985_v54, %v1910_v63  ;;  %v1836_v45 = vadd.f32 %v7345_v4, %v1835_v30  ;;  %v1749_v62 = vpop.f32.mrf.mxu0 }
 0x2b7   : > { %v1698_v47 = vpop.f32.mrf.mxu3  ;;  %12887 = vst [vmem:[#allocation46_spill] sm:$0xff] %v9211_v52  ;;  %v1916_v30 = vmul.f32 %v9211_v52, %v9211_v52  ;;  %v1827_v40 = vadd.f32 %v9211_v52, %v9221_v13 }
 0x2b8   : > { %v9205_v23 = vadd.f32 %v1698_v47, %v8804_v19  ;;  %1987 = vadd.xlane.f32.xlu2 %v1986_v58  ;;  %v1914_v47 = vmul.f32 %v9200_v31, %v9200_v31  ;;  %v9225_v5 = vsel %vm1837_vm3, %v7345_v4, %v1836_v45 }
 0x2ba   : > { %12886 = vst [vmem:[#allocation45_spill] sm:$0xff] %v9205_v23  ;;  %v1913_v15 = vmul.f32 %v9205_v23, %v9205_v23  ;;  %v1823_v54 = vadd.f32 %v1822_v49, %v9205_v23  ;;  %v2402_v23 = vperm.slane %v1270_v61, 2 }
 0x2bc   : > { %v1824_v63 = vadd.f32 %v1823_v54, %v9200_v31  ;;  %v1990_v58 = vadd.f32 %v1989_v9, %v1913_v15  ;;  %v2401_v54 = vperm.slane %v1270_v61, 1  ;;  %v9228_v31 = vadd.f32 %v1749_v62, %v8802_v27 }
 0x2bd   : > { %v1915_v9 = vmul.f32 %v9221_v13, %v9221_v13  ;;  %v2409_v62 = vpack.c.bf16 %v2403_v11, %v2402_v23 }
 0x2be   : > { %1825 = vadd.xlane.f32.xlu0 %v1824_v63  ;;  %v1991_v10 = vadd.f32 %v1990_v58, %v1914_v47  ;;  %12890 = vst [vmem:[#allocation48_spill] sm:$0xff] %v9228_v31  ;;  %v2408_v47 = vpack.c.bf16 %v2401_v54, %v2400_v7  ;;  %v1918_v61 = vmul.f32 %v9228_v31, %v9228_v31 }
 0x2bf   : > { %v1700_v49 = vpop.f32.mrf.mxu3  ;;  %v1994_v58 = vadd.f32 %v1916_v30, %v1915_v9  ;;  %v2414_v30 = vunpack.c.l.b16 %v2409_v62  ;;  %v2415_v11 = vunpack.c.h.b16 %v2409_v62 }
 0x2c0   : > { %v9231_v15 = vadd.f32 %v1700_v49, %v8804_v19  ;;  %1992 = vadd.xlane.f32.xlu2 %v1991_v10  ;;  %v2413_v7 = vunpack.c.h.b16 %v2408_v47 }
 0x2c1   : > { %v1756_v63 = vpop.xlane.xlu2 %1755  ;;  %v2418_v62 = vpack.c.b16 %v2414_v30, %v2414_v30 }
 0x2c2   : > { %12891 = vst [vmem:[#allocation49_spill] sm:$0xff] %v9231_v15  ;;  %v9238_v4 = vmul.f32 %v9225_v5, %v1756_v63  ;;  %v1828_v45 = vadd.f32 %v1827_v40, %v9231_v15  ;;  %v1917_v27 = vmul.f32 %v9231_v15, %v9231_v15  ;;  %v7144_v40 = vld [vmem:[%s12635_s9 + $0x38] sm:$0xff]  ;;  %v2412_v15 = vunpack.c.l.b16 %v2408_v47 }
 0x2c3   : > { %v1923_v19 = vpop.xlane.xlu1 %1922  ;;  %3156 = vmatpush.bf16.msrb.mxu1 %v7144_v40  ;;  %v2429_v30 = vpack.i.b16 %v2418_v62, %v2418_v62 }
 0x2c4   : > { %v1999_v10 = vmul.f32 %v1923_v19, %v9225_v5  ;;  %v2015_v49 = vmul.f32 %v9238_v4, %v9238_v4  ;;  %v1829_v63 = vadd.f32 %v1828_v45, %v9228_v31  ;;  %v1995_v52 = vadd.f32 %v1994_v58, %v1917_v27  ;;  %v7164_v45 = vld [vmem:[%s12635_s9 + $0xd8] sm:$0xff] }
 0x2c5   : > { %v2416_v58 = vpack.c.b16 %v2412_v15, %v2412_v15  ;;  %v2417_v31 = vpack.c.b16 %v2413_v7, %v2413_v7  ;;  %3307 = vmatpush.bf16.msra.mxu0 %v7164_v45  ;;  %v7143_v15 = vld [vmem:[%s12635_s9 + $0x30] sm:$0xff]  ;;  %v7142_v45 = vld [vmem:[%s12635_s9 + $0x28] sm:$0xff]  ;;  %v2066_v21 = vsub.f32 %v8811_v6, %v9238_v4 }
 0x2c6   : > { %v2031_v54 = vsub.f32 %v1999_v10, %v2015_v49  ;;  %1830 = vadd.xlane.f32.xlu1 %v1829_v63  ;;  %v1996_v23 = vadd.f32 %v1995_v52, %v1918_v61  ;;  %v9263_v52 = vld [vmem:[%s12634_s8] sm:$0xf]  ;;  %v2419_v61 = vpack.c.b16 %v2415_v11, %v2415_v11 }
 0x2c7   : > { %v2601_v63 = vperm.slane %v9263_v52, 0  ;;  %v2602_v40 = vperm.slane %v9263_v52, 1  ;;  %v2421_v7 = vpack.i.b16 %v2416_v58, %v2416_v58  ;;  %3157 = vmatpush.bf16.msrb.mxu1 %v7143_v15 }
 0x2c8   : > { %v2047_v9 = vmax.f32 %v2031_v54, 0.0  ;;  %1997 = vadd.xlane.f32.xlu0 %v1996_v23  ;;  %v2425_v54 = vpack.i.b16 %v2417_v31, %v2417_v31  ;;  %v2433_v11 = vpack.i.b16 %v2419_v61, %v2419_v61  ;;  %v7155_v31 = vld [vmem:[%s12635_s9 + $0x90] sm:$0xff] }
 0x2c9   : > { %v1761_v19 = vpop.xlane.xlu0 %1760  ;;  %v2609_v58 = vpack.c.bf16 %v2602_v40, %v2601_v63  ;;  %v2423_v61 = vperm.slane %v2421_v7, 0  ;;  %3259 = vmatpush.bf16.msrb.mxu3 %v7155_v31 }
 0x2ca   : > { %v9256_v27 = vmul.f32 %v9225_v5, %v1761_v19  ;;  %v9258_v13 = vadd.f32 1e-05, %v2047_v9  ;;  %v2435_v24 = vperm.slane %v2433_v11, 0  ;;  %v7163_v11 = vld [vmem:[%s12635_s9 + $0xd0] sm:$0xff] }
 0x2cb   : > { %v1928_v47 = vpop.xlane.xlu2 %1927  ;;  %3158 = vmatpush.bf16.msrb.mxu1 %v7142_v45  ;;  %v2614_v45 = vunpack.c.h.b16 %v2609_v58  ;;  %3308 = vmatpush.bf16.msra.mxu0 %v7163_v11 }
 0x2cc   : > { %7346 = vrsqrt.f32 %v9258_v13  ;;  %v2016_v10 = vmul.f32 %v9256_v27, %v9256_v27  ;;  %v2000_v49 = vmul.f32 %v1928_v47, %v9225_v5  ;;  %v7147_v47 = vld [vmem:[%s12635_s9 + $0x50] sm:$0xff]  ;;  %v9305_v31 = vunpack.c.l.bf16 %v2435_v24  ;;  %v7140_v24 = vld [vmem:[%s12635_s9 + $0x18] sm:$0xff] }
 0x2cd   : > { %3210 = vmatpush.bf16.msra.mxu2 %v7147_v47  ;;  %vm2149_vm5 = vweird.f32 %v9258_v13 }
 0x2ce   : > { %v2032_v23 = vsub.f32 %v2000_v49, %v2016_v10  ;;  %v2427_v10 = vperm.slane %v2425_v54, 0  ;;  %v2613_v54 = vunpack.c.l.b16 %v2609_v58 }
 0x2d0   : > { %v2048_v9 = vmax.f32 %v2032_v23, 0.0  ;;  %v2431_v23 = vperm.slane %v2429_v30, 0  ;;  %v9298_v30 = vunpack.c.l.bf16 %v2427_v10  ;;  %v2065_v10 = vsub.f32 %v8816_v43, %v9238_v4 }
 0x2d1   : > { %v1766_v19 = vpop.xlane.xlu0 %1765  ;;  %v2618_v43 = vpack.c.b16 %v2614_v45, %v2614_v45 }
 0x2d2   : > { %v9281_v8 = vmul.f32 %v9225_v5, %v1766_v19  ;;  %v7347_v62 = vpop.eup %7346  ;;  %v9286_v49 = vadd.f32 1e-05, %v2048_v9  ;;  %v7141_v19 = vld [vmem:[%s12635_s9 + $0x20] sm:$0xff]  ;;  %v9296_v9 = vunpack.c.l.bf16 %v2423_v61  ;;  %v9303_v47 = vunpack.c.l.bf16 %v2431_v23 }
 0x2d3   : > { %v1933_v15 = vpop.xlane.xlu2 %1932  ;;  %v2144_v14 = vmul.f32 %v7347_v62, %v9258_v13  ;;  %3159 = vmatpush.bf16.msrb.mxu1 %v7141_v19  ;;  %v2064_v61 = vsub.f32 %v8797_v60, %v9238_v4  ;;  %vm2150_vm4 = vweird.f32 %v7347_v62  ;;  %v2069_v13 = vsub.f32 %v8838_v46, %v9256_v27  ;;  %v7154_v46 = vld [vmem:[%s12635_s9 + $0x88] sm:$0xff] }
 0x2d4   : > { %7348 = vrsqrt.f32 %v9286_v49  ;;  %v2017_v40 = vmul.f32 %v9281_v8, %v9281_v8  ;;  %v2001_v7 = vmul.f32 %v1933_v15, %v9225_v5  ;;  %v2063_v15 = vsub.f32 %v8800_v36, %v9238_v4  ;;  %vm2151_vm6 = vmor %vm2149_vm5, %vm2150_vm4  ;;  %3260 = vmatpush.bf16.msrb.mxu3 %v7154_v46 }
 0x2d5   : > { %v2145_v63 = vmul.f32 %v7347_v62, %v2144_v14  ;;  %vm2159_vm7 = vweird.f32 %v9286_v49  ;;  %v2626_v60 = vpack.i.b16 %v2618_v43, %v2618_v43 }
 0x2d6   : > { %v2033_v18 = vsub.f32 %v2001_v7, %v2017_v40 }
 0x2d7   : > { %v2146_v14 = vmul.f32 0.5, %v2145_v63  ;;  %v2617_v63 = vpack.c.b16 %v2613_v54, %v2613_v54  ;;  %3160 = vmatpush.bf16.msrb.mxu1 %v7140_v24  ;;  %v2070_v54 = vsub.f32 %v8835_v29, %v9256_v27  ;;  %v7139_v24 = vld [vmem:[%s12635_s9 + $0x10] sm:$0xff]  ;;  %v7146_v29 = vld [vmem:[%s12635_s9 + $0x48] sm:$0xff] }
 0x2d8   : > { %v2049_v23 = vmax.f32 %v2033_v18, 0.0  ;;  %3211 = vmatpush.bf16.msra.mxu2 %v7146_v29 }
 0x2d9   : > { %v1771_v19 = vpop.xlane.xlu1 %1770  ;;  %v2147_v58 = vsub.f32 1.5, %v2146_v14 }
 0x2da   : > { %v9318_v36 = vpop.eup %7348  ;;  %v9327_v7 = vadd.f32 1e-05, %v2049_v23  ;;  %v9330_v18 = vmul.f32 %v9225_v5, %v1771_v19  ;;  %v2622_v23 = vpack.i.b16 %v2617_v63, %v2617_v63 }
 0x2db   : > { %v2148_v4 = vmul.f32 %v7347_v62, %v2147_v58  ;;  %v2154_v40 = vmul.f32 %v9318_v36, %v9286_v49  ;;  %v1938_v14 = vpop.xlane.xlu0 %1937  ;;  %3161 = vmatpush.bf16.msrb.mxu1 %v7139_v24  ;;  %vm2160_vm8 = vweird.f32 %v9318_v36  ;;  %v7145_v49 = vld [vmem:[%s12635_s9 + $0x40] sm:$0xff] }
 0x2dc   : > { %7350 = vrsqrt.f32 %v9327_v7  ;;  %v2002_v6 = vmul.f32 %v1938_v14, %v9225_v5  ;;  %v9366_v43 = vperm.slane %v2622_v23, 0  ;;  %vm2161_vm9 = vmor %vm2159_vm7, %vm2160_vm8  ;;  %3212 = vmatpush.bf16.msra.mxu2 %v7145_v49  ;;  %vm2169_vm10 = vweird.f32 %v9327_v7 }
 0x2dd   : > { %v2152_v19 = vsel %vm2151_vm6, %v7347_v62, %v2148_v4  ;;  %v2155_v58 = vmul.f32 %v9318_v36, %v2154_v40  ;;  %v2018_v40 = vmul.f32 %v9330_v18, %v9330_v18  ;;  %v2077_v62 = vsub.f32 %v8886_v0, %v9330_v18 }
 0x2de   : > { %v2305_v45 = vmul.f32 %v2152_v19, %v2065_v10  ;;  %v2306_v11 = vmul.f32 %v2152_v19, %v2066_v21  ;;  %v2303_v25 = vmul.f32 %v2152_v19, %v2063_v15  ;;  %v2304_v32 = vmul.f32 %v2152_v19, %v2064_v61  ;;  %v7162_v21 = vld [vmem:[%s12635_s9 + $0xc8] sm:$0xff] }
 0x2df   : > { %v2156_v4 = vmul.f32 0.5, %v2155_v58  ;;  %v7138_v10 = vld [vmem:[%s12635_s9 + $0x8] sm:$0xff]  ;;  %v2034_v58 = vsub.f32 %v2002_v6, %v2018_v40  ;;  %3309 = vmatpush.bf16.msra.mxu0 %v7162_v21  ;;  %v12893_v6 = vsub.f32 %v8821_v1, %v9256_v27 }
 0x2e0   : > { %v2368_v63 = vpack.c.bf16 %v2306_v11, %v2305_v45  ;;  %3162 = vmatpush.bf16.msrb.mxu1 %v7138_v10  ;;  %v2603_v11 = vperm.slane %v9263_v52, 2  ;;  %v2604_v45 = vperm.slane %v9263_v52, 3  ;;  %v2367_v40 = vpack.c.bf16 %v2304_v32, %v2303_v25  ;;  %v7153_v10 = vld [vmem:[%s12635_s9 + $0x80] sm:$0xff] }
 0x2e1   : > { %v2157_v24 = vsub.f32 1.5, %v2156_v4  ;;  %v1776_v29 = vpop.xlane.xlu1 %1775  ;;  %v2050_v23 = vmax.f32 %v2034_v58, 0.0  ;;  %v9379_v4 = vperm.slane %v2626_v60, 0  ;;  %v7161_v25 = vld [vmem:[%s12635_s9 + $0xc0] sm:$0xff]  ;;  %3261 = vmatpush.bf16.msrb.mxu3 %v7153_v10 }
 0x2e2   : > { %v2438_v15 = vunpack.c.l.bf16 %v2368_v63  ;;  %v2439_v61 = vunpack.c.h.bf16 %v2368_v63  ;;  %v9370_v19 = vpop.eup %7350  ;;  %v9385_v21 = vmul.f32 %v9225_v5, %v1776_v29  ;;  %v7137_v29 = vld [vmem:[%s12635_s9] sm:$0xff] }
 0x2e3   : > { %v2158_v46 = vmul.f32 %v9318_v36, %v2157_v24  ;;  %v2164_v24 = vmul.f32 %v9370_v19, %v9327_v7  ;;  %v9400_v58 = vadd.f32 1e-05, %v2050_v23  ;;  %v1943_v48 = vpop.xlane.xlu0 %1942  ;;  %3310 = vmatpush.bf16.msra.mxu0 %v7161_v25  ;;  %vm2170_vm11 = vweird.f32 %v9370_v19 }
 0x2e4   : > { %v2506_v63 = vmul.f32 %v9303_v47, %v2438_v15  ;;  %v2507_v32 = vmul.f32 %v9305_v31, %v2439_v61  ;;  %v12892_v15 = vsub.f32 %v8825_v38, %v9256_v27  ;;  %v2436_v38 = vunpack.c.l.bf16 %v2367_v40  ;;  %3163 = vmatpush.bf16.msrb.mxu1 %v7137_v29  ;;  %vm2171_vm12 = vmor %vm2169_vm10, %vm2170_vm11 }
 0x2e5   : > { %v2162_v60 = vsel %vm2161_vm9, %v9318_v36, %v2158_v46  ;;  %v9411_v36 = vpack.c.bf16 %v2604_v45, %v2603_v11  ;;  %v2165_v23 = vmul.f32 %v9370_v19, %v2164_v24  ;;  %7352 = vrsqrt.f32 %v9400_v58 }
 0x2e6   : > { %v2307_v52 = vmul.f32 %v2162_v60, %v12892_v15  ;;  %v2308_v14 = vmul.f32 %v2162_v60, %v12893_v6  ;;  %v2309_v61 = vmul.f32 %v2162_v60, %v2069_v13  ;;  %v2310_v46 = vmul.f32 %v2162_v60, %v2070_v54 }
 0x2e7   : > { %v2437_v15 = vunpack.c.h.bf16 %v2367_v40  ;;  %v9420_v13 = vpack.c.bf16 %v2507_v32, %v2506_v63  ;;  %v2166_v11 = vmul.f32 0.5, %v2165_v23  ;;  %v2019_v45 = vmul.f32 %v9385_v21, %v9385_v21 }
 0x2e8   : > { %v2370_v54 = vpack.c.bf16 %v2310_v46, %v2309_v61  ;;  %v2369_v6 = vpack.c.bf16 %v2308_v14, %v2307_v52  ;;  %v2003_v49 = vmul.f32 %v1943_v48, %v9225_v5  ;;  %v9431_v63 = vmul.f32 %v9296_v9, %v2436_v38 }
 0x2e9   : > { %v1781_v27 = vpop.xlane.xlu2 %1780  ;;  %v2167_v24 = vsub.f32 1.5, %v2166_v11  ;;  %v9438_v61 = vmul.f32 %v9298_v30, %v2437_v15  ;;  %vm2179_vm13 = vweird.f32 %v9400_v58  ;;  %v12895_v7 = vsub.f32 %v8843_v33, %v9281_v8 }
 0x2ea   : > { %v2442_v25 = vunpack.c.l.bf16 %v2370_v54  ;;  %v2443_v60 = vunpack.c.h.bf16 %v2370_v54  ;;  %v9428_v29 = vmul.f32 %v9225_v5, %v1781_v27  ;;  %v2035_v52 = vsub.f32 %v2003_v49, %v2019_v45 }
 0x2eb   : > { %v1948_v40 = vpop.xlane.xlu1 %1947  ;;  %v7353_v48 = vpop.eup %7352  ;;  %v2168_v23 = vmul.f32 %v9370_v19, %v2167_v24  ;;  %v2440_v15 = vunpack.c.l.bf16 %v2369_v6  ;;  %v2441_v49 = vunpack.c.h.bf16 %v2369_v6 }
 0x2ec   : > { %v2004_v27 = vmul.f32 %v1948_v40, %v9225_v5  ;;  %v2510_v38 = vmul.f32 %v9303_v47, %v2442_v25  ;;  %v2511_v54 = vmul.f32 %v9305_v31, %v2443_v60  ;;  %v2174_v11 = vmul.f32 %v7353_v48, %v9400_v58 }
 0x2ed   : > { %v2051_v45 = vmax.f32 %v2035_v52, 0.0  ;;  %v2172_v46 = vsel %vm2171_vm12, %v9370_v19, %v2168_v23  ;;  %v2020_v40 = vmul.f32 %v9428_v29, %v9428_v29  ;;  %v12894_v25 = vsub.f32 %v8849_v42, %v9281_v8 }
 0x2ee   : > { %v2312_v24 = vmul.f32 %v2172_v46, %v12895_v7  ;;  %v12896_v52 = vsub.f32 %v8864_v59, %v9281_v8  ;;  %v12897_v19 = vsub.f32 %v8859_v22, %v9281_v8  ;;  %v2175_v10 = vmul.f32 %v7353_v48, %v2174_v11 }
 0x2ef   : > { %v2311_v60 = vmul.f32 %v2172_v46, %v12894_v25  ;;  %v2081_v42 = vsub.f32 %v8919_v37, %v9385_v21  ;;  %v9469_v25 = vadd.f32 1e-05, %v2051_v45  ;;  %v9471_v1 = vpack.c.bf16 %v2511_v54, %v2510_v38 }
 0x2f0   : > { %v2313_v14 = vmul.f32 %v2172_v46, %v12896_v52  ;;  %v2314_v6 = vmul.f32 %v2172_v46, %v12897_v19  ;;  %v2082_v59 = vsub.f32 %v8914_v20, %v9385_v21  ;;  %v2036_v7 = vsub.f32 %v2004_v27, %v2020_v40 }
 0x2f1   : > { %v1786_v23 = vpop.xlane.xlu2 %1785  ;;  %v2508_v22 = vmul.f32 %v9296_v9, %v2440_v15  ;;  %v2176_v8 = vmul.f32 0.5, %v2175_v10  ;;  %7354 = vrsqrt.f32 %v9469_v25  ;;  %v2509_v11 = vmul.f32 %v9298_v30, %v2441_v49 }
 0x2f2   : > { %v2372_v33 = vpack.c.bf16 %v2314_v6, %v2313_v14  ;;  %v9478_v46 = vmul.f32 %v9225_v5, %v1786_v23  ;;  %v9481_v45 = vpack.c.bf16 %v2312_v24, %v2311_v60  ;;  %vm2180_vm14 = vweird.f32 %v7353_v48 }
 0x2f3   : > { %v1953_v52 = vpop.xlane.xlu1 %1952  ;;  %v2177_v27 = vsub.f32 1.5, %v2176_v8  ;;  %v2052_v54 = vmax.f32 %v2036_v7, 0.0  ;;  %vm2181_vm15 = vmor %vm2179_vm13, %vm2180_vm14  ;;  %v12898_v7 = vsub.f32 %v8873_v3, %v9330_v18  ;;  %v12899_v58 = vsub.f32 %v8867_v2, %v9330_v18 }
 0x2f4   : > { %v2005_v10 = vmul.f32 %v1953_v52, %v9225_v5  ;;  %v2446_v40 = vunpack.c.l.bf16 %v2372_v33  ;;  %v2447_v60 = vunpack.c.h.bf16 %v2372_v33  ;;  %v2021_v23 = vmul.f32 %v9478_v46, %v9478_v46 }
 0x2f5   : > { %v2178_v24 = vmul.f32 %v7353_v48, %v2177_v27  ;;  %v9493_v6 = vadd.f32 1e-05, %v2052_v54  ;;  %vm2189_vm0 = vweird.f32 %v9469_v25 }
 0x2f6   : > { %v2037_v38 = vsub.f32 %v2005_v10, %v2021_v23  ;;  %v9520_v14 = vmul.f32 %v9303_v47, %v2446_v40  ;;  %v9523_v10 = vmul.f32 %v9305_v31, %v2447_v60 }
 0x2f7   : > { %v7355_v33 = vpop.eup %7354  ;;  %v2182_v27 = vsel %vm2181_vm15, %v7353_v48, %v2178_v24  ;;  %7356 = vrsqrt.f32 %v9493_v6  ;;  %v12900_v48 = vsub.f32 %v8883_v51, %v9330_v18  ;;  %v9533_v18 = vpack.c.bf16 %v9438_v61, %v9431_v63 }
 0x2f8   : > { %v2315_v52 = vmul.f32 %v2182_v27, %v12898_v7  ;;  %v2316_v8 = vmul.f32 %v2182_v27, %v12899_v58  ;;  %v2317_v32 = vmul.f32 %v2182_v27, %v2077_v62  ;;  %v2184_v3 = vmul.f32 %v7355_v33, %v9469_v25 }
 0x2f9   : > { %v1791_v15 = vpop.xlane.xlu0 %1790  ;;  %v2318_v24 = vmul.f32 %v2182_v27, %v12900_v48  ;;  %v2053_v2 = vmax.f32 %v2037_v38, 0.0  ;;  %v2570_v27 = vpack.c.bf16 %v2509_v11, %v2508_v22  ;;  %v9546_v58 = vunpack.c.l.bf16 %v9379_v4 }
 0x2fa   : > { %v2185_v40 = vmul.f32 %v7355_v33, %v2184_v3  ;;  %v9538_v7 = vmul.f32 %v9225_v5, %v1791_v15  ;;  %v9540_v38 = vpack.c.bf16 %v2316_v8, %v2315_v52  ;;  %v12901_v48 = vunpack.c.l.b16 %v9411_v36 }
 0x2fb   : > { %v2374_v23 = vpack.c.bf16 %v2318_v24, %v2317_v32  ;;  %v1958_v51 = vpop.xlane.xlu2 %1957  ;;  %v9535_v60 = vadd.f32 1e-05, %v2053_v2  ;;  %v9543_v32 = vunpack.c.l.bf16 %v9366_v43  ;;  %vm2190_vm1 = vweird.f32 %v7355_v33 }
 0x2fc   : > { %v9551_v63 = vpack.c.b16 %v12901_v48, %v12901_v48  ;;  %v2186_v3 = vmul.f32 0.5, %v2185_v40  ;;  %v2006_v22 = vmul.f32 %v1958_v51, %v9225_v5  ;;  %v2637_v15 = vunpack.c.l.bf16 %v9533_v18  ;;  %vm2191_vm3 = vmor %vm2189_vm0, %vm2190_vm1 }
 0x2fd   : > { %v7357_v61 = vpop.eup %7356  ;;  %v2450_v24 = vunpack.c.l.bf16 %v2374_v23  ;;  %7358 = vrsqrt.f32 %v9535_v60  ;;  %v2451_v11 = vunpack.c.h.bf16 %v2374_v23  ;;  %vm2199_vm2 = vweird.f32 %v9493_v6 }
 0x2fe   : > { %v2194_v43 = vmul.f32 %v7357_v61, %v9493_v6  ;;  %v2187_v4 = vsub.f32 1.5, %v2186_v3  ;;  %v2022_v2 = vmul.f32 %v9538_v7, %v9538_v7  ;;  %v2641_v54 = vunpack.c.l.bf16 %v2570_v27 }
 0x2ff   : > { %v9567_v3 = vmul.f32 %v9303_v47, %v2450_v24  ;;  %v9572_v8 = vmul.f32 %v9305_v31, %v2451_v11  ;;  %v12903_v25 = vsub.f32 %v8897_v26, %v9385_v21  ;;  %vm2200_vm4 = vweird.f32 %v7357_v61 }
 0x300   : > { %v2195_v48 = vmul.f32 %v7357_v61, %v2194_v43  ;;  %v2188_v62 = vmul.f32 %v7355_v33, %v2187_v4  ;;  %v2038_v0 = vsub.f32 %v2006_v22, %v2022_v2  ;;  %v2642_v43 = vunpack.c.h.bf16 %v2570_v27  ;;  %vm2201_vm6 = vmor %vm2199_vm2, %vm2200_vm4 }
 0x301   : > { %v1796_v40 = vpop.xlane.xlu0 %1795  ;;  %v2705_v4 = vadd.f32 %v9543_v32, %v2637_v15  ;;  %v2709_v52 = vadd.f32 %v9543_v32, %v2641_v54  ;;  %v12902_v22 = vsub.f32 %v8904_v55, %v9385_v21  ;;  %vm2209_vm5 = vweird.f32 %v9535_v60 }
 0x302   : > { %v2196_v23 = vmul.f32 0.5, %v2195_v48  ;;  %v9578_v51 = vmul.f32 %v9225_v5, %v1796_v40  ;;  %v2192_v24 = vsel %vm2191_vm3, %v7355_v33, %v2188_v62  ;;  %v2054_v19 = vmax.f32 %v2038_v0, 0.0 }
 0x303   : > { %v7359_v49 = vpop.eup %7358  ;;  %v2319_v11 = vmul.f32 %v2192_v24, %v12902_v22  ;;  %v2320_v2 = vmul.f32 %v2192_v24, %v12903_v25  ;;  %v2321_v40 = vmul.f32 %v2192_v24, %v2081_v42  ;;  %v2322_v33 = vmul.f32 %v2192_v24, %v2082_v59  ;;  %v12904_v59 = vld [vmem:[#allocation19_spill] sm:$0xff] }
 0x304   : > { %v2197_v0 = vsub.f32 1.5, %v2196_v23  ;;  %v2204_v54 = vmul.f32 %v7359_v49, %v9535_v60  ;;  %v9596_v55 = vadd.f32 1e-05, %v2054_v19  ;;  %v2094_v26 = vsub.f32 %v9001_v17, %v9538_v7  ;;  %v12905_v23 = vld [vmem:[#allocation21_spill] sm:$0xff] }
 0x305   : > { %v2376_v62 = vpack.c.bf16 %v2322_v33, %v2321_v40  ;;  %v2638_v27 = vunpack.c.h.bf16 %v9533_v18  ;;  %v2769_v37 = vpack.c.bf16 %v2709_v52, %v2705_v4  ;;  %v2095_v20 = vsub.f32 %v9022_v44, %v9578_v51 }
 0x306   : > { %v2198_v42 = vmul.f32 %v7357_v61, %v2197_v0  ;;  %v2205_v15 = vmul.f32 %v7359_v49, %v2204_v54  ;;  %7360 = vrsqrt.f32 %v9596_v55  ;;  %v9604_v21 = vpack.c.bf16 %v2320_v2, %v2319_v11 }
 0x307   : > { %v2096_v19 = vsub.f32 %v12904_v59, %v9578_v51  ;;  %v2097_v48 = vsub.f32 %v12905_v23, %v9578_v51  ;;  %v2710_v18 = vadd.f32 %v9546_v58, %v2642_v43  ;;  %v2801_v4 = vunpack.c.l.bf16 %v2769_v37 }
 0x308   : > { %v2202_v52 = vsel %vm2201_vm6, %v7357_v61, %v2198_v42  ;;  %v2206_v24 = vmul.f32 0.5, %v2205_v15  ;;  %v2805_v22 = vunpack.c.h.bf16 %v2769_v37  ;;  %v2454_v25 = vunpack.c.l.bf16 %v2376_v62 }
 0x309   : > { %v2455_v40 = vunpack.c.h.bf16 %v2376_v62  ;;  %vm2210_vm7 = vweird.f32 %v7359_v49  ;;  %v2706_v11 = vadd.f32 %v9546_v58, %v2638_v27  ;;  %v12906_v6 = vsub.f32 %v8945_v12, %v9428_v29 }
 0x30a   : > { %v12907_v33 = vsub.f32 %v8942_v35, %v9428_v29  ;;  %v2207_v54 = vsub.f32 1.5, %v2206_v24  ;;  %7362 = vtanh.f32 %v2801_v4  ;;  %v12908_v61 = vsub.f32 %v8932_v16, %v9428_v29  ;;  %v12910_v35 = vld [vmem:[#allocation20_spill] sm:$0xff]  ;;  %vm2211_vm8 = vmor %vm2209_vm5, %vm2210_vm7 }
 0x30b   : > { %v2325_v2 = vmul.f32 %v2202_v52, %v12906_v6  ;;  %v12909_v62 = vsub.f32 %v8922_v39, %v9428_v29  ;;  %7364 = vtanh.f32 %v2805_v22  ;;  %v2770_v27 = vpack.c.bf16 %v2710_v18, %v2706_v11 }
 0x30c   : > { %v2326_v0 = vmul.f32 %v2202_v52, %v12907_v33  ;;  %v2323_v43 = vmul.f32 %v2202_v52, %v12908_v61  ;;  %v7361_v42 = vpop.eup %7360  ;;  %v2208_v6 = vmul.f32 %v7359_v49, %v2207_v54  ;;  %v2098_v33 = vsub.f32 %v12910_v35, %v9578_v51 }
 0x30d   : > { %v2324_v37 = vmul.f32 %v2202_v52, %v12909_v62  ;;  %v9631_v4 = vmul.f32 %v9303_v47, %v2454_v25  ;;  %v2214_v39 = vmul.f32 %v7361_v42, %v9596_v55  ;;  %v2630_v16 = vpack.i.b16 %v9551_v63, %v9551_v63 }
 0x30e   : > { %v2378_v15 = vpack.c.bf16 %v2326_v0, %v2325_v2  ;;  %v9640_v29 = vmul.f32 %v9305_v31, %v2455_v40  ;;  %v2212_v18 = vsel %vm2211_vm8, %v7359_v49, %v2208_v6  ;;  %vm2219_vm9 = vweird.f32 %v9596_v55 }
 0x30f   : > { %v2802_v52 = vunpack.c.l.bf16 %v2770_v27  ;;  %v2616_v22 = vunpack.c.h.b16 %v9411_v36  ;;  %v9644_v25 = vpack.c.bf16 %v2324_v37, %v2323_v43  ;;  %v12911_v60 = vsub.f32 %v8978_v53, %v9478_v46 }
 0x310   : > { %v2458_v11 = vunpack.c.l.bf16 %v2378_v15  ;;  %v12912_v0 = vsub.f32 %v8973_v50, %v9478_v46  ;;  %v7363_v54 = vpop.eup %7362  ;;  %v2459_v40 = vunpack.c.h.bf16 %v2378_v15  ;;  %v12913_v49 = vsub.f32 %v8963_v56, %v9478_v46 }
 0x311   : > { %v2329_v2 = vmul.f32 %v2212_v18, %v12911_v60  ;;  %v2215_v62 = vmul.f32 %v7361_v42, %v2214_v39  ;;  %v2806_v6 = vunpack.c.h.bf16 %v2770_v27  ;;  %v7365_v36 = vpop.eup %7364  ;;  %v12914_v43 = vsub.f32 %v8956_v34, %v9478_v46  ;;  %v1963_v60 = vpop.xlane.xlu2 %1962 }
 0x312   : > { %v2330_v63 = vmul.f32 %v2212_v18, %v12912_v0  ;;  %v2327_v61 = vmul.f32 %v2212_v18, %v12913_v49  ;;  %7366 = vtanh.f32 %v2802_v52  ;;  %v2632_v53 = vperm.slane %v2630_v16, 0 }
 0x313   : > { %v2328_v37 = vmul.f32 %v2212_v18, %v12914_v43  ;;  %v2216_v12 = vmul.f32 0.5, %v2215_v62  ;;  %v2929_v50 = vpack.c.bf16 %v7365_v36, %v7363_v54  ;;  %7368 = vtanh.f32 %v2806_v6 }
 0x314   : > { %v2380_v24 = vpack.c.bf16 %v2330_v63, %v2329_v2  ;;  %v2620_v0 = vpack.c.b16 %v2616_v22, %v2616_v22  ;;  %v2456_v15 = vunpack.c.l.bf16 %v9644_v25  ;;  %v2457_v56 = vunpack.c.h.bf16 %v9644_v25 }
 0x315   : > { %vm2220_vm10 = vweird.f32 %v7361_v42  ;;  %v2023_v27 = vmul.f32 %v9578_v51, %v9578_v51  ;;  %v2217_v39 = vsub.f32 1.5, %v2216_v12  ;;  %3164 = vmatmul.bf16.vlgmr.msrb.gmra.mxu1 %v2929_v50  ;;  %v9662_v34 = vunpack.c.l.bf16 %v2632_v53 }
 0x316   : > { %v2634_v46 = vpack.i.b16 %v2620_v0, %v2620_v0  ;;  %v2007_v16 = vmul.f32 %v1963_v60, %v9225_v5  ;;  %v9666_v18 = vmul.f32 %v9303_v47, %v2458_v11  ;;  %v9669_v52 = vmul.f32 %v9305_v31, %v2459_v40  ;;  %vm2221_vm11 = vmor %vm2219_vm9, %vm2220_vm10 }
 0x317   : > { %v9671_v22 = vpack.c.bf16 %v2328_v37, %v2327_v61  ;;  %v2462_v2 = vunpack.c.l.bf16 %v2380_v24  ;;  %v2218_v63 = vmul.f32 %v7361_v42, %v2217_v39  ;;  %v12915_v54 = vunpack.c.l.bf16 %v9420_v13 }
 0x318   : > { %v12916_v49 = vunpack.c.l.bf16 %v9471_v1  ;;  %v2636_v6 = vperm.slane %v2634_v46, 0  ;;  %v7367_v36 = vpop.eup %7366  ;;  %v2039_v11 = vsub.f32 %v2007_v16, %v2023_v27  ;;  %v12917_v40 = vunpack.c.l.bf16 %v9481_v45 }
 0x319   : > { %v2707_v12 = vadd.f32 %v9662_v34, %v12915_v54  ;;  %v12918_v43 = vunpack.c.h.bf16 %v9481_v45  ;;  %v12919_v53 = vunpack.c.l.bf16 %v9540_v38  ;;  %v7369_v50 = vpop.eup %7368  ;;  %v2222_v0 = vsel %vm2221_vm11, %v7361_v42, %v2218_v63 }
 0x31a   : > { %v2711_v62 = vadd.f32 %v9662_v34, %v12916_v49  ;;  %v2512_v61 = vmul.f32 %v9296_v9, %v12917_v40  ;;  %v9691_v46 = vunpack.c.l.bf16 %v2636_v6  ;;  %v12920_v55 = vunpack.c.h.bf16 %v9540_v38  ;;  %v1801_v6 = vpop.xlane.xlu1 %1800 }
 0x31b   : > { %v2513_v37 = vmul.f32 %v9298_v30, %v12918_v43  ;;  %v2516_v60 = vmul.f32 %v9296_v9, %v12919_v53  ;;  %v12921_v16 = vsub.f32 %v8991_v41, %v9538_v7  ;;  %v12922_v45 = vsub.f32 %v8981_v57, %v9538_v7 }
 0x31c   : > { %v2771_v39 = vpack.c.bf16 %v2711_v62, %v2707_v12  ;;  %v2517_v27 = vmul.f32 %v9298_v30, %v12920_v55  ;;  %v12923_v40 = vsub.f32 %v9004_v28, %v9538_v7  ;;  %v2334_v42 = vmul.f32 %v2222_v0, %v2094_v26  ;;  %v1968_v26 = vpop.xlane.xlu0 %1967 }
 0x31d   : > { %v2331_v54 = vmul.f32 %v2222_v0, %v12921_v16  ;;  %v2332_v49 = vmul.f32 %v2222_v0, %v12922_v45  ;;  %v2463_v63 = vunpack.c.h.bf16 %v2380_v24  ;;  %v2930_v38 = vpack.c.bf16 %v7369_v50, %v7367_v36 }
 0x31e   : > { %v2333_v43 = vmul.f32 %v2222_v0, %v12923_v40  ;;  %v2803_v12 = vunpack.c.l.bf16 %v2771_v39  ;;  %v2807_v62 = vunpack.c.h.bf16 %v2771_v39  ;;  %v12924_v55 = vunpack.c.h.bf16 %v9471_v1 }
 0x31f   : > { %v9708_v53 = vpack.c.bf16 %v2332_v49, %v2331_v54  ;;  %v2055_v16 = vmax.f32 %v2039_v11, 0.0  ;;  %3213 = vmatmul.bf16.vlgmr.msra.gmra.mxu2 %v2930_v38  ;;  %v12925_v17 = vunpack.c.h.bf16 %v9420_v13  ;;  %v9719_v24 = vmul.f32 %v9303_v47, %v2462_v2  ;;  %v12926_v38 = vld [vmem:[#allocation23_spill] sm:$0xff] }
 0x320   : > { %v2382_v41 = vpack.c.bf16 %v2334_v42, %v2333_v43  ;;  %v2712_v57 = vadd.f32 %v9691_v46, %v12924_v55  ;;  %7370 = vtanh.f32 %v2803_v12  ;;  %v9722_v36 = vmul.f32 %v9225_v5, %v1801_v6 }
 0x321   : > { %v2708_v7 = vadd.f32 %v9691_v46, %v12925_v17  ;;  %v2572_v1 = vpack.c.bf16 %v2513_v37, %v2512_v61  ;;  %v2574_v50 = vpack.c.bf16 %v2517_v27, %v2516_v60  ;;  %v9725_v11 = vmul.f32 %v9305_v31, %v2463_v63  ;;  %v12927_v17 = vld [vmem:[#allocation22_spill] sm:$0xff] }
 0x322   : > { %7372 = vtanh.f32 %v2807_v62  ;;  %v9727_v39 = vadd.f32 1e-05, %v2055_v16  ;;  %v2466_v54 = vunpack.c.l.bf16 %v2382_v41  ;;  %v2008_v49 = vmul.f32 %v1968_v26, %v9225_v5  ;;  %v12928_v26 = vld [vmem:[#allocation25_spill] sm:$0xff] }
 0x323   : > { %v2772_v0 = vpack.c.bf16 %v2712_v57, %v2708_v7  ;;  %v2573_v2 = vpack.c.bf16 %v9523_v10, %v9520_v14  ;;  %v2467_v40 = vunpack.c.h.bf16 %v2382_v41  ;;  %v2024_v37 = vmul.f32 %v9722_v36, %v9722_v36 }
 0x324   : > { %7374 = vrsqrt.f32 %v9727_v39  ;;  %v2645_v60 = vunpack.c.l.bf16 %v2572_v1  ;;  %v2649_v27 = vunpack.c.l.bf16 %v2574_v50  ;;  %v2646_v62 = vunpack.c.h.bf16 %v2572_v1 }
 0x325   : > { %v2804_v43 = vunpack.c.l.bf16 %v2772_v0  ;;  %v2808_v42 = vunpack.c.h.bf16 %v2772_v0  ;;  %v2650_v6 = vunpack.c.h.bf16 %v2574_v50  ;;  %v2040_v14 = vsub.f32 %v2008_v49, %v2024_v37  ;;  %v12929_v0 = vld [vmem:[#allocation24_spill] sm:$0xff] }
 0x326   : > { %v7371_v63 = vpop.eup %7370  ;;  %v2713_v10 = vadd.f32 %v9543_v32, %v2645_v60  ;;  %v2717_v41 = vadd.f32 %v9543_v32, %v2649_v27  ;;  %v9742_v57 = vmul.f32 %v9303_v47, %v2466_v54  ;;  %v9745_v16 = vmul.f32 %v9305_v31, %v2467_v40 }
 0x327   : > { %7376 = vtanh.f32 %v2804_v43  ;;  %v2056_v43 = vmax.f32 %v2040_v14, 0.0  ;;  %v2714_v54 = vadd.f32 %v9546_v58, %v2646_v62  ;;  %v2718_v27 = vadd.f32 %v9546_v58, %v2650_v6 }
 0x328   : > { %7378 = vtanh.f32 %v2808_v42  ;;  %v7373_v55 = vpop.eup %7372  ;;  %v1806_v42 = vpop.xlane.xlu1 %1805  ;;  %v2773_v37 = vpack.c.bf16 %v2717_v41, %v2713_v10  ;;  %v2575_v40 = vpack.c.bf16 %v9572_v8, %v9567_v3  ;;  %v2647_v61 = vunpack.c.l.bf16 %v2573_v2 }
 0x329   : > { %v2931_v50 = vpack.c.bf16 %v7373_v55, %v7371_v63  ;;  %vm2229_vm12 = vweird.f32 %v9727_v39  ;;  %v9759_v63 = vadd.f32 1e-05, %v2056_v43  ;;  %v2648_v14 = vunpack.c.h.bf16 %v2573_v2 }
 0x32a   : > { %v7375_v60 = vpop.eup %7374  ;;  %v2809_v55 = vunpack.c.l.bf16 %v2773_v37  ;;  %v9762_v10 = vmul.f32 %v9225_v5, %v1806_v42  ;;  %v2813_v62 = vunpack.c.h.bf16 %v2773_v37  ;;  %v2774_v41 = vpack.c.bf16 %v2718_v27, %v2714_v54 }
 0x32b   : > { %3262 = vmatmul.bf16.vlgmr.msrb.gmra.mxu3 %v2931_v50  ;;  %v2224_v13 = vmul.f32 %v7375_v60, %v9727_v39  ;;  %v2651_v6 = vunpack.c.l.bf16 %v2575_v40  ;;  %7380 = vrsqrt.f32 %v9759_v63  ;;  %v2715_v8 = vadd.f32 %v9662_v34, %v2647_v61  ;;  %v1973_v50 = vpop.xlane.xlu0 %1972 }
 0x32c   : > { %v2652_v3 = vunpack.c.h.bf16 %v2575_v40  ;;  %7382 = vtanh.f32 %v2809_v55  ;;  %v2810_v43 = vunpack.c.l.bf16 %v2774_v41  ;;  %v2814_v7 = vunpack.c.h.bf16 %v2774_v41  ;;  %v12931_v55 = vld [vmem:[#allocation26_spill] sm:$0xff] }
 0x32d   : > { %v7377_v45 = vpop.eup %7376  ;;  %v2225_v49 = vmul.f32 %v7375_v60, %v2224_v13  ;;  %7384 = vtanh.f32 %v2813_v62  ;;  %v2719_v42 = vadd.f32 %v9662_v34, %v2651_v6  ;;  %v2716_v37 = vadd.f32 %v9691_v46, %v2648_v14 }
 0x32e   : > { %v7379_v28 = vpop.eup %7378  ;;  %7386 = vtanh.f32 %v2810_v43  ;;  %v2720_v13 = vadd.f32 %v9691_v46, %v2652_v3  ;;  %v2025_v54 = vmul.f32 %v9762_v10, %v9762_v10  ;;  %v2009_v61 = vmul.f32 %v1973_v50, %v9225_v5  ;;  %v12932_v3 = vld [vmem:[#allocation29_spill] sm:$0xff] }
 0x32f   : > { %v2932_v1 = vpack.c.bf16 %v7379_v28, %v7377_v45  ;;  %v2226_v2 = vmul.f32 0.5, %v2225_v49  ;;  %vm2230_vm13 = vweird.f32 %v7375_v60  ;;  %7388 = vtanh.f32 %v2814_v7  ;;  %v1811_v45 = vpop.xlane.xlu2 %1810  ;;  %v12930_v49 = vld [vmem:[#allocation27_spill] sm:$0xff] }
 0x330   : > { %v2775_v28 = vpack.c.bf16 %v2719_v42, %v2715_v8  ;;  %v2103_v40 = vsub.f32 %v12930_v49, %v9762_v10  ;;  %v2041_v62 = vsub.f32 %v2009_v61, %v2025_v54  ;;  %vm2231_vm14 = vmor %vm2229_vm12, %vm2230_vm13  ;;  %v12933_v8 = vld [vmem:[#allocation28_spill] sm:$0xff]  ;;  %vm2239_vm15 = vweird.f32 %v9759_v63 }
 0x331   : > { %3311 = vmatmul.bf16.vlgmr.msra.gmra.mxu0 %v2932_v1  ;;  %v2227_v27 = vsub.f32 1.5, %v2226_v2  ;;  %v2776_v1 = vpack.c.bf16 %v2720_v13, %v2716_v37  ;;  %v9776_v41 = vpop.eup %7380  ;;  %v9787_v13 = vmul.f32 %v9225_v5, %v1811_v45  ;;  %v1978_v45 = vpop.xlane.xlu1 %1977  ;;  %v2577_v25 = vpack.c.bf16 %v9640_v29, %v9631_v4 }
 0x332   : > { %v2811_v50 = vunpack.c.l.bf16 %v2775_v28  ;;  %v2815_v2 = vunpack.c.h.bf16 %v2775_v28  ;;  %v7383_v12 = vpop.eup %7382  ;;  %v2234_v7 = vmul.f32 %v9776_v41, %v9759_v63  ;;  %v2057_v43 = vmax.f32 %v2041_v62, 0.0 }
 0x333   : > { %v2228_v6 = vmul.f32 %v7375_v60, %v2227_v27  ;;  %v2812_v37 = vunpack.c.l.bf16 %v2776_v1  ;;  %v7385_v54 = vpop.eup %7384  ;;  %v2816_v27 = vunpack.c.h.bf16 %v2776_v1  ;;  %v2010_v51 = vmul.f32 %v1978_v45, %v9225_v5 }
 0x334   : > { %7390 = vtanh.f32 %v2811_v50  ;;  %v7387_v28 = vpop.eup %7386  ;;  %v2235_v62 = vmul.f32 %v9776_v41, %v2234_v7  ;;  %v9802_v44 = vadd.f32 1e-05, %v2057_v43  ;;  %vm2240_vm0 = vweird.f32 %v9776_v41  ;;  %v12937_v7 = vld [vmem:[#allocation33_spill] sm:$0xff] }
 0x335   : > { %v2232_v61 = vsel %vm2231_vm14, %v7375_v60, %v2228_v6  ;;  %v7389_v1 = vpop.eup %7388  ;;  %v2933_v6 = vpack.c.bf16 %v7385_v54, %v7383_v12  ;;  %7392 = vtanh.f32 %v2815_v2  ;;  %vm2241_vm1 = vmor %vm2239_vm15, %vm2240_vm0  ;;  %v12941_v63 = vsub.f32 %v12927_v17, %v9722_v36 }
 0x336   : > { %v2335_v39 = vmul.f32 %v2232_v61, %v2095_v20  ;;  %v2336_v14 = vmul.f32 %v2232_v61, %v2096_v19  ;;  %v2337_v42 = vmul.f32 %v2232_v61, %v2097_v48  ;;  %v2338_v60 = vmul.f32 %v2232_v61, %v2098_v33  ;;  %v12934_v48 = vld [vmem:[#allocation31_spill] sm:$0xff]  ;;  %v12935_v33 = vld [vmem:[#allocation30_spill] sm:$0xff] }
 0x337   : > { %v2934_v59 = vpack.c.bf16 %v7389_v1, %v7387_v28  ;;  %7394 = vtanh.f32 %v2812_v37  ;;  %v2236_v23 = vmul.f32 0.5, %v2235_v62  ;;  %3169 = vmatmul.bf16.gmra.mxu1 %v2933_v6  ;;  %v2107_v35 = vsub.f32 %v12934_v48, %v9787_v13 }
 0x338   : > { %v9804_v20 = vpack.c.bf16 %v2336_v14, %v2335_v39  ;;  %v2384_v19 = vpack.c.bf16 %v2338_v60, %v2337_v42  ;;  %7396 = vtanh.f32 %v2816_v27  ;;  %v2108_v12 = vsub.f32 %v12935_v33, %v9787_v13 }
 0x339   : > { %3218 = vmatmul.bf16.gmra.mxu2 %v2934_v59  ;;  %v12936_v14 = vunpack.c.l.bf16 %v9604_v21  ;;  %v2237_v2 = vsub.f32 1.5, %v2236_v23  ;;  %7398 = vrsqrt.f32 %v9802_v44  ;;  %v2109_v42 = vsub.f32 %v12937_v7, %v9787_v13 }
 0x33a   : > { %v7391_v50 = vpop.eup %7390  ;;  %v2026_v37 = vmul.f32 %v9787_v13, %v9787_v13  ;;  %v12938_v27 = vunpack.c.h.bf16 %v9604_v21  ;;  %v2524_v39 = vmul.f32 %v9296_v9, %v2456_v15  ;;  %v2470_v45 = vunpack.c.l.bf16 %v2384_v19 }
 0x33b   : > { %v2520_v43 = vmul.f32 %v9296_v9, %v12936_v14  ;;  %v7393_v60 = vpop.eup %7392  ;;  %v2238_v1 = vmul.f32 %v9776_v41, %v2237_v2  ;;  %v2525_v6 = vmul.f32 %v9298_v30, %v2457_v56  ;;  %v2471_v23 = vunpack.c.h.bf16 %v2384_v19  ;;  %v12939_v14 = vld [vmem:[#allocation32_spill] sm:$0xff] }
 0x33c   : > { %v2521_v28 = vmul.f32 %v9298_v30, %v12938_v27  ;;  %v2042_v62 = vsub.f32 %v2010_v51, %v2026_v37  ;;  %v2935_v21 = vpack.c.bf16 %v7393_v60, %v7391_v50  ;;  %v2110_v15 = vsub.f32 %v12939_v14, %v9787_v13 }
 0x33d   : > { %v7395_v59 = vpop.eup %7394  ;;  %v2242_v2 = vsel %vm2241_vm1, %v9776_v41, %v2238_v1  ;;  %v2578_v37 = vpack.c.bf16 %v2525_v6, %v2524_v39  ;;  %v12940_v56 = vsub.f32 %v12926_v38, %v9722_v36  ;;  %v12942_v60 = vsub.f32 %v12928_v26, %v9722_v36 }
 0x33e   : > { %v2576_v27 = vpack.c.bf16 %v2521_v28, %v2520_v43  ;;  %v7397_v61 = vpop.eup %7396  ;;  %v2058_v51 = vmax.f32 %v2042_v62, 0.0  ;;  %v2340_v50 = vmul.f32 %v2242_v2, %v12941_v63  ;;  %v12943_v41 = vsub.f32 %v12929_v0, %v9722_v36  ;;  %3267 = vmatmul.bf16.gmra.mxu3 %v2935_v21 }
 0x33f   : > { %v2339_v19 = vmul.f32 %v2242_v2, %v12940_v56  ;;  %v2341_v43 = vmul.f32 %v2242_v2, %v12942_v60  ;;  %v7399_v39 = vpop.eup %7398  ;;  %v2936_v1 = vpack.c.bf16 %v7397_v61, %v7395_v59  ;;  %v2657_v38 = vunpack.c.l.bf16 %v2578_v37 }
 0x340   : > { %v2342_v28 = vmul.f32 %v2242_v2, %v12943_v41  ;;  %v9854_v4 = vadd.f32 1e-05, %v2058_v51  ;;  %v2653_v29 = vunpack.c.l.bf16 %v2576_v27  ;;  %v2244_v17 = vmul.f32 %v7399_v39, %v9802_v44 }
 0x341   : > { %v9856_v62 = vpack.c.bf16 %v2340_v50, %v2339_v19  ;;  %v2579_v26 = vpack.c.bf16 %v9669_v52, %v9666_v18  ;;  %v9862_v56 = vmul.f32 %v9303_v47, %v2470_v45  ;;  %3316 = vmatmul.bf16.gmra.mxu0 %v2936_v1  ;;  %vm2249_vm2 = vweird.f32 %v9802_v44 }
 0x342   : > { %v2386_v6 = vpack.c.bf16 %v2342_v28, %v2341_v43  ;;  %7400 = vrsqrt.f32 %v9854_v4  ;;  %v2721_v36 = vadd.f32 %v9543_v32, %v2653_v29  ;;  %v2725_v0 = vadd.f32 %v9543_v32, %v2657_v38 }
 0x343   : > { %v9869_v61 = vmul.f32 %v9305_v31, %v2471_v23  ;;  %vm2250_vm3 = vweird.f32 %v7399_v39  ;;  %v2655_v59 = vunpack.c.l.bf16 %v2577_v25  ;;  %v12944_v21 = vunpack.c.l.bf16 %v9671_v22 }
 0x344   : > { %v2245_v52 = vmul.f32 %v7399_v39, %v2244_v17  ;;  %v2777_v45 = vpack.c.bf16 %v2725_v0, %v2721_v36  ;;  %v2654_v2 = vunpack.c.h.bf16 %v2576_v27  ;;  %v2658_v51 = vunpack.c.h.bf16 %v2578_v37  ;;  %vm2251_vm5 = vmor %vm2249_vm2, %vm2250_vm3 }
 0x345   : > { %v9874_v18 = vmul.f32 %v9296_v9, %v12944_v21  ;;  %v2474_v63 = vunpack.c.l.bf16 %v2386_v6  ;;  %v2475_v50 = vunpack.c.h.bf16 %v2386_v6  ;;  %v2659_v60 = vunpack.c.l.bf16 %v2579_v26 }
 0x346   : > { %v2246_v43 = vmul.f32 0.5, %v2245_v52  ;;  %v2817_v41 = vunpack.c.l.bf16 %v2777_v45  ;;  %v2821_v23 = vunpack.c.h.bf16 %v2777_v45  ;;  %v2722_v28 = vadd.f32 %v9546_v58, %v2654_v2  ;;  %v1816_v45 = vpop.xlane.xlu2 %1815 }
 0x347   : > { %v2726_v1 = vadd.f32 %v9546_v58, %v2658_v51  ;;  %v2727_v29 = vadd.f32 %v9662_v34, %v2659_v60  ;;  %v2656_v38 = vunpack.c.h.bf16 %v2577_v25  ;;  %v2660_v21 = vunpack.c.h.bf16 %v2579_v26 }
 0x348   : > { %v7401_v17 = vpop.eup %7400  ;;  %v2247_v37 = vsub.f32 1.5, %v2246_v43  ;;  %7402 = vtanh.f32 %v2817_v41  ;;  %v2723_v36 = vadd.f32 %v9662_v34, %v2655_v59  ;;  %v9883_v6 = vmul.f32 %v9303_v47, %v2474_v63  ;;  %v1983_v41 = vpop.xlane.xlu1 %1982 }
 0x349   : > { %v2254_v0 = vmul.f32 %v7401_v17, %v9854_v4  ;;  %7404 = vtanh.f32 %v2821_v23  ;;  %v2778_v52 = vpack.c.bf16 %v2726_v1, %v2722_v28  ;;  %vm2259_vm4 = vweird.f32 %v9854_v4  ;;  %v1821_v23 = vpop.xlane.xlu0 %1820 }
 0x34a   : > { %v2248_v2 = vmul.f32 %v7399_v39, %v2247_v37  ;;  %v2779_v25 = vpack.c.bf16 %v2727_v29, %v2723_v36  ;;  %v2724_v26 = vadd.f32 %v9691_v46, %v2656_v38  ;;  %v2728_v51 = vadd.f32 %v9691_v46, %v2660_v21 }
 0x34b   : > { %v9890_v60 = vmul.f32 %v9305_v31, %v2475_v50  ;;  %v2255_v59 = vmul.f32 %v7401_v17, %v2254_v0  ;;  %v2818_v63 = vunpack.c.l.bf16 %v2778_v52  ;;  %v2822_v43 = vunpack.c.h.bf16 %v2778_v52 }
 0x34c   : > { %v2252_v28 = vsel %vm2251_vm5, %v7399_v39, %v2248_v2  ;;  %v2819_v1 = vunpack.c.l.bf16 %v2779_v25  ;;  %v2780_v37 = vpack.c.bf16 %v2728_v51, %v2724_v26  ;;  %v9896_v29 = vmul.f32 %v9225_v5, %v1816_v45 }
 0x34d   : > { %v2343_v50 = vmul.f32 %v2252_v28, %v2103_v40  ;;  %v12945_v38 = vsub.f32 %v12931_v55, %v9762_v10  ;;  %v12946_v21 = vsub.f32 %v12932_v3, %v9762_v10  ;;  %v12947_v39 = vsub.f32 %v12933_v8, %v9762_v10  ;;  %v12948_v10 = vld [vmem:[#allocation35_spill] sm:$0xff] }
 0x34e   : > { %v7403_v52 = vpop.eup %7402  ;;  %v2256_v2 = vmul.f32 0.5, %v2255_v59  ;;  %7406 = vtanh.f32 %v2818_v63  ;;  %v2823_v45 = vunpack.c.h.bf16 %v2779_v25  ;;  %v2011_v26 = vmul.f32 %v1983_v41, %v9225_v5  ;;  %v12949_v59 = vld [vmem:[#allocation34_spill] sm:$0xff]  ;;  %v12950_v25 = vld [vmem:[#allocation37_spill] sm:$0xff] }
 0x34f   : > { %v2344_v44 = vmul.f32 %v2252_v28, %v12945_v38  ;;  %v2345_v36 = vmul.f32 %v2252_v28, %v12946_v21  ;;  %v2346_v0 = vmul.f32 %v2252_v28, %v12947_v39  ;;  %v7405_v49 = vpop.eup %7404  ;;  %7408 = vtanh.f32 %v2822_v43 }
 0x350   : > { %v2820_v55 = vunpack.c.l.bf16 %v2780_v37  ;;  %v2257_v38 = vsub.f32 1.5, %v2256_v2  ;;  %vm2260_vm6 = vweird.f32 %v7401_v17  ;;  %v2937_v3 = vpack.c.bf16 %v7405_v49, %v7403_v52 }
 0x351   : > { %v9911_v40 = vpack.c.bf16 %v2344_v44, %v2343_v50  ;;  %v2388_v51 = vpack.c.bf16 %v2346_v0, %v2345_v36  ;;  %v2824_v21 = vunpack.c.h.bf16 %v2780_v37  ;;  %7410 = vtanh.f32 %v2819_v1  ;;  %vm2261_vm7 = vmor %vm2259_vm4, %vm2260_vm6  ;;  %v1988_v36 = vpop.xlane.xlu2 %1987  ;;  %v12956_v37 = vld [vmem:[#allocation40_spill] sm:$0xff] }
 0x352   : > { %v2258_v50 = vmul.f32 %v7401_v17, %v2257_v38  ;;  %3174 = vmatmul.bf16.gmra.mxu1 %v2937_v3  ;;  %7412 = vtanh.f32 %v2823_v45  ;;  %v2027_v43 = vmul.f32 %v9896_v29, %v9896_v29  ;;  %v9927_v2 = vmul.f32 %v9225_v5, %v1821_v23 }
 0x353   : > { %v2478_v1 = vunpack.c.l.bf16 %v2388_v51  ;;  %v2479_v44 = vunpack.c.h.bf16 %v2388_v51  ;;  %7414 = vtanh.f32 %v2820_v55  ;;  %v12951_v55 = vld [vmem:[#allocation36_spill] sm:$0xff]  ;;  %v2012_v48 = vmul.f32 %v1988_v36, %v9225_v5 }
 0x354   : > { %v7407_v39 = vpop.eup %7406  ;;  %v2262_v0 = vsel %vm2261_vm7, %v7401_v17, %v2258_v50  ;;  %7416 = vtanh.f32 %v2824_v21  ;;  %v2043_v52 = vsub.f32 %v2011_v26, %v2027_v43  ;;  %v1826_v26 = vpop.xlane.xlu0 %1825  ;;  %v2028_v50 = vmul.f32 %v9927_v2, %v9927_v2 }
 0x355   : > { %v7409_v45 = vpop.eup %7408  ;;  %v2347_v49 = vmul.f32 %v2262_v0, %v2107_v35  ;;  %v2348_v51 = vmul.f32 %v2262_v0, %v2108_v12  ;;  %v2349_v4 = vmul.f32 %v2262_v0, %v2109_v42  ;;  %v2350_v17 = vmul.f32 %v2262_v0, %v2110_v15  ;;  %v12952_v15 = vld [vmem:[#allocation39_spill] sm:$0xff]  ;;  %v1831_v21 = vpop.xlane.xlu1 %1830 }
 0x356   : > { %v2938_v23 = vpack.c.bf16 %v7409_v45, %v7407_v39  ;;  %v2059_v3 = vmax.f32 %v2043_v52, 0.0  ;;  %v9945_v33 = vmul.f32 %v9303_v47, %v2478_v1  ;;  %v9948_v12 = vmul.f32 %v9305_v31, %v2479_v44  ;;  %v12953_v39 = vld [vmem:[#allocation38_spill] sm:$0xff] }
 0x357   : > { %v7411_v35 = vpop.eup %7410  ;;  %v9950_v7 = vpack.c.bf16 %v2348_v51, %v2347_v49  ;;  %v2390_v42 = vpack.c.bf16 %v2350_v17, %v2349_v4  ;;  %v9959_v43 = vmul.f32 %v9225_v5, %v1826_v26  ;;  %v12954_v52 = vunpack.c.h.bf16 %v9671_v22  ;;  %v12955_v4 = vld [vmem:[#allocation41_spill] sm:$0xff]  ;;  %v12964_v26 = vld [vmem:[#allocation44_spill] sm:$0xff] }
 0x358   : > { %v7413_v13 = vpop.eup %7412  ;;  %3223 = vmatmul.bf16.gmra.mxu2 %v2938_v23  ;;  %v9952_v14 = vadd.f32 1e-05, %v2059_v3  ;;  %v2044_v23 = vsub.f32 %v2012_v48, %v2028_v50  ;;  %v12960_v48 = vunpack.c.l.bf16 %v9708_v53 }
 0x359   : > { %v7415_v1 = vpop.eup %7414  ;;  %v2482_v36 = vunpack.c.l.bf16 %v2390_v42  ;;  %v2483_v44 = vunpack.c.h.bf16 %v2390_v42  ;;  %v2529_v45 = vmul.f32 %v9298_v30, %v12954_v52  ;;  %v2939_v51 = vpack.c.bf16 %v7413_v13, %v7411_v35  ;;  %v12959_v13 = vld [vmem:[#allocation43_spill] sm:$0xff]  ;;  %v1993_v3 = vpop.xlane.xlu2 %1992 }
 0x35a   : > { %v7417_v49 = vpop.eup %7416  ;;  %7418 = vrsqrt.f32 %v9952_v14  ;;  %v2060_v35 = vmax.f32 %v2044_v23, 0.0  ;;  %v2532_v50 = vmul.f32 %v9296_v9, %v12960_v48  ;;  %v12962_v23 = vld [vmem:[#allocation42_spill] sm:$0xff]  ;;  %v2583_v48 = vpack.c.bf16 %v9745_v16, %v9742_v57 }
 0x35b   : > { %v2940_v42 = vpack.c.bf16 %v7417_v49, %v7415_v1  ;;  %v9974_v22 = vmul.f32 %v9303_v47, %v2482_v36  ;;  %v9977_v52 = vmul.f32 %v9305_v31, %v2483_v44  ;;  %3272 = vmatmul.bf16.gmra.mxu3 %v2939_v51  ;;  %v12961_v1 = vunpack.c.h.bf16 %v9708_v53 }
 0x35c   : > { %v2580_v36 = vpack.c.bf16 %v2529_v45, %v9874_v18  ;;  %v2581_v44 = vpack.c.bf16 %v9725_v11, %v9719_v24  ;;  %v9990_v51 = vadd.f32 1e-05, %v2060_v35  ;;  %v2029_v18 = vmul.f32 %v9959_v43, %v9959_v43 }
 0x35d   : > { %12957 = vst [vmem:[#allocation19_spill] sm:$0xff] %v9974_v22  ;;  %3321 = vmatmul.bf16.gmra.mxu0 %v2940_v42  ;;  %v2533_v49 = vmul.f32 %v9298_v30, %v12961_v1  ;;  %v12963_v42 = vld [vmem:[#allocation45_spill] sm:$0xff]  ;;  %v2667_v11 = vunpack.c.l.bf16 %v2583_v48  ;;  %v2013_v35 = vmul.f32 %v1993_v3, %v9225_v5  ;;  %vm2269_vm8 = vweird.f32 %v9952_v14 }
 0x35e   : > { %12958 = vst [vmem:[#allocation21_spill] sm:$0xff] %v9977_v52  ;;  %v2661_v19 = vunpack.c.l.bf16 %v2580_v36  ;;  %v2663_v1 = vunpack.c.l.bf16 %v2581_v44  ;;  %7420 = vrsqrt.f32 %v9990_v51  ;;  %v2662_v24 = vunpack.c.h.bf16 %v2580_v36 }
 0x35f   : > { %v2582_v53 = vpack.c.bf16 %v2533_v49, %v2532_v50  ;;  %v2664_v50 = vunpack.c.h.bf16 %v2581_v44  ;;  %v2735_v28 = vadd.f32 %v9662_v34, %v2667_v11  ;;  %v2668_v0 = vunpack.c.h.bf16 %v2583_v48  ;;  %v1998_v44 = vpop.xlane.xlu0 %1997 }
 0x360   : > { %v7419_v45 = vpop.eup %7418  ;;  %v2731_v54 = vadd.f32 %v9662_v34, %v2663_v1  ;;  %v2729_v36 = vadd.f32 %v9543_v32, %v2661_v19  ;;  %v2730_v38 = vadd.f32 %v9546_v58, %v2662_v24  ;;  %v2045_v63 = vsub.f32 %v2013_v35, %v2029_v18 }
 0x361   : > { %v2264_v27 = vmul.f32 %v7419_v45, %v9952_v14  ;;  %v2665_v16 = vunpack.c.l.bf16 %v2582_v53  ;;  %vm2270_vm9 = vweird.f32 %v7419_v45  ;;  %v2666_v49 = vunpack.c.h.bf16 %v2582_v53 }
 0x362   : > { %v2783_v57 = vpack.c.bf16 %v2735_v28, %v2731_v54  ;;  %v2732_v1 = vadd.f32 %v9691_v46, %v2664_v50  ;;  %v2736_v11 = vadd.f32 %v9691_v46, %v2668_v0  ;;  %v2061_v22 = vmax.f32 %v2045_v63, 0.0  ;;  %vm2271_vm11 = vmor %vm2269_vm8, %vm2270_vm9 }
 0x363   : > { %v2265_v17 = vmul.f32 %v7419_v45, %v2264_v27  ;;  %v2733_v3 = vadd.f32 %v9543_v32, %v2665_v16  ;;  %v2734_v41 = vadd.f32 %v9546_v58, %v2666_v49  ;;  %v10015_v48 = vmul.f32 %v9225_v5, %v1831_v21 }
 0x364   : > { %v7421_v27 = vpop.eup %7420  ;;  %v2827_v19 = vunpack.c.l.bf16 %v2783_v57  ;;  %vm2279_vm10 = vweird.f32 %v9990_v51  ;;  %v2014_v28 = vmul.f32 %v1998_v44, %v9225_v5  ;;  %v10023_v63 = vadd.f32 1e-05, %v2061_v22 }
 0x365   : > { %v2266_v8 = vmul.f32 0.5, %v2265_v17  ;;  %v2781_v53 = vpack.c.bf16 %v2733_v3, %v2729_v36  ;;  %v2782_v52 = vpack.c.bf16 %v2734_v41, %v2730_v38  ;;  %v2274_v24 = vmul.f32 %v7421_v27, %v9990_v51 }
 0x366   : > { %7422 = vtanh.f32 %v2827_v19  ;;  %v2784_v41 = vpack.c.bf16 %v2736_v11, %v2732_v1  ;;  %vm2280_vm12 = vweird.f32 %v7421_v27  ;;  %v12966_v3 = vsub.f32 %v12949_v59, %v9896_v29  ;;  %v12969_v11 = vld [vmem:[#allocation47_spill] sm:$0xff]  ;;  %v12970_v59 = vld [vmem:[#allocation46_spill] sm:$0xff] }
 0x367   : > { %v2267_v16 = vsub.f32 1.5, %v2266_v8  ;;  %v2825_v54 = vunpack.c.l.bf16 %v2781_v53  ;;  %v2829_v17 = vunpack.c.h.bf16 %v2781_v53  ;;  %v2826_v18 = vunpack.c.l.bf16 %v2782_v52  ;;  %vm2281_vm13 = vmor %vm2279_vm10, %vm2280_vm12 }
 0x368   : > { %v2830_v35 = vunpack.c.h.bf16 %v2782_v52  ;;  %v2275_v50 = vmul.f32 %v7421_v27, %v2274_v24  ;;  %v2831_v8 = vunpack.c.h.bf16 %v2783_v57  ;;  %v2828_v49 = vunpack.c.l.bf16 %v2784_v41 }
 0x369   : > { %v2268_v0 = vmul.f32 %v7419_v45, %v2267_v16  ;;  %7424 = vtanh.f32 %v2825_v54  ;;  %v12965_v52 = vsub.f32 %v12948_v10, %v9896_v29  ;;  %v12967_v14 = vsub.f32 %v12950_v25, %v9896_v29 }
 0x36a   : > { %7426 = vtanh.f32 %v2829_v17  ;;  %v2276_v21 = vmul.f32 0.5, %v2275_v50  ;;  %v12968_v22 = vsub.f32 %v12951_v55, %v9896_v29  ;;  %v2832_v1 = vunpack.c.h.bf16 %v2784_v41  ;;  %v12971_v29 = vld [vmem:[#allocation49_spill] sm:$0xff] }
 0x36b   : > { %v2272_v38 = vsel %vm2271_vm11, %v7419_v45, %v2268_v0  ;;  %7428 = vtanh.f32 %v2826_v18  ;;  %v2123_v19 = vsub.f32 %v12969_v11, %v10015_v48  ;;  %v2124_v54 = vsub.f32 %v12970_v59, %v10015_v48 }
 0x36c   : > { %v2351_v36 = vmul.f32 %v2272_v38, %v12965_v52  ;;  %v2352_v44 = vmul.f32 %v2272_v38, %v12966_v3  ;;  %v2353_v53 = vmul.f32 %v2272_v38, %v12967_v14  ;;  %v2354_v57 = vmul.f32 %v2272_v38, %v12968_v22  ;;  %v7423_v10 = vpop.eup %7422 }
 0x36d   : > { %v2277_v45 = vsub.f32 1.5, %v2276_v21  ;;  %7430 = vtanh.f32 %v2830_v35  ;;  %v2125_v55 = vsub.f32 %v12971_v29, %v10015_v48  ;;  %v2030_v18 = vmul.f32 %v10015_v48, %v10015_v48 }
 0x36e   : > { %v10039_v16 = vpack.c.bf16 %v2352_v44, %v2351_v36  ;;  %v2392_v24 = vpack.c.bf16 %v2354_v57, %v2353_v53  ;;  %7432 = vtanh.f32 %v2831_v8  ;;  %v12972_v8 = vld [vmem:[#allocation48_spill] sm:$0xff]  ;;  %v12973_v14 = vsub.f32 %v12952_v15, %v9927_v2 }
 0x36f   : > { %v7425_v25 = vpop.eup %7424  ;;  %v2278_v17 = vmul.f32 %v7421_v27, %v2277_v45  ;;  %7434 = vtanh.f32 %v2828_v49  ;;  %v2126_v38 = vsub.f32 %v12972_v8, %v10015_v48  ;;  %v2046_v36 = vsub.f32 %v2014_v28, %v2030_v18 }
 0x370   : > { %v7427_v35 = vpop.eup %7426  ;;  %v2486_v41 = vunpack.c.l.bf16 %v2392_v24  ;;  %7436 = vtanh.f32 %v2832_v1  ;;  %v2487_v3 = vunpack.c.h.bf16 %v2392_v24  ;;  %v12974_v51 = vsub.f32 %v12953_v39, %v9927_v2 }
 0x371   : > { %v7429_v21 = vpop.eup %7428  ;;  %v2282_v49 = vsel %vm2281_vm13, %v7421_v27, %v2278_v17  ;;  %v2941_v52 = vpack.c.bf16 %v7427_v35, %v7425_v25  ;;  %v12975_v45 = vsub.f32 %v12955_v4, %v9927_v2  ;;  %v12976_v28 = vsub.f32 %v12956_v37, %v9927_v2 }
 0x372   : > { %v10055_v44 = vmul.f32 %v9303_v47, %v2486_v41  ;;  %v2355_v53 = vmul.f32 %v2282_v49, %v12973_v14  ;;  %v2356_v22 = vmul.f32 %v2282_v49, %v12974_v51  ;;  %7438 = vrsqrt.f32 %v10023_v63 }
 0x373   : > { %v7431_v57 = vpop.eup %7430  ;;  %v2357_v27 = vmul.f32 %v2282_v49, %v12975_v45  ;;  %v2358_v1 = vmul.f32 %v2282_v49, %v12976_v28  ;;  %3179 = vmatmul.bf16.gmra.mxu1 %v2941_v52  ;;  %v2062_v24 = vmax.f32 %v2046_v36, 0.0  ;;  %v12977_v39 = vunpack.c.l.bf16 %v9804_v20 }
 0x374   : > { %v7433_v25 = vpop.eup %7432  ;;  %v10070_v15 = vpack.c.bf16 %v2356_v22, %v2355_v53  ;;  %v2942_v17 = vpack.c.bf16 %v7431_v57, %v7429_v21  ;;  %v12978_v35 = vunpack.c.h.bf16 %v9804_v20  ;;  %v12979_v49 = vunpack.c.l.bf16 %v9856_v62 }
 0x375   : > { %v2536_v18 = vmul.f32 %v9296_v9, %v12977_v39  ;;  %v7435_v41 = vpop.eup %7434  ;;  %v2394_v14 = vpack.c.bf16 %v2358_v1, %v2357_v27  ;;  %v2943_v37 = vpack.c.bf16 %v7433_v25, %v7423_v10  ;;  %v10078_v2 = vadd.f32 1e-05, %v2062_v24 }
 0x376   : > { %v2537_v4 = vmul.f32 %v9298_v30, %v12978_v35  ;;  %v2540_v52 = vmul.f32 %v9296_v9, %v12979_v49  ;;  %v10084_v36 = vmul.f32 %v9305_v31, %v2487_v3  ;;  %3228 = vmatmul.bf16.gmra.mxu2 %v2942_v17  ;;  %v12980_v53 = vunpack.c.h.bf16 %v9856_v62  ;;  %v7437_v22 = vpop.eup %7436 }
 0x377   : > { %v2490_v57 = vunpack.c.l.bf16 %v2394_v14  ;;  %v2491_v45 = vunpack.c.h.bf16 %v2394_v14  ;;  %3277 = vmatmul.bf16.gmra.mxu3 %v2943_v37  ;;  %7440 = vrsqrt.f32 %v10078_v2  ;;  %v2944_v27 = vpack.c.bf16 %v7437_v22, %v7435_v41 }
 0x378   : > { %v2541_v20 = vmul.f32 %v9298_v30, %v12980_v53  ;;  %v2584_v51 = vpack.c.bf16 %v2537_v4, %v2536_v18  ;;  %v7439_v24 = vpop.eup %7438  ;;  %v2585_v17 = vpack.c.bf16 %v9869_v61, %v9862_v56  ;;  %v2587_v39 = vpack.c.bf16 %v9890_v60, %v9883_v6 }
 0x379   : > { %v10093_v25 = vmul.f32 %v9303_v47, %v2490_v57  ;;  %v10096_v62 = vmul.f32 %v9305_v31, %v2491_v45  ;;  %3326 = vmatmul.bf16.gmra.mxu0 %v2944_v27  ;;  %v2284_v18 = vmul.f32 %v7439_v24, %v10023_v63  ;;  %vm2289_vm14 = vweird.f32 %v10023_v63 }
 0x37a   : > { %v2586_v28 = vpack.c.bf16 %v2541_v20, %v2540_v52  ;;  %v2669_v3 = vunpack.c.l.bf16 %v2584_v51  ;;  %v2670_v1 = vunpack.c.h.bf16 %v2584_v51  ;;  %vm2290_vm15 = vweird.f32 %v7439_v24 }
 0x37b   : > { %v2671_v37 = vunpack.c.l.bf16 %v2585_v17  ;;  %v2675_v49 = vunpack.c.l.bf16 %v2587_v39  ;;  %v2285_v52 = vmul.f32 %v7439_v24, %v2284_v18  ;;  %v2672_v61 = vunpack.c.h.bf16 %v2585_v17  ;;  %vm2291_vm2 = vmor %vm2289_vm14, %vm2290_vm15 }
 0x37c   : > { %v2673_v35 = vunpack.c.l.bf16 %v2586_v28  ;;  %v2737_v4 = vadd.f32 %v9543_v32, %v2669_v3  ;;  %v2674_v41 = vunpack.c.h.bf16 %v2586_v28  ;;  %v2738_v14 = vadd.f32 %v9546_v58, %v2670_v1 }
 0x37d   : > { %v2676_v53 = vunpack.c.h.bf16 %v2587_v39  ;;  %v7441_v6 = vpop.eup %7440  ;;  %v2739_v20 = vadd.f32 %v9662_v34, %v2671_v37  ;;  %v2743_v51 = vadd.f32 %v9662_v34, %v2675_v49  ;;  %v12981_v22 = vunpack.c.l.bf16 %v9911_v40 }
 0x37e   : > { %v2741_v56 = vadd.f32 %v9543_v32, %v2673_v35  ;;  %v2742_v60 = vadd.f32 %v9546_v58, %v2674_v41  ;;  %v2286_v45 = vmul.f32 0.5, %v2285_v52  ;;  %v2294_v27 = vmul.f32 %v7441_v6, %v10078_v2 }
 0x37f   : > { %v2544_v57 = vmul.f32 %v9296_v9, %v12981_v22  ;;  %vm2299_vm0 = vweird.f32 %v10078_v2  ;;  %vm2300_vm1 = vweird.f32 %v7441_v6  ;;  %v2787_v1 = vpack.c.bf16 %v2743_v51, %v2739_v20 }
 0x380   : > { %v2785_v28 = vpack.c.bf16 %v2741_v56, %v2737_v4  ;;  %v2786_v3 = vpack.c.bf16 %v2742_v60, %v2738_v14  ;;  %v2740_v17 = vadd.f32 %v9691_v46, %v2672_v61  ;;  %v2744_v39 = vadd.f32 %v9691_v46, %v2676_v53  ;;  %vm2301_vm3 = vmor %vm2299_vm0, %vm2300_vm1 }
 0x381   : > { %v2287_v18 = vsub.f32 1.5, %v2286_v45  ;;  %v2295_v35 = vmul.f32 %v7441_v6, %v2294_v27  ;;  %v2835_v22 = vunpack.c.l.bf16 %v2787_v1  ;;  %v2839_v52 = vunpack.c.h.bf16 %v2787_v1 }
 0x382   : > { %v2833_v41 = vunpack.c.l.bf16 %v2785_v28  ;;  %v2837_v37 = vunpack.c.h.bf16 %v2785_v28  ;;  %v2834_v49 = vunpack.c.l.bf16 %v2786_v3  ;;  %v2838_v10 = vunpack.c.h.bf16 %v2786_v3 }
 0x383   : > { %v2288_v21 = vmul.f32 %v7439_v24, %v2287_v18  ;;  %v2296_v50 = vmul.f32 0.5, %v2295_v35  ;;  %v2788_v0 = vpack.c.bf16 %v2744_v39, %v2740_v17  ;;  %v12982_v4 = vunpack.c.h.bf16 %v9911_v40 }
 0x384   : > { %7442 = vtanh.f32 %v2833_v41  ;;  %v12983_v56 = vunpack.c.l.bf16 %v9950_v7  ;;  %v12984_v53 = vunpack.c.h.bf16 %v9950_v7  ;;  %v12985_v63 = vsub.f32 %v12959_v13, %v9959_v43 }
 0x385   : > { %7444 = vtanh.f32 %v2837_v37  ;;  %v2545_v14 = vmul.f32 %v9298_v30, %v12982_v4  ;;  %v2292_v20 = vsel %vm2291_vm2, %v7439_v24, %v2288_v21  ;;  %v2297_v51 = vsub.f32 1.5, %v2296_v50 }
 0x386   : > { %v2548_v61 = vmul.f32 %v9296_v9, %v12983_v56  ;;  %v2549_v60 = vmul.f32 %v9298_v30, %v12984_v53  ;;  %7446 = vtanh.f32 %v2834_v49  ;;  %v2836_v45 = vunpack.c.l.bf16 %v2788_v0 }
 0x387   : > { %v2359_v27 = vmul.f32 %v2292_v20, %v12985_v63  ;;  %v12986_v40 = vsub.f32 %v12962_v23, %v9959_v43  ;;  %v12987_v3 = vsub.f32 %v12963_v42, %v9959_v43  ;;  %v12988_v7 = vsub.f32 %v12964_v26, %v9959_v43 }
 0x388   : > { %v2298_v21 = vmul.f32 %v7441_v6, %v2297_v51  ;;  %7448 = vtanh.f32 %v2838_v10  ;;  %v2840_v50 = vunpack.c.h.bf16 %v2788_v0  ;;  %v2588_v24 = vpack.c.bf16 %v2545_v14, %v2544_v57 }
 0x389   : > { %v2360_v28 = vmul.f32 %v2292_v20, %v12986_v40  ;;  %v2361_v1 = vmul.f32 %v2292_v20, %v12987_v3  ;;  %v2362_v17 = vmul.f32 %v2292_v20, %v12988_v7  ;;  %7450 = vtanh.f32 %v2835_v22  ;;  %v12989_v3 = vld [vmem:[#allocation19_spill] sm:$0xff] }
 0x38a   : > { %v2590_v23 = vpack.c.bf16 %v2549_v60, %v2548_v61  ;;  %v7443_v18 = vpop.eup %7442  ;;  %v2302_v42 = vsel %vm2301_vm3, %v7441_v6, %v2298_v21  ;;  %7452 = vtanh.f32 %v2839_v52  ;;  %v2677_v35 = vunpack.c.l.bf16 %v2588_v24 }
 0x38b   : > { %v10141_v39 = vpack.c.bf16 %v2360_v28, %v2359_v27  ;;  %v2396_v13 = vpack.c.bf16 %v2362_v17, %v2361_v1  ;;  %v2678_v41 = vunpack.c.h.bf16 %v2588_v24  ;;  %v7445_v43 = vpop.eup %7444  ;;  %v2363_v2 = vmul.f32 %v2302_v42, %v2123_v19  ;;  %v12990_v1 = vld [vmem:[#allocation21_spill] sm:$0xff] }
 0x38c   : > { %v7447_v37 = vpop.eup %7446  ;;  %v2364_v49 = vmul.f32 %v2302_v42, %v2124_v54  ;;  %v2365_v6 = vmul.f32 %v2302_v42, %v2125_v55  ;;  %v2366_v22 = vmul.f32 %v2302_v42, %v2126_v38  ;;  %v2945_v11 = vpack.c.bf16 %v7445_v43, %v7443_v18 }
 0x38d   : > { %v2492_v26 = vunpack.c.l.bf16 %v10141_v39  ;;  %v2493_v0 = vunpack.c.h.bf16 %v10141_v39  ;;  %v2494_v10 = vunpack.c.l.bf16 %v2396_v13  ;;  %v2495_v57 = vunpack.c.h.bf16 %v2396_v13 }
 0x38e   : > { %7454 = vtanh.f32 %v2836_v45  ;;  %v7449_v19 = vpop.eup %7448  ;;  %v10166_v14 = vpack.c.bf16 %v2364_v49, %v2363_v2  ;;  %v2398_v59 = vpack.c.bf16 %v2366_v22, %v2365_v6  ;;  %v2681_v54 = vunpack.c.l.bf16 %v2590_v23  ;;  %3184 = vmatmul.bf16.gmra.mxu1 %v2945_v11 }
 0x38f   : > { %v10161_v52 = vmul.f32 %v9303_v47, %v2494_v10  ;;  %v10164_v4 = vmul.f32 %v9305_v31, %v2495_v57  ;;  %7456 = vtanh.f32 %v2840_v50  ;;  %v7451_v29 = vpop.eup %7450  ;;  %v2946_v55 = vpack.c.bf16 %v7449_v19, %v7447_v37 }
 0x390   : > { %v2745_v48 = vadd.f32 %v9543_v32, %v2677_v35  ;;  %v2682_v8 = vunpack.c.h.bf16 %v2590_v23  ;;  %v2746_v38 = vadd.f32 %v9546_v58, %v2678_v41  ;;  %v7453_v56 = vpop.eup %7452  ;;  %v2496_v61 = vunpack.c.l.bf16 %v10166_v14 }
 0x391   : > { %v2497_v53 = vunpack.c.h.bf16 %v10166_v14  ;;  %v2498_v60 = vunpack.c.l.bf16 %v2398_v59  ;;  %v2499_v20 = vunpack.c.h.bf16 %v2398_v59  ;;  %3233 = vmatmul.bf16.gmra.mxu2 %v2946_v55  ;;  %v2947_v51 = vpack.c.bf16 %v7453_v56, %v7451_v29 }
 0x392   : > { %v2749_v45 = vadd.f32 %v9543_v32, %v2681_v54  ;;  %v2750_v63 = vadd.f32 %v9546_v58, %v2682_v8  ;;  %v2589_v27 = vpack.c.bf16 %v9948_v12, %v9945_v33  ;;  %v2591_v7 = vpack.c.bf16 %v12990_v1, %v12989_v3 }
 0x393   : > { %v10177_v40 = vmul.f32 %v9303_v47, %v2498_v60  ;;  %v10180_v28 = vmul.f32 %v9305_v31, %v2499_v20  ;;  %v12991_v17 = vunpack.c.l.bf16 %v10039_v16  ;;  %3282 = vmatmul.bf16.gmra.mxu3 %v2947_v51  ;;  %v12992_v42 = vunpack.c.h.bf16 %v10039_v16 }
 0x394   : > { %v7455_v50 = vpop.eup %7454  ;;  %v2789_v24 = vpack.c.bf16 %v2749_v45, %v2745_v48  ;;  %v2790_v13 = vpack.c.bf16 %v2750_v63, %v2746_v38  ;;  %v2679_v23 = vunpack.c.l.bf16 %v2589_v27  ;;  %v2680_v18 = vunpack.c.h.bf16 %v2589_v27 }
 0x395   : > { %v2552_v21 = vmul.f32 %v9296_v9, %v12991_v17  ;;  %v7457_v33 = vpop.eup %7456  ;;  %v2683_v12 = vunpack.c.l.bf16 %v2591_v7  ;;  %v2684_v47 = vunpack.c.h.bf16 %v2591_v7  ;;  %v2553_v31 = vmul.f32 %v9298_v30, %v12992_v42 }
 0x396   : > { %v12993_v35 = vunpack.c.l.bf16 %v10070_v15  ;;  %v2948_v43 = vpack.c.bf16 %v7457_v33, %v7455_v50  ;;  %v2841_v10 = vunpack.c.l.bf16 %v2789_v24  ;;  %v2845_v57 = vunpack.c.h.bf16 %v2789_v24 }
 0x397   : > { %v2842_v37 = vunpack.c.l.bf16 %v2790_v13  ;;  %v2846_v2 = vunpack.c.h.bf16 %v2790_v13  ;;  %v2747_v49 = vadd.f32 %v9662_v34, %v2679_v23  ;;  %v2751_v6 = vadd.f32 %v9662_v34, %v2683_v12 }
 0x398   : > { %v2556_v41 = vmul.f32 %v9296_v9, %v12993_v35  ;;  %v2748_v22 = vadd.f32 %v9691_v46, %v2680_v18  ;;  %3331 = vmatmul.bf16.gmra.mxu0 %v2948_v43  ;;  %7458 = vtanh.f32 %v2841_v10  ;;  %v2752_v16 = vadd.f32 %v9691_v46, %v2684_v47 }
 0x399   : > { %v12994_v11 = vunpack.c.h.bf16 %v10070_v15  ;;  %v2592_v59 = vpack.c.bf16 %v2553_v31, %v2552_v21  ;;  %7460 = vtanh.f32 %v2845_v57  ;;  %v2791_v54 = vpack.c.bf16 %v2751_v6, %v2747_v49 }
 0x39a   : > { %v2593_v29 = vpack.c.bf16 %v10084_v36, %v10055_v44  ;;  %v2595_v55 = vpack.c.bf16 %v10096_v62, %v10093_v25  ;;  %7462 = vtanh.f32 %v2842_v37  ;;  %v2792_v48 = vpack.c.bf16 %v2752_v16, %v2748_v22 }
 0x39b   : > { %v2557_v19 = vmul.f32 %v9298_v30, %v12994_v11  ;;  %v2685_v38 = vunpack.c.l.bf16 %v2592_v59  ;;  %7464 = vtanh.f32 %v2846_v2  ;;  %v2843_v56 = vunpack.c.l.bf16 %v2791_v54 }
 0x39c   : > { %v2847_v60 = vunpack.c.h.bf16 %v2791_v54  ;;  %v2686_v20 = vunpack.c.h.bf16 %v2592_v59  ;;  %v2844_v15 = vunpack.c.l.bf16 %v2792_v48  ;;  %v2848_v51 = vunpack.c.h.bf16 %v2792_v48 }
 0x39d   : > { %v2594_v8 = vpack.c.bf16 %v2557_v19, %v2556_v41  ;;  %v2753_v63 = vadd.f32 %v9543_v32, %v2685_v38  ;;  %7466 = vtanh.f32 %v2843_v56  ;;  %v2687_v36 = vunpack.c.l.bf16 %v2593_v29 }
 0x39e   : > { %v2754_v44 = vadd.f32 %v9546_v58, %v2686_v20  ;;  %v7459_v3 = vpop.eup %7458  ;;  %7468 = vtanh.f32 %v2847_v60  ;;  %v2691_v62 = vunpack.c.l.bf16 %v2595_v55  ;;  %v2688_v1 = vunpack.c.h.bf16 %v2593_v29 }
 0x39f   : > { %v2689_v45 = vunpack.c.l.bf16 %v2594_v8  ;;  %v2690_v27 = vunpack.c.h.bf16 %v2594_v8  ;;  %v7461_v7 = vpop.eup %7460  ;;  %7470 = vtanh.f32 %v2844_v15  ;;  %v2755_v21 = vadd.f32 %v9662_v34, %v2687_v36 }
 0x3a0   : > { %v2692_v50 = vunpack.c.h.bf16 %v2595_v55  ;;  %v7463_v24 = vpop.eup %7462  ;;  %v2949_v13 = vpack.c.bf16 %v7461_v7, %v7459_v3  ;;  %7472 = vtanh.f32 %v2848_v51  ;;  %v2759_v18 = vadd.f32 %v9662_v34, %v2691_v62 }
 0x3a1   : > { %v2757_v25 = vadd.f32 %v9543_v32, %v2689_v45  ;;  %v2758_v17 = vadd.f32 %v9546_v58, %v2690_v27  ;;  %v7465_v33 = vpop.eup %7464  ;;  %v2756_v47 = vadd.f32 %v9691_v46, %v2688_v1  ;;  %v2560_v31 = vmul.f32 %v9296_v9, %v2492_v26 }
 0x3a2   : > { %v2760_v42 = vadd.f32 %v9691_v46, %v2692_v50  ;;  %3189 = vmatmul.bf16.gmra.mxu1 %v2949_v13  ;;  %v2950_v35 = vpack.c.bf16 %v7465_v33, %v7463_v24  ;;  %v2795_v10 = vpack.c.bf16 %v2759_v18, %v2755_v21  ;;  %v2561_v6 = vmul.f32 %v9298_v30, %v2493_v0 }
 0x3a3   : > { %v2793_v23 = vpack.c.bf16 %v2757_v25, %v2753_v63  ;;  %v2794_v12 = vpack.c.bf16 %v2758_v17, %v2754_v44  ;;  %v7467_v57 = vpop.eup %7466  ;;  %v2564_v26 = vmul.f32 %v9296_v9, %v2496_v61  ;;  %v2565_v39 = vmul.f32 %v9298_v30, %v2497_v53  ;;  %v10231_v30 = vld [vmem:[%s12636_s10] ss:$0 sm:$0xff] }
 0x3a4   : > { %v2796_v49 = vpack.c.bf16 %v2760_v42, %v2756_v47  ;;  %v7469_v22 = vpop.eup %7468  ;;  %3238 = vmatmul.bf16.gmra.mxu2 %v2950_v35  ;;  %v2851_v16 = vunpack.c.l.bf16 %v2795_v10  ;;  %v2855_v59 = vunpack.c.h.bf16 %v2795_v10  ;;  %v2596_v0 = vpack.c.bf16 %v2561_v6, %v2560_v31 }
 0x3a5   : > { %v2849_v41 = vunpack.c.l.bf16 %v2793_v23  ;;  %v2853_v43 = vunpack.c.h.bf16 %v2793_v23  ;;  %v2850_v37 = vunpack.c.l.bf16 %v2794_v12  ;;  %v2854_v2 = vunpack.c.h.bf16 %v2794_v12  ;;  %v7471_v11 = vpop.eup %7470 }
 0x3a6   : > { %v2951_v19 = vpack.c.bf16 %v7469_v22, %v7467_v57  ;;  %v2852_v54 = vunpack.c.l.bf16 %v2796_v49  ;;  %v7473_v29 = vpop.eup %7472  ;;  %v2597_v55 = vpack.c.bf16 %v10164_v4, %v10161_v52  ;;  %v2856_v8 = vunpack.c.h.bf16 %v2796_v49  ;;  %v3165_v52 = vpop.f32.mrf.mxu1 }
 0x3a7   : > { %7474 = vtanh.f32 %v2849_v41  ;;  %v2952_v48 = vpack.c.bf16 %v7473_v29, %v7471_v11  ;;  %v2599_v9 = vpack.c.bf16 %v10180_v28, %v10177_v40  ;;  %v2598_v61 = vpack.c.bf16 %v2565_v39, %v2564_v26  ;;  %v3214_v4 = vpop.f32.mrf.mxu2 }
 0x3a8   : > { %7476 = vtanh.f32 %v2853_v43  ;;  %3287 = vmatmul.bf16.gmra.mxu3 %v2951_v19  ;;  %v2693_v38 = vunpack.c.l.bf16 %v2596_v0  ;;  %v2694_v56 = vunpack.c.h.bf16 %v2596_v0  ;;  %v2695_v15 = vunpack.c.l.bf16 %v2597_v55 }
 0x3a9   : > { %7478 = vtanh.f32 %v2850_v37  ;;  %3336 = vmatmul.bf16.gmra.mxu0 %v2952_v48  ;;  %v2699_v14 = vunpack.c.l.bf16 %v2599_v9  ;;  %v2697_v60 = vunpack.c.l.bf16 %v2598_v61  ;;  %v2698_v20 = vunpack.c.h.bf16 %v2598_v61 }
 0x3aa   : > { %7480 = vtanh.f32 %v2854_v2  ;;  %v2761_v28 = vadd.f32 %v9543_v32, %v2693_v38  ;;  %v2762_v51 = vadd.f32 %v9546_v58, %v2694_v56  ;;  %v2700_v36 = vunpack.c.h.bf16 %v2599_v9 }
 0x3ab   : > { %7482 = vtanh.f32 %v2851_v16  ;;  %v2765_v63 = vadd.f32 %v9543_v32, %v2697_v60  ;;  %v2766_v27 = vadd.f32 %v9546_v58, %v2698_v20  ;;  %v2767_v44 = vadd.f32 %v9662_v34, %v2699_v14 }
 0x3ac   : > { %7484 = vtanh.f32 %v2855_v59  ;;  %v2696_v25 = vunpack.c.h.bf16 %v2597_v55  ;;  %v3166_v62 = vadd.f32 %v10231_v30, %v3165_v52  ;;  %v2763_v50 = vadd.f32 %v9662_v34, %v2695_v15 }
 0x3ad   : > { %v7475_v53 = vpop.eup %7474  ;;  %7486 = vtanh.f32 %v2852_v54  ;;  %v2797_v17 = vpack.c.bf16 %v2765_v63, %v2761_v28  ;;  %v2798_v21 = vpack.c.bf16 %v2766_v27, %v2762_v51  ;;  %v2768_v13 = vadd.f32 %v9691_v46, %v2700_v36 }
 0x3ae   : > { %v7477_v40 = vpop.eup %7476  ;;  %7488 = vtanh.f32 %v2856_v8  ;;  %v3215_v23 = vadd.f32 %v3214_v4, %v3166_v62  ;;  %v2799_v33 = vpack.c.bf16 %v2767_v44, %v2763_v50  ;;  %v3312_v12 = vpop.f32.mrf.mxu0  ;;  %v2764_v35 = vadd.f32 %v9691_v46, %v2696_v25 }
 0x3af   : > { %v7479_v45 = vpop.eup %7478  ;;  %v2953_v7 = vpack.c.bf16 %v7477_v40, %v7475_v53  ;;  %v2857_v58 = vunpack.c.l.bf16 %v2797_v17  ;;  %v3263_v47 = vpop.f32.mrf.mxu3  ;;  %v2861_v31 = vunpack.c.h.bf16 %v2797_v17  ;;  %v2858_v57 = vunpack.c.l.bf16 %v2798_v21 }
 0x3b0   : > { %v7481_v3 = vpop.eup %7480  ;;  %v3264_v41 = vadd.f32 %v3263_v47, %v3215_v23  ;;  %v3167_v43 = vpop.f32.mrf.mxu1  ;;  %v2862_v37 = vunpack.c.h.bf16 %v2798_v21  ;;  %v2800_v2 = vpack.c.bf16 %v2768_v13, %v2764_v35  ;;  %v2859_v22 = vunpack.c.l.bf16 %v2799_v33  ;;  %v7197_v47 = vld [vmem:[%s12639_s13 + $0xe4] sm:$0xf] }
 0x3b1   : > { %v7483_v1 = vpop.eup %7482  ;;  %v2954_v18 = vpack.c.bf16 %v7481_v3, %v7479_v45  ;;  %v3216_v34 = vpop.f32.mrf.mxu2  ;;  %v3168_v6 = vadd.f32 %v10231_v30, %v3167_v43  ;;  %7490 = vtanh.f32 %v2857_v58  ;;  %v2863_v11 = vunpack.c.h.bf16 %v2799_v33  ;;  %v7200_v43 = vld [vmem:[%s12639_s13 + $0xf4] sm:$0xf0] }
 0x3b2   : > { %v7485_v24 = vpop.eup %7484  ;;  %3194 = vmatmul.bf16.gmra.mxu1 %v2953_v7  ;;  %v10242_v49 = vadd.f32 %v3312_v12, %v3264_v41  ;;  %7492 = vtanh.f32 %v2861_v31  ;;  %v2860_v19 = vunpack.c.l.bf16 %v2800_v2  ;;  %v2864_v59 = vunpack.c.h.bf16 %v2800_v2  ;;  %v6937_v31 = vld [vmem:[%s12639_s13 + $0xe8] sm:$0xf] }
 0x3b3   : > { %v7487_v32 = vpop.eup %7486  ;;  %v2955_v10 = vpack.c.bf16 %v7485_v24, %v7483_v1  ;;  %v3217_v46 = vadd.f32 %v3216_v34, %v3168_v6  ;;  %7494 = vtanh.f32 %v2858_v57 }
 0x3b4   : > { %v7489_v42 = vpop.eup %7488  ;;  %3243 = vmatmul.bf16.gmra.mxu2 %v2954_v18  ;;  %3352 = vadd.xlane.f32.xlu1 %v10242_v49  ;;  %v3400_v26 = vmul.f32 %v10242_v49, %v10242_v49  ;;  %7496 = vtanh.f32 %v2862_v37 }
 0x3b5   : > { %v2956_v16 = vpack.c.bf16 %v7489_v42, %v7487_v32  ;;  %7498 = vtanh.f32 %v2859_v22  ;;  %v6931_v42 = vld [vmem:[%s12639_s13 + $0xf0] sm:$0xf0] }
 0x3b6   : > { %3416 = vadd.xlane.f32.xlu0 %v3400_v26  ;;  %7500 = vtanh.f32 %v2863_v11  ;;  %v3314_v0 = vpop.f32.mrf.mxu0  ;;  %v6934_v41 = vor.u32 %v7197_v47, %v6931_v42  ;;  %v7192_v47 = vld [vmem:[%s12639_s13 + $0xb4] sm:$0xf0] }
 0x3b7   : > { %v3265_v54 = vpop.f32.mrf.mxu3  ;;  %v7491_v39 = vpop.eup %7490  ;;  %7502 = vtanh.f32 %v2860_v19  ;;  %v6929_v19 = vld [vmem:[%s12639_s13 + $0xe0] sm:$0xf] }
 0x3b8   : > { %3292 = vmatmul.bf16.gmra.mxu3 %v2955_v10  ;;  %v3266_v29 = vadd.f32 %v3265_v54, %v3217_v46  ;;  %v3170_v55 = vpop.f32.mrf.mxu1  ;;  %v7493_v48 = vpop.eup %7492  ;;  %7504 = vtanh.f32 %v2864_v59  ;;  %v6938_v10 = vor.u32 %v7200_v43, %v6937_v31  ;;  %4142 = vmatpush.bf16.msrb.mxu2 %v6934_v41  ;;  %v7199_v59 = vld [vmem:[%s12639_s13 + $0xec] sm:$0xf0]  ;;  %v7198_v54 = vld [vmem:[%s12639_s13 + $0xec] sm:$0xf] }
 0x3b9   : > { %3341 = vmatmul.bf16.gmra.mxu0 %v2956_v16  ;;  %v7495_v9 = vpop.eup %7494  ;;  %v2957_v56 = vpack.c.bf16 %v7493_v48, %v7491_v39  ;;  %v3171_v60 = vadd.f32 %v10231_v30, %v3170_v55  ;;  %v6930_v39 = vor.u32 %v7199_v59, %v6929_v19 }
 0x3ba   : > { %v10248_v8 = vadd.f32 %v3314_v0, %v3266_v29  ;;  %v7497_v61 = vpop.eup %7496  ;;  %4191 = vmatpush.bf16.msra.mxu3 %v6938_v10  ;;  %v6939_v0 = vld [vmem:[%s12639_s13 + $0xf8] sm:$0xf0] }
 0x3bb   : > { %v7499_v14 = vpop.eup %7498  ;;  %v2958_v53 = vpack.c.bf16 %v7497_v61, %v7495_v9  ;;  %v6942_v55 = vor.u32 %v7198_v54, %v6939_v0  ;;  %4093 = vmatpush.bf16.msra.mxu1 %v6930_v39 }
 0x3bc   : > { %3354 = vadd.xlane.f32.xlu2 %v10248_v8  ;;  %v3401_v38 = vmul.f32 %v10248_v8, %v10248_v8  ;;  %v3219_v52 = vpop.f32.mrf.mxu2  ;;  %v7501_v4 = vpop.eup %7500 }
 0x3bd   : > { %v7503_v20 = vpop.eup %7502  ;;  %v3220_v40 = vadd.f32 %v3219_v52, %v3171_v60  ;;  %v2959_v28 = vpack.c.bf16 %v7501_v4, %v7499_v14  ;;  %4240 = vmatpush.bf16.msrb.mxu0 %v6942_v55  ;;  %v6915_v14 = vld [vmem:[%s12639_s13 + $0xd0] sm:$0xf0]  ;;  %v6921_v52 = vld [vmem:[%s12639_s13 + $0xc8] sm:$0xf]  ;;  %v7196_v60 = vld [vmem:[%s12639_s13 + $0xd4] sm:$0xf0] }
 0x3be   : > { %3418 = vadd.xlane.f32.xlu1 %v3401_v38  ;;  %v7505_v15 = vpop.eup %7504  ;;  %v3317_v63 = vpop.f32.mrf.mxu0  ;;  %v7185_v55 = vld [vmem:[%s12639_s13 + $0x84] sm:$0xf] }
 0x3bf   : > { %v2960_v45 = vpack.c.bf16 %v7505_v15, %v7503_v20  ;;  %v6922_v15 = vor.u32 %v7196_v60, %v6921_v52 }
 0x3c0   : > { %v3172_v51 = vpop.f32.mrf.mxu1 }
 0x3c1   : > { %v3268_v27 = vpop.f32.mrf.mxu3  ;;  %v3173_v25 = vadd.f32 %v10231_v30, %v3172_v51  ;;  %4192 = vmatpush.bf16.msra.mxu3 %v6922_v15 }
 0x3c2   : > { %3199 = vmatmul.bf16.gmra.mxu1 %v2957_v56  ;;  %v3269_v44 = vadd.f32 %v3268_v27, %v3220_v40  ;;  %v7193_v56 = vld [vmem:[%s12639_s13 + $0xc4] sm:$0xf] }
 0x3c4   : > { %3248 = vmatmul.bf16.gmra.mxu2 %v2958_v53  ;;  %v3221_v36 = vpop.f32.mrf.mxu2  ;;  %v10254_v3 = vadd.f32 %v3317_v63, %v3269_v44  ;;  %v6918_v53 = vor.u32 %v7193_v56, %v6915_v14  ;;  %v7188_v14 = vld [vmem:[%s12639_s13 + $0x94] sm:$0xf0] }
 0x3c5   : > { %v3222_v62 = vadd.f32 %v3221_v36, %v3173_v25  ;;  %v6913_v36 = vld [vmem:[%s12639_s13 + $0xc0] sm:$0xf]  ;;  %v7195_v25 = vld [vmem:[%s12639_s13 + $0xcc] sm:$0xf0] }
 0x3c6   : > { %3356 = vadd.xlane.f32.xlu2 %v10254_v3  ;;  %v3402_v1 = vmul.f32 %v10254_v3, %v10254_v3  ;;  %v3319_v21 = vpop.f32.mrf.mxu0  ;;  %4143 = vmatpush.bf16.msrb.mxu2 %v6918_v53 }
 0x3c8   : > { %3297 = vmatmul.bf16.gmra.mxu3 %v2959_v28  ;;  %3420 = vadd.xlane.f32.xlu1 %v3402_v1 }
 0x3c9   : > { %3346 = vmatmul.bf16.gmra.mxu0 %v2960_v45  ;;  %v3270_v7 = vpop.f32.mrf.mxu3 }
 0x3ca   : > { %v3271_v17 = vadd.f32 %v3270_v7, %v3222_v62  ;;  %v7194_v62 = vld [vmem:[%s12639_s13 + $0xcc] sm:$0xf]  ;;  %v6914_v7 = vor.u32 %v7195_v25, %v6913_v36  ;;  %v6891_v36 = vld [vmem:[%s12639_s13 + $0x98] sm:$0xf0] }
 0x3cc   : > { %v10260_v50 = vadd.f32 %v3319_v21, %v3271_v17  ;;  %v6923_v17 = vld [vmem:[%s12639_s13 + $0xd8] sm:$0xf0]  ;;  %4094 = vmatpush.bf16.msra.mxu1 %v6914_v7 }
 0x3ce   : > { %3358 = vadd.xlane.f32.xlu0 %v10260_v50  ;;  %v3403_v24 = vmul.f32 %v10260_v50, %v10260_v50 }
 0x3cf   : > { %v3175_v13 = vpop.f32.mrf.mxu1 }
 0x3d0   : > { %3422 = vadd.xlane.f32.xlu2 %v3403_v24  ;;  %v3176_v23 = vadd.f32 %v10231_v30, %v3175_v13  ;;  %v6926_v24 = vor.u32 %v7194_v62, %v6923_v17 }
 0x3d2   : > { %4241 = vmatpush.bf16.msrb.mxu0 %v6926_v24 }
 0x3d7   : > { %v3177_v58 = vpop.f32.mrf.mxu1 }
 0x3d8   : > { %v3178_v34 = vadd.f32 %v10231_v30, %v3177_v58  ;;  %v6899_v58 = vld [vmem:[%s12639_s13 + $0xb0] sm:$0xf0] }
 0x3da   : > { %v3322_v33 = vpop.f32.mrf.mxu0 }
 0x3db   : > { %v3224_v32 = vpop.f32.mrf.mxu2 }
 0x3dc   : > { %v3225_v18 = vadd.f32 %v3224_v32, %v3176_v23 }
 0x3de   : > { %v3273_v12 = vpop.f32.mrf.mxu3 }
 0x3df   : > { %v3274_v35 = vadd.f32 %v3273_v12, %v3225_v18  ;;  %v7189_v18 = vld [vmem:[%s12639_s13 + $0xa4] sm:$0xf] }
 0x3e0   : > { %v6902_v12 = vor.u32 %v7189_v18, %v6899_v58  ;;  %v6873_v18 = vld [vmem:[%s12639_s13 + $0x68] sm:$0xf] }
 0x3e1   : > { %v10278_v57 = vadd.f32 %v3322_v33, %v3274_v35  ;;  %v6905_v33 = vld [vmem:[%s12639_s13 + $0xa8] sm:$0xf] }
 0x3e2   : > { %v3324_v46 = vpop.f32.mrf.mxu0  ;;  %v6906_v42 = vor.u32 %v7192_v47, %v6905_v33  ;;  %4144 = vmatpush.bf16.msrb.mxu2 %v6902_v12 }
 0x3e3   : > { %v3226_v37 = vpop.f32.mrf.mxu2  ;;  %3360 = vadd.xlane.f32.xlu0 %v10278_v57  ;;  %v3404_v6 = vmul.f32 %v10278_v57, %v10278_v57 }
 0x3e4   : > { %v3227_v2 = vadd.f32 %v3226_v37, %v3178_v34  ;;  %4193 = vmatpush.bf16.msra.mxu3 %v6906_v42  ;;  %v6897_v34 = vld [vmem:[%s12639_s13 + $0xa0] sm:$0xf]  ;;  %v7191_v37 = vld [vmem:[%s12639_s13 + $0xac] sm:$0xf0]  ;;  %v7184_v42 = vld [vmem:[%s12639_s13 + $0x74] sm:$0xf0] }
 0x3e5   : > { %3424 = vadd.xlane.f32.xlu2 %v3404_v6 }
 0x3e6   : > { %v3275_v22 = vpop.f32.mrf.mxu3 }
 0x3e7   : > { %v3276_v16 = vadd.f32 %v3275_v22, %v3227_v2  ;;  %v7190_v2 = vld [vmem:[%s12639_s13 + $0xac] sm:$0xf]  ;;  %v6898_v22 = vor.u32 %v7191_v37, %v6897_v34  ;;  %v6865_v34 = vld [vmem:[%s12639_s13 + $0x60] sm:$0xf]  ;;  %v7183_v37 = vld [vmem:[%s12639_s13 + $0x6c] sm:$0xf0] }
 0x3e9   : > { %v10284_v26 = vadd.f32 %v3324_v46, %v3276_v16  ;;  %v6907_v16 = vld [vmem:[%s12639_s13 + $0xb8] sm:$0xf0]  ;;  %4095 = vmatpush.bf16.msra.mxu1 %v6898_v22 }
 0x3eb   : > { %3362 = vadd.xlane.f32.xlu1 %v10284_v26  ;;  %v3405_v11 = vmul.f32 %v10284_v26, %v10284_v26 }
 0x3ed   : > { %3426 = vadd.xlane.f32.xlu0 %v3405_v11  ;;  %v6910_v11 = vor.u32 %v7190_v2, %v6907_v16 }
 0x3ef   : > { %4242 = vmatpush.bf16.msrb.mxu0 %v6910_v11  ;;  %v12995_v11 = vld [vmem:[#allocation2_spill] sm:$0xff] }
 0x3f0   : > { %v3180_v29 = vpop.f32.mrf.mxu1 }
 0x3f1   : > { %v3181_v48 = vadd.f32 %v10231_v30, %v3180_v29 }
 0x3f6   : > { %v3327_v4 = vpop.f32.mrf.mxu0 }
 0x3f8   : > { %v3182_v40 = vpop.f32.mrf.mxu1 }
 0x3f9   : > { %v3229_v9 = vpop.f32.mrf.mxu2  ;;  %v3183_v51 = vadd.f32 %v10231_v30, %v3182_v40  ;;  %v6881_v40 = vld [vmem:[%s12639_s13 + $0x80] sm:$0xf] }
 0x3fa   : > { %v3230_v61 = vadd.f32 %v3229_v9, %v3181_v48  ;;  %v3278_v38 = vpop.f32.mrf.mxu3  ;;  %v6883_v48 = vld [vmem:[%s12639_s13 + $0x90] sm:$0xf0]  ;;  %v6889_v9 = vld [vmem:[%s12639_s13 + $0x88] sm:$0xf] }
 0x3fb   : > { %v6886_v56 = vor.u32 %v7185_v55, %v6883_v48 }
 0x3fc   : > { %v3279_v20 = vadd.f32 %v3278_v38, %v3230_v61 }
 0x3fd   : > { %4145 = vmatpush.bf16.msrb.mxu2 %v6886_v56 }
 0x3fe   : > { %v10314_v28 = vadd.f32 %v3327_v4, %v3279_v20  ;;  %v3329_v21 = vpop.f32.mrf.mxu0  ;;  %v6890_v4 = vor.u32 %v7188_v14, %v6889_v9  ;;  %v7182_v9 = vld [vmem:[%s12639_s13 + $0x6c] sm:$0xf]  ;;  %v7177_v14 = vld [vmem:[%s12639_s13 + $0x44] sm:$0xf] }
 0x400   : > { %3364 = vadd.xlane.f32.xlu1 %v10314_v28  ;;  %v3406_v45 = vmul.f32 %v10314_v28, %v10314_v28  ;;  %4194 = vmatpush.bf16.msra.mxu3 %v6890_v4 }
 0x401   : > { %v3231_v63 = vpop.f32.mrf.mxu2 }
 0x402   : > { %v3232_v27 = vadd.f32 %v3231_v63, %v3183_v51  ;;  %3428 = vadd.xlane.f32.xlu0 %v3406_v45  ;;  %v3280_v44 = vpop.f32.mrf.mxu3  ;;  %v7187_v51 = vld [vmem:[%s12639_s13 + $0x8c] sm:$0xf0]  ;;  %v7186_v45 = vld [vmem:[%s12639_s13 + $0x8c] sm:$0xf] }
 0x403   : > { %v6894_v62 = vor.u32 %v7186_v45, %v6891_v36 }
 0x404   : > { %v3281_v1 = vadd.f32 %v3280_v44, %v3232_v27  ;;  %v6882_v44 = vor.u32 %v7187_v51, %v6881_v40 }
 0x405   : > { %4243 = vmatpush.bf16.msrb.mxu0 %v6894_v62 }
 0x406   : > { %v10332_v13 = vadd.f32 %v3329_v21, %v3281_v1  ;;  %4096 = vmatpush.bf16.msra.mxu1 %v6882_v44 }
 0x408   : > { %3366 = vadd.xlane.f32.xlu2 %v10332_v13  ;;  %v3407_v23 = vmul.f32 %v10332_v13, %v10332_v13 }
 0x40a   : > { %3430 = vadd.xlane.f32.xlu1 %v3407_v23  ;;  %v7181_v23 = vld [vmem:[%s12639_s13 + $0x64] sm:$0xf] }
 0x40b   : > { %v3185_v32 = vpop.f32.mrf.mxu1 }
 0x40c   : > { %v3186_v31 = vadd.f32 %v10231_v30, %v3185_v32  ;;  %v6867_v32 = vld [vmem:[%s12639_s13 + $0x70] sm:$0xf0] }
 0x40d   : > { %v6870_v47 = vor.u32 %v7181_v23, %v6867_v32 }
 0x40f   : > { %4146 = vmatpush.bf16.msrb.mxu2 %v6870_v47 }
 0x413   : > { %v3187_v10 = vpop.f32.mrf.mxu1 }
 0x414   : > { %v3234_v41 = vpop.f32.mrf.mxu2  ;;  %v3188_v59 = vadd.f32 %v10231_v30, %v3187_v10 }
 0x415   : > { %v3332_v35 = vpop.f32.mrf.mxu0  ;;  %v3235_v43 = vadd.f32 %v3234_v41, %v3186_v31 }
 0x416   : > { %v3283_v6 = vpop.f32.mrf.mxu3 }
 0x417   : > { %v3284_v46 = vadd.f32 %v3283_v6, %v3235_v43 }
 0x419   : > { %v10362_v19 = vadd.f32 %v3332_v35, %v3284_v46  ;;  %v6874_v35 = vor.u32 %v7184_v42, %v6873_v18  ;;  %v6866_v46 = vor.u32 %v7183_v37, %v6865_v34  ;;  %v7179_v18 = vld [vmem:[%s12639_s13 + $0x4c] sm:$0xf0] }
 0x41b   : > { %3368 = vadd.xlane.f32.xlu2 %v10362_v19  ;;  %v3408_v54 = vmul.f32 %v10362_v19, %v10362_v19  ;;  %4195 = vmatpush.bf16.msra.mxu3 %v6874_v35 }
 0x41c   : > { %v3236_v39 = vpop.f32.mrf.mxu2  ;;  %4097 = vmatpush.bf16.msra.mxu1 %v6866_v46 }
 0x41d   : > { %v3334_v29 = vpop.f32.mrf.mxu0  ;;  %v3237_v0 = vadd.f32 %v3236_v39, %v3188_v59  ;;  %3432 = vadd.xlane.f32.xlu1 %v3408_v54 }
 0x41e   : > { %v3285_v61 = vpop.f32.mrf.mxu3 }
 0x41f   : > { %v3190_v38 = vpop.f32.mrf.mxu1  ;;  %v3286_v52 = vadd.f32 %v3285_v61, %v3237_v0  ;;  %v6875_v61 = vld [vmem:[%s12639_s13 + $0x78] sm:$0xf0] }
 0x420   : > { %v3191_v20 = vadd.f32 %v10231_v30, %v3190_v38  ;;  %v6878_v38 = vor.u32 %v7182_v9, %v6875_v61  ;;  %v6835_v61 = vld [vmem:[%s12639_s13 + $0x30] sm:$0xf0] }
 0x421   : > { %v10380_v53 = vadd.f32 %v3334_v29, %v3286_v52  ;;  %v6851_v52 = vld [vmem:[%s12639_s13 + $0x50] sm:$0xf0] }
 0x422   : > { %4244 = vmatpush.bf16.msrb.mxu0 %v6878_v38 }
 0x423   : > { %3370 = vadd.xlane.f32.xlu0 %v10380_v53  ;;  %v3409_v60 = vmul.f32 %v10380_v53, %v10380_v53 }
 0x425   : > { %3434 = vadd.xlane.f32.xlu2 %v3409_v60 }
 0x426   : > { %v3337_v15 = vpop.f32.mrf.mxu0 }
 0x427   : > { %v3239_v63 = vpop.f32.mrf.mxu2  ;;  %v3192_v27 = vpop.f32.mrf.mxu1 }
 0x428   : > { %v3240_v25 = vadd.f32 %v3239_v63, %v3191_v20  ;;  %v3193_v21 = vadd.f32 %v10231_v30, %v3192_v27  ;;  %v3353_v2 = vpop.xlane.xlu1 %3352 }
 0x429   : > { %v3417_v6 = vpop.xlane.xlu0 %3416  ;;  %v10426_v59 = vmul.f32 %v3353_v2, %v12995_v11 }
 0x42a   : > { %v3448_v54 = vmul.f32 %v3417_v6, %v12995_v11 }
 0x42b   : > { %v3288_v1 = vpop.f32.mrf.mxu3  ;;  %v3464_v48 = vmul.f32 %v10426_v59, %v10426_v59 }
 0x42c   : > { %v3289_v7 = vadd.f32 %v3288_v1, %v3240_v25 }
 0x42d   : > { %v3480_v60 = vsub.f32 %v3448_v54, %v3464_v48  ;;  %v7178_v54 = vld [vmem:[%s12639_s13 + $0x4c] sm:$0xf] }
 0x42e   : > { %v10398_v17 = vadd.f32 %v3337_v15, %v3289_v7  ;;  %v3339_v24 = vpop.f32.mrf.mxu0  ;;  %v6854_v15 = vor.u32 %v7177_v14, %v6851_v52  ;;  %v6857_v7 = vld [vmem:[%s12639_s13 + $0x48] sm:$0xf] }
 0x42f   : > { %v3241_v58 = vpop.f32.mrf.mxu2  ;;  %v3195_v12 = vpop.f32.mrf.mxu1  ;;  %v3496_v51 = vmax.f32 %v3480_v60, 0.0 }
 0x430   : > { %3372 = vadd.xlane.f32.xlu0 %v10398_v17  ;;  %v3410_v33 = vmul.f32 %v10398_v17, %v10398_v17  ;;  %v3242_v31 = vadd.f32 %v3241_v58, %v3193_v21  ;;  %v3196_v22 = vadd.f32 %v10231_v30, %v3195_v12  ;;  %v3355_v56 = vpop.xlane.xlu2 %3354  ;;  %4147 = vmatpush.bf16.msrb.mxu2 %v6854_v15  ;;  %v7180_v21 = vld [vmem:[%s12639_s13 + $0x54] sm:$0xf0] }
 0x431   : > { %v10447_v20 = vmul.f32 %v3355_v56, %v12995_v11  ;;  %v3419_v27 = vpop.xlane.xlu1 %3418  ;;  %v10454_v36 = vadd.f32 1e-05, %v3496_v51  ;;  %v6858_v12 = vor.u32 %v7180_v21, %v6857_v7  ;;  %v6841_v7 = vld [vmem:[%s12639_s13 + $0x28] sm:$0xf]  ;;  %v7176_v21 = vld [vmem:[%s12639_s13 + $0x34] sm:$0xf0] }
 0x432   : > { %3436 = vadd.xlane.f32.xlu2 %v3410_v33  ;;  %v3449_v25 = vmul.f32 %v3419_v27, %v12995_v11 }
 0x433   : > { %v3290_v41 = vpop.f32.mrf.mxu3  ;;  %v3465_v63 = vmul.f32 %v10447_v20, %v10447_v20  ;;  %7506 = vrsqrt.f32 %v10454_v36  ;;  %4196 = vmatpush.bf16.msra.mxu3 %v6858_v12  ;;  %vm3550_vm6 = vweird.f32 %v10454_v36 }
 0x434   : > { %v3291_v43 = vadd.f32 %v3290_v41, %v3242_v31 }
 0x435   : > { %v3481_v33 = vsub.f32 %v3449_v25, %v3465_v63 }
 0x436   : > { %v10416_v10 = vadd.f32 %v3339_v24, %v3291_v43  ;;  %v3342_v16 = vpop.f32.mrf.mxu0  ;;  %v6849_v24 = vld [vmem:[%s12639_s13 + $0x40] sm:$0xf] }
 0x437   : > { %v3244_v29 = vpop.f32.mrf.mxu2  ;;  %v3197_v0 = vpop.f32.mrf.mxu1  ;;  %v6850_v47 = vor.u32 %v7179_v18, %v6849_v24  ;;  %v3497_v43 = vmax.f32 %v3481_v33, 0.0  ;;  %v7175_v18 = vld [vmem:[%s12639_s13 + $0x2c] sm:$0xf0] }
 0x438   : > { %3374 = vadd.xlane.f32.xlu1 %v10416_v10  ;;  %v3411_v39 = vmul.f32 %v10416_v10, %v10416_v10  ;;  %v3245_v55 = vadd.f32 %v3244_v29, %v3196_v22  ;;  %v3198_v44 = vadd.f32 %v10231_v30, %v3197_v0  ;;  %v6859_v29 = vld [vmem:[%s12639_s13 + $0x58] sm:$0xf0]  ;;  %v7173_v0 = vld [vmem:[%s12639_s13 + $0x24] sm:$0xf] }
 0x439   : > { %v3357_v42 = vpop.xlane.xlu2 %3356  ;;  %4098 = vmatpush.bf16.msra.mxu1 %v6850_v47  ;;  %v10480_v2 = vadd.f32 1e-05, %v3497_v43  ;;  %v10482_v22 = vpop.eup %7506  ;;  %v6862_v52 = vor.u32 %v7178_v54, %v6859_v29  ;;  %v6838_v60 = vor.u32 %v7173_v0, %v6835_v61 }
 0x43a   : > { %3438 = vadd.xlane.f32.xlu0 %v3411_v39  ;;  %v10474_v35 = vmul.f32 %v3357_v42, %v12995_v11  ;;  %v3545_v9 = vmul.f32 %v10482_v22, %v10454_v36  ;;  %vm3551_vm4 = vweird.f32 %v10482_v22 }
 0x43b   : > { %v3293_v4 = vpop.f32.mrf.mxu3  ;;  %v3421_v6 = vpop.xlane.xlu1 %3420  ;;  %7508 = vrsqrt.f32 %v10480_v2  ;;  %4245 = vmatpush.bf16.msrb.mxu0 %v6862_v52  ;;  %4148 = vmatpush.bf16.msrb.mxu2 %v6838_v60  ;;  %vm3552_vm7 = vmor %vm3550_vm6, %vm3551_vm4  ;;  %vm3560_vm8 = vweird.f32 %v10480_v2  ;;  %v3513_v60 = vsub.f32 %v10248_v8, %v10447_v20 }
 0x43c   : > { %v3294_v40 = vadd.f32 %v3293_v4, %v3245_v55  ;;  %v3466_v34 = vmul.f32 %v10474_v35, %v10474_v35  ;;  %v3450_v46 = vmul.f32 %v3421_v6, %v12995_v11  ;;  %v3546_v14 = vmul.f32 %v10482_v22, %v3545_v9 }
 0x43e   : > { %v10449_v45 = vadd.f32 %v3342_v16, %v3294_v40  ;;  %v3344_v23 = vpop.f32.mrf.mxu0  ;;  %v3482_v56 = vsub.f32 %v3450_v46, %v3466_v34 }
 0x43f   : > { %v3246_v62 = vpop.f32.mrf.mxu2  ;;  %v3200_v58 = vpop.f32.mrf.mxu1 }
 0x440   : > { %3376 = vadd.xlane.f32.xlu1 %v10449_v45  ;;  %v3412_v1 = vmul.f32 %v10449_v45, %v10449_v45  ;;  %v3247_v32 = vadd.f32 %v3246_v62, %v3198_v44  ;;  %v3201_v16 = vadd.f32 %v10231_v30, %v3200_v58  ;;  %v3498_v63 = vmax.f32 %v3482_v56, 0.0 }
 0x441   : > { %v3359_v39 = vpop.xlane.xlu0 %3358  ;;  %v3547_v62 = vmul.f32 0.5, %v3546_v14  ;;  %v7509_v58 = vpop.eup %7508 }
 0x442   : > { %3440 = vadd.xlane.f32.xlu0 %v3412_v1  ;;  %v10506_v4 = vmul.f32 %v3359_v39, %v12995_v11  ;;  %v10517_v24 = vadd.f32 1e-05, %v3498_v63  ;;  %vm3561_vm5 = vweird.f32 %v7509_v58 }
 0x443   : > { %v3295_v31 = vpop.f32.mrf.mxu3  ;;  %v3423_v15 = vpop.xlane.xlu2 %3422  ;;  %v3548_v34 = vsub.f32 1.5, %v3547_v62  ;;  %vm3562_vm9 = vmor %vm3560_vm8, %vm3561_vm5  ;;  %v10568_v62 = vld [vmem:[%s12638_s12] ss:$0 sm:$0xff] }
 0x444   : > { %v3296_v41 = vadd.f32 %v3295_v31, %v3247_v32  ;;  %v3451_v27 = vmul.f32 %v3423_v15, %v12995_v11  ;;  %v3467_v1 = vmul.f32 %v10506_v4, %v10506_v4  ;;  %v6833_v32 = vld [vmem:[%s12639_s13 + $0x20] sm:$0xf]  ;;  %v3555_v31 = vmul.f32 %v7509_v58, %v10480_v2 }
 0x445   : > { %v6834_v47 = vor.u32 %v7175_v18, %v6833_v32  ;;  %7510 = vrsqrt.f32 %v10517_v24  ;;  %v3549_v0 = vmul.f32 %v10482_v22, %v3548_v34  ;;  %v3512_v15 = vsub.f32 %v10242_v49, %v10426_v59  ;;  %v7174_v32 = vld [vmem:[%s12639_s13 + $0x2c] sm:$0xf]  ;;  %v6843_v18 = vld [vmem:[%s12639_s13 + $0x38] sm:$0xf0] }
 0x446   : > { %v10478_v37 = vadd.f32 %v3344_v23, %v3296_v41  ;;  %v3347_v40 = vpop.f32.mrf.mxu0  ;;  %v6842_v23 = vor.u32 %v7176_v21, %v6841_v7  ;;  %v3483_v12 = vsub.f32 %v3451_v27, %v3467_v1  ;;  %v3556_v46 = vmul.f32 %v7509_v58, %v3555_v31 }
 0x447   : > { %v3249_v55 = vpop.f32.mrf.mxu2  ;;  %v3202_v25 = vpop.f32.mrf.mxu1  ;;  %4099 = vmatpush.bf16.msra.mxu1 %v6834_v47  ;;  %v3553_v14 = vsel %vm3552_vm7, %v10482_v22, %v3549_v0  ;;  %v10558_v22 = vld [vmem:[%s12637_s11] ss:$0 sm:$0xff]  ;;  %v7169_v47 = vld [vmem:[%s12639_s13 + $0x4] sm:$0xf]  ;;  %v12996_v0 = vld [vmem:[#allocation16_spill] sm:$0xff]  ;;  %vm3570_vm14 = vweird.f32 %v10517_v24 }
 0x448   : > { %3378 = vadd.xlane.f32.xlu2 %v10478_v37  ;;  %v3413_v48 = vmul.f32 %v10478_v37, %v10478_v37  ;;  %v3250_v38 = vadd.f32 %v3249_v55, %v3201_v16  ;;  %v3203_v42 = vadd.f32 %v10231_v30, %v3202_v25  ;;  %4197 = vmatpush.bf16.msra.mxu3 %v6842_v23  ;;  %v3499_v6 = vmax.f32 %v3483_v12, 0.0 }
 0x449   : > { %v3557_v29 = vmul.f32 0.5, %v3556_v46  ;;  %v3704_v63 = vmul.f32 %v3553_v14, %v3512_v15  ;;  %v6846_v12 = vor.u32 %v7174_v32, %v6843_v18  ;;  %v13000_v15 = vld [vmem:[#allocation15_spill] sm:$0xff] }
 0x44a   : > { %3442 = vadd.xlane.f32.xlu1 %v3413_v48  ;;  %v10533_v54 = vadd.f32 1e-05, %v3499_v6 }
 0x44b   : > { %v3298_v51 = vpop.f32.mrf.mxu3  ;;  %v10538_v55 = vpop.eup %7510  ;;  %v3558_v9 = vsub.f32 1.5, %v3557_v29  ;;  %v3723_v7 = vmul.f32 %v10558_v22, %v3704_v63  ;;  %4246 = vmatpush.bf16.msrb.mxu0 %v6846_v12  ;;  %v7171_v63 = vld [vmem:[%s12639_s13 + $0xc] sm:$0xf0] }
 0x44c   : > { %v3299_v44 = vadd.f32 %v3298_v51, %v3250_v38  ;;  %7512 = vrsqrt.f32 %v10533_v54  ;;  %v3565_v38 = vmul.f32 %v10538_v55, %v10517_v24  ;;  %vm3571_vm11 = vweird.f32 %v10538_v55  ;;  %v6817_v24 = vld [vmem:[%s12639_s13] sm:$0xf] }
 0x44d   : > { %v3559_v56 = vmul.f32 %v7509_v58, %v3558_v9  ;;  %v3742_v6 = vadd.f32 %v10568_v62, %v3723_v7  ;;  %vm3580_vm12 = vweird.f32 %v10533_v54  ;;  %vm3572_vm15 = vmor %vm3570_vm14, %vm3571_vm11  ;;  %v13004_v9 = vld [vmem:[#allocation18_spill] sm:$0xff] }
 0x44e   : > { %v10525_v33 = vadd.f32 %v3347_v40, %v3299_v44  ;;  %v3349_v48 = vpop.f32.mrf.mxu0  ;;  %v3566_v36 = vmul.f32 %v10538_v55, %v3565_v38 }
 0x44f   : > { %v3251_v41 = vpop.f32.mrf.mxu2  ;;  %v3563_v40 = vsel %vm3562_vm9, %v7509_v58, %v3559_v56 }
 0x450   : > { %3380 = vadd.xlane.f32.xlu2 %v10525_v33  ;;  %v3414_v43 = vmul.f32 %v10525_v33, %v10525_v33  ;;  %v3252_v16 = vadd.f32 %v3251_v41, %v3203_v42  ;;  %v3705_v2 = vmul.f32 %v3563_v40, %v3513_v60  ;;  %v3567_v8 = vmul.f32 0.5, %v3566_v36  ;;  %v6819_v42 = vld [vmem:[%s12639_s13 + $0x10] sm:$0xf0]  ;;  %v6825_v60 = vld [vmem:[%s12639_s13 + $0x8] sm:$0xf] }
 0x451   : > { %v6822_v34 = vor.u32 %v7169_v47, %v6819_v42  ;;  %v7172_v36 = vld [vmem:[%s12639_s13 + $0x14] sm:$0xf0]  ;;  %v10617_v40 = vadd.f32 %v3742_v6, %v13000_v15 }
 0x452   : > { %3444 = vadd.xlane.f32.xlu1 %v3414_v43  ;;  %v7513_v51 = vpop.eup %7512  ;;  %v3724_v25 = vmul.f32 %v10558_v22, %v3705_v2  ;;  %v3568_v58 = vsub.f32 1.5, %v3567_v8  ;;  %v6826_v2 = vor.u32 %v7172_v36, %v6825_v60  ;;  %v6818_v8 = vor.u32 %v7171_v63, %v6817_v24 }
 0x453   : > { %v3300_v30 = vpop.f32.mrf.mxu3  ;;  %v3575_v27 = vmul.f32 %v7513_v51, %v10533_v54  ;;  %vm3581_vm10 = vweird.f32 %v7513_v51  ;;  %4149 = vmatpush.bf16.msrb.mxu2 %v6822_v34  ;;  %13001 = vst [vmem:[#allocation23_spill] sm:$0xff] %v10617_v40 }
 0x454   : > { %v3301_v39 = vadd.f32 %v3300_v30, %v3252_v16  ;;  %v3743_v31 = vadd.f32 %v10568_v62, %v3724_v25  ;;  %v3569_v29 = vmul.f32 %v10538_v55, %v3568_v58  ;;  %vm10597_vm13 = vmor %vm3580_vm12, %vm3581_vm10  ;;  %v3514_v25 = vsub.f32 %v10254_v3, %v10474_v35  ;;  %4198 = vmatpush.bf16.msra.mxu3 %v6826_v2  ;;  %v7170_v35 = vld [vmem:[%s12639_s13 + $0xc] sm:$0xf]  ;;  %v6827_v58 = vld [vmem:[%s12639_s13 + $0x18] sm:$0xf0] }
 0x455   : > { %v3576_v49 = vmul.f32 %v7513_v51, %v3575_v27  ;;  %4100 = vmatpush.bf16.msra.mxu1 %v6818_v8  ;;  %v6830_v47 = vor.u32 %v7170_v35, %v6827_v58 }
 0x456   : > { %v10540_v61 = vadd.f32 %v3349_v48, %v3301_v39  ;;  %v3361_v44 = vpop.xlane.xlu0 %3360  ;;  %v10595_v48 = vadd.f32 %v3743_v31, %v12996_v0  ;;  %v3573_v27 = vsel %vm3572_vm15, %v10538_v55, %v3569_v29 }
 0x457   : > { %v10562_v20 = vmul.f32 %v3361_v44, %v12995_v11  ;;  %v3577_v21 = vmul.f32 0.5, %v3576_v49  ;;  %4247 = vmatpush.bf16.msrb.mxu0 %v6830_v47 }
 0x458   : > { %3382 = vadd.xlane.f32.xlu0 %v10540_v61  ;;  %v3415_v52 = vmul.f32 %v10540_v61, %v10540_v61  ;;  %v3425_v59 = vpop.xlane.xlu2 %3424  ;;  %12997 = vst [vmem:[#allocation20_spill] sm:$0xff] %v10595_v48 }
 0x459   : > { %v3468_v1 = vmul.f32 %v10562_v20, %v10562_v20  ;;  %v3452_v23 = vmul.f32 %v3425_v59, %v12995_v11  ;;  %v3578_v41 = vsub.f32 1.5, %v3577_v21  ;;  %v3876_v59 = vpack.c.bf16 %v10595_v48, %v10617_v40 }
 0x45a   : > { %3446 = vadd.xlane.f32.xlu2 %v3415_v52 }
 0x45b   : > { %v3484_v43 = vsub.f32 %v3452_v23, %v3468_v1  ;;  %v3579_v16 = vmul.f32 %v7513_v51, %v3578_v41  ;;  %v3885_v7 = vunpack.c.h.bf16 %v3876_v59 }
 0x45d   : > { %v3500_v46 = vmax.f32 %v3484_v43, 0.0  ;;  %v3583_v14 = vsel %vm10597_vm13, %v7513_v51, %v3579_v16  ;;  %v3515_v51 = vsub.f32 %v10260_v50, %v10506_v4  ;;  %v3706_v50 = vmul.f32 %v3573_v27, %v3514_v25  ;;  %v13002_v16 = vld [vmem:[#allocation17_spill] sm:$0xff] }
 0x45e   : > { %v3363_v30 = vpop.xlane.xlu1 %3362  ;;  %v3884_v4 = vunpack.c.l.bf16 %v3876_v59 }
 0x45f   : > { %v10592_v39 = vmul.f32 %v3363_v30, %v12995_v11  ;;  %v3532_v38 = vadd.f32 1e-05, %v3500_v46  ;;  %v3707_v49 = vmul.f32 %v3583_v14, %v3515_v51  ;;  %v3725_v18 = vmul.f32 %v10558_v22, %v3706_v50 }
 0x460   : > { %v3427_v56 = vpop.xlane.xlu0 %3426 }
 0x461   : > { %v3469_v54 = vmul.f32 %v10592_v39, %v10592_v39  ;;  %v3453_v52 = vmul.f32 %v3427_v56, %v12995_v11  ;;  %7514 = vrsqrt.f32 %v3532_v38  ;;  %v3726_v32 = vmul.f32 %v10558_v22, %v3707_v49 }
 0x462   : > { %7516 = vtanh.f32 %v3884_v4  ;;  %v3744_v41 = vadd.f32 %v10568_v62, %v3725_v18  ;;  %vm3590_vm1 = vweird.f32 %v3532_v38 }
 0x463   : > { %v3485_v44 = vsub.f32 %v3453_v52, %v3469_v54  ;;  %v3745_v12 = vadd.f32 %v10568_v62, %v3726_v32 }
 0x464   : > { %v10645_v56 = vadd.f32 %v3744_v41, %v13004_v9  ;;  %v13010_v41 = vld [vmem:[#allocation3_spill] sm:$0xff] }
 0x465   : > { %v3501_v1 = vmax.f32 %v3485_v44, 0.0  ;;  %v10642_v46 = vadd.f32 %v3745_v12, %v13002_v16 }
 0x466   : > { %13005 = vst [vmem:[#allocation25_spill] sm:$0xff] %v10645_v56 }
 0x467   : > { %v3533_v21 = vadd.f32 1e-05, %v3501_v1  ;;  %v7515_v23 = vpop.eup %7514  ;;  %13003 = vst [vmem:[#allocation22_spill] sm:$0xff] %v10642_v46  ;;  %v3877_v51 = vpack.c.bf16 %v10642_v46, %v10645_v56 }
 0x468   : > { %v3585_v55 = vmul.f32 %v7515_v23, %v3532_v38  ;;  %v7517_v31 = vpop.eup %7516  ;;  %vm3591_vm0 = vweird.f32 %v7515_v23  ;;  %v3516_v38 = vsub.f32 %v10278_v57, %v10562_v20  ;;  %v3517_v57 = vsub.f32 %v10284_v26, %v10592_v39 }
 0x469   : > { %7518 = vrsqrt.f32 %v3533_v21  ;;  %vm10647_vm2 = vmor %vm3590_vm1, %vm3591_vm0  ;;  %v3886_v8 = vunpack.c.l.bf16 %v3877_v51  ;;  %v3887_v25 = vunpack.c.h.bf16 %v3877_v51  ;;  %vm3600_vm4 = vweird.f32 %v3533_v21 }
 0x46a   : > { %7520 = vtanh.f32 %v3885_v7  ;;  %v3586_v3 = vmul.f32 %v7515_v23, %v3585_v55 }
 0x46b   : > { %7522 = vtanh.f32 %v3886_v8 }
 0x46c   : > { %v3587_v42 = vmul.f32 0.5, %v3586_v3  ;;  %7524 = vtanh.f32 %v3887_v25 }
 0x46e   : > { %v3588_v34 = vsub.f32 1.5, %v3587_v42  ;;  %v13008_v42 = vld [vmem:[#allocation4_spill] sm:$0xff] }
 0x46f   : > { %v7519_v43 = vpop.eup %7518 }
 0x470   : > { %v7521_v6 = vpop.eup %7520  ;;  %v3595_v30 = vmul.f32 %v7519_v43, %v3533_v21  ;;  %v3589_v29 = vmul.f32 %v7515_v23, %v3588_v34  ;;  %vm3601_vm3 = vweird.f32 %v7519_v43 }
 0x471   : > { %v3916_v0 = vpack.c.bf16 %v7521_v6, %v7517_v31  ;;  %vm3602_vm5 = vmor %vm3600_vm4, %vm3601_vm3  ;;  %v7523_v26 = vpop.eup %7522 }
 0x472   : > { %v3596_v54 = vmul.f32 %v7519_v43, %v3595_v30  ;;  %v3593_v60 = vsel %vm10647_vm2, %v7515_v23, %v3589_v29  ;;  %v7525_v35 = vpop.eup %7524 }
 0x473   : > { %v3365_v52 = vpop.xlane.xlu1 %3364  ;;  %4101 = vmatmul.bf16.vlgmr.msra.gmra.mxu1 %v3916_v0  ;;  %4150 = vmatmul.bf16.vlgmr.msrb.gmra.mxu2 %v3916_v0  ;;  %v3708_v27 = vmul.f32 %v3593_v60, %v3516_v38  ;;  %v3917_v47 = vpack.c.bf16 %v7525_v35, %v7523_v26 }
 0x474   : > { %v10654_v36 = vmul.f32 %v3365_v52, %v12995_v11  ;;  %v3597_v24 = vmul.f32 0.5, %v3596_v54  ;;  %4199 = vmatmul.bf16.vlgmr.msra.gmra.mxu3 %v3916_v0  ;;  %4248 = vmatmul.bf16.vlgmr.msrb.gmra.mxu0 %v3916_v0 }
 0x475   : > { %v3429_v15 = vpop.xlane.xlu0 %3428  ;;  %v3727_v1 = vmul.f32 %v10558_v22, %v3708_v27 }
 0x476   : > { %v3470_v2 = vmul.f32 %v10654_v36, %v10654_v36  ;;  %v3454_v63 = vmul.f32 %v3429_v15, %v12995_v11  ;;  %v3598_v44 = vsub.f32 1.5, %v3597_v24 }
 0x477   : > { %v3746_v39 = vadd.f32 %v10568_v62, %v3727_v1 }
 0x478   : > { %v3486_v49 = vsub.f32 %v3454_v63, %v3470_v2  ;;  %v3599_v59 = vmul.f32 %v7519_v43, %v3598_v44 }
 0x47a   : > { %v3502_v20 = vmax.f32 %v3486_v49, 0.0  ;;  %v3603_v50 = vsel %vm3602_vm5, %v7519_v43, %v3599_v59  ;;  %v10679_v43 = vadd.f32 %v3746_v39, %v13010_v41  ;;  %v3518_v59 = vsub.f32 %v10314_v28, %v10654_v36 }
 0x47b   : > { %v3367_v4 = vpop.xlane.xlu2 %3366  ;;  %v3709_v7 = vmul.f32 %v3603_v50, %v3517_v57 }
 0x47c   : > { %v3534_v23 = vadd.f32 1e-05, %v3502_v20  ;;  %v10667_v32 = vmul.f32 %v3367_v4, %v12995_v11  ;;  %13011 = vst [vmem:[#allocation27_spill] sm:$0xff] %v10679_v43 }
 0x47d   : > { %v3431_v55 = vpop.xlane.xlu1 %3430  ;;  %v3728_v18 = vmul.f32 %v10558_v22, %v3709_v7 }
 0x47e   : > { %7526 = vrsqrt.f32 %v3534_v23  ;;  %v3471_v21 = vmul.f32 %v10667_v32, %v10667_v32  ;;  %v3455_v3 = vmul.f32 %v3431_v55, %v12995_v11  ;;  %vm3610_vm7 = vweird.f32 %v3534_v23 }
 0x47f   : > { %v3747_v58 = vadd.f32 %v10568_v62, %v3728_v18  ;;  %v3519_v36 = vsub.f32 %v10332_v13, %v10667_v32  ;;  %v13012_v32 = vld [vmem:[#allocation6_spill] sm:$0xff] }
 0x480   : > { %v3487_v12 = vsub.f32 %v3455_v3, %v3471_v21 }
 0x481   : > { %v10676_v31 = vadd.f32 %v3747_v58, %v13008_v42 }
 0x482   : > { %v3503_v34 = vmax.f32 %v3487_v12, 0.0 }
 0x483   : > { %13009 = vst [vmem:[#allocation24_spill] sm:$0xff] %v10676_v31  ;;  %4106 = vmatmul.bf16.gmra.mxu1 %v3917_v47  ;;  %4155 = vmatmul.bf16.gmra.mxu2 %v3917_v47  ;;  %v3878_v29 = vpack.c.bf16 %v10676_v31, %v10679_v43  ;;  %v7213_v31 = vld [vmem:[%s12643_s17 + $0x60] sm:$0xff] }
 0x484   : > { %v7527_v6 = vpop.eup %7526  ;;  %v3535_v30 = vadd.f32 1e-05, %v3503_v34  ;;  %4204 = vmatmul.bf16.gmra.mxu3 %v3917_v47  ;;  %4253 = vmatmul.bf16.gmra.mxu0 %v3917_v47 }
 0x485   : > { %v3605_v16 = vmul.f32 %v7527_v6, %v3534_v23  ;;  %v3888_v9 = vunpack.c.l.bf16 %v3878_v29  ;;  %v3889_v14 = vunpack.c.h.bf16 %v3878_v29  ;;  %vm3611_vm6 = vweird.f32 %v7527_v6  ;;  %v13014_v29 = vld [vmem:[#allocation5_spill] sm:$0xff] }
 0x486   : > { %7528 = vrsqrt.f32 %v3535_v30  ;;  %vm3612_vm8 = vmor %vm3610_vm7, %vm3611_vm6  ;;  %vm3620_vm10 = vweird.f32 %v3535_v30 }
 0x487   : > { %v3606_v0 = vmul.f32 %v7527_v6, %v3605_v16  ;;  %7530 = vtanh.f32 %v3888_v9 }
 0x488   : > { %7532 = vtanh.f32 %v3889_v14 }
 0x489   : > { %v3607_v54 = vmul.f32 0.5, %v3606_v0 }
 0x48b   : > { %v3608_v52 = vsub.f32 1.5, %v3607_v54 }
 0x48c   : > { %v7529_v38 = vpop.eup %7528 }
 0x48d   : > { %v3609_v24 = vmul.f32 %v7527_v6, %v3608_v52  ;;  %v3615_v51 = vmul.f32 %v7529_v38, %v3535_v30  ;;  %v7531_v63 = vpop.eup %7530  ;;  %vm3621_vm9 = vweird.f32 %v7529_v38 }
 0x48e   : > { %v3369_v60 = vpop.xlane.xlu2 %3368  ;;  %v7533_v8 = vpop.eup %7532  ;;  %vm3622_vm11 = vmor %vm3620_vm10, %vm3621_vm9 }
 0x48f   : > { %v10684_v15 = vmul.f32 %v3369_v60, %v12995_v11  ;;  %v3613_v25 = vsel %vm3612_vm8, %v7527_v6, %v3609_v24  ;;  %v3616_v49 = vmul.f32 %v7529_v38, %v3615_v51  ;;  %v3918_v20 = vpack.c.bf16 %v7533_v8, %v7531_v63 }
 0x490   : > { %v3433_v2 = vpop.xlane.xlu1 %3432  ;;  %v3710_v50 = vmul.f32 %v3613_v25, %v3518_v59 }
 0x491   : > { %v3472_v27 = vmul.f32 %v10684_v15, %v10684_v15  ;;  %v3456_v44 = vmul.f32 %v3433_v2, %v12995_v11  ;;  %v3617_v1 = vmul.f32 0.5, %v3616_v49 }
 0x492   : > { %v3729_v28 = vmul.f32 %v10558_v22, %v3710_v50 }
 0x493   : > { %v3488_v57 = vsub.f32 %v3456_v44, %v3472_v27  ;;  %v3618_v7 = vsub.f32 1.5, %v3617_v1  ;;  %4111 = vmatmul.bf16.gmra.mxu1 %v3918_v20  ;;  %4160 = vmatmul.bf16.gmra.mxu2 %v3918_v20 }
 0x494   : > { %4209 = vmatmul.bf16.gmra.mxu3 %v3918_v20  ;;  %4258 = vmatmul.bf16.gmra.mxu0 %v3918_v20  ;;  %v3748_v47 = vadd.f32 %v10568_v62, %v3729_v28 }
 0x495   : > { %v3504_v4 = vmax.f32 %v3488_v57, 0.0  ;;  %v3619_v21 = vmul.f32 %v7529_v38, %v3618_v7 }
 0x496   : > { %v3371_v23 = vpop.xlane.xlu0 %3370  ;;  %v10704_v30 = vadd.f32 %v3748_v47, %v13012_v32 }
 0x497   : > { %v3536_v55 = vadd.f32 1e-05, %v3504_v4  ;;  %v10692_v18 = vmul.f32 %v3371_v23, %v12995_v11  ;;  %v3623_v3 = vsel %vm3622_vm11, %v7529_v38, %v3619_v21 }
 0x498   : > { %v3435_v26 = vpop.xlane.xlu2 %3434  ;;  %v3711_v58 = vmul.f32 %v3623_v3, %v3519_v36  ;;  %13013 = vst [vmem:[#allocation26_spill] sm:$0xff] %v10704_v30 }
 0x499   : > { %7534 = vrsqrt.f32 %v3536_v55  ;;  %v3473_v39 = vmul.f32 %v10692_v18, %v10692_v18  ;;  %v3457_v35 = vmul.f32 %v3435_v26, %v12995_v11  ;;  %vm3630_vm13 = vweird.f32 %v3536_v55 }
 0x49a   : > { %v3730_v42 = vmul.f32 %v10558_v22, %v3711_v58 }
 0x49b   : > { %v3489_v12 = vsub.f32 %v3457_v35, %v3473_v39  ;;  %v3520_v39 = vsub.f32 %v10362_v19, %v10684_v15 }
 0x49c   : > { %v3749_v6 = vadd.f32 %v10568_v62, %v3730_v42 }
 0x49d   : > { %v3505_v41 = vmax.f32 %v3489_v12, 0.0 }
 0x49e   : > { %v10707_v0 = vadd.f32 %v3749_v6, %v13014_v29 }
 0x49f   : > { %v7535_v34 = vpop.eup %7534  ;;  %v3537_v13 = vadd.f32 1e-05, %v3505_v41 }
 0x4a0   : > { %v3625_v16 = vmul.f32 %v7535_v34, %v3536_v55  ;;  %13015 = vst [vmem:[#allocation29_spill] sm:$0xff] %v10707_v0  ;;  %v3879_v60 = vpack.c.bf16 %v10707_v0, %v10704_v30  ;;  %vm3631_vm12 = vweird.f32 %v7535_v34 }
 0x4a1   : > { %7536 = vrsqrt.f32 %v3537_v13  ;;  %vm3632_vm14 = vmor %vm3630_vm13, %vm3631_vm12  ;;  %vm3640_vm0 = vweird.f32 %v3537_v13 }
 0x4a2   : > { %v3626_v14 = vmul.f32 %v7535_v34, %v3625_v16  ;;  %v3890_v2 = vunpack.c.l.bf16 %v3879_v60  ;;  %v3891_v63 = vunpack.c.h.bf16 %v3879_v60 }
 0x4a3   : > { %v3373_v9 = vpop.xlane.xlu0 %3372 }
 0x4a4   : > { %v10710_v54 = vmul.f32 %v3373_v9, %v12995_v11  ;;  %v3627_v38 = vmul.f32 0.5, %v3626_v14  ;;  %7538 = vtanh.f32 %v3890_v2 }
 0x4a5   : > { %v3437_v52 = vpop.xlane.xlu2 %3436  ;;  %7540 = vtanh.f32 %v3891_v63 }
 0x4a6   : > { %v3474_v24 = vmul.f32 %v10710_v54, %v10710_v54  ;;  %v3458_v51 = vmul.f32 %v3437_v52, %v12995_v11  ;;  %v3628_v27 = vsub.f32 1.5, %v3627_v38 }
 0x4a7   : > { %v7537_v8 = vpop.eup %7536 }
 0x4a8   : > { %v3490_v44 = vsub.f32 %v3458_v51, %v3474_v24  ;;  %v3629_v49 = vmul.f32 %v7535_v34, %v3628_v27  ;;  %v3635_v59 = vmul.f32 %v7537_v8, %v3537_v13  ;;  %vm3641_vm15 = vweird.f32 %v7537_v8  ;;  %v13016_v27 = vld [vmem:[#allocation8_spill] sm:$0xff] }
 0x4a9   : > { %vm3642_vm1 = vmor %vm3640_vm0, %vm3641_vm15 }
 0x4aa   : > { %v3506_v25 = vmax.f32 %v3490_v44, 0.0  ;;  %v3636_v50 = vmul.f32 %v7537_v8, %v3635_v59  ;;  %v7539_v23 = vpop.eup %7538  ;;  %v3633_v21 = vsel %vm3632_vm14, %v7535_v34, %v3629_v49  ;;  %v3521_v34 = vsub.f32 %v10380_v53, %v10692_v18 }
 0x4ab   : > { %v3375_v57 = vpop.xlane.xlu1 %3374  ;;  %v7541_v36 = vpop.eup %7540  ;;  %v3712_v58 = vmul.f32 %v3633_v21, %v3520_v39  ;;  %v3522_v39 = vsub.f32 %v10398_v17, %v10710_v54 }
 0x4ac   : > { %v3538_v20 = vadd.f32 1e-05, %v3506_v25  ;;  %v10718_v1 = vmul.f32 %v3375_v57, %v12995_v11  ;;  %v3637_v26 = vmul.f32 0.5, %v3636_v50  ;;  %v3919_v55 = vpack.c.bf16 %v7541_v36, %v7539_v23  ;;  %v13018_v50 = vld [vmem:[#allocation9_spill] sm:$0xff] }
 0x4ad   : > { %v3439_v4 = vpop.xlane.xlu0 %3438  ;;  %v3731_v13 = vmul.f32 %v10558_v22, %v3712_v58 }
 0x4ae   : > { %7542 = vrsqrt.f32 %v3538_v20  ;;  %v3475_v7 = vmul.f32 %v10718_v1, %v10718_v1  ;;  %v3459_v28 = vmul.f32 %v3439_v4, %v12995_v11  ;;  %v3638_v3 = vsub.f32 1.5, %v3637_v26  ;;  %4116 = vmatmul.bf16.gmra.mxu1 %v3919_v55  ;;  %4165 = vmatmul.bf16.gmra.mxu2 %v3919_v55 }
 0x4af   : > { %4214 = vmatmul.bf16.gmra.mxu3 %v3919_v55  ;;  %4263 = vmatmul.bf16.gmra.mxu0 %v3919_v55  ;;  %v3750_v38 = vadd.f32 %v10568_v62, %v3731_v13  ;;  %vm3650_vm3 = vweird.f32 %v3538_v20  ;;  %v3523_v17 = vsub.f32 %v10416_v10, %v10718_v1 }
 0x4b0   : > { %v3491_v35 = vsub.f32 %v3459_v28, %v3475_v7  ;;  %v3639_v12 = vmul.f32 %v7537_v8, %v3638_v3 }
 0x4b1   : > { %v10746_v4 = vadd.f32 %v3750_v38, %v13018_v50 }
 0x4b2   : > { %v3507_v47 = vmax.f32 %v3491_v35, 0.0  ;;  %v3643_v19 = vsel %vm3642_vm1, %v7537_v8, %v3639_v12 }
 0x4b3   : > { %v3377_v42 = vpop.xlane.xlu1 %3376  ;;  %v3713_v29 = vmul.f32 %v3643_v19, %v3521_v34  ;;  %13019 = vst [vmem:[#allocation31_spill] sm:$0xff] %v10746_v4 }
 0x4b4   : > { %v7543_v41 = vpop.eup %7542  ;;  %v10728_v6 = vmul.f32 %v3377_v42, %v12995_v11  ;;  %v3539_v16 = vadd.f32 1e-05, %v3507_v47 }
 0x4b5   : > { %v3645_v15 = vmul.f32 %v7543_v41, %v3538_v20  ;;  %v3441_v32 = vpop.xlane.xlu0 %3440  ;;  %v3732_v53 = vmul.f32 %v10558_v22, %v3713_v29  ;;  %vm3651_vm2 = vweird.f32 %v7543_v41 }
 0x4b6   : > { %v3476_v9 = vmul.f32 %v10728_v6, %v10728_v6  ;;  %v3460_v14 = vmul.f32 %v3441_v32, %v12995_v11  ;;  %7544 = vrsqrt.f32 %v3539_v16  ;;  %vm3652_vm4 = vmor %vm3650_vm3, %vm3651_vm2  ;;  %vm3660_vm6 = vweird.f32 %v3539_v16 }
 0x4b7   : > { %v3646_v52 = vmul.f32 %v7543_v41, %v3645_v15  ;;  %v3751_v24 = vadd.f32 %v10568_v62, %v3732_v53 }
 0x4b8   : > { %v3492_v18 = vsub.f32 %v3460_v14, %v3476_v9 }
 0x4b9   : > { %v3647_v60 = vmul.f32 0.5, %v3646_v52  ;;  %v10738_v44 = vadd.f32 %v3751_v24, %v13016_v27 }
 0x4ba   : > { %v3508_v51 = vmax.f32 %v3492_v18, 0.0 }
 0x4bb   : > { %v3648_v2 = vsub.f32 1.5, %v3647_v60  ;;  %v3379_v63 = vpop.xlane.xlu2 %3378  ;;  %13017 = vst [vmem:[#allocation28_spill] sm:$0xff] %v10738_v44  ;;  %v3880_v36 = vpack.c.bf16 %v10738_v44, %v10746_v4  ;;  %v7230_v44 = vld [vmem:[%s12643_s17 + $0xe8] sm:$0xff] }
 0x4bc   : > { %v10740_v8 = vadd.f32 1e-05, %v3508_v51  ;;  %v10743_v25 = vmul.f32 %v3379_v63, %v12995_v11  ;;  %v7545_v49 = vpop.eup %7544 }
 0x4bd   : > { %v3649_v59 = vmul.f32 %v7543_v41, %v3648_v2  ;;  %v3443_v57 = vpop.xlane.xlu1 %3442  ;;  %v3655_v7 = vmul.f32 %v7545_v49, %v3539_v16  ;;  %v3892_v20 = vunpack.c.l.bf16 %v3880_v36  ;;  %v3893_v55 = vunpack.c.h.bf16 %v3880_v36  ;;  %v13022_v36 = vld [vmem:[#allocation12_spill] sm:$0xff] }
 0x4be   : > { %7546 = vrsqrt.f32 %v10740_v8  ;;  %v3477_v23 = vmul.f32 %v10743_v25, %v10743_v25  ;;  %v3461_v21 = vmul.f32 %v3443_v57, %v12995_v11  ;;  %vm3661_vm5 = vweird.f32 %v7545_v49 }
 0x4bf   : > { %v3653_v26 = vsel %vm3652_vm4, %v7543_v41, %v3649_v59  ;;  %v3656_v28 = vmul.f32 %v7545_v49, %v3655_v7  ;;  %7548 = vtanh.f32 %v3892_v20  ;;  %vm3662_vm7 = vmor %vm3660_vm6, %vm3661_vm5  ;;  %vm3670_vm9 = vweird.f32 %v10740_v8 }
 0x4c0   : > { %v3493_v3 = vsub.f32 %v3461_v21, %v3477_v23  ;;  %v3714_v58 = vmul.f32 %v3653_v26, %v3522_v39  ;;  %7550 = vtanh.f32 %v3893_v55  ;;  %v13020_v26 = vld [vmem:[#allocation11_spill] sm:$0xff]  ;;  %v3524_v20 = vsub.f32 %v10449_v45, %v10728_v6 }
 0x4c1   : > { %v3657_v35 = vmul.f32 0.5, %v3656_v28  ;;  %v3525_v45 = vsub.f32 %v10478_v37, %v10743_v25 }
 0x4c2   : > { %v3509_v12 = vmax.f32 %v3493_v3, 0.0  ;;  %v3733_v29 = vmul.f32 %v10558_v22, %v3714_v58 }
 0x4c3   : > { %v3381_v47 = vpop.xlane.xlu2 %3380  ;;  %v3658_v34 = vsub.f32 1.5, %v3657_v35 }
 0x4c4   : > { %v7547_v42 = vpop.eup %7546  ;;  %v10757_v19 = vmul.f32 %v3381_v47, %v12995_v11  ;;  %v3541_v15 = vadd.f32 1e-05, %v3509_v12  ;;  %v3752_v10 = vadd.f32 %v10568_v62, %v3733_v29 }
 0x4c5   : > { %v3665_v41 = vmul.f32 %v7547_v42, %v10740_v8  ;;  %v3445_v32 = vpop.xlane.xlu1 %3444  ;;  %v3659_v54 = vmul.f32 %v7545_v49, %v3658_v34  ;;  %v7549_v38 = vpop.eup %7548  ;;  %vm3671_vm8 = vweird.f32 %v7547_v42 }
 0x4c6   : > { %v3478_v13 = vmul.f32 %v10757_v19, %v10757_v19  ;;  %7552 = vrsqrt.f32 %v3541_v15  ;;  %v3462_v14 = vmul.f32 %v3445_v32, %v12995_v11  ;;  %v7551_v24 = vpop.eup %7550  ;;  %v10776_v28 = vadd.f32 %v3752_v10, %v13020_v26  ;;  %vm3672_vm10 = vmor %vm3670_vm9, %vm3671_vm8 }
 0x4c7   : > { %v3666_v9 = vmul.f32 %v7547_v42, %v3665_v41  ;;  %v3663_v52 = vsel %vm3662_vm7, %v7545_v49, %v3659_v54  ;;  %v3920_v27 = vpack.c.bf16 %v7551_v24, %v7549_v38  ;;  %vm3680_vm12 = vweird.f32 %v3541_v15 }
 0x4c8   : > { %v3715_v53 = vmul.f32 %v3663_v52, %v3523_v17  ;;  %v3494_v60 = vsub.f32 %v3462_v14, %v3478_v13  ;;  %13021 = vst [vmem:[#allocation30_spill] sm:$0xff] %v10776_v28 }
 0x4c9   : > { %v3667_v18 = vmul.f32 0.5, %v3666_v9  ;;  %4121 = vmatmul.bf16.gmra.mxu1 %v3920_v27  ;;  %4170 = vmatmul.bf16.gmra.mxu2 %v3920_v27 }
 0x4ca   : > { %v3734_v1 = vmul.f32 %v10558_v22, %v3715_v53  ;;  %v3510_v51 = vmax.f32 %v3494_v60, 0.0  ;;  %4219 = vmatmul.bf16.gmra.mxu3 %v3920_v27  ;;  %4268 = vmatmul.bf16.gmra.mxu0 %v3920_v27 }
 0x4cb   : > { %v3668_v16 = vsub.f32 1.5, %v3667_v18  ;;  %v3383_v2 = vpop.xlane.xlu0 %3382 }
 0x4cc   : > { %v10769_v63 = vmul.f32 %v3383_v2, %v12995_v11  ;;  %v7553_v59 = vpop.eup %7552  ;;  %v3753_v49 = vadd.f32 %v10568_v62, %v3734_v1  ;;  %v3542_v50 = vadd.f32 1e-05, %v3510_v51  ;;  %v13026_v2 = vld [vmem:[#allocation10_spill] sm:$0xff] }
 0x4cd   : > { %v3669_v57 = vmul.f32 %v7547_v42, %v3668_v16  ;;  %v3447_v7 = vpop.xlane.xlu2 %3446  ;;  %v3675_v23 = vmul.f32 %v7553_v59, %v3541_v15  ;;  %vm3681_vm11 = vweird.f32 %v7553_v59  ;;  %v13024_v16 = vld [vmem:[#allocation7_spill] sm:$0xff] }
 0x4ce   : > { %v3479_v21 = vmul.f32 %v10769_v63, %v10769_v63  ;;  %v10779_v39 = vadd.f32 %v3753_v49, %v13022_v36  ;;  %7554 = vrsqrt.f32 %v3542_v50  ;;  %v3463_v8 = vmul.f32 %v3447_v7, %v12995_v11  ;;  %vm3682_vm13 = vmor %vm3680_vm12, %vm3681_vm11 }
 0x4cf   : > { %v3673_v3 = vsel %vm3672_vm10, %v7547_v42, %v3669_v57  ;;  %v3676_v35 = vmul.f32 %v7553_v59, %v3675_v23  ;;  %vm3690_vm15 = vweird.f32 %v3542_v50  ;;  %v3526_v23 = vsub.f32 %v10525_v33, %v10757_v19 }
 0x4d0   : > { %13023 = vst [vmem:[#allocation33_spill] sm:$0xff] %v10779_v39  ;;  %v3881_v55 = vpack.c.bf16 %v10779_v39, %v10776_v28  ;;  %v3495_v12 = vsub.f32 %v3463_v8, %v3479_v21  ;;  %v3716_v47 = vmul.f32 %v3673_v3, %v3524_v20  ;;  %v3527_v20 = vsub.f32 %v10540_v61, %v10769_v63 }
 0x4d1   : > { %v3677_v58 = vmul.f32 0.5, %v3676_v35 }
 0x4d2   : > { %v3894_v34 = vunpack.c.l.bf16 %v3881_v55  ;;  %v3895_v41 = vunpack.c.h.bf16 %v3881_v55  ;;  %v3511_v17 = vmax.f32 %v3495_v12, 0.0  ;;  %v3735_v29 = vmul.f32 %v10558_v22, %v3716_v47 }
 0x4d3   : > { %v3678_v32 = vsub.f32 1.5, %v3677_v58 }
 0x4d4   : > { %v7555_v54 = vpop.eup %7554  ;;  %7556 = vtanh.f32 %v3894_v34  ;;  %v3543_v6 = vadd.f32 1e-05, %v3511_v17  ;;  %v3754_v60 = vadd.f32 %v10568_v62, %v3735_v29 }
 0x4d5   : > { %v3679_v42 = vmul.f32 %v7553_v59, %v3678_v32  ;;  %v3685_v13 = vmul.f32 %v7555_v54, %v3542_v50  ;;  %7558 = vtanh.f32 %v3895_v41  ;;  %vm3691_vm14 = vweird.f32 %v7555_v54  ;;  %v13028_v32 = vld [vmem:[#allocation14_spill] sm:$0xff] }
 0x4d6   : > { %7560 = vrsqrt.f32 %v3543_v6  ;;  %v10794_v51 = vadd.f32 %v3754_v60, %v13024_v16  ;;  %vm3692_vm0 = vmor %vm3690_vm15, %vm3691_vm14  ;;  %vm3700_vm2 = vweird.f32 %v3543_v6 }
 0x4d7   : > { %v3683_v9 = vsel %vm3682_vm13, %v7553_v59, %v3679_v42  ;;  %v3686_v14 = vmul.f32 %v7555_v54, %v3685_v13 }
 0x4d8   : > { %v3717_v52 = vmul.f32 %v3683_v9, %v3525_v45  ;;  %13025 = vst [vmem:[#allocation32_spill] sm:$0xff] %v10794_v51 }
 0x4d9   : > { %v3687_v53 = vmul.f32 0.5, %v3686_v14 }
 0x4da   : > { %v7557_v18 = vpop.eup %7556  ;;  %v3736_v38 = vmul.f32 %v10558_v22, %v3717_v52 }
 0x4db   : > { %v3688_v15 = vsub.f32 1.5, %v3687_v53  ;;  %v7559_v24 = vpop.eup %7558 }
 0x4dc   : > { %v3755_v10 = vadd.f32 %v10568_v62, %v3736_v38  ;;  %v3921_v37 = vpack.c.bf16 %v7559_v24, %v7557_v18  ;;  %v7561_v25 = vpop.eup %7560 }
 0x4dd   : > { %v3689_v1 = vmul.f32 %v7555_v54, %v3688_v15  ;;  %v3695_v59 = vmul.f32 %v7561_v25, %v3543_v6  ;;  %vm3701_vm1 = vweird.f32 %v7561_v25 }
 0x4de   : > { %v10797_v27 = vadd.f32 %v3755_v10, %v13026_v2  ;;  %4126 = vmatmul.bf16.gmra.mxu1 %v3921_v37  ;;  %4175 = vmatmul.bf16.gmra.mxu2 %v3921_v37  ;;  %vm3702_vm3 = vmor %vm3700_vm2, %vm3701_vm1 }
 0x4df   : > { %4224 = vmatmul.bf16.gmra.mxu3 %v3921_v37  ;;  %4273 = vmatmul.bf16.gmra.mxu0 %v3921_v37  ;;  %v3693_v57 = vsel %vm3692_vm0, %v7555_v54, %v3689_v1  ;;  %v3696_v7 = vmul.f32 %v7561_v25, %v3695_v59  ;;  %v13030_v54 = vld [vmem:[#allocation13_spill] sm:$0xff] }
 0x4e0   : > { %13027 = vst [vmem:[#allocation35_spill] sm:$0xff] %v10797_v27  ;;  %v3882_v49 = vpack.c.bf16 %v10797_v27, %v10794_v51  ;;  %v3718_v3 = vmul.f32 %v3693_v57, %v3526_v23  ;;  %v7206_v51 = vld [vmem:[%s12643_s17 + $0x28] sm:$0xff] }
 0x4e1   : > { %v3697_v36 = vmul.f32 0.5, %v3696_v7 }
 0x4e2   : > { %v3896_v21 = vunpack.c.l.bf16 %v3882_v49  ;;  %v3897_v26 = vunpack.c.h.bf16 %v3882_v49  ;;  %v3737_v8 = vmul.f32 %v10558_v22, %v3718_v3 }
 0x4e3   : > { %v3698_v50 = vsub.f32 1.5, %v3697_v36 }
 0x4e4   : > { %7562 = vtanh.f32 %v3896_v21  ;;  %v3756_v19 = vadd.f32 %v10568_v62, %v3737_v8 }
 0x4e5   : > { %7564 = vtanh.f32 %v3897_v26  ;;  %v3699_v35 = vmul.f32 %v7561_v25, %v3698_v50 }
 0x4e6   : > { %v10810_v17 = vadd.f32 %v3756_v19, %v13028_v32 }
 0x4e7   : > { %v3703_v55 = vsel %vm3702_vm3, %v7561_v25, %v3699_v35 }
 0x4e8   : > { %v3719_v12 = vmul.f32 %v3703_v55, %v3527_v20  ;;  %13029 = vst [vmem:[#allocation34_spill] sm:$0xff] %v10810_v17 }
 0x4ea   : > { %v7563_v58 = vpop.eup %7562  ;;  %v3738_v47 = vmul.f32 %v10558_v22, %v3719_v12  ;;  %v3806_v22 = vld [vmem:[%s12640_s14] sm:$0xf] }
 0x4eb   : > { %v7565_v33 = vpop.eup %7564  ;;  %v10820_v29 = vperm.slane %v3806_v22, 0  ;;  %v10822_v6 = vperm.slane %v3806_v22, 1  ;;  %v10824_v9 = vperm.slane %v3806_v22, 3  ;;  %v10826_v14 = vperm.slane %v3806_v22, 2 }
 0x4ec   : > { %v3922_v34 = vpack.c.bf16 %v7565_v33, %v7563_v58  ;;  %v3757_v41 = vadd.f32 %v10568_v62, %v3738_v47 }
 0x4ee   : > { %4131 = vmatmul.bf16.gmra.mxu1 %v3922_v34  ;;  %4180 = vmatmul.bf16.gmra.mxu2 %v3922_v34  ;;  %v10813_v42 = vadd.f32 %v3757_v41, %v13030_v54 }
 0x4ef   : > { %4229 = vmatmul.bf16.gmra.mxu3 %v3922_v34  ;;  %4278 = vmatmul.bf16.gmra.mxu0 %v3922_v34 }
 0x4f0   : > { %13031 = vst [vmem:[#allocation37_spill] sm:$0xff] %v10813_v42  ;;  %v3883_v61 = vpack.c.bf16 %v10813_v42, %v10810_v17  ;;  %v4102_v62 = vpop.f32.mrf.mxu1 }
 0x4f1   : > { %v4249_v45 = vpop.f32.mrf.mxu0  ;;  %v10829_v52 = vadd.f32 %v4102_v62, %v10820_v29 }
 0x4f2   : > { %v3898_v63 = vunpack.c.l.bf16 %v3883_v61  ;;  %v3899_v13 = vunpack.c.h.bf16 %v3883_v61  ;;  %v10835_v15 = vadd.f32 %v4249_v45, %v10824_v9 }
 0x4f3   : > { %v4385_v37 = vmul.f32 %v10829_v52, %v10829_v52 }
 0x4f4   : > { %7566 = vtanh.f32 %v3898_v63  ;;  %v4388_v23 = vmul.f32 %v10835_v15, %v10835_v15 }
 0x4f5   : > { %7568 = vtanh.f32 %v3899_v13 }
 0x4f6   : > { %v4151_v53 = vpop.f32.mrf.mxu2 }
 0x4f7   : > { %v10832_v18 = vadd.f32 %v4151_v53, %v10822_v6  ;;  %v4200_v60 = vpop.f32.mrf.mxu3 }
 0x4f8   : > { %v10838_v24 = vadd.f32 %v4200_v60, %v10826_v14  ;;  %v4104_v10 = vpop.f32.mrf.mxu1 }
 0x4f9   : > { %v4289_v25 = vadd.f32 %v10832_v18, %v10829_v52  ;;  %v4386_v16 = vmul.f32 %v10832_v18, %v10832_v18  ;;  %v4251_v2 = vpop.f32.mrf.mxu0  ;;  %v10852_v21 = vadd.f32 %v4104_v10, %v10820_v29 }
 0x4fa   : > { %v7567_v38 = vpop.eup %7566  ;;  %v4387_v49 = vmul.f32 %v10838_v24, %v10838_v24  ;;  %v10864_v12 = vadd.f32 %v4251_v2, %v10824_v9 }
 0x4fb   : > { %v7569_v1 = vpop.eup %7568  ;;  %v4290_v57 = vadd.f32 %v4289_v25, %v10838_v24  ;;  %v4449_v7 = vadd.f32 %v4386_v16, %v4385_v37  ;;  %v4389_v58 = vmul.f32 %v10852_v21, %v10852_v21 }
 0x4fc   : > { %v3923_v59 = vpack.c.bf16 %v7569_v1, %v7567_v38  ;;  %v4392_v22 = vmul.f32 %v10864_v12, %v10864_v12 }
 0x4fd   : > { %v4291_v26 = vadd.f32 %v4290_v57, %v10835_v15  ;;  %v4450_v36 = vadd.f32 %v4449_v7, %v4387_v49 }
 0x4fe   : > { %4136 = vmatmul.bf16.gmra.mxu1 %v3923_v59  ;;  %4185 = vmatmul.bf16.gmra.mxu2 %v3923_v59  ;;  %v4153_v3 = vpop.f32.mrf.mxu2 }
 0x4ff   : > { %4234 = vmatmul.bf16.gmra.mxu3 %v3923_v59  ;;  %4283 = vmatmul.bf16.gmra.mxu0 %v3923_v59  ;;  %v10856_v50 = vadd.f32 %v4153_v3, %v10822_v6  ;;  %v4202_v35 = vpop.f32.mrf.mxu3  ;;  %v4451_v8 = vadd.f32 %v4450_v36, %v4388_v23 }
 0x500   : > { %4292 = vadd.xlane.f32.xlu0 %v4291_v26  ;;  %v10859_v20 = vadd.f32 %v4202_v35, %v10826_v14  ;;  %v4107_v55 = vpop.f32.mrf.mxu1 }
 0x501   : > { %v4390_v33 = vmul.f32 %v10856_v50, %v10856_v50  ;;  %v4254_v19 = vpop.f32.mrf.mxu0  ;;  %4452 = vadd.xlane.f32.xlu2 %v4451_v8  ;;  %v4294_v47 = vadd.f32 %v10856_v50, %v10852_v21  ;;  %v10874_v54 = vadd.f32 %v4107_v55, %v10820_v29 }
 0x502   : > { %v4391_v41 = vmul.f32 %v10859_v20, %v10859_v20  ;;  %v10888_v1 = vadd.f32 %v4254_v19, %v10824_v9 }
 0x503   : > { %v4295_v34 = vadd.f32 %v4294_v47, %v10859_v20  ;;  %v4454_v32 = vadd.f32 %v4390_v33, %v4389_v58  ;;  %v4393_v10 = vmul.f32 %v10874_v54, %v10874_v54 }
 0x504   : > { %v4396_v23 = vmul.f32 %v10888_v1, %v10888_v1 }
 0x505   : > { %v4296_v61 = vadd.f32 %v4295_v34, %v10864_v12  ;;  %v4455_v63 = vadd.f32 %v4454_v32, %v4391_v41 }
 0x506   : > { %v4156_v13 = vpop.f32.mrf.mxu2 }
 0x507   : > { %v10880_v62 = vadd.f32 %v4156_v13, %v10822_v6  ;;  %v4205_v45 = vpop.f32.mrf.mxu3  ;;  %4297 = vadd.xlane.f32.xlu1 %v4296_v61  ;;  %v4456_v53 = vadd.f32 %v4455_v63, %v4392_v22 }
 0x508   : > { %v10883_v60 = vadd.f32 %v4205_v45, %v10826_v14  ;;  %v4109_v38 = vpop.f32.mrf.mxu1 }
 0x509   : > { %v4299_v37 = vadd.f32 %v10880_v62, %v10874_v54  ;;  %v4394_v25 = vmul.f32 %v10880_v62, %v10880_v62  ;;  %4457 = vadd.xlane.f32.xlu0 %v4456_v53  ;;  %v4256_v16 = vpop.f32.mrf.mxu0  ;;  %v10898_v57 = vadd.f32 %v4109_v38, %v10820_v29 }
 0x50a   : > { %v4395_v2 = vmul.f32 %v10883_v60, %v10883_v60  ;;  %v10912_v19 = vadd.f32 %v4256_v16, %v10824_v9 }
 0x50b   : > { %v4300_v59 = vadd.f32 %v4299_v37, %v10883_v60  ;;  %v4459_v49 = vadd.f32 %v4394_v25, %v4393_v10  ;;  %v4397_v33 = vmul.f32 %v10898_v57, %v10898_v57 }
 0x50c   : > { %v4400_v45 = vmul.f32 %v10912_v19, %v10912_v19 }
 0x50d   : > { %v4301_v7 = vadd.f32 %v4300_v59, %v10888_v1  ;;  %v4460_v26 = vadd.f32 %v4459_v49, %v4395_v2 }
 0x50e   : > { %v4158_v36 = vpop.f32.mrf.mxu2 }
 0x50f   : > { %v10904_v3 = vadd.f32 %v4158_v36, %v10822_v6  ;;  %v4207_v35 = vpop.f32.mrf.mxu3  ;;  %4302 = vadd.xlane.f32.xlu1 %v4301_v7  ;;  %v4461_v8 = vadd.f32 %v4460_v26, %v4396_v23 }
 0x510   : > { %v10907_v55 = vadd.f32 %v4207_v35, %v10826_v14  ;;  %v4112_v58 = vpop.f32.mrf.mxu1 }
 0x511   : > { %v4398_v47 = vmul.f32 %v10904_v3, %v10904_v3  ;;  %4462 = vadd.xlane.f32.xlu0 %v4461_v8  ;;  %v4304_v34 = vadd.f32 %v10904_v3, %v10898_v57  ;;  %v4259_v22 = vpop.f32.mrf.mxu0  ;;  %v10922_v63 = vadd.f32 %v4112_v58, %v10820_v29 }
 0x512   : > { %v4399_v32 = vmul.f32 %v10907_v55, %v10907_v55  ;;  %v10936_v59 = vadd.f32 %v4259_v22, %v10824_v9 }
 0x513   : > { %v4305_v41 = vadd.f32 %v4304_v34, %v10907_v55  ;;  %v4464_v61 = vadd.f32 %v4398_v47, %v4397_v33  ;;  %v4401_v2 = vmul.f32 %v10922_v63, %v10922_v63 }
 0x514   : > { %v4404_v33 = vmul.f32 %v10936_v59, %v10936_v59 }
 0x515   : > { %v4306_v13 = vadd.f32 %v4305_v41, %v10912_v19  ;;  %v4465_v53 = vadd.f32 %v4464_v61, %v4399_v32 }
 0x516   : > { %v4161_v38 = vpop.f32.mrf.mxu2 }
 0x517   : > { %v10928_v10 = vadd.f32 %v4161_v38, %v10822_v6  ;;  %v4210_v37 = vpop.f32.mrf.mxu3  ;;  %4307 = vadd.xlane.f32.xlu2 %v4306_v13  ;;  %v4466_v25 = vadd.f32 %v4465_v53, %v4400_v45 }
 0x518   : > { %v10931_v16 = vadd.f32 %v4210_v37, %v10826_v14  ;;  %v4114_v23 = vpop.f32.mrf.mxu1 }
 0x519   : > { %v4309_v49 = vadd.f32 %v10928_v10, %v10922_v63  ;;  %v4402_v7 = vmul.f32 %v10928_v10, %v10928_v10  ;;  %4467 = vadd.xlane.f32.xlu1 %v4466_v25  ;;  %v10946_v8 = vadd.f32 %v4114_v23, %v10820_v29  ;;  %v4261_v34 = vpop.f32.mrf.mxu0 }
 0x51a   : > { %v4403_v26 = vmul.f32 %v10931_v16, %v10931_v16  ;;  %v10960_v53 = vadd.f32 %v4261_v34, %v10824_v9 }
 0x51b   : > { %v4310_v36 = vadd.f32 %v4309_v49, %v10931_v16  ;;  %v4469_v35 = vadd.f32 %v4402_v7, %v4401_v2  ;;  %v4405_v45 = vmul.f32 %v10946_v8, %v10946_v8 }
 0x51c   : > { %v4408_v23 = vmul.f32 %v10960_v53, %v10960_v53 }
 0x51d   : > { %v4311_v58 = vadd.f32 %v4310_v36, %v10936_v59  ;;  %v4470_v47 = vadd.f32 %v4469_v35, %v4403_v26  ;;  %v7216_v35 = vld [vmem:[%s12643_s17 + $0x78] sm:$0xff] }
 0x51e   : > { %v4163_v41 = vpop.f32.mrf.mxu2  ;;  %5735 = vmatpush.bf16.msra.mxu2 %v7216_v35 }
 0x51f   : > { %v10952_v32 = vadd.f32 %v4163_v41, %v10822_v6  ;;  %v4212_v61 = vpop.f32.mrf.mxu3  ;;  %4312 = vadd.xlane.f32.xlu2 %v4311_v58  ;;  %v4471_v22 = vadd.f32 %v4470_v47, %v4404_v33  ;;  %v7224_v58 = vld [vmem:[%s12643_s17 + $0xb8] sm:$0xff] }
 0x520   : > { %v10955_v13 = vadd.f32 %v4212_v61, %v10826_v14  ;;  %5784 = vmatpush.bf16.msrb.mxu3 %v7224_v58  ;;  %v7208_v41 = vld [vmem:[%s12643_s17 + $0x38] sm:$0xff] }
 0x521   : > { %v4406_v38 = vmul.f32 %v10952_v32, %v10952_v32  ;;  %4472 = vadd.xlane.f32.xlu1 %v4471_v22  ;;  %v4314_v37 = vadd.f32 %v10952_v32, %v10946_v8  ;;  %v7232_v22 = vld [vmem:[%s12643_s17 + $0xf8] sm:$0xff]  ;;  %5686 = vmatpush.bf16.msrb.mxu1 %v7208_v41 }
 0x522   : > { %v4407_v2 = vmul.f32 %v10955_v13, %v10955_v13  ;;  %5833 = vmatpush.bf16.msra.mxu0 %v7232_v22 }
 0x523   : > { %v4315_v25 = vadd.f32 %v4314_v37, %v10955_v13  ;;  %v4474_v49 = vadd.f32 %v4406_v38, %v4405_v45 }
 0x525   : > { %v4316_v7 = vadd.f32 %v4315_v25, %v10960_v53  ;;  %v4475_v26 = vadd.f32 %v4474_v49, %v4407_v2 }
 0x527   : > { %4317 = vadd.xlane.f32.xlu0 %v4316_v7  ;;  %v4476_v36 = vadd.f32 %v4475_v26, %v4408_v23 }
 0x529   : > { %4477 = vadd.xlane.f32.xlu2 %v4476_v36 }
 0x52b   : > { %v4117_v33 = vpop.f32.mrf.mxu1 }
 0x52c   : > { %v4264_v47 = vpop.f32.mrf.mxu0  ;;  %v10979_v34 = vadd.f32 %v4117_v33, %v10820_v29 }
 0x52d   : > { %v10996_v2 = vadd.f32 %v4264_v47, %v10824_v9 }
 0x52e   : > { %v4409_v25 = vmul.f32 %v10979_v34, %v10979_v34 }
 0x52f   : > { %v4412_v47 = vmul.f32 %v10996_v2, %v10996_v2 }
 0x531   : > { %v4166_v61 = vpop.f32.mrf.mxu2 }
 0x532   : > { %v10988_v45 = vadd.f32 %v4166_v61, %v10822_v6  ;;  %v4215_v38 = vpop.f32.mrf.mxu3 }
 0x533   : > { %v10991_v37 = vadd.f32 %v4215_v38, %v10826_v14  ;;  %v4119_v23 = vpop.f32.mrf.mxu1 }
 0x534   : > { %v4319_v49 = vadd.f32 %v10988_v45, %v10979_v34  ;;  %v4410_v7 = vmul.f32 %v10988_v45, %v10988_v45  ;;  %v11006_v58 = vadd.f32 %v4119_v23, %v10820_v29  ;;  %v4266_v61 = vpop.f32.mrf.mxu0 }
 0x535   : > { %v4411_v26 = vmul.f32 %v10991_v37, %v10991_v37 }
 0x536   : > { %v4320_v36 = vadd.f32 %v4319_v49, %v10991_v37  ;;  %v4479_v35 = vadd.f32 %v4410_v7, %v4409_v25  ;;  %v7215_v25 = vld [vmem:[%s12643_s17 + $0x70] sm:$0xff]  ;;  %v4413_v23 = vmul.f32 %v11006_v58, %v11006_v58 }
 0x537   : > { %v7223_v7 = vld [vmem:[%s12643_s17 + $0xb0] sm:$0xff]  ;;  %5736 = vmatpush.bf16.msra.mxu2 %v7215_v25 }
 0x538   : > { %v4321_v33 = vadd.f32 %v4320_v36, %v10996_v2  ;;  %v4480_v41 = vadd.f32 %v4479_v35, %v4411_v26  ;;  %v11026_v26 = vadd.f32 %v4266_v61, %v10824_v9  ;;  %5785 = vmatpush.bf16.msrb.mxu3 %v7223_v7  ;;  %v7231_v25 = vld [vmem:[%s12643_s17 + $0xf0] sm:$0xff] }
 0x539   : > { %v4168_v22 = vpop.f32.mrf.mxu2  ;;  %5834 = vmatpush.bf16.msra.mxu0 %v7231_v25 }
 0x53a   : > { %v11012_v38 = vadd.f32 %v4168_v22, %v10822_v6  ;;  %v4217_v42 = vpop.f32.mrf.mxu3  ;;  %4322 = vadd.xlane.f32.xlu0 %v4321_v33  ;;  %v4481_v17 = vadd.f32 %v4480_v41, %v4412_v47  ;;  %13033 = vst [vmem:[#allocation39_spill] sm:$0xff] %v11026_v26  ;;  %v4416_v61 = vmul.f32 %v11026_v26, %v11026_v26 }
 0x53b   : > { %v11015_v49 = vadd.f32 %v4217_v42, %v10826_v14 }
 0x53c   : > { %v4414_v36 = vmul.f32 %v11012_v38, %v11012_v38  ;;  %4482 = vadd.xlane.f32.xlu2 %v4481_v17  ;;  %v4324_v42 = vadd.f32 %v11012_v38, %v11006_v58  ;;  %v7207_v17 = vld [vmem:[%s12643_s17 + $0x30] sm:$0xff] }
 0x53d   : > { %13032 = vst [vmem:[#allocation36_spill] sm:$0xff] %v11015_v49  ;;  %v4415_v33 = vmul.f32 %v11015_v49, %v11015_v49  ;;  %5687 = vmatpush.bf16.msrb.mxu1 %v7207_v17  ;;  %5835 = vmatpush.bf16.msra.mxu0 %v7230_v44 }
 0x53e   : > { %v4325_v35 = vadd.f32 %v4324_v42, %v11015_v49  ;;  %v4484_v47 = vadd.f32 %v4414_v36, %v4413_v23  ;;  %v7214_v42 = vld [vmem:[%s12643_s17 + $0x68] sm:$0xff] }
 0x53f   : > { %5737 = vmatpush.bf16.msra.mxu2 %v7214_v42 }
 0x540   : > { %v4326_v41 = vadd.f32 %v4325_v35, %v11026_v26  ;;  %v4485_v22 = vadd.f32 %v4484_v47, %v4415_v33  ;;  %v7222_v35 = vld [vmem:[%s12643_s17 + $0xa8] sm:$0xff] }
 0x541   : > { %5786 = vmatpush.bf16.msrb.mxu3 %v7222_v35  ;;  %5688 = vmatpush.bf16.msrb.mxu1 %v7206_v51 }
 0x542   : > { %4327 = vadd.xlane.f32.xlu1 %v4326_v41  ;;  %v4486_v27 = vadd.f32 %v4485_v22, %v4416_v61 }
 0x543   : > { %5738 = vmatpush.bf16.msra.mxu2 %v7213_v31 }
 0x544   : > { %4487 = vadd.xlane.f32.xlu0 %v4486_v27 }
 0x546   : > { %v4122_v7 = vpop.f32.mrf.mxu1 }
 0x547   : > { %v4269_v23 = vpop.f32.mrf.mxu0  ;;  %v11045_v36 = vadd.f32 %v4122_v7, %v10820_v29 }
 0x548   : > { %v11062_v17 = vadd.f32 %v4269_v23, %v10824_v9 }
 0x549   : > { %13034 = vst [vmem:[#allocation38_spill] sm:$0xff] %v11045_v36  ;;  %v4417_v22 = vmul.f32 %v11045_v36, %v11045_v36 }
 0x54a   : > { %13037 = vst [vmem:[#allocation43_spill] sm:$0xff] %v11062_v17  ;;  %v4420_v28 = vmul.f32 %v11062_v17, %v11062_v17 }
 0x54c   : > { %v4171_v33 = vpop.f32.mrf.mxu2 }
 0x54d   : > { %v11054_v47 = vadd.f32 %v4171_v33, %v10822_v6  ;;  %v4220_v27 = vpop.f32.mrf.mxu3 }
 0x54e   : > { %v11057_v41 = vadd.f32 %v4220_v27, %v10826_v14  ;;  %v4124_v61 = vpop.f32.mrf.mxu1 }
 0x54f   : > { %13035 = vst [vmem:[#allocation41_spill] sm:$0xff] %v11054_v47  ;;  %v4329_v25 = vadd.f32 %v11054_v47, %v11045_v36  ;;  %v4418_v7 = vmul.f32 %v11054_v47, %v11054_v47  ;;  %v4271_v33 = vpop.f32.mrf.mxu0  ;;  %v11075_v23 = vadd.f32 %v4124_v61, %v10820_v29 }
 0x550   : > { %13036 = vst [vmem:[#allocation40_spill] sm:$0xff] %v11057_v41  ;;  %v4419_v42 = vmul.f32 %v11057_v41, %v11057_v41 }
 0x551   : > { %v4330_v35 = vadd.f32 %v4329_v25, %v11057_v41  ;;  %v4489_v27 = vadd.f32 %v4418_v7, %v4417_v22  ;;  %13038 = vst [vmem:[#allocation42_spill] sm:$0xff] %v11075_v23 }
 0x553   : > { %v4331_v39 = vadd.f32 %v4330_v35, %v11062_v17  ;;  %v4490_v4 = vadd.f32 %v4489_v27, %v4419_v42  ;;  %v4421_v35 = vmul.f32 %v11075_v23, %v11075_v23  ;;  %v11092_v42 = vadd.f32 %v4271_v33, %v10824_v9 }
 0x554   : > { %v4173_v0 = vpop.f32.mrf.mxu2 }
 0x555   : > { %v11084_v22 = vadd.f32 %v4173_v0, %v10822_v6  ;;  %v4222_v25 = vpop.f32.mrf.mxu3  ;;  %4332 = vadd.xlane.f32.xlu1 %v4331_v39  ;;  %v4491_v7 = vadd.f32 %v4490_v4, %v4420_v28  ;;  %13041 = vst [vmem:[#allocation47_spill] sm:$0xff] %v11092_v42  ;;  %v4424_v33 = vmul.f32 %v11092_v42, %v11092_v42 }
 0x556   : > { %v11087_v61 = vadd.f32 %v4222_v25, %v10826_v14 }
 0x557   : > { %13039 = vst [vmem:[#allocation45_spill] sm:$0xff] %v11084_v22  ;;  %v4334_v27 = vadd.f32 %v11084_v22, %v11075_v23  ;;  %v4422_v0 = vmul.f32 %v11084_v22, %v11084_v22  ;;  %4492 = vadd.xlane.f32.xlu0 %v4491_v7  ;;  %v7221_v7 = vld [vmem:[%s12643_s17 + $0xa0] sm:$0xff] }
 0x558   : > { %13040 = vst [vmem:[#allocation44_spill] sm:$0xff] %v11087_v61  ;;  %v4423_v44 = vmul.f32 %v11087_v61, %v11087_v61  ;;  %5787 = vmatpush.bf16.msrb.mxu3 %v7221_v7 }
 0x559   : > { %v4335_v28 = vadd.f32 %v4334_v27, %v11087_v61  ;;  %v4494_v39 = vadd.f32 %v4422_v0, %v4421_v35 }
 0x55b   : > { %v4127_v51 = vpop.f32.mrf.mxu1  ;;  %v4336_v25 = vadd.f32 %v4335_v28, %v11092_v42  ;;  %v4495_v30 = vadd.f32 %v4494_v39, %v4423_v44 }
 0x55c   : > { %v4274_v4 = vpop.f32.mrf.mxu0  ;;  %v11111_v43 = vadd.f32 %v4127_v51, %v10820_v29 }
 0x55d   : > { %4337 = vadd.xlane.f32.xlu2 %v4336_v25  ;;  %v4496_v27 = vadd.f32 %v4495_v30, %v4424_v33  ;;  %v11122_v51 = vadd.f32 %v4274_v4, %v10824_v9  ;;  %v7229_v4 = vld [vmem:[%s12643_s17 + $0xe0] sm:$0xff] }
 0x55e   : > { %13042 = vst [vmem:[#allocation46_spill] sm:$0xff] %v11111_v43  ;;  %v4425_v46 = vmul.f32 %v11111_v43, %v11111_v43  ;;  %5836 = vmatpush.bf16.msra.mxu0 %v7229_v4  ;;  %v7220_v4 = vld [vmem:[%s12643_s17 + $0x98] sm:$0xff] }
 0x55f   : > { %4497 = vadd.xlane.f32.xlu1 %v4496_v27  ;;  %13045 = vst [vmem:[#allocation19_spill] sm:$0xff] %v11122_v51  ;;  %v4428_v40 = vmul.f32 %v11122_v51, %v11122_v51  ;;  %5788 = vmatpush.bf16.msrb.mxu3 %v7220_v4 }
 0x561   : > { %v4176_v35 = vpop.f32.mrf.mxu2 }
 0x562   : > { %v11114_v0 = vadd.f32 %v4176_v35, %v10822_v6  ;;  %v4225_v44 = vpop.f32.mrf.mxu3  ;;  %v7205_v35 = vld [vmem:[%s12643_s17 + $0x20] sm:$0xff] }
 0x563   : > { %v11117_v28 = vadd.f32 %v4225_v44, %v10826_v14  ;;  %v4129_v39 = vpop.f32.mrf.mxu1  ;;  %5689 = vmatpush.bf16.msrb.mxu1 %v7205_v35 }
 0x564   : > { %13043 = vst [vmem:[#allocation49_spill] sm:$0xff] %v11114_v0  ;;  %v4339_v30 = vadd.f32 %v11114_v0, %v11111_v43  ;;  %v4426_v31 = vmul.f32 %v11114_v0, %v11114_v0  ;;  %v4276_v25 = vpop.f32.mrf.mxu0  ;;  %v11138_v44 = vadd.f32 %v4129_v39, %v10820_v29 }
 0x565   : > { %13044 = vst [vmem:[#allocation48_spill] sm:$0xff] %v11117_v28  ;;  %v4427_v33 = vmul.f32 %v11117_v28, %v11117_v28 }
 0x566   : > { %v4340_v7 = vadd.f32 %v4339_v30, %v11117_v28  ;;  %v4499_v27 = vadd.f32 %v4426_v31, %v4425_v46  ;;  %13046 = vst [vmem:[#allocation21_spill] sm:$0xff] %v11138_v44  ;;  %v11147_v28 = vadd.f32 %v4276_v25, %v10824_v9  ;;  %v7212_v25 = vld [vmem:[%s12643_s17 + $0x58] sm:$0xff] }
 0x567   : > { %5739 = vmatpush.bf16.msra.mxu2 %v7212_v25 }
 0x568   : > { %v4341_v56 = vadd.f32 %v4340_v7, %v11122_v51  ;;  %v4500_v48 = vadd.f32 %v4499_v27, %v4427_v33  ;;  %13048 = vst [vmem:[#allocation15_spill] sm:$0xff] %v11147_v28  ;;  %v4429_v51 = vmul.f32 %v11138_v44, %v11138_v44 }
 0x569   : > { %v4178_v30 = vpop.f32.mrf.mxu2 }
 0x56a   : > { %v11144_v46 = vadd.f32 %v4178_v30, %v10822_v6  ;;  %v4227_v31 = vpop.f32.mrf.mxu3  ;;  %4342 = vadd.xlane.f32.xlu2 %v4341_v56  ;;  %v4501_v11 = vadd.f32 %v4500_v48, %v4428_v40  ;;  %v4432_v30 = vmul.f32 %v11147_v28, %v11147_v28 }
 0x56b   : > { %v11150_v39 = vadd.f32 %v4227_v31, %v10826_v14  ;;  %v4132_v7 = vpop.f32.mrf.mxu1 }
 0x56c   : > { %13047 = vst [vmem:[#allocation16_spill] sm:$0xff] %v11144_v46  ;;  %v4344_v33 = vadd.f32 %v11144_v46, %v11138_v44  ;;  %v4430_v27 = vmul.f32 %v11144_v46, %v11144_v46  ;;  %v4279_v35 = vpop.f32.mrf.mxu0  ;;  %4502 = vadd.xlane.f32.xlu1 %v4501_v11  ;;  %v11170_v31 = vadd.f32 %v4132_v7, %v10820_v29 }
 0x56d   : > { %13049 = vst [vmem:[#allocation17_spill] sm:$0xff] %v11150_v39  ;;  %v4431_v48 = vmul.f32 %v11150_v39, %v11150_v39 }
 0x56e   : > { %v4345_v40 = vadd.f32 %v4344_v33, %v11150_v39  ;;  %v4504_v56 = vadd.f32 %v4430_v27, %v4429_v51  ;;  %13050 = vst [vmem:[#allocation18_spill] sm:$0xff] %v11170_v31  ;;  %v3807_v51 = vld [vmem:[%s12641_s15] sm:$0xf] }
 0x56f   : > { %v4930_v43 = vperm.slane %v3807_v51, 0 }
 0x570   : > { %v4346_v11 = vadd.f32 %v4345_v40, %v11147_v28  ;;  %v4505_v46 = vadd.f32 %v4504_v56, %v4431_v48  ;;  %v4931_v40 = vperm.slane %v3807_v51, 1  ;;  %v4433_v48 = vmul.f32 %v11170_v31, %v11170_v31 }
 0x571   : > { %v4181_v33 = vpop.f32.mrf.mxu2  ;;  %v11185_v56 = vadd.f32 %v4279_v35, %v10824_v9 }
 0x572   : > { %v11177_v27 = vadd.f32 %v4181_v33, %v10822_v6  ;;  %v4230_v39 = vpop.f32.mrf.mxu3  ;;  %4347 = vadd.xlane.f32.xlu0 %v4346_v11  ;;  %v4506_v44 = vadd.f32 %v4505_v46, %v4432_v30  ;;  %v4933_v11 = vperm.slane %v3807_v51, 3  ;;  %v4938_v61 = vpack.c.bf16 %v4931_v40, %v4930_v43 }
 0x573   : > { %v11180_v0 = vadd.f32 %v4230_v39, %v10826_v14  ;;  %v4134_v7 = vpop.f32.mrf.mxu1  ;;  %13053 = vst [vmem:[#allocation6_spill] sm:$0xff] %v11185_v56  ;;  %v4293_v30 = vpop.xlane.xlu0 %4292  ;;  %v4932_v39 = vperm.slane %v3807_v51, 2 }
 0x574   : > { %13051 = vst [vmem:[#allocation4_spill] sm:$0xff] %v11177_v27  ;;  %v4349_v25 = vadd.f32 %v11177_v27, %v11170_v31  ;;  %v4434_v4 = vmul.f32 %v11177_v27, %v11177_v27  ;;  %4507 = vadd.xlane.f32.xlu2 %v4506_v44  ;;  %v4281_v46 = vpop.f32.mrf.mxu0  ;;  %v11195_v35 = vmul.f32 %v4293_v30, %v9225_v5  ;;  %v4453_v51 = vpop.xlane.xlu2 %4452  ;;  %v4943_v30 = vunpack.c.h.b16 %v4938_v61 }
 0x575   : > { %13052 = vst [vmem:[#allocation3_spill] sm:$0xff] %v11180_v0  ;;  %v4435_v33 = vmul.f32 %v11180_v0, %v11180_v0  ;;  %v11198_v31 = vadd.f32 %v4134_v7, %v10820_v29  ;;  %v4436_v44 = vmul.f32 %v11185_v56, %v11185_v56  ;;  %v4939_v17 = vpack.c.bf16 %v4933_v11, %v4932_v39 }
 0x576   : > { %v4350_v28 = vadd.f32 %v4349_v25, %v11180_v0  ;;  %v4509_v42 = vadd.f32 %v4434_v4, %v4433_v48  ;;  %v4545_v7 = vmul.f32 %v11195_v35, %v11195_v35  ;;  %v4529_v40 = vmul.f32 %v4453_v51, %v9225_v5 }
 0x577   : > { %13054 = vst [vmem:[#allocation5_spill] sm:$0xff] %v11198_v31  ;;  %v11215_v4 = vadd.f32 %v4281_v46, %v10824_v9  ;;  %v4944_v39 = vunpack.c.l.b16 %v4939_v17  ;;  %v4947_v26 = vpack.c.b16 %v4943_v30, %v4943_v30 }
 0x578   : > { %v4351_v27 = vadd.f32 %v4350_v28, %v11185_v56  ;;  %v4510_v22 = vadd.f32 %v4509_v42, %v4435_v33  ;;  %v4942_v28 = vunpack.c.l.b16 %v4938_v61  ;;  %v4437_v42 = vmul.f32 %v11198_v31, %v11198_v31 }
 0x579   : > { %v4183_v23 = vpop.f32.mrf.mxu2  ;;  %13057 = vst [vmem:[#allocation11_spill] sm:$0xff] %v11215_v4  ;;  %v4561_v0 = vsub.f32 %v4529_v40, %v4545_v7  ;;  %v7228_v7 = vld [vmem:[%s12643_s17 + $0xd8] sm:$0xff] }
 0x57a   : > { %v11204_v41 = vadd.f32 %v4183_v23, %v10822_v6  ;;  %v4232_v48 = vpop.f32.mrf.mxu3  ;;  %4352 = vadd.xlane.f32.xlu0 %v4351_v27  ;;  %v4511_v25 = vadd.f32 %v4510_v22, %v4436_v44  ;;  %v4298_v11 = vpop.xlane.xlu1 %4297  ;;  %v4946_v56 = vpack.c.b16 %v4942_v28, %v4942_v28  ;;  %5837 = vmatpush.bf16.msra.mxu0 %v7228_v7 }
 0x57b   : > { %v11207_v43 = vadd.f32 %v4232_v48, %v10826_v14  ;;  %v4137_v27 = vpop.f32.mrf.mxu1  ;;  %v4945_v48 = vunpack.c.h.b16 %v4939_v17  ;;  %v11228_v61 = vmul.f32 %v4298_v11, %v9225_v5  ;;  %v7204_v17 = vld [vmem:[%s12643_s17 + $0x18] sm:$0xff] }
 0x57c   : > { %13055 = vst [vmem:[#allocation8_spill] sm:$0xff] %v11204_v41  ;;  %v4354_v23 = vadd.f32 %v11204_v41, %v11198_v31  ;;  %v4438_v22 = vmul.f32 %v11204_v41, %v11204_v41  ;;  %4512 = vadd.xlane.f32.xlu2 %v4511_v25  ;;  %v4284_v46 = vpop.f32.mrf.mxu0  ;;  %v4458_v47 = vpop.xlane.xlu0 %4457  ;;  %v4440_v41 = vmul.f32 %v11215_v4, %v11215_v4 }
 0x57d   : > { %13056 = vst [vmem:[#allocation9_spill] sm:$0xff] %v11207_v43  ;;  %v4439_v33 = vmul.f32 %v11207_v43, %v11207_v43  ;;  %v11231_v36 = vadd.f32 %v4137_v27, %v10820_v29  ;;  %v4530_v11 = vmul.f32 %v4458_v47, %v9225_v5  ;;  %5690 = vmatpush.bf16.msrb.mxu1 %v7204_v17 }
 0x57e   : > { %v4355_v44 = vadd.f32 %v4354_v23, %v11207_v43  ;;  %v4514_v51 = vadd.f32 %v4438_v22, %v4437_v42  ;;  %v4577_v23 = vmax.f32 %v4561_v0, 0.0  ;;  %v4948_v42 = vpack.c.b16 %v4944_v39, %v4944_v39 }
 0x57f   : > { %13058 = vst [vmem:[#allocation12_spill] sm:$0xff] %v11231_v36  ;;  %v4949_v22 = vpack.c.b16 %v4945_v48, %v4945_v48  ;;  %v4441_v39 = vmul.f32 %v11231_v36, %v11231_v36 }
 0x580   : > { %v4356_v31 = vadd.f32 %v4355_v44, %v11215_v4  ;;  %v4515_v25 = vadd.f32 %v4514_v51, %v4439_v33  ;;  %v11243_v0 = vadd.f32 1e-05, %v4577_v23  ;;  %v4546_v33 = vmul.f32 %v11228_v61, %v11228_v61  ;;  %v7211_v4 = vld [vmem:[%s12643_s17 + $0x50] sm:$0xff] }
 0x581   : > { %v4186_v28 = vpop.f32.mrf.mxu2  ;;  %v11248_v44 = vadd.f32 %v4284_v46, %v10824_v9  ;;  %v4955_v23 = vpack.i.b16 %v4947_v26, %v4947_v26  ;;  %v4959_v17 = vpack.i.b16 %v4948_v42, %v4948_v42  ;;  %v4963_v7 = vpack.i.b16 %v4949_v22, %v4949_v22  ;;  %5740 = vmatpush.bf16.msra.mxu2 %v7211_v4  ;;  %v7227_v4 = vld [vmem:[%s12643_s17 + $0xd0] sm:$0xff] }
 0x582   : > { %4357 = vadd.xlane.f32.xlu1 %v4356_v31  ;;  %v4516_v40 = vadd.f32 %v4515_v25, %v4440_v41  ;;  %v11241_v27 = vadd.f32 %v4186_v28, %v10822_v6  ;;  %v4235_v30 = vpop.f32.mrf.mxu3  ;;  %v4951_v31 = vpack.i.b16 %v4946_v56, %v4946_v56  ;;  %7570 = vrsqrt.f32 %v11243_v0  ;;  %v4303_v46 = vpop.xlane.xlu1 %4302  ;;  %5838 = vmatpush.bf16.msra.mxu0 %v7227_v4 }
 0x583   : > { %13060 = vst [vmem:[#allocation10_spill] sm:$0xff] %v11248_v44  ;;  %v11251_v41 = vadd.f32 %v4235_v30, %v10826_v14  ;;  %v4139_v25 = vpop.f32.mrf.mxu1  ;;  %v4562_v28 = vsub.f32 %v4530_v11, %v4546_v33  ;;  %v11266_v47 = vmul.f32 %v4303_v46, %v9225_v5  ;;  %vm4679_vm5 = vweird.f32 %v11243_v0 }
 0x584   : > { %13059 = vst [vmem:[#allocation7_spill] sm:$0xff] %v11241_v27  ;;  %4517 = vadd.xlane.f32.xlu0 %v4516_v40  ;;  %v4359_v51 = vadd.f32 %v11241_v27, %v11231_v36  ;;  %v4442_v48 = vmul.f32 %v11241_v27, %v11241_v27  ;;  %v4463_v36 = vpop.xlane.xlu0 %4462  ;;  %v4444_v27 = vmul.f32 %v11248_v44, %v11248_v44  ;;  %v4286_v11 = vpop.f32.mrf.mxu0  ;;  %v4953_v46 = vperm.slane %v4951_v31, 0 }
 0x585   : > { %13061 = vst [vmem:[#allocation14_spill] sm:$0xff] %v11251_v41  ;;  %v4443_v56 = vmul.f32 %v11251_v41, %v11251_v41  ;;  %v4578_v42 = vmax.f32 %v4562_v28, 0.0  ;;  %v11275_v22 = vadd.f32 %v4139_v25, %v10820_v29  ;;  %v7219_v29 = vld [vmem:[%s12643_s17 + $0x90] sm:$0xff]  ;;  %v4547_v25 = vmul.f32 %v11266_v47, %v11266_v47 }
 0x586   : > { %v4360_v40 = vadd.f32 %v4359_v51, %v11251_v41  ;;  %v4519_v30 = vadd.f32 %v4442_v48, %v4441_v39  ;;  %v4531_v51 = vmul.f32 %v4463_v36, %v9225_v5  ;;  %v4957_v41 = vperm.slane %v4955_v23, 0  ;;  %5789 = vmatpush.bf16.msrb.mxu3 %v7219_v29 }
 0x587   : > { %13062 = vst [vmem:[#allocation13_spill] sm:$0xff] %v11275_v22  ;;  %v11279_v43 = vadd.f32 1e-05, %v4578_v42  ;;  %v4961_v23 = vperm.slane %v4959_v17, 0  ;;  %v4598_v4 = vsub.f32 %v10856_v50, %v11228_v61 }
 0x588   : > { %v4361_v33 = vadd.f32 %v4360_v40, %v11248_v44  ;;  %v4520_v39 = vadd.f32 %v4519_v30, %v4443_v56  ;;  %v7571_v28 = vpop.eup %7570  ;;  %v4965_v40 = vperm.slane %v4963_v7, 0  ;;  %v11293_v30 = vadd.f32 %v4286_v11, %v10824_v9 }
 0x589   : > { %v4188_v48 = vpop.f32.mrf.mxu2  ;;  %v4674_v26 = vmul.f32 %v7571_v28, %v11243_v0  ;;  %7572 = vrsqrt.f32 %v11279_v43  ;;  %v4563_v9 = vsub.f32 %v4531_v51, %v4547_v25  ;;  %v4596_v11 = vsub.f32 %v10835_v15, %v11195_v35  ;;  %v11352_v0 = vld [vmem:[%s12642_s16] sm:$0xf] }
 0x58a   : > { %v11290_v56 = vadd.f32 %v4188_v48, %v10822_v6  ;;  %v4237_v36 = vpop.f32.mrf.mxu3  ;;  %4362 = vadd.xlane.f32.xlu1 %v4361_v33  ;;  %v4521_v31 = vadd.f32 %v4520_v39, %v4444_v27  ;;  %13064 = vst [vmem:[#allocation51_spill] sm:$0xff] %v11293_v30  ;;  %v4445_v6 = vmul.f32 %v11275_v22, %v11275_v22  ;;  %v4308_v7 = vpop.xlane.xlu2 %4307  ;;  %v11314_v33 = vunpack.c.l.bf16 %v4953_v46 }
 0x58b   : > { %v11296_v42 = vadd.f32 %v4237_v36, %v10826_v14  ;;  %v7203_v14 = vld [vmem:[%s12643_s17 + $0x10] sm:$0xff]  ;;  %v4675_v39 = vmul.f32 %v7571_v28, %v4674_v26  ;;  %v11317_v48 = vmul.f32 %v4308_v7, %v9225_v5  ;;  %v4579_v36 = vmax.f32 %v4563_v9, 0.0 }
 0x58c   : > { %13063 = vst [vmem:[#allocation50_spill] sm:$0xff] %v11290_v56  ;;  %v4364_v27 = vadd.f32 %v11290_v56, %v11275_v22  ;;  %v4446_v17 = vmul.f32 %v11290_v56, %v11290_v56  ;;  %4522 = vadd.xlane.f32.xlu0 %v4521_v31  ;;  %5691 = vmatpush.bf16.msrb.mxu1 %v7203_v14  ;;  %v4468_v31 = vpop.xlane.xlu1 %4467  ;;  %v11322_v56 = vunpack.c.l.bf16 %v4957_v41  ;;  %v11324_v22 = vunpack.c.l.bf16 %v4961_v23 }
 0x58d   : > { %13065 = vst [vmem:[#allocation52_spill] sm:$0xff] %v11296_v42  ;;  %v4447_v51 = vmul.f32 %v11296_v42, %v11296_v42  ;;  %v11326_v15 = vunpack.c.l.bf16 %v4965_v40  ;;  %v4676_v26 = vmul.f32 0.5, %v4675_v39  ;;  %v4448_v7 = vmul.f32 %v11293_v30, %v11293_v30 }
 0x58e   : > { %v4365_v29 = vadd.f32 %v4364_v27, %v11296_v42  ;;  %v4524_v25 = vadd.f32 %v4446_v17, %v4445_v6  ;;  %v11331_v49 = vadd.f32 1e-05, %v4579_v36  ;;  %vm4680_vm4 = vweird.f32 %v7571_v28 }
 0x58f   : > { %v7573_v6 = vpop.eup %7572  ;;  %v4677_v27 = vsub.f32 1.5, %v4676_v26  ;;  %v4532_v17 = vmul.f32 %v4468_v31, %v9225_v5  ;;  %v4548_v41 = vmul.f32 %v11317_v48, %v11317_v48  ;;  %v4597_v40 = vsub.f32 %v10852_v21, %v11228_v61  ;;  %vm4681_vm6 = vmor %vm4679_vm5, %vm4680_vm4 }
 0x590   : > { %v4366_v46 = vadd.f32 %v4365_v29, %v11293_v30  ;;  %v4525_v44 = vadd.f32 %v4524_v25, %v4447_v51  ;;  %v4684_v9 = vmul.f32 %v7573_v6, %v11279_v43  ;;  %7574 = vrsqrt.f32 %v11331_v49 }
 0x591   : > { %v4678_v14 = vmul.f32 %v7571_v28, %v4677_v27  ;;  %v4564_v39 = vsub.f32 %v4532_v17, %v4548_v41  ;;  %v4599_v51 = vsub.f32 %v10859_v20, %v11228_v61  ;;  %v13067_v31 = vsub.f32 %v10832_v18, %v11195_v35  ;;  %v7210_v27 = vld [vmem:[%s12643_s17 + $0x48] sm:$0xff] }
 0x592   : > { %4367 = vadd.xlane.f32.xlu2 %v4366_v46  ;;  %v4526_v23 = vadd.f32 %v4525_v44, %v4448_v7  ;;  %v4600_v44 = vsub.f32 %v10864_v12, %v11228_v61  ;;  %v4685_v21 = vmul.f32 %v7573_v6, %v4684_v9  ;;  %v13066_v12 = vsub.f32 %v10829_v52, %v11195_v35  ;;  %v4313_v17 = vpop.xlane.xlu2 %4312  ;;  %v7218_v41 = vld [vmem:[%s12643_s17 + $0x88] sm:$0xff] }
 0x593   : > { %v4682_v25 = vsel %vm4681_vm6, %v7571_v28, %v4678_v14  ;;  %v4580_v20 = vmax.f32 %v4564_v39, 0.0  ;;  %v13068_v46 = vsub.f32 %v10838_v24, %v11195_v35  ;;  %v5131_v9 = vperm.slane %v11352_v0, 0  ;;  %5741 = vmatpush.bf16.msra.mxu2 %v7210_v27  ;;  %5790 = vmatpush.bf16.msrb.mxu3 %v7218_v41 }
 0x594   : > { %4527 = vadd.xlane.f32.xlu1 %v4526_v23  ;;  %v4833_v61 = vmul.f32 %v4682_v25, %v13066_v12  ;;  %v4834_v26 = vmul.f32 %v4682_v25, %v13067_v31  ;;  %v4836_v28 = vmul.f32 %v4682_v25, %v4596_v11  ;;  %v4686_v52 = vmul.f32 0.5, %v4685_v21  ;;  %v4473_v14 = vpop.xlane.xlu1 %4472 }
 0x595   : > { %v4835_v7 = vmul.f32 %v4682_v25, %v13068_v46  ;;  %v11375_v18 = vadd.f32 1e-05, %v4580_v20  ;;  %vm4690_vm7 = vweird.f32 %v7573_v6  ;;  %v5132_v39 = vperm.slane %v11352_v0, 1 }
 0x596   : > { %v7575_v24 = vpop.eup %7574  ;;  %v4897_v35 = vpack.c.bf16 %v4834_v26, %v4833_v61  ;;  %v4687_v25 = vsub.f32 1.5, %v4686_v52  ;;  %v11382_v21 = vmul.f32 %v4313_v17, %v9225_v5  ;;  %vm4689_vm8 = vweird.f32 %v11279_v43 }
 0x597   : > { %v4898_v11 = vpack.c.bf16 %v4836_v28, %v4835_v7  ;;  %v4694_v12 = vmul.f32 %v7575_v24, %v11331_v49  ;;  %7576 = vrsqrt.f32 %v11375_v18  ;;  %v4533_v28 = vmul.f32 %v4473_v14, %v9225_v5  ;;  %vm4691_vm9 = vmor %vm4689_vm8, %vm4690_vm7 }
 0x598   : > { %v4966_v20 = vunpack.c.l.bf16 %v4897_v35  ;;  %v4967_v31 = vunpack.c.h.bf16 %v4897_v35  ;;  %v4688_v26 = vmul.f32 %v7573_v6, %v4687_v25  ;;  %v4608_v43 = vsub.f32 %v10912_v19, %v11317_v48 }
 0x599   : > { %v4695_v46 = vmul.f32 %v7575_v24, %v4694_v12  ;;  %v4968_v27 = vunpack.c.l.bf16 %v4898_v11  ;;  %v4969_v52 = vunpack.c.h.bf16 %v4898_v11  ;;  %v4549_v25 = vmul.f32 %v11382_v21, %v11382_v21 }
 0x59a   : > { %v4692_v41 = vsel %vm4691_vm9, %v7573_v6, %v4688_v26  ;;  %v11397_v12 = vpack.c.bf16 %v5132_v39, %v5131_v9  ;;  %v5034_v7 = vmul.f32 %v11314_v33, %v4966_v20  ;;  %v5035_v14 = vmul.f32 %v11322_v56, %v4967_v31  ;;  %v7202_v9 = vld [vmem:[%s12643_s17 + $0x8] sm:$0xff] }
 0x59b   : > { %v4696_v35 = vmul.f32 0.5, %v4695_v46  ;;  %v4837_v11 = vmul.f32 %v4692_v41, %v4597_v40  ;;  %v4838_v61 = vmul.f32 %v4692_v41, %v4598_v4  ;;  %v4839_v36 = vmul.f32 %v4692_v41, %v4599_v51  ;;  %v7226_v40 = vld [vmem:[%s12643_s17 + $0xc8] sm:$0xff]  ;;  %5692 = vmatpush.bf16.msrb.mxu1 %v7202_v9 }
 0x59c   : > { %v4840_v17 = vmul.f32 %v4692_v41, %v4600_v44  ;;  %v4565_v29 = vsub.f32 %v4533_v28, %v4549_v25  ;;  %v5036_v6 = vmul.f32 %v11324_v22, %v4968_v27  ;;  %v5037_v26 = vmul.f32 %v11326_v15, %v4969_v52  ;;  %v4318_v28 = vpop.xlane.xlu0 %4317  ;;  %5839 = vmatpush.bf16.msra.mxu0 %v7226_v40 }
 0x59d   : > { %v11401_v23 = vpop.eup %7576  ;;  %v4697_v50 = vsub.f32 1.5, %v4696_v35  ;;  %vm4699_vm10 = vweird.f32 %v11331_v49  ;;  %vm4700_vm11 = vweird.f32 %v7575_v24  ;;  %v4899_v4 = vpack.c.bf16 %v4838_v61, %v4837_v11 }
 0x59e   : > { %v4900_v51 = vpack.c.bf16 %v4840_v17, %v4839_v36  ;;  %v4704_v39 = vmul.f32 %v11401_v23, %v11375_v18  ;;  %v4609_v20 = vsub.f32 %v10922_v63, %v11382_v21  ;;  %v4610_v31 = vsub.f32 %v10928_v10, %v11382_v21  ;;  %vm4701_vm12 = vmor %vm4699_vm10, %vm4700_vm11 }
 0x59f   : > { %v4698_v44 = vmul.f32 %v7575_v24, %v4697_v50  ;;  %v4581_v46 = vmax.f32 %v4565_v29, 0.0  ;;  %v5143_v27 = vunpack.c.l.b16 %v11397_v12  ;;  %v11419_v52 = vpack.c.bf16 %v5035_v14, %v5034_v7 }
 0x5a0   : > { %v4970_v61 = vunpack.c.l.bf16 %v4899_v4  ;;  %v4971_v36 = vunpack.c.h.bf16 %v4899_v4  ;;  %v4972_v50 = vunpack.c.l.bf16 %v4900_v51  ;;  %v4973_v17 = vunpack.c.h.bf16 %v4900_v51 }
 0x5a1   : > { %v4702_v41 = vsel %vm4701_vm12, %v7575_v24, %v4698_v44  ;;  %v4705_v35 = vmul.f32 %v11401_v23, %v4704_v39  ;;  %v11425_v25 = vadd.f32 1e-05, %v4581_v46  ;;  %v11427_v29 = vpack.c.bf16 %v5037_v26, %v5036_v6 }
 0x5a2   : > { %v5038_v11 = vmul.f32 %v11314_v33, %v4970_v61  ;;  %v5039_v7 = vmul.f32 %v11322_v56, %v4971_v36  ;;  %v11432_v14 = vmul.f32 %v4318_v28, %v9225_v5  ;;  %v13069_v9 = vsub.f32 %v10874_v54, %v11266_v47  ;;  %v4478_v28 = vpop.xlane.xlu2 %4477 }
 0x5a3   : > { %v13070_v24 = vsub.f32 %v10880_v62, %v11266_v47  ;;  %v13071_v4 = vsub.f32 %v10883_v60, %v11266_v47  ;;  %v13072_v26 = vsub.f32 %v10888_v1, %v11266_v47  ;;  %v4706_v44 = vmul.f32 0.5, %v4705_v35 }
 0x5a4   : > { %v4841_v49 = vmul.f32 %v4702_v41, %v13069_v9  ;;  %v4611_v39 = vsub.f32 %v10931_v16, %v11382_v21  ;;  %v4612_v54 = vsub.f32 %v10936_v59, %v11382_v21  ;;  %7578 = vrsqrt.f32 %v11425_v25 }
 0x5a5   : > { %v4842_v40 = vmul.f32 %v4702_v41, %v13070_v24  ;;  %v4843_v6 = vmul.f32 %v4702_v41, %v13071_v4  ;;  %v4844_v51 = vmul.f32 %v4702_v41, %v13072_v26  ;;  %v5167_v62 = vunpack.c.l.bf16 %v11419_v52  ;;  %v7225_v41 = vld [vmem:[%s12643_s17 + $0xc0] sm:$0xff] }
 0x5a6   : > { %v5040_v46 = vmul.f32 %v11324_v22, %v4972_v50  ;;  %v5041_v60 = vmul.f32 %v11326_v15, %v4973_v17  ;;  %vm4709_vm13 = vweird.f32 %v11375_v18  ;;  %v11457_v61 = vpack.c.bf16 %v5039_v7, %v5038_v11  ;;  %5840 = vmatpush.bf16.msra.mxu0 %v7225_v41 }
 0x5a7   : > { %v4901_v36 = vpack.c.bf16 %v4842_v40, %v4841_v49  ;;  %v4902_v35 = vpack.c.bf16 %v4844_v51, %v4843_v6  ;;  %vm4710_vm14 = vweird.f32 %v11401_v23  ;;  %v4707_v9 = vsub.f32 1.5, %v4706_v44  ;;  %v7209_v40 = vld [vmem:[%s12643_s17 + $0x40] sm:$0xff] }
 0x5a8   : > { %v4550_v17 = vmul.f32 %v11432_v14, %v11432_v14  ;;  %v4534_v24 = vmul.f32 %v4478_v28, %v9225_v5  ;;  %v5147_v4 = vpack.c.b16 %v5143_v27, %v5143_v27  ;;  %v11466_v26 = vpack.c.bf16 %v5041_v60, %v5040_v46  ;;  %v7217_v6 = vld [vmem:[%s12643_s17 + $0x80] sm:$0xff]  ;;  %vm4711_vm15 = vmor %vm4709_vm13, %vm4710_vm14  ;;  %5742 = vmatpush.bf16.msra.mxu2 %v7209_v40 }
 0x5a9   : > { %v5171_v51 = vunpack.c.l.bf16 %v11457_v61  ;;  %v4974_v44 = vunpack.c.l.bf16 %v4901_v36  ;;  %v4708_v46 = vmul.f32 %v11401_v23, %v4707_v9  ;;  %v7201_v28 = vld [vmem:[%s12643_s17] sm:$0xff]  ;;  %v4975_v47 = vunpack.c.h.bf16 %v4901_v36  ;;  %5791 = vmatpush.bf16.msrb.mxu3 %v7217_v6 }
 0x5aa   : > { %v11480_v27 = vpop.eup %7578  ;;  %v4566_v60 = vsub.f32 %v4534_v24, %v4550_v17  ;;  %v5152_v9 = vpack.i.b16 %v5147_v4, %v5147_v4  ;;  %v5144_v17 = vunpack.c.h.b16 %v11397_v12  ;;  %v4976_v24 = vunpack.c.l.bf16 %v4902_v35  ;;  %5693 = vmatpush.bf16.msrb.mxu1 %v7201_v28 }
 0x5ab   : > { %v4714_v49 = vmul.f32 %v11480_v27, %v11425_v25  ;;  %v4977_v7 = vunpack.c.h.bf16 %v4902_v35  ;;  %v4712_v11 = vsel %vm4711_vm15, %v11401_v23, %v4708_v46  ;;  %vm4719_vm0 = vweird.f32 %v11425_v25 }
 0x5ac   : > { %v4582_v36 = vmax.f32 %v4566_v60, 0.0  ;;  %v13073_v18 = vsub.f32 %v10898_v57, %v11317_v48  ;;  %v13074_v40 = vsub.f32 %v10904_v3, %v11317_v48  ;;  %v13075_v12 = vsub.f32 %v10907_v55, %v11317_v48 }
 0x5ad   : > { %v4323_v50 = vpop.xlane.xlu0 %4322  ;;  %v4848_v23 = vmul.f32 %v4712_v11, %v4608_v43  ;;  %v5172_v6 = vunpack.c.h.bf16 %v11457_v61  ;;  %v4715_v46 = vmul.f32 %v11480_v27, %v4714_v49  ;;  %v5154_v55 = vperm.slane %v5152_v9, 0 }
 0x5ae   : > { %v4845_v1 = vmul.f32 %v4712_v11, %v13073_v18  ;;  %v4846_v4 = vmul.f32 %v4712_v11, %v13074_v40  ;;  %v4847_v35 = vmul.f32 %v4712_v11, %v13075_v12  ;;  %v11514_v57 = vadd.f32 1e-05, %v4582_v36 }
 0x5af   : > { %v11518_v3 = vmul.f32 %v4323_v50, %v9225_v5  ;;  %v4483_v28 = vpop.xlane.xlu2 %4482  ;;  %v5148_v18 = vpack.c.b16 %v5144_v17, %v5144_v17  ;;  %v11521_v40 = vmul.f32 %v11314_v33, %v4974_v44  ;;  %v4716_v48 = vmul.f32 0.5, %v4715_v46 }
 0x5b0   : > { %v4903_v19 = vpack.c.bf16 %v4846_v4, %v4845_v1  ;;  %7580 = vrsqrt.f32 %v11514_v57  ;;  %v11525_v43 = vmul.f32 %v11322_v56, %v4975_v47  ;;  %v11528_v11 = vmul.f32 %v11324_v22, %v4976_v24 }
 0x5b1   : > { %v11531_v49 = vmul.f32 %v11326_v15, %v4977_v7  ;;  %v4904_v50 = vpack.c.bf16 %v4848_v23, %v4847_v35  ;;  %v4717_v36 = vsub.f32 1.5, %v4716_v48  ;;  %vm4720_vm1 = vweird.f32 %v11480_v27 }
 0x5b2   : > { %v4535_v44 = vmul.f32 %v4483_v28, %v9225_v5  ;;  %v5133_v1 = vperm.slane %v11352_v0, 2  ;;  %v4617_v9 = vsub.f32 %v10979_v34, %v11518_v3  ;;  %v11538_v17 = vunpack.c.l.bf16 %v5154_v55  ;;  %vm4721_vm2 = vmor %vm4719_vm0, %vm4720_vm1 }
 0x5b3   : > { %v5156_v47 = vpack.i.b16 %v5148_v18, %v5148_v18  ;;  %v5134_v24 = vperm.slane %v11352_v0, 3  ;;  %v4978_v4 = vunpack.c.l.bf16 %v4903_v19  ;;  %v4979_v12 = vunpack.c.h.bf16 %v4903_v19 }
 0x5b4   : > { %v4718_v7 = vmul.f32 %v11480_v27, %v4717_v36  ;;  %v4551_v35 = vmul.f32 %v11518_v3, %v11518_v3  ;;  %v4980_v46 = vunpack.c.l.bf16 %v4904_v50  ;;  %v4981_v28 = vunpack.c.h.bf16 %v4904_v50 }
 0x5b5   : > { %v4328_v23 = vpop.xlane.xlu1 %4327  ;;  %v4618_v55 = vsub.f32 %v10988_v45, %v11518_v3  ;;  %v4619_v18 = vsub.f32 %v10991_v37, %v11518_v3  ;;  %v5239_v50 = vadd.f32 %v11538_v17, %v5171_v51  ;;  %vm4729_vm3 = vweird.f32 %v11514_v57 }
 0x5b6   : > { %v7581_v0 = vpop.eup %7580  ;;  %v4722_v19 = vsel %vm4721_vm2, %v11480_v27, %v4718_v7  ;;  %v4567_v48 = vsub.f32 %v4535_v44, %v4551_v35  ;;  %v11552_v36 = vmul.f32 %v4328_v23, %v9225_v5  ;;  %v5235_v10 = vadd.f32 %v11538_v17, %v5167_v62 }
 0x5b7   : > { %v4849_v25 = vmul.f32 %v4722_v19, %v4609_v20  ;;  %v4850_v60 = vmul.f32 %v4722_v19, %v4610_v31  ;;  %v4851_v27 = vmul.f32 %v4722_v19, %v4611_v39  ;;  %v4852_v44 = vmul.f32 %v4722_v19, %v4612_v54  ;;  %v4488_v39 = vpop.xlane.xlu0 %4487 }
 0x5b8   : > { %v4724_v7 = vmul.f32 %v7581_v0, %v11514_v57  ;;  %v4583_v20 = vmax.f32 %v4567_v48, 0.0  ;;  %v11577_v31 = vmul.f32 %v11314_v33, %v4978_v4  ;;  %v11580_v16 = vmul.f32 %v11322_v56, %v4979_v12 }
 0x5b9   : > { %v11583_v59 = vmul.f32 %v11324_v22, %v4980_v46  ;;  %v4905_v21 = vpack.c.bf16 %v4850_v60, %v4849_v25  ;;  %v4552_v35 = vmul.f32 %v11552_v36, %v11552_v36  ;;  %v5299_v23 = vpack.c.bf16 %v5239_v50, %v5235_v10  ;;  %v13076_v50 = vld [vmem:[#allocation36_spill] sm:$0xff] }
 0x5ba   : > { %v4725_v54 = vmul.f32 %v7581_v0, %v4724_v7  ;;  %v11585_v51 = vadd.f32 1e-05, %v4583_v20  ;;  %v11590_v62 = vmul.f32 %v11326_v15, %v4981_v28  ;;  %v4906_v4 = vpack.c.bf16 %v4852_v44, %v4851_v27 }
 0x5bb   : > { %v5158_v19 = vperm.slane %v5156_v47, 0  ;;  %v5140_v48 = vpack.c.bf16 %v5134_v24, %v5133_v1  ;;  %vm4730_vm4 = vweird.f32 %v7581_v0  ;;  %v4536_v60 = vmul.f32 %v4488_v39, %v9225_v5 }
 0x5bc   : > { %v4726_v12 = vmul.f32 0.5, %v4725_v54  ;;  %7582 = vrsqrt.f32 %v11585_v51  ;;  %v4982_v46 = vunpack.c.l.bf16 %v4905_v21  ;;  %v4622_v7 = vsub.f32 %v11012_v38, %v11552_v36  ;;  %vm4731_vm5 = vmor %vm4729_vm3, %vm4730_vm4  ;;  %v13092_v38 = vld [vmem:[#allocation43_spill] sm:$0xff] }
 0x5bd   : > { %v4623_v28 = vsub.f32 %v13076_v50, %v11552_v36  ;;  %v4568_v27 = vsub.f32 %v4536_v60, %v4552_v35  ;;  %v5331_v47 = vunpack.c.l.bf16 %v5299_v23  ;;  %v5335_v1 = vunpack.c.h.bf16 %v5299_v23 }
 0x5be   : > { %v4727_v20 = vsub.f32 1.5, %v4726_v12  ;;  %v4983_v24 = vunpack.c.h.bf16 %v4905_v21  ;;  %v4984_v44 = vunpack.c.l.bf16 %v4906_v4  ;;  %v11600_v10 = vunpack.c.l.bf16 %v5158_v19 }
 0x5bf   : > { %v5145_v54 = vunpack.c.l.b16 %v5140_v48  ;;  %v4584_v41 = vmax.f32 %v4568_v27, 0.0  ;;  %7584 = vtanh.f32 %v5331_v47  ;;  %v5146_v63 = vunpack.c.h.b16 %v5140_v48  ;;  %v13082_v27 = vld [vmem:[#allocation39_spill] sm:$0xff] }
 0x5c0   : > { %v4728_v39 = vmul.f32 %v7581_v0, %v4727_v20  ;;  %v4985_v25 = vunpack.c.h.bf16 %v4906_v4  ;;  %7586 = vtanh.f32 %v5335_v1  ;;  %v5240_v35 = vadd.f32 %v11600_v10, %v5172_v6 }
 0x5c1   : > { %v11610_v21 = vpack.c.bf16 %v11525_v43, %v11521_v40  ;;  %v11612_v12 = vadd.f32 1e-05, %v4584_v41  ;;  %v13077_v48 = vunpack.c.h.bf16 %v11419_v52  ;;  %v5149_v60 = vpack.c.b16 %v5145_v54, %v5145_v54 }
 0x5c2   : > { %v7583_v23 = vpop.eup %7582  ;;  %v4732_v19 = vsel %vm4731_vm5, %v7581_v0, %v4728_v39  ;;  %v13078_v57 = vsub.f32 %v10946_v8, %v11432_v14  ;;  %v13079_v61 = vsub.f32 %v10952_v32, %v11432_v14  ;;  %v13080_v40 = vsub.f32 %v10955_v13, %v11432_v14 }
 0x5c3   : > { %v5236_v4 = vadd.f32 %v11600_v10, %v13077_v48  ;;  %v13081_v41 = vsub.f32 %v10960_v53, %v11432_v14  ;;  %v4734_v52 = vmul.f32 %v7583_v23, %v11585_v51  ;;  %v4624_v47 = vsub.f32 %v13082_v27, %v11552_v36 }
 0x5c4   : > { %v4853_v20 = vmul.f32 %v4732_v19, %v13078_v57  ;;  %v4854_v6 = vmul.f32 %v4732_v19, %v13079_v61  ;;  %v4855_v43 = vmul.f32 %v4732_v19, %v13080_v40  ;;  %7588 = vrsqrt.f32 %v11612_v12 }
 0x5c5   : > { %v4856_v0 = vmul.f32 %v4732_v19, %v13081_v41  ;;  %v5150_v8 = vpack.c.b16 %v5146_v63, %v5146_v63  ;;  %v11634_v1 = vmul.f32 %v11314_v33, %v4982_v46  ;;  %vm4739_vm6 = vweird.f32 %v11585_v51  ;;  %v7585_v54 = vpop.eup %7584 }
 0x5c6   : > { %v4907_v32 = vpack.c.bf16 %v4854_v6, %v4853_v20  ;;  %v5300_v13 = vpack.c.bf16 %v5240_v35, %v5236_v4  ;;  %v11638_v39 = vmul.f32 %v11322_v56, %v4983_v24  ;;  %v4735_v14 = vmul.f32 %v7583_v23, %v4734_v52  ;;  %v7587_v48 = vpop.eup %7586 }
 0x5c7   : > { %v4908_v53 = vpack.c.bf16 %v4856_v0, %v4855_v43  ;;  %v5175_v19 = vunpack.c.l.bf16 %v11610_v21  ;;  %v11642_v57 = vmul.f32 %v11324_v22, %v4984_v44  ;;  %v11645_v63 = vmul.f32 %v11326_v15, %v4985_v25 }
 0x5c8   : > { %v4986_v46 = vunpack.c.l.bf16 %v4907_v32  ;;  %v4333_v20 = vpop.xlane.xlu1 %4332  ;;  %v5160_v61 = vpack.i.b16 %v5149_v60, %v5149_v60  ;;  %v4736_v6 = vmul.f32 0.5, %v4735_v14  ;;  %v5459_v35 = vpack.c.bf16 %v7587_v48, %v7585_v54 }
 0x5c9   : > { %v5332_v4 = vunpack.c.l.bf16 %v5300_v13  ;;  %v5164_v40 = vpack.i.b16 %v5150_v8, %v5150_v8  ;;  %v4987_v24 = vunpack.c.h.bf16 %v4907_v32  ;;  %vm4740_vm7 = vweird.f32 %v7583_v23 }
 0x5ca   : > { %v11649_v43 = vpack.c.bf16 %v11580_v16, %v11577_v31  ;;  %v11653_v44 = vpack.c.bf16 %v11531_v49, %v11528_v11  ;;  %v7589_v41 = vpop.eup %7588  ;;  %v4988_v25 = vunpack.c.l.bf16 %v4908_v53  ;;  %v4737_v0 = vsub.f32 1.5, %v4736_v6  ;;  %5694 = vmatmul.bf16.vlgmr.msrb.gmra.mxu1 %v5459_v35  ;;  %v4493_v60 = vpop.xlane.xlu0 %4492  ;;  %vm4741_vm9 = vmor %vm4739_vm6, %vm4740_vm7 }
 0x5cb   : > { %v11656_v52 = vmul.f32 %v4333_v20, %v9225_v5  ;;  %v11659_v8 = vadd.f32 %v11538_v17, %v5175_v19  ;;  %v4989_v32 = vunpack.c.h.bf16 %v4908_v53  ;;  %v11662_v54 = vmul.f32 %v11314_v33, %v4986_v46 }
 0x5cc   : > { %v4744_v31 = vmul.f32 %v7589_v41, %v11612_v12  ;;  %v5336_v16 = vunpack.c.h.bf16 %v5300_v13  ;;  %v4738_v11 = vmul.f32 %v7583_v23, %v4737_v0  ;;  %vm4749_vm8 = vweird.f32 %v11612_v12 }
 0x5cd   : > { %7590 = vtanh.f32 %v5332_v4  ;;  %v5162_v49 = vperm.slane %v5160_v61, 0  ;;  %v5166_v14 = vperm.slane %v5164_v40, 0  ;;  %v11667_v48 = vmul.f32 %v11322_v56, %v4987_v24 }
 0x5ce   : > { %v4745_v53 = vmul.f32 %v7589_v41, %v4744_v31  ;;  %7592 = vtanh.f32 %v5336_v16  ;;  %v4537_v19 = vmul.f32 %v4493_v60, %v9225_v5  ;;  %v4742_v46 = vsel %vm4741_vm9, %v7583_v23, %v4738_v11 }
 0x5cf   : > { %v11673_v20 = vunpack.c.l.bf16 %v5162_v49  ;;  %v11675_v13 = vunpack.c.l.bf16 %v5166_v14  ;;  %v4553_v61 = vmul.f32 %v11656_v52, %v11656_v52  ;;  %v4857_v6 = vmul.f32 %v4742_v46, %v4617_v9  ;;  %v13087_v14 = vld [vmem:[#allocation38_spill] sm:$0xff] }
 0x5d0   : > { %v4858_v51 = vmul.f32 %v4742_v46, %v4618_v55  ;;  %v4859_v35 = vmul.f32 %v4742_v46, %v4619_v18  ;;  %v13083_v23 = vsub.f32 %v10996_v2, %v11518_v3  ;;  %v11692_v40 = vmul.f32 %v11324_v22, %v4988_v25  ;;  %v4338_v55 = vpop.xlane.xlu2 %4337 }
 0x5d1   : > { %v4746_v24 = vmul.f32 0.5, %v4745_v53  ;;  %v13084_v0 = vunpack.c.l.bf16 %v11427_v29  ;;  %v13085_v9 = vunpack.c.l.bf16 %v11466_v26  ;;  %v11701_v37 = vmul.f32 %v11326_v15, %v4989_v32 }
 0x5d2   : > { %v4860_v4 = vmul.f32 %v4742_v46, %v13083_v23  ;;  %v4909_v18 = vpack.c.bf16 %v4858_v51, %v4857_v6  ;;  %vm4750_vm10 = vweird.f32 %v7589_v41  ;;  %v13086_v31 = vunpack.c.h.bf16 %v11466_v26  ;;  %v13088_v46 = vld [vmem:[#allocation41_spill] sm:$0xff] }
 0x5d3   : > { %v5237_v34 = vadd.f32 %v11673_v20, %v13084_v0  ;;  %v5241_v45 = vadd.f32 %v11673_v20, %v13085_v9  ;;  %v7591_v2 = vpop.eup %7590  ;;  %v4747_v3 = vsub.f32 1.5, %v4746_v24  ;;  %v4569_v11 = vsub.f32 %v4537_v19, %v4553_v61  ;;  %vm4751_vm11 = vmor %vm4749_vm8, %vm4750_vm10 }
 0x5d4   : > { %v4910_v60 = vpack.c.bf16 %v4860_v4, %v4859_v35  ;;  %v5242_v16 = vadd.f32 %v11675_v13, %v13086_v31  ;;  %v7593_v49 = vpop.eup %7592  ;;  %v13089_v32 = vunpack.c.h.bf16 %v11427_v29  ;;  %v11714_v51 = vmul.f32 %v4338_v55, %v9225_v5  ;;  %v4498_v31 = vpop.xlane.xlu1 %4497 }
 0x5d5   : > { %v5301_v25 = vpack.c.bf16 %v5241_v45, %v5237_v34  ;;  %v4748_v35 = vmul.f32 %v7589_v41, %v4747_v3  ;;  %v5460_v4 = vpack.c.bf16 %v7593_v49, %v7591_v2  ;;  %v4990_v0 = vunpack.c.l.bf16 %v4909_v18 }
 0x5d6   : > { %v5238_v6 = vadd.f32 %v11675_v13, %v13089_v32  ;;  %v4991_v19 = vunpack.c.h.bf16 %v4909_v18  ;;  %v4992_v61 = vunpack.c.l.bf16 %v4910_v60  ;;  %v4993_v34 = vunpack.c.h.bf16 %v4910_v60 }
 0x5d7   : > { %v5333_v26 = vunpack.c.l.bf16 %v5301_v25  ;;  %v5337_v24 = vunpack.c.h.bf16 %v5301_v25  ;;  %v4752_v9 = vsel %vm4751_vm11, %v7589_v41, %v4748_v35  ;;  %5743 = vmatmul.bf16.vlgmr.msra.gmra.mxu2 %v5460_v4  ;;  %v4585_v45 = vmax.f32 %v4569_v11, 0.0 }
 0x5d8   : > { %v5302_v29 = vpack.c.bf16 %v5242_v16, %v5238_v6  ;;  %v13090_v55 = vsub.f32 %v11006_v58, %v11552_v36  ;;  %v4862_v18 = vmul.f32 %v4752_v9, %v4622_v7  ;;  %v4863_v60 = vmul.f32 %v4752_v9, %v4623_v28  ;;  %v13091_v58 = vld [vmem:[#allocation40_spill] sm:$0xff]  ;;  %v13093_v6 = vld [vmem:[#allocation42_spill] sm:$0xff] }
 0x5d9   : > { %7594 = vtanh.f32 %v5333_v26  ;;  %v4864_v12 = vmul.f32 %v4752_v9, %v4624_v47  ;;  %v5179_v25 = vunpack.c.l.bf16 %v11649_v43  ;;  %v4538_v50 = vmul.f32 %v4498_v31, %v9225_v5 }
 0x5da   : > { %v4861_v2 = vmul.f32 %v4752_v9, %v13090_v55  ;;  %7596 = vtanh.f32 %v5337_v24  ;;  %v5334_v41 = vunpack.c.l.bf16 %v5302_v29  ;;  %v5338_v3 = vunpack.c.h.bf16 %v5302_v29  ;;  %v13095_v9 = vld [vmem:[#allocation44_spill] sm:$0xff] }
 0x5db   : > { %v11740_v28 = vmul.f32 %v11314_v33, %v4990_v0  ;;  %v11743_v36 = vmul.f32 %v11322_v56, %v4991_v19  ;;  %v11745_v27 = vadd.f32 1e-05, %v4585_v45  ;;  %v11748_v47 = vmul.f32 %v11324_v22, %v4992_v61  ;;  %v13094_v61 = vld [vmem:[#allocation45_spill] sm:$0xff]  ;;  %v13096_v45 = vld [vmem:[#allocation47_spill] sm:$0xff] }
 0x5dc   : > { %v11732_v16 = vpack.c.bf16 %v4862_v18, %v4861_v2  ;;  %7598 = vtanh.f32 %v5334_v41  ;;  %v11751_v49 = vmul.f32 %v11326_v15, %v4993_v34  ;;  %v11753_v32 = vpack.c.bf16 %v4864_v12, %v4863_v60 }
 0x5dd   : > { %7600 = vtanh.f32 %v5338_v3  ;;  %v4554_v26 = vmul.f32 %v11714_v51, %v11714_v51  ;;  %v5247_v24 = vadd.f32 %v11538_v17, %v5179_v25  ;;  %v5176_v0 = vunpack.c.h.bf16 %v11610_v21 }
 0x5de   : > { %v4994_v19 = vunpack.c.l.bf16 %v11732_v16  ;;  %7602 = vrsqrt.f32 %v11745_v27  ;;  %v5180_v60 = vunpack.c.h.bf16 %v11649_v43  ;;  %v5105_v41 = vpack.c.bf16 %v11590_v62, %v11583_v59 }
 0x5df   : > { %v7595_v4 = vpop.eup %7594  ;;  %v4570_v2 = vsub.f32 %v4538_v50, %v4554_v26  ;;  %v5303_v18 = vpack.c.bf16 %v5247_v24, %v11659_v8  ;;  %v5244_v12 = vadd.f32 %v11600_v10, %v5176_v0  ;;  %v5177_v3 = vunpack.c.l.bf16 %v11653_v44  ;;  %v4343_v26 = vpop.xlane.xlu2 %4342 }
 0x5e0   : > { %v7597_v55 = vpop.eup %7596  ;;  %v5248_v35 = vadd.f32 %v11600_v10, %v5180_v60  ;;  %v4995_v50 = vunpack.c.h.bf16 %v11732_v16  ;;  %v4996_v8 = vunpack.c.l.bf16 %v11753_v32  ;;  %v5181_v43 = vunpack.c.l.bf16 %v5105_v41 }
 0x5e1   : > { %v5461_v21 = vpack.c.bf16 %v7597_v55, %v7595_v4  ;;  %v4586_v29 = vmax.f32 %v4570_v2, 0.0  ;;  %v5339_v34 = vunpack.c.l.bf16 %v5303_v18  ;;  %v5343_v31 = vunpack.c.h.bf16 %v5303_v18 }
 0x5e2   : > { %v7599_v25 = vpop.eup %7598  ;;  %v5182_v4 = vunpack.c.h.bf16 %v5105_v41  ;;  %v5304_v59 = vpack.c.bf16 %v5248_v35, %v5244_v12  ;;  %v5178_v62 = vunpack.c.h.bf16 %v11653_v44  ;;  %v5245_v18 = vadd.f32 %v11673_v20, %v5177_v3 }
 0x5e3   : > { %5792 = vmatmul.bf16.vlgmr.msrb.gmra.mxu3 %v5461_v21  ;;  %v7601_v24 = vpop.eup %7600  ;;  %v11778_v0 = vadd.f32 1e-05, %v4586_v29  ;;  %7604 = vtanh.f32 %v5339_v34  ;;  %v5249_v16 = vadd.f32 %v11673_v20, %v5181_v43  ;;  %v11785_v7 = vmul.f32 %v4343_v26, %v9225_v5 }
 0x5e4   : > { %v5462_v2 = vpack.c.bf16 %v7601_v24, %v7599_v25  ;;  %7606 = vtanh.f32 %v5343_v31  ;;  %v7603_v60 = vpop.eup %7602  ;;  %v5340_v21 = vunpack.c.l.bf16 %v5304_v59  ;;  %v5344_v41 = vunpack.c.h.bf16 %v5304_v59  ;;  %v4503_v31 = vpop.xlane.xlu1 %4502 }
 0x5e5   : > { %v4348_v55 = vpop.xlane.xlu0 %4347  ;;  %7608 = vrsqrt.f32 %v11778_v0  ;;  %v4997_v34 = vunpack.c.h.bf16 %v11753_v32  ;;  %v4754_v44 = vmul.f32 %v7603_v60, %v11745_v27  ;;  %vm4759_vm12 = vweird.f32 %v11745_v27 }
 0x5e6   : > { %5841 = vmatmul.bf16.vlgmr.msra.gmra.mxu0 %v5462_v2  ;;  %v5305_v35 = vpack.c.bf16 %v5249_v16, %v5245_v18  ;;  %v5250_v29 = vadd.f32 %v11675_v13, %v5182_v4  ;;  %v11792_v12 = vmul.f32 %v11314_v33, %v4994_v19  ;;  %v11795_v3 = vmul.f32 %v11322_v56, %v4995_v50 }
 0x5e7   : > { %7610 = vtanh.f32 %v5340_v21  ;;  %v5246_v25 = vadd.f32 %v11675_v13, %v5178_v62  ;;  %v4755_v43 = vmul.f32 %v7603_v60, %v4754_v44  ;;  %v11799_v59 = vmul.f32 %v11324_v22, %v4996_v8 }
 0x5e8   : > { %7612 = vtanh.f32 %v5344_v41  ;;  %v5341_v32 = vunpack.c.l.bf16 %v5305_v35  ;;  %v5345_v26 = vunpack.c.h.bf16 %v5305_v35  ;;  %v4539_v4 = vmul.f32 %v4503_v31, %v9225_v5 }
 0x5e9   : > { %v7605_v24 = vpop.eup %7604  ;;  %v5306_v2 = vpack.c.bf16 %v5250_v29, %v5246_v25  ;;  %v4555_v19 = vmul.f32 %v11785_v7, %v11785_v7  ;;  %v11805_v50 = vmul.f32 %v11326_v15, %v4997_v34  ;;  %v4756_v16 = vmul.f32 0.5, %v4755_v43  ;;  %v4508_v25 = vpop.xlane.xlu2 %4507  ;;  %v13098_v43 = vld [vmem:[#allocation46_spill] sm:$0xff] }
 0x5ea   : > { %v7607_v18 = vpop.eup %7606  ;;  %7614 = vtanh.f32 %v5341_v32  ;;  %v11808_v62 = vmul.f32 %v4348_v55, %v9225_v5  ;;  %vm4760_vm13 = vweird.f32 %v7603_v60  ;;  %vm4769_vm14 = vweird.f32 %v11778_v0  ;;  %v13099_v32 = vld [vmem:[#allocation49_spill] sm:$0xff] }
 0x5eb   : > { %13097 = vst [vmem:[#allocation36_spill] sm:$0xff] %v11805_v50  ;;  %v7609_v21 = vpop.eup %7608  ;;  %v5463_v41 = vpack.c.bf16 %v7607_v18, %v7605_v24  ;;  %7616 = vtanh.f32 %v5345_v26  ;;  %v5342_v8 = vunpack.c.l.bf16 %v5306_v2  ;;  %v5346_v44 = vunpack.c.h.bf16 %v5306_v2  ;;  %v13100_v26 = vld [vmem:[#allocation48_spill] sm:$0xff]  ;;  %vm4761_vm15 = vmor %vm4759_vm12, %vm4760_vm13 }
 0x5ec   : > { %v4757_v35 = vsub.f32 1.5, %v4756_v16  ;;  %v4764_v29 = vmul.f32 %v7609_v21, %v11778_v0  ;;  %v4571_v31 = vsub.f32 %v4539_v4, %v4555_v19  ;;  %v13101_v19 = vld [vmem:[#allocation19_spill] sm:$0xff]  ;;  %v4540_v24 = vmul.f32 %v4508_v25, %v9225_v5 }
 0x5ed   : > { %v7611_v34 = vpop.eup %7610  ;;  %5699 = vmatmul.bf16.gmra.mxu1 %v5463_v41  ;;  %7618 = vtanh.f32 %v5342_v8  ;;  %v4353_v18 = vpop.xlane.xlu0 %4352  ;;  %v4556_v8 = vmul.f32 %v11808_v62, %v11808_v62  ;;  %v13102_v27 = vsub.f32 %v13087_v14, %v11656_v52  ;;  %v13104_v25 = vsub.f32 %v13091_v58, %v11656_v52 }
 0x5ee   : > { %v7613_v16 = vpop.eup %7612  ;;  %v4758_v11 = vmul.f32 %v7603_v60, %v4757_v35  ;;  %v4765_v23 = vmul.f32 %v7609_v21, %v4764_v29  ;;  %7620 = vtanh.f32 %v5346_v44  ;;  %v4587_v53 = vmax.f32 %v4571_v31, 0.0 }
 0x5ef   : > { %v5464_v4 = vpack.c.bf16 %v7613_v16, %v7611_v34  ;;  %v11829_v44 = vmul.f32 %v4353_v18, %v9225_v5  ;;  %v13103_v34 = vsub.f32 %v13088_v46, %v11656_v52  ;;  %vm4770_vm0 = vweird.f32 %v7609_v21  ;;  %v13106_v46 = vld [vmem:[#allocation21_spill] sm:$0xff] }
 0x5f0   : > { %v7615_v2 = vpop.eup %7614  ;;  %v4762_v55 = vsel %vm4761_vm15, %v7603_v60, %v4758_v11  ;;  %v4766_v30 = vmul.f32 0.5, %v4765_v23  ;;  %v11826_v35 = vadd.f32 1e-05, %v4587_v53  ;;  %v13105_v53 = vsub.f32 %v13092_v38, %v11656_v52  ;;  %v13108_v38 = vld [vmem:[#allocation17_spill] sm:$0xff]  ;;  %vm4771_vm1 = vmor %vm4769_vm14, %vm4770_vm0 }
 0x5f1   : > { %v7617_v29 = vpop.eup %7616  ;;  %v4865_v31 = vmul.f32 %v4762_v55, %v13102_v27  ;;  %v4866_v16 = vmul.f32 %v4762_v55, %v13103_v34  ;;  %v4867_v41 = vmul.f32 %v4762_v55, %v13104_v25  ;;  %5748 = vmatmul.bf16.gmra.mxu2 %v5464_v4  ;;  %v4572_v42 = vsub.f32 %v4540_v24, %v4556_v8  ;;  %v13107_v25 = vld [vmem:[#allocation16_spill] sm:$0xff]  ;;  %v13110_v4 = vld [vmem:[#allocation18_spill] sm:$0xff] }
 0x5f2   : > { %v4868_v23 = vmul.f32 %v4762_v55, %v13105_v53  ;;  %v4767_v11 = vsub.f32 1.5, %v4766_v30  ;;  %v5465_v60 = vpack.c.bf16 %v7617_v29, %v7615_v2  ;;  %7622 = vrsqrt.f32 %v11826_v35  ;;  %v13109_v55 = vld [vmem:[#allocation15_spill] sm:$0xff]  ;;  %v13111_v24 = vld [vmem:[#allocation4_spill] sm:$0xff] }
 0x5f3   : > { %v7619_v14 = vpop.eup %7618  ;;  %v4913_v18 = vpack.c.bf16 %v4866_v16, %v4865_v31  ;;  %v5106_v16 = vpack.c.bf16 %v11638_v39, %v11634_v1  ;;  %v13113_v8 = vsub.f32 %v13093_v6, %v11714_v51  ;;  %v13114_v31 = vsub.f32 %v13094_v61, %v11714_v51  ;;  %v13117_v6 = vld [vmem:[#allocation6_spill] sm:$0xff] }
 0x5f4   : > { %v4914_v27 = vpack.c.bf16 %v4868_v23, %v4867_v41  ;;  %v7621_v50 = vpop.eup %7620  ;;  %v4768_v58 = vmul.f32 %v7609_v21, %v4767_v11  ;;  %5797 = vmatmul.bf16.gmra.mxu3 %v5465_v60  ;;  %v4588_v11 = vmax.f32 %v4572_v42, 0.0  ;;  %v5108_v60 = vpack.c.bf16 %v11667_v48, %v11662_v54 }
 0x5f5   : > { %v5466_v23 = vpack.c.bf16 %v7621_v50, %v7619_v14  ;;  %v4998_v0 = vunpack.c.l.bf16 %v4913_v18  ;;  %v4999_v2 = vunpack.c.h.bf16 %v4913_v18  ;;  %v13115_v1 = vsub.f32 %v13095_v9, %v11714_v51 }
 0x5f6   : > { %v4772_v53 = vsel %vm4771_vm1, %v7609_v21, %v4768_v58  ;;  %v5000_v30 = vunpack.c.l.bf16 %v4914_v27  ;;  %v5001_v52 = vunpack.c.h.bf16 %v4914_v27  ;;  %v13116_v39 = vsub.f32 %v13096_v45, %v11714_v51 }
 0x5f7   : > { %v4869_v34 = vmul.f32 %v4772_v53, %v13113_v8  ;;  %v4870_v29 = vmul.f32 %v4772_v53, %v13114_v31  ;;  %v4871_v42 = vmul.f32 %v4772_v53, %v13115_v1  ;;  %5846 = vmatmul.bf16.gmra.mxu0 %v5466_v23  ;;  %vm4779_vm2 = vweird.f32 %v11826_v35 }
 0x5f8   : > { %v7623_v41 = vpop.eup %7622  ;;  %v4872_v54 = vmul.f32 %v4772_v53, %v13116_v39  ;;  %v11878_v50 = vadd.f32 1e-05, %v4588_v11  ;;  %v5183_v61 = vunpack.c.l.bf16 %v5106_v16  ;;  %v5187_v27 = vunpack.c.l.bf16 %v5108_v60 }
 0x5f9   : > { %v4774_v48 = vmul.f32 %v7623_v41, %v11826_v35  ;;  %v4915_v14 = vpack.c.bf16 %v4870_v29, %v4869_v34  ;;  %v5184_v9 = vunpack.c.h.bf16 %v5106_v16  ;;  %v11883_v58 = vmul.f32 %v11314_v33, %v4998_v0 }
 0x5fa   : > { %v4916_v18 = vpack.c.bf16 %v4872_v54, %v4871_v42  ;;  %v11886_v51 = vmul.f32 %v11322_v56, %v4999_v2  ;;  %7624 = vrsqrt.f32 %v11878_v50  ;;  %v11890_v8 = vmul.f32 %v11324_v22, %v5000_v30  ;;  %v4513_v54 = vpop.xlane.xlu2 %4512 }
 0x5fb   : > { %v4775_v45 = vmul.f32 %v7623_v41, %v4774_v48  ;;  %v11893_v31 = vmul.f32 %v11326_v15, %v5001_v52  ;;  %v5002_v53 = vunpack.c.l.bf16 %v4915_v14  ;;  %v5003_v34 = vunpack.c.h.bf16 %v4915_v14 }
 0x5fc   : > { %v5251_v16 = vadd.f32 %v11538_v17, %v5183_v61  ;;  %v5255_v23 = vadd.f32 %v11538_v17, %v5187_v27  ;;  %v5188_v11 = vunpack.c.h.bf16 %v5108_v60  ;;  %v5004_v0 = vunpack.c.l.bf16 %v4916_v18 }
 0x5fd   : > { %v4776_v29 = vmul.f32 0.5, %v4775_v45  ;;  %v5005_v2 = vunpack.c.h.bf16 %v4916_v18  ;;  %vm4780_vm3 = vweird.f32 %v7623_v41  ;;  %v5252_v1 = vadd.f32 %v11600_v10, %v5184_v9 }
 0x5fe   : > { %v5307_v39 = vpack.c.bf16 %v5255_v23, %v5251_v16  ;;  %v5256_v30 = vadd.f32 %v11600_v10, %v5188_v11  ;;  %v5107_v52 = vpack.c.bf16 %v11645_v63, %v11642_v57  ;;  %v11902_v48 = vmul.f32 %v11314_v33, %v5002_v53  ;;  %vm4781_vm4 = vmor %vm4779_vm2, %vm4780_vm3 }
 0x5ff   : > { %v4777_v42 = vsub.f32 1.5, %v4776_v29  ;;  %v11905_v61 = vmul.f32 %v11322_v56, %v5003_v34  ;;  %v5109_v60 = vpack.c.bf16 %v11701_v37, %v11692_v40  ;;  %v4557_v14 = vmul.f32 %v11829_v44, %v11829_v44 }
 0x600   : > { %v7625_v18 = vpop.eup %7624  ;;  %v5347_v9 = vunpack.c.l.bf16 %v5307_v39  ;;  %v5351_v45 = vunpack.c.h.bf16 %v5307_v39  ;;  %v5308_v29 = vpack.c.bf16 %v5256_v30, %v5252_v1  ;;  %v5185_v63 = vunpack.c.l.bf16 %v5107_v52 }
 0x601   : > { %v4778_v27 = vmul.f32 %v7623_v41, %v4777_v42  ;;  %v4784_v57 = vmul.f32 %v7625_v18, %v11878_v50  ;;  %v5189_v53 = vunpack.c.l.bf16 %v5109_v60  ;;  %v4541_v34 = vmul.f32 %v4513_v54, %v9225_v5 }
 0x602   : > { %vm4789_vm5 = vweird.f32 %v11878_v50  ;;  %7626 = vtanh.f32 %v5347_v9  ;;  %v5348_v40 = vunpack.c.l.bf16 %v5308_v29  ;;  %v5352_v37 = vunpack.c.h.bf16 %v5308_v29 }
 0x603   : > { %v4782_v16 = vsel %vm4781_vm4, %v7623_v41, %v4778_v27  ;;  %v13118_v23 = vsub.f32 %v13098_v43, %v11785_v7  ;;  %v13119_v35 = vsub.f32 %v13099_v32, %v11785_v7  ;;  %v13120_v42 = vsub.f32 %v13100_v26, %v11785_v7 }
 0x604   : > { %v13121_v41 = vsub.f32 %v13101_v19, %v11785_v7  ;;  %v4785_v54 = vmul.f32 %v7625_v18, %v4784_v57  ;;  %7628 = vtanh.f32 %v5351_v45  ;;  %v5253_v27 = vadd.f32 %v11673_v20, %v5185_v63  ;;  %v4358_v57 = vpop.xlane.xlu1 %4357 }
 0x605   : > { %v4873_v11 = vmul.f32 %v4782_v16, %v13118_v23  ;;  %v4874_v1 = vmul.f32 %v4782_v16, %v13119_v35  ;;  %v4875_v39 = vmul.f32 %v4782_v16, %v13120_v42  ;;  %v5257_v9 = vadd.f32 %v11673_v20, %v5189_v53 }
 0x606   : > { %v4876_v30 = vmul.f32 %v4782_v16, %v13121_v41  ;;  %7630 = vtanh.f32 %v5348_v40  ;;  %v5186_v23 = vunpack.c.h.bf16 %v5107_v52  ;;  %v4786_v32 = vmul.f32 0.5, %v4785_v54 }
 0x607   : > { %v4917_v43 = vpack.c.bf16 %v4874_v1, %v4873_v11  ;;  %7632 = vtanh.f32 %v5352_v37  ;;  %v5309_v35 = vpack.c.bf16 %v5257_v9, %v5253_v27  ;;  %v5190_v21 = vunpack.c.h.bf16 %v5109_v60 }
 0x608   : > { %v4918_v29 = vpack.c.bf16 %v4876_v30, %v4875_v39  ;;  %v11932_v26 = vmul.f32 %v11324_v22, %v5004_v0  ;;  %v11935_v7 = vmul.f32 %v11326_v15, %v5005_v2  ;;  %v7627_v63 = vpop.eup %7626  ;;  %v4787_v16 = vsub.f32 1.5, %v4786_v32 }
 0x609   : > { %v5006_v19 = vunpack.c.l.bf16 %v4917_v43  ;;  %v5007_v45 = vunpack.c.h.bf16 %v4917_v43  ;;  %vm4790_vm6 = vweird.f32 %v7625_v18  ;;  %v5349_v53 = vunpack.c.l.bf16 %v5309_v35 }
 0x60a   : > { %v5353_v11 = vunpack.c.h.bf16 %v5309_v35  ;;  %v5008_v40 = vunpack.c.l.bf16 %v4918_v29  ;;  %v5009_v52 = vunpack.c.h.bf16 %v4918_v29  ;;  %v5254_v37 = vadd.f32 %v11675_v13, %v5186_v23  ;;  %v7629_v0 = vpop.eup %7628  ;;  %vm4791_vm7 = vmor %vm4789_vm5, %vm4790_vm6 }
 0x60b   : > { %v11940_v60 = vpack.c.bf16 %v11743_v36, %v11740_v28  ;;  %v4788_v1 = vmul.f32 %v7625_v18, %v4787_v16  ;;  %7634 = vtanh.f32 %v5349_v53  ;;  %v5258_v2 = vadd.f32 %v11675_v13, %v5190_v21 }
 0x60c   : > { %v4573_v42 = vsub.f32 %v4541_v34, %v4557_v14  ;;  %v7631_v39 = vpop.eup %7630  ;;  %v11944_v41 = vmul.f32 %v11314_v33, %v5006_v19  ;;  %v11947_v30 = vmul.f32 %v11322_v56, %v5007_v45  ;;  %v5467_v54 = vpack.c.bf16 %v7629_v0, %v7627_v63  ;;  %v4518_v14 = vpop.xlane.xlu0 %4517 }
 0x60d   : > { %7636 = vtanh.f32 %v5353_v11  ;;  %v7633_v28 = vpop.eup %7632  ;;  %v4792_v36 = vsel %vm4791_vm7, %v7625_v18, %v4788_v1  ;;  %v5310_v27 = vpack.c.bf16 %v5258_v2, %v5254_v37  ;;  %v11953_v21 = vmul.f32 %v4358_v57, %v9225_v5 }
 0x60e   : > { %v4589_v9 = vmax.f32 %v4573_v42, 0.0  ;;  %v13122_v34 = vsub.f32 %v13106_v46, %v11808_v62  ;;  %v13123_v29 = vsub.f32 %v13107_v25, %v11808_v62  ;;  %v13124_v50 = vsub.f32 %v13108_v38, %v11808_v62  ;;  %5704 = vmatmul.bf16.gmra.mxu1 %v5467_v54  ;;  %v4363_v38 = vpop.xlane.xlu1 %4362 }
 0x60f   : > { %v13125_v18 = vsub.f32 %v13109_v55, %v11808_v62  ;;  %v11968_v19 = vmul.f32 %v11324_v22, %v5008_v40  ;;  %v5468_v45 = vpack.c.bf16 %v7633_v28, %v7631_v39  ;;  %v5350_v57 = vunpack.c.l.bf16 %v5310_v27  ;;  %v13126_v55 = vld [vmem:[#allocation5_spill] sm:$0xff] }
 0x610   : > { %v4877_v43 = vmul.f32 %v4792_v36, %v13122_v34  ;;  %v4878_v23 = vmul.f32 %v4792_v36, %v13123_v29  ;;  %v4879_v32 = vmul.f32 %v4792_v36, %v13124_v50  ;;  %v5354_v46 = vunpack.c.h.bf16 %v5310_v27  ;;  %v13127_v27 = vld [vmem:[#allocation8_spill] sm:$0xff] }
 0x611   : > { %v4880_v35 = vmul.f32 %v4792_v36, %v13125_v18  ;;  %v11971_v63 = vmul.f32 %v11326_v15, %v5009_v52  ;;  %v4542_v53 = vmul.f32 %v4518_v14, %v9225_v5  ;;  %v7635_v11 = vpop.eup %7634  ;;  %5753 = vmatmul.bf16.gmra.mxu2 %v5468_v45  ;;  %7638 = vtanh.f32 %v5350_v57  ;;  %v13129_v14 = vld [vmem:[#allocation11_spill] sm:$0xff] }
 0x612   : > { %v4919_v25 = vpack.c.bf16 %v4878_v23, %v4877_v43  ;;  %v11974_v62 = vadd.f32 1e-05, %v4589_v9  ;;  %v5112_v37 = vpack.c.bf16 %v11795_v3, %v11792_v12  ;;  %7640 = vtanh.f32 %v5354_v46  ;;  %v13128_v12 = vld [vmem:[#allocation9_spill] sm:$0xff]  ;;  %v4368_v3 = vpop.xlane.xlu2 %4367 }
 0x613   : > { %v4920_v16 = vpack.c.bf16 %v4880_v35, %v4879_v32  ;;  %v7637_v0 = vpop.eup %7636  ;;  %v4558_v54 = vmul.f32 %v11953_v21, %v11953_v21  ;;  %v11983_v28 = vmul.f32 %v4363_v38, %v9225_v5  ;;  %v13131_v32 = vld [vmem:[#allocation12_spill] sm:$0xff]  ;;  %v5191_v35 = vunpack.c.l.bf16 %v11940_v60 }
 0x614   : > { %v5010_v1 = vunpack.c.l.bf16 %v4919_v25  ;;  %v5011_v52 = vunpack.c.h.bf16 %v4919_v25  ;;  %v5469_v39 = vpack.c.bf16 %v7637_v0, %v7635_v11  ;;  %7642 = vrsqrt.f32 %v11974_v62  ;;  %v13132_v11 = vld [vmem:[#allocation7_spill] sm:$0xff] }
 0x615   : > { %v5012_v2 = vunpack.c.l.bf16 %v4920_v16  ;;  %v5013_v42 = vunpack.c.h.bf16 %v4920_v16  ;;  %v4574_v23 = vsub.f32 %v4542_v53, %v4558_v54  ;;  %v5195_v45 = vunpack.c.l.bf16 %v5112_v37 }
 0x616   : > { %v11986_v36 = vmul.f32 %v11314_v33, %v5010_v1  ;;  %v11995_v43 = vmul.f32 %v11322_v56, %v5011_v52  ;;  %5802 = vmatmul.bf16.gmra.mxu3 %v5469_v39  ;;  %v5192_v25 = vunpack.c.h.bf16 %v11940_v60  ;;  %v5196_v16 = vunpack.c.h.bf16 %v5112_v37  ;;  %v13133_v52 = vld [vmem:[#allocation36_spill] sm:$0xff] }
 0x617   : > { %v11998_v29 = vmul.f32 %v11324_v22, %v5012_v2  ;;  %v12002_v50 = vmul.f32 %v11326_v15, %v5013_v42  ;;  %v7639_v57 = vpop.eup %7638  ;;  %v4590_v46 = vmax.f32 %v4574_v23, 0.0  ;;  %v5111_v38 = vpack.c.bf16 %v11751_v49, %v11748_v47  ;;  %v4523_v42 = vpop.xlane.xlu0 %4522  ;;  %v13134_v49 = vld [vmem:[#allocation14_spill] sm:$0xff] }
 0x618   : > { %v5259_v0 = vadd.f32 %v11538_v17, %v5191_v35  ;;  %v5263_v1 = vadd.f32 %v11538_v17, %v5195_v45  ;;  %v5113_v2 = vpack.c.bf16 %v13133_v52, %v11799_v59  ;;  %v7641_v39 = vpop.eup %7640  ;;  %v5260_v60 = vadd.f32 %v11600_v10, %v5192_v25 }
 0x619   : > { %13130 = vst [vmem:[#allocation39_spill] sm:$0xff] %v12002_v50  ;;  %v12016_v54 = vadd.f32 1e-05, %v4590_v46  ;;  %v5264_v37 = vadd.f32 %v11600_v10, %v5196_v16  ;;  %v5193_v23 = vunpack.c.l.bf16 %v5111_v38  ;;  %v5470_v47 = vpack.c.bf16 %v7641_v39, %v7639_v57 }
 0x61a   : > { %v5311_v18 = vpack.c.bf16 %v5263_v1, %v5259_v0  ;;  %v5197_v35 = vunpack.c.l.bf16 %v5113_v2  ;;  %v7643_v34 = vpop.eup %7642  ;;  %v5194_v59 = vunpack.c.h.bf16 %v5111_v38  ;;  %v4543_v52 = vmul.f32 %v4523_v42, %v9225_v5  ;;  %v13135_v38 = vld [vmem:[#allocation10_spill] sm:$0xff] }
 0x61b   : > { %7644 = vrsqrt.f32 %v12016_v54  ;;  %v5312_v45 = vpack.c.bf16 %v5264_v37, %v5260_v60  ;;  %5851 = vmatmul.bf16.gmra.mxu0 %v5470_v47  ;;  %v4794_v46 = vmul.f32 %v7643_v34, %v11974_v62  ;;  %vm4799_vm8 = vweird.f32 %v11974_v62 }
 0x61c   : > { %v5355_v25 = vunpack.c.l.bf16 %v5311_v18  ;;  %v5359_v16 = vunpack.c.h.bf16 %v5311_v18  ;;  %v5261_v57 = vadd.f32 %v11673_v20, %v5193_v23  ;;  %v5265_v0 = vadd.f32 %v11673_v20, %v5197_v35  ;;  %v4528_v35 = vpop.xlane.xlu1 %4527 }
 0x61d   : > { %v5356_v39 = vunpack.c.l.bf16 %v5312_v45  ;;  %v5360_v53 = vunpack.c.h.bf16 %v5312_v45  ;;  %v5198_v1 = vunpack.c.h.bf16 %v5113_v2  ;;  %v4795_v9 = vmul.f32 %v7643_v34, %v4794_v46 }
 0x61e   : > { %7646 = vtanh.f32 %v5355_v25  ;;  %v4559_v42 = vmul.f32 %v11983_v28, %v11983_v28  ;;  %v5313_v37 = vpack.c.bf16 %v5265_v0, %v5261_v57  ;;  %v5262_v18 = vadd.f32 %v11675_v13, %v5194_v59 }
 0x61f   : > { %7648 = vtanh.f32 %v5359_v16  ;;  %v5266_v23 = vadd.f32 %v11675_v13, %v5198_v1  ;;  %v4796_v47 = vmul.f32 0.5, %v4795_v9  ;;  %v12035_v2 = vmul.f32 %v4368_v3, %v9225_v5 }
 0x620   : > { %7650 = vtanh.f32 %v5356_v39  ;;  %v4575_v45 = vsub.f32 %v4543_v52, %v4559_v42  ;;  %v5357_v60 = vunpack.c.l.bf16 %v5313_v37  ;;  %v5361_v25 = vunpack.c.h.bf16 %v5313_v37  ;;  %v13136_v42 = vld [vmem:[#allocation13_spill] sm:$0xff] }
 0x621   : > { %v7645_v46 = vpop.eup %7644  ;;  %7652 = vtanh.f32 %v5360_v53  ;;  %v5314_v40 = vpack.c.bf16 %v5266_v23, %v5262_v18  ;;  %v4797_v50 = vsub.f32 1.5, %v4796_v47  ;;  %vm4800_vm9 = vweird.f32 %v7643_v34 }
 0x622   : > { %v4804_v16 = vmul.f32 %v7645_v46, %v12016_v54  ;;  %vm4809_vm10 = vweird.f32 %v12016_v54  ;;  %v4591_v59 = vmax.f32 %v4575_v45, 0.0  ;;  %7654 = vtanh.f32 %v5357_v60  ;;  %vm4801_vm11 = vmor %vm4799_vm8, %vm4800_vm9 }
 0x623   : > { %v5358_v9 = vunpack.c.l.bf16 %v5314_v40  ;;  %v5362_v57 = vunpack.c.h.bf16 %v5314_v40  ;;  %v12040_v52 = vmul.f32 %v4528_v35, %v9225_v5  ;;  %v4798_v39 = vmul.f32 %v7643_v34, %v4797_v50  ;;  %v13137_v40 = vld [vmem:[#allocation50_spill] sm:$0xff] }
 0x624   : > { %v7647_v3 = vpop.eup %7646  ;;  %v4805_v0 = vmul.f32 %v7645_v46, %v4804_v16  ;;  %7656 = vtanh.f32 %v5361_v25  ;;  %v12042_v53 = vadd.f32 1e-05, %v4591_v59  ;;  %vm4810_vm12 = vweird.f32 %v7645_v46  ;;  %v13140_v16 = vld [vmem:[#allocation3_spill] sm:$0xff] }
 0x625   : > { %v7649_v1 = vpop.eup %7648  ;;  %7658 = vtanh.f32 %v5358_v9  ;;  %v4653_v60 = vsub.f32 %v13136_v42, %v12035_v2  ;;  %v4802_v18 = vsel %vm4801_vm11, %v7643_v34, %v4798_v39  ;;  %v13138_v45 = vsub.f32 %v13110_v4, %v11829_v44  ;;  %v13143_v4 = vld [vmem:[#allocation52_spill] sm:$0xff]  ;;  %vm4811_vm13 = vmor %vm4809_vm10, %vm4810_vm12 }
 0x626   : > { %v7651_v5 = vpop.eup %7650  ;;  %v4806_v23 = vmul.f32 0.5, %v4805_v0  ;;  %v5471_v50 = vpack.c.bf16 %v7649_v1, %v7647_v3  ;;  %7660 = vtanh.f32 %v5362_v57  ;;  %v13139_v62 = vsub.f32 %v13111_v24, %v11829_v44 }
 0x627   : > { %v7653_v47 = vpop.eup %7652  ;;  %v4881_v35 = vmul.f32 %v4802_v18, %v13138_v45  ;;  %v13141_v59 = vsub.f32 %v13140_v16, %v11829_v44  ;;  %v13142_v37 = vsub.f32 %v13117_v6, %v11829_v44  ;;  %7662 = vrsqrt.f32 %v12042_v53  ;;  %v13144_v6 = vld [vmem:[#allocation51_spill] sm:$0xff] }
 0x628   : > { %v4882_v25 = vmul.f32 %v4802_v18, %v13139_v62  ;;  %v4807_v39 = vsub.f32 1.5, %v4806_v23  ;;  %5709 = vmatmul.bf16.gmra.mxu1 %v5471_v50  ;;  %v5472_v57 = vpack.c.bf16 %v7653_v47, %v7651_v5  ;;  %v4655_v3 = vsub.f32 %v13143_v4, %v12035_v2  ;;  %v7655_v0 = vpop.eup %7654 }
 0x629   : > { %v4883_v9 = vmul.f32 %v4802_v18, %v13141_v59  ;;  %v4884_v34 = vmul.f32 %v4802_v18, %v13142_v37  ;;  %v4560_v45 = vmul.f32 %v12035_v2, %v12035_v2  ;;  %v5114_v62 = vpack.c.bf16 %v11886_v51, %v11883_v58 }
 0x62a   : > { %v4921_v1 = vpack.c.bf16 %v4882_v25, %v4881_v35  ;;  %v7657_v16 = vpop.eup %7656  ;;  %v4808_v44 = vmul.f32 %v7645_v46, %v4807_v39  ;;  %5758 = vmatmul.bf16.gmra.mxu2 %v5472_v57  ;;  %v4656_v37 = vsub.f32 %v13144_v6, %v12035_v2  ;;  %v5116_v5 = vpack.c.bf16 %v11905_v61, %v11902_v48 }
 0x62b   : > { %v4922_v24 = vpack.c.bf16 %v4884_v34, %v4883_v9  ;;  %v12075_v18 = vpack.c.bf16 %v11893_v31, %v11890_v8  ;;  %v7659_v23 = vpop.eup %7658  ;;  %v5473_v59 = vpack.c.bf16 %v7657_v16, %v7655_v0  ;;  %v4576_v9 = vsub.f32 %v12040_v52, %v4560_v45 }
 0x62c   : > { %v5014_v50 = vunpack.c.l.bf16 %v4921_v1  ;;  %v5015_v47 = vunpack.c.h.bf16 %v4921_v1  ;;  %v7661_v58 = vpop.eup %7660  ;;  %v4812_v51 = vsel %vm4811_vm13, %v7645_v46, %v4808_v44  ;;  %v5117_v48 = vpack.c.bf16 %v11935_v7, %v11932_v26 }
 0x62d   : > { %v5016_v35 = vunpack.c.l.bf16 %v4922_v24  ;;  %v5017_v25 = vunpack.c.h.bf16 %v4922_v24  ;;  %v5199_v34 = vunpack.c.l.bf16 %v5114_v62  ;;  %v7663_v54 = vpop.eup %7662  ;;  %v13145_v46 = vsub.f32 %v13126_v55, %v11953_v21  ;;  %5807 = vmatmul.bf16.gmra.mxu3 %v5473_v59 }
 0x62e   : > { %v12084_v8 = vmul.f32 %v11314_v33, %v5014_v50  ;;  %v12087_v31 = vmul.f32 %v11322_v56, %v5015_v47  ;;  %v13146_v52 = vsub.f32 %v13127_v27, %v11953_v21  ;;  %v13147_v26 = vsub.f32 %v13128_v12, %v11953_v21 }
 0x62f   : > { %v12090_v61 = vmul.f32 %v11324_v22, %v5016_v35  ;;  %v4885_v39 = vmul.f32 %v4812_v51, %v13145_v46  ;;  %v13148_v0 = vsub.f32 %v13129_v14, %v11953_v21  ;;  %v12105_v24 = vmul.f32 %v11326_v15, %v5017_v25 }
 0x630   : > { %v4886_v57 = vmul.f32 %v4812_v51, %v13146_v52  ;;  %v4887_v7 = vmul.f32 %v4812_v51, %v13147_v26  ;;  %v5474_v45 = vpack.c.bf16 %v7661_v58, %v7659_v23  ;;  %v4814_v55 = vmul.f32 %v7663_v54, %v12042_v53 }
 0x631   : > { %v4888_v1 = vmul.f32 %v4812_v51, %v13148_v0  ;;  %vm4819_vm14 = vweird.f32 %v12042_v53  ;;  %v4592_v16 = vmax.f32 %v4576_v9, 0.0  ;;  %vm4820_vm15 = vweird.f32 %v7663_v54 }
 0x632   : > { %v4923_v27 = vpack.c.bf16 %v4886_v57, %v4885_v39  ;;  %v5203_v50 = vunpack.c.l.bf16 %v5116_v5  ;;  %5856 = vmatmul.bf16.gmra.mxu0 %v5474_v45  ;;  %v4815_v12 = vmul.f32 %v7663_v54, %v4814_v55  ;;  %v5200_v21 = vunpack.c.h.bf16 %v5114_v62  ;;  %vm4821_vm0 = vmor %vm4819_vm14, %vm4820_vm15 }
 0x633   : > { %v4924_v44 = vpack.c.bf16 %v4888_v1, %v4887_v7  ;;  %v12109_v47 = vadd.f32 1e-05, %v4592_v16  ;;  %v5204_v14 = vunpack.c.h.bf16 %v5116_v5  ;;  %v5267_v58 = vadd.f32 %v11538_v17, %v5199_v34 }
 0x634   : > { %v5018_v35 = vunpack.c.l.bf16 %v4923_v27  ;;  %v5019_v51 = vunpack.c.h.bf16 %v4923_v27  ;;  %v4816_v23 = vmul.f32 0.5, %v4815_v12  ;;  %v5271_v9 = vadd.f32 %v11538_v17, %v5203_v50 }
 0x635   : > { %v5020_v25 = vunpack.c.l.bf16 %v4924_v44  ;;  %v5021_v59 = vunpack.c.h.bf16 %v4924_v44  ;;  %7664 = vrsqrt.f32 %v12109_v47  ;;  %v5268_v26 = vadd.f32 %v11600_v10, %v5200_v21 }
 0x636   : > { %v12115_v46 = vmul.f32 %v11314_v33, %v5018_v35  ;;  %v12118_v39 = vmul.f32 %v11322_v56, %v5019_v51  ;;  %v4817_v52 = vsub.f32 1.5, %v4816_v23  ;;  %v5315_v57 = vpack.c.bf16 %v5271_v9, %v5267_v58 }
 0x637   : > { %v12121_v62 = vmul.f32 %v11324_v22, %v5020_v25  ;;  %v12124_v5 = vmul.f32 %v11326_v15, %v5021_v59  ;;  %v5272_v34 = vadd.f32 %v11600_v10, %v5204_v14  ;;  %v5201_v7 = vunpack.c.l.bf16 %v12075_v18 }
 0x638   : > { %v5205_v0 = vunpack.c.l.bf16 %v5117_v48  ;;  %v5202_v1 = vunpack.c.h.bf16 %v12075_v18  ;;  %v5206_v45 = vunpack.c.h.bf16 %v5117_v48  ;;  %v4818_v55 = vmul.f32 %v7663_v54, %v4817_v52 }
 0x639   : > { %v5363_v16 = vunpack.c.l.bf16 %v5315_v57  ;;  %v5367_v27 = vunpack.c.h.bf16 %v5315_v57  ;;  %v5316_v44 = vpack.c.bf16 %v5272_v34, %v5268_v26  ;;  %v5269_v50 = vadd.f32 %v11673_v20, %v5201_v7 }
 0x63a   : > { %v5273_v12 = vadd.f32 %v11673_v20, %v5205_v0  ;;  %v5270_v21 = vadd.f32 %v11675_v13, %v5202_v1  ;;  %v5274_v14 = vadd.f32 %v11675_v13, %v5206_v45  ;;  %v4822_v51 = vsel %vm4821_vm0, %v7663_v54, %v4818_v55 }
 0x63b   : > { %v7665_v35 = vpop.eup %7664  ;;  %7666 = vtanh.f32 %v5363_v16  ;;  %v5364_v18 = vunpack.c.l.bf16 %v5316_v44  ;;  %v5368_v48 = vunpack.c.h.bf16 %v5316_v44  ;;  %v13149_v25 = vsub.f32 %v13131_v32, %v11983_v28 }
 0x63c   : > { %v13150_v53 = vsub.f32 %v13132_v11, %v11983_v28  ;;  %v13151_v58 = vsub.f32 %v13134_v49, %v11983_v28  ;;  %v13152_v52 = vsub.f32 %v13135_v38, %v11983_v28  ;;  %v4824_v54 = vmul.f32 %v7665_v35, %v12109_v47 }
 0x63d   : > { %v4889_v59 = vmul.f32 %v4822_v51, %v13149_v25  ;;  %vm4829_vm1 = vweird.f32 %v12109_v47  ;;  %vm4830_vm2 = vweird.f32 %v7665_v35  ;;  %7668 = vtanh.f32 %v5367_v27 }
 0x63e   : > { %v4890_v23 = vmul.f32 %v4822_v51, %v13150_v53  ;;  %v4891_v9 = vmul.f32 %v4822_v51, %v13151_v58  ;;  %v4892_v57 = vmul.f32 %v4822_v51, %v13152_v52  ;;  %v5317_v32 = vpack.c.bf16 %v5273_v12, %v5269_v50  ;;  %v13153_v58 = vld [vmem:[#allocation39_spill] sm:$0xff]  ;;  %vm4831_vm3 = vmor %vm4829_vm1, %vm4830_vm2 }
 0x63f   : > { %7670 = vtanh.f32 %v5364_v18  ;;  %v5318_v11 = vpack.c.bf16 %v5274_v14, %v5270_v21  ;;  %v4825_v7 = vmul.f32 %v7665_v35, %v4824_v54  ;;  %v5120_v25 = vpack.c.bf16 %v11995_v43, %v11986_v36 }
 0x640   : > { %v4925_v26 = vpack.c.bf16 %v4890_v23, %v4889_v59  ;;  %v4926_v34 = vpack.c.bf16 %v4892_v57, %v4891_v9  ;;  %7672 = vtanh.f32 %v5368_v48  ;;  %v5365_v0 = vunpack.c.l.bf16 %v5317_v32 }
 0x641   : > { %v5369_v49 = vunpack.c.h.bf16 %v5317_v32  ;;  %v7667_v38 = vpop.eup %7666  ;;  %v4826_v16 = vmul.f32 0.5, %v4825_v7  ;;  %v5366_v44 = vunpack.c.l.bf16 %v5318_v11  ;;  %v5370_v51 = vunpack.c.h.bf16 %v5318_v11 }
 0x642   : > { %v5022_v1 = vunpack.c.l.bf16 %v4925_v26  ;;  %v5023_v45 = vunpack.c.h.bf16 %v4925_v26  ;;  %v5024_v55 = vunpack.c.l.bf16 %v4926_v34  ;;  %v5025_v28 = vunpack.c.h.bf16 %v4926_v34 }
 0x643   : > { %7674 = vtanh.f32 %v5365_v0  ;;  %v7669_v14 = vpop.eup %7668  ;;  %v4827_v18 = vsub.f32 1.5, %v4826_v16  ;;  %v5118_v48 = vpack.c.bf16 %v11947_v30, %v11944_v41  ;;  %v5119_v23 = vpack.c.bf16 %v11971_v63, %v11968_v19 }
 0x644   : > { %v12152_v27 = vmul.f32 %v11314_v33, %v5022_v1  ;;  %v12155_v50 = vmul.f32 %v11322_v56, %v5023_v45  ;;  %v12158_v12 = vmul.f32 %v11324_v22, %v5024_v55  ;;  %v12161_v21 = vmul.f32 %v11326_v15, %v5025_v28 }
 0x645   : > { %7676 = vtanh.f32 %v5369_v49  ;;  %v7671_v59 = vpop.eup %7670  ;;  %v5475_v53 = vpack.c.bf16 %v7669_v14, %v7667_v38  ;;  %v12171_v9 = vpack.c.bf16 %v13153_v58, %v11998_v29  ;;  %v4828_v57 = vmul.f32 %v7665_v35, %v4827_v18 }
 0x646   : > { %7678 = vtanh.f32 %v5366_v44  ;;  %v7673_v52 = vpop.eup %7672  ;;  %v5207_v54 = vunpack.c.l.bf16 %v5118_v48  ;;  %v5211_v32 = vunpack.c.l.bf16 %v5120_v25  ;;  %v5208_v30 = vunpack.c.h.bf16 %v5118_v48 }
 0x647   : > { %7680 = vtanh.f32 %v5370_v51  ;;  %5714 = vmatmul.bf16.gmra.mxu1 %v5475_v53  ;;  %v5476_v41 = vpack.c.bf16 %v7673_v52, %v7671_v59  ;;  %v5212_v36 = vunpack.c.h.bf16 %v5120_v25  ;;  %v5209_v43 = vunpack.c.l.bf16 %v5119_v23 }
 0x648   : > { %v4832_v19 = vsel %vm4831_vm3, %v7665_v35, %v4828_v57  ;;  %v5275_v63 = vadd.f32 %v11538_v17, %v5207_v54  ;;  %v5279_v29 = vadd.f32 %v11538_v17, %v5211_v32  ;;  %v5213_v34 = vunpack.c.l.bf16 %v12171_v9 }
 0x649   : > { %v7675_v26 = vpop.eup %7674  ;;  %v4893_v11 = vmul.f32 %v4832_v19, %v4653_v60  ;;  %v13154_v47 = vsub.f32 %v13137_v40, %v12035_v2  ;;  %v4895_v0 = vmul.f32 %v4832_v19, %v4655_v3  ;;  %v4896_v35 = vmul.f32 %v4832_v19, %v4656_v37  ;;  %5763 = vmatmul.bf16.gmra.mxu2 %v5476_v41 }
 0x64a   : > { %v5319_v1 = vpack.c.bf16 %v5279_v29, %v5275_v63  ;;  %v5276_v45 = vadd.f32 %v11600_v10, %v5208_v30  ;;  %v5280_v42 = vadd.f32 %v11600_v10, %v5212_v36  ;;  %v5277_v60 = vadd.f32 %v11673_v20, %v5209_v43 }
 0x64b   : > { %v4894_v7 = vmul.f32 %v4832_v19, %v13154_v47  ;;  %v7677_v49 = vpop.eup %7676  ;;  %v4928_v28 = vpack.c.bf16 %v4896_v35, %v4895_v0  ;;  %v5281_v4 = vadd.f32 %v11673_v20, %v5213_v34  ;;  %v5210_v6 = vunpack.c.h.bf16 %v5119_v23 }
 0x64c   : > { %v7679_v55 = vpop.eup %7678  ;;  %v5477_v38 = vpack.c.bf16 %v7677_v49, %v7675_v26  ;;  %v5371_v16 = vunpack.c.l.bf16 %v5319_v1  ;;  %v5375_v44 = vunpack.c.h.bf16 %v5319_v1  ;;  %v5320_v2 = vpack.c.bf16 %v5280_v42, %v5276_v45 }
 0x64d   : > { %v4927_v40 = vpack.c.bf16 %v4894_v7, %v4893_v11  ;;  %v7681_v3 = vpop.eup %7680  ;;  %v5028_v14 = vunpack.c.l.bf16 %v4928_v28  ;;  %v5029_v18 = vunpack.c.h.bf16 %v4928_v28  ;;  %v5321_v23 = vpack.c.bf16 %v5281_v4, %v5277_v60 }
 0x64e   : > { %5812 = vmatmul.bf16.gmra.mxu3 %v5477_v38  ;;  %v5478_v48 = vpack.c.bf16 %v7681_v3, %v7679_v55  ;;  %7682 = vtanh.f32 %v5371_v16  ;;  %v5372_v25 = vunpack.c.l.bf16 %v5320_v2  ;;  %v5376_v59 = vunpack.c.h.bf16 %v5320_v2 }
 0x64f   : > { %v5026_v37 = vunpack.c.l.bf16 %v4927_v40  ;;  %v5027_v51 = vunpack.c.h.bf16 %v4927_v40  ;;  %v12198_v52 = vmul.f32 %v11324_v22, %v5028_v14  ;;  %v12201_v57 = vmul.f32 %v11326_v15, %v5029_v18 }
 0x650   : > { %5861 = vmatmul.bf16.gmra.mxu0 %v5478_v48  ;;  %7684 = vtanh.f32 %v5375_v44  ;;  %v5214_v54 = vunpack.c.h.bf16 %v12171_v9  ;;  %v5278_v32 = vadd.f32 %v11675_v13, %v5210_v6  ;;  %v5122_v41 = vpack.c.bf16 %v12087_v31, %v12084_v8 }
 0x651   : > { %v5094_v53 = vmul.f32 %v11314_v33, %v5026_v37  ;;  %v5095_v58 = vmul.f32 %v11322_v56, %v5027_v51  ;;  %7686 = vtanh.f32 %v5372_v25  ;;  %v5124_v56 = vpack.c.bf16 %v12118_v39, %v12115_v46 }
 0x652   : > { %v5123_v22 = vpack.c.bf16 %v12105_v24, %v12090_v61  ;;  %7688 = vtanh.f32 %v5376_v59  ;;  %v5373_v33 = vunpack.c.l.bf16 %v5321_v23  ;;  %v5377_v15 = vunpack.c.h.bf16 %v5321_v23 }
 0x653   : > { %v5282_v30 = vadd.f32 %v11675_v13, %v5214_v54  ;;  %v5215_v36 = vunpack.c.l.bf16 %v5122_v41  ;;  %v5219_v43 = vunpack.c.l.bf16 %v5124_v56  ;;  %v5216_v9 = vunpack.c.h.bf16 %v5122_v41 }
 0x654   : > { %v5220_v26 = vunpack.c.h.bf16 %v5124_v56  ;;  %v7683_v19 = vpop.eup %7682  ;;  %7690 = vtanh.f32 %v5373_v33  ;;  %v5125_v8 = vpack.c.bf16 %v12124_v5, %v12121_v62  ;;  %v5217_v31 = vunpack.c.l.bf16 %v5123_v22 }
 0x655   : > { %v5322_v63 = vpack.c.bf16 %v5282_v30, %v5278_v32  ;;  %7692 = vtanh.f32 %v5377_v15  ;;  %v5283_v46 = vadd.f32 %v11538_v17, %v5215_v36  ;;  %v5287_v61 = vadd.f32 %v11538_v17, %v5219_v43  ;;  %v5695_v43 = vpop.f32.mrf.mxu1 }
 0x656   : > { %v5284_v24 = vadd.f32 %v11600_v10, %v5216_v9  ;;  %v7685_v39 = vpop.eup %7684  ;;  %v5288_v11 = vadd.f32 %v11600_v10, %v5220_v26  ;;  %v5221_v47 = vunpack.c.l.bf16 %v5125_v8  ;;  %v5285_v49 = vadd.f32 %v11673_v20, %v5217_v31 }
 0x657   : > { %v5374_v29 = vunpack.c.l.bf16 %v5322_v63  ;;  %v5378_v34 = vunpack.c.h.bf16 %v5322_v63  ;;  %v7687_v7 = vpop.eup %7686  ;;  %v5479_v0 = vpack.c.bf16 %v7685_v39, %v7683_v19  ;;  %v5323_v35 = vpack.c.bf16 %v5287_v61, %v5283_v46 }
 0x658   : > { %v5218_v62 = vunpack.c.h.bf16 %v5123_v22  ;;  %v7689_v5 = vpop.eup %7688  ;;  %v5324_v1 = vpack.c.bf16 %v5288_v11, %v5284_v24  ;;  %v5289_v45 = vadd.f32 %v11673_v20, %v5221_v47  ;;  %v5222_v42 = vunpack.c.h.bf16 %v5125_v8 }
 0x659   : > { %7694 = vtanh.f32 %v5374_v29  ;;  %5719 = vmatmul.bf16.gmra.mxu1 %v5479_v0  ;;  %v5480_v60 = vpack.c.bf16 %v7689_v5, %v7687_v7  ;;  %v5379_v55 = vunpack.c.l.bf16 %v5323_v35  ;;  %v5383_v40 = vunpack.c.h.bf16 %v5323_v35 }
 0x65a   : > { %7696 = vtanh.f32 %v5378_v34  ;;  %v7691_v28 = vpop.eup %7690  ;;  %v5380_v38 = vunpack.c.l.bf16 %v5324_v1  ;;  %v5384_v4 = vunpack.c.h.bf16 %v5324_v1  ;;  %v5325_v3 = vpack.c.bf16 %v5289_v45, %v5285_v49  ;;  %v5744_v9 = vpop.f32.mrf.mxu2 }
 0x65b   : > { %v5286_v16 = vadd.f32 %v11675_v13, %v5218_v62  ;;  %v7693_v44 = vpop.eup %7692  ;;  %5768 = vmatmul.bf16.gmra.mxu2 %v5480_v60  ;;  %7698 = vtanh.f32 %v5379_v55  ;;  %v5290_v2 = vadd.f32 %v11675_v13, %v5222_v42  ;;  %v5126_v6 = vpack.c.bf16 %v12155_v50, %v12152_v27 }
 0x65c   : > { %v5128_v37 = vpack.c.bf16 %v5095_v58, %v5094_v53  ;;  %v5481_v51 = vpack.c.bf16 %v7693_v44, %v7691_v28  ;;  %7700 = vtanh.f32 %v5383_v40  ;;  %v5381_v14 = vunpack.c.l.bf16 %v5325_v3 }
 0x65d   : > { %v5385_v18 = vunpack.c.h.bf16 %v5325_v3  ;;  %7702 = vtanh.f32 %v5380_v38  ;;  %v5326_v48 = vpack.c.bf16 %v5290_v2, %v5286_v16  ;;  %v5223_v25 = vunpack.c.l.bf16 %v5126_v6  ;;  %v5697_v55 = vpop.f32.mrf.mxu1 }
 0x65e   : > { %v5227_v59 = vunpack.c.l.bf16 %v5128_v37  ;;  %5817 = vmatmul.bf16.gmra.mxu3 %v5481_v51  ;;  %7704 = vtanh.f32 %v5384_v4  ;;  %v5228_v54 = vunpack.c.h.bf16 %v5128_v37  ;;  %v5127_v32 = vpack.c.bf16 %v12161_v21, %v12158_v12  ;;  %v12234_v21 = vld [vmem:[%s12644_s18] ss:$0 sm:$0xff] }
 0x65f   : > { %v7695_v23 = vpop.eup %7694  ;;  %7706 = vtanh.f32 %v5381_v14  ;;  %v5224_v56 = vunpack.c.h.bf16 %v5126_v6  ;;  %v5382_v50 = vunpack.c.l.bf16 %v5326_v48  ;;  %v5386_v53 = vunpack.c.h.bf16 %v5326_v48 }
 0x660   : > { %v7697_v41 = vpop.eup %7696  ;;  %v5295_v58 = vadd.f32 %v11538_v17, %v5227_v59  ;;  %7708 = vtanh.f32 %v5385_v18  ;;  %v5291_v33 = vadd.f32 %v11538_v17, %v5223_v25  ;;  %v5296_v15 = vadd.f32 %v11600_v10, %v5228_v54 }
 0x661   : > { %v5482_v27 = vpack.c.bf16 %v7697_v41, %v7695_v23  ;;  %v7699_v22 = vpop.eup %7698  ;;  %v5129_v30 = vpack.c.bf16 %v12201_v57, %v12198_v52  ;;  %v5225_v12 = vunpack.c.l.bf16 %v5127_v32  ;;  %v5292_v63 = vadd.f32 %v11600_v10, %v5224_v56 }
 0x662   : > { %v7701_v36 = vpop.eup %7700  ;;  %v5327_v19 = vpack.c.bf16 %v5295_v58, %v5291_v33  ;;  %7710 = vtanh.f32 %v5382_v50  ;;  %v5226_v39 = vunpack.c.h.bf16 %v5127_v32  ;;  %v5696_v29 = vadd.f32 %v12234_v21, %v5695_v43  ;;  %v5746_v40 = vpop.f32.mrf.mxu2 }
 0x663   : > { %5866 = vmatmul.bf16.gmra.mxu0 %v5482_v27  ;;  %v7703_v26 = vpop.eup %7702  ;;  %v5229_v17 = vunpack.c.l.bf16 %v5129_v30  ;;  %v5230_v31 = vunpack.c.h.bf16 %v5129_v30  ;;  %v5483_v52 = vpack.c.bf16 %v7701_v36, %v7699_v22  ;;  %7712 = vtanh.f32 %v5386_v53  ;;  %v5842_v34 = vpop.f32.mrf.mxu0 }
 0x664   : > { %v7705_v8 = vpop.eup %7704  ;;  %v5328_v57 = vpack.c.bf16 %v5296_v15, %v5292_v63  ;;  %v5293_v24 = vadd.f32 %v11673_v20, %v5225_v12  ;;  %v5387_v7 = vunpack.c.l.bf16 %v5327_v19  ;;  %v5391_v10 = vunpack.c.h.bf16 %v5327_v19 }
 0x665   : > { %v7707_v46 = vpop.eup %7706  ;;  %v5297_v61 = vadd.f32 %v11673_v20, %v5229_v17  ;;  %v5484_v47 = vpack.c.bf16 %v7705_v8, %v7703_v26  ;;  %v5298_v35 = vadd.f32 %v11675_v13, %v5230_v31  ;;  %v5745_v49 = vadd.f32 %v5744_v9, %v5696_v29 }
 0x666   : > { %v7709_v11 = vpop.eup %7708  ;;  %v5793_v62 = vpop.f32.mrf.mxu3  ;;  %v5388_v5 = vunpack.c.l.bf16 %v5328_v57  ;;  %v5392_v42 = vunpack.c.h.bf16 %v5328_v57  ;;  %v5294_v20 = vadd.f32 %v11675_v13, %v5226_v39  ;;  %7714 = vtanh.f32 %v5387_v7 }
 0x667   : > { %v5329_v0 = vpack.c.bf16 %v5297_v61, %v5293_v24  ;;  %v5485_v45 = vpack.c.bf16 %v7709_v11, %v7707_v46  ;;  %v5794_v60 = vadd.f32 %v5793_v62, %v5745_v49  ;;  %v5698_v38 = vadd.f32 %v12234_v21, %v5697_v55 }
 0x668   : > { %v7711_v1 = vpop.eup %7710  ;;  %7716 = vtanh.f32 %v5391_v10  ;;  %v5330_v3 = vpack.c.bf16 %v5298_v35, %v5294_v20  ;;  %v7240_v10 = vld [vmem:[%s12647_s21 + $0x38] sm:$0xff] }
 0x669   : > { %5724 = vmatmul.bf16.gmra.mxu1 %v5483_v52  ;;  %v7713_v28 = vpop.eup %7712  ;;  %v5389_v4 = vunpack.c.l.bf16 %v5329_v0  ;;  %v12243_v16 = vadd.f32 %v5842_v34, %v5794_v60  ;;  %7718 = vtanh.f32 %v5388_v5  ;;  %v5393_v44 = vunpack.c.h.bf16 %v5329_v0 }
 0x66a   : > { %v5747_v2 = vadd.f32 %v5746_v40, %v5698_v38  ;;  %v5486_v6 = vpack.c.bf16 %v7713_v28, %v7711_v1  ;;  %7720 = vtanh.f32 %v5392_v42  ;;  %v5390_v37 = vunpack.c.l.bf16 %v5330_v3  ;;  %v5700_v23 = vpop.f32.mrf.mxu1  ;;  %6420 = vmatpush.bf16.msra.mxu1 %v7240_v10 }
 0x66b   : > { %5773 = vmatmul.bf16.gmra.mxu2 %v5484_v47  ;;  %5882 = vadd.xlane.f32.xlu2 %v12243_v16  ;;  %v5930_v13 = vmul.f32 %v12243_v16, %v12243_v16  ;;  %7722 = vtanh.f32 %v5389_v4  ;;  %v5844_v51 = vpop.f32.mrf.mxu0  ;;  %v5394_v48 = vunpack.c.h.bf16 %v5330_v3  ;;  %v5701_v53 = vadd.f32 %v12234_v21, %v5700_v23 }
 0x66c   : > { %v7715_v18 = vpop.eup %7714  ;;  %7724 = vtanh.f32 %v5393_v44 }
 0x66d   : > { %5946 = vadd.xlane.f32.xlu1 %v5930_v13  ;;  %7726 = vtanh.f32 %v5390_v37 }
 0x66e   : > { %5822 = vmatmul.bf16.gmra.mxu3 %v5485_v45  ;;  %v5795_v14 = vpop.f32.mrf.mxu3  ;;  %v7717_v59 = vpop.eup %7716  ;;  %7728 = vtanh.f32 %v5394_v48 }
 0x66f   : > { %v5796_v25 = vadd.f32 %v5795_v14, %v5747_v2  ;;  %v7719_v54 = vpop.eup %7718  ;;  %v5487_v56 = vpack.c.bf16 %v7717_v59, %v7715_v18  ;;  %v7239_v14 = vld [vmem:[%s12647_s21 + $0x30] sm:$0xff] }
 0x670   : > { %v7721_v41 = vpop.eup %7720  ;;  %6421 = vmatpush.bf16.msra.mxu1 %v7239_v14 }
 0x671   : > { %v12248_v32 = vadd.f32 %v5844_v51, %v5796_v25  ;;  %v7723_v50 = vpop.eup %7722  ;;  %v5488_v22 = vpack.c.bf16 %v7721_v41, %v7719_v54 }
 0x672   : > { %v7725_v58 = vpop.eup %7724  ;;  %v5702_v19 = vpop.f32.mrf.mxu1 }
 0x673   : > { %5871 = vmatmul.bf16.gmra.mxu0 %v5486_v6  ;;  %5884 = vadd.xlane.f32.xlu0 %v12248_v32  ;;  %v5931_v27 = vmul.f32 %v12248_v32, %v12248_v32  ;;  %v7727_v30 = vpop.eup %7726  ;;  %v5489_v36 = vpack.c.bf16 %v7725_v58, %v7723_v50  ;;  %v5703_v8 = vadd.f32 %v12234_v21, %v5702_v19  ;;  %v7238_v58 = vld [vmem:[%s12647_s21 + $0x28] sm:$0xff] }
 0x674   : > { %v5749_v33 = vpop.f32.mrf.mxu2  ;;  %v5847_v12 = vpop.f32.mrf.mxu0  ;;  %6422 = vmatpush.bf16.msra.mxu1 %v7238_v58 }
 0x675   : > { %5948 = vadd.xlane.f32.xlu2 %v5931_v27  ;;  %v5750_v15 = vadd.f32 %v5749_v33, %v5701_v53  ;;  %v7729_v9 = vpop.eup %7728 }
 0x676   : > { %v5490_v17 = vpack.c.bf16 %v7729_v9, %v7727_v30 }
 0x677   : > { %v5798_v43 = vpop.f32.mrf.mxu3 }
 0x678   : > { %v5799_v26 = vadd.f32 %v5798_v43, %v5750_v15 }
 0x679   : > { %5729 = vmatmul.bf16.gmra.mxu1 %v5487_v56 }
 0x67a   : > { %v12254_v63 = vadd.f32 %v5847_v12, %v5799_v26 }
 0x67b   : > { %5778 = vmatmul.bf16.gmra.mxu2 %v5488_v22 }
 0x67c   : > { %5886 = vadd.xlane.f32.xlu0 %v12254_v63  ;;  %v5751_v31 = vpop.f32.mrf.mxu2  ;;  %v5932_v46 = vmul.f32 %v12254_v63, %v12254_v63  ;;  %v5849_v24 = vpop.f32.mrf.mxu0 }
 0x67d   : > { %v5752_v52 = vadd.f32 %v5751_v31, %v5703_v8 }
 0x67e   : > { %5827 = vmatmul.bf16.gmra.mxu3 %v5489_v36  ;;  %5950 = vadd.xlane.f32.xlu2 %v5932_v46 }
 0x67f   : > { %v5800_v57 = vpop.f32.mrf.mxu3 }
 0x680   : > { %v5801_v61 = vadd.f32 %v5800_v57, %v5752_v52  ;;  %v7237_v52 = vld [vmem:[%s12647_s21 + $0x20] sm:$0xff] }
 0x681   : > { %6423 = vmatpush.bf16.msra.mxu1 %v7237_v52 }
 0x682   : > { %v12260_v39 = vadd.f32 %v5849_v24, %v5801_v61 }
 0x683   : > { %5876 = vmatmul.bf16.gmra.mxu0 %v5490_v17 }
 0x684   : > { %5888 = vadd.xlane.f32.xlu1 %v12260_v39  ;;  %v5933_v29 = vmul.f32 %v12260_v39, %v12260_v39 }
 0x686   : > { %5952 = vadd.xlane.f32.xlu0 %v5933_v29 }
 0x68b   : > { %v5705_v34 = vpop.f32.mrf.mxu1 }
 0x68c   : > { %v5706_v11 = vadd.f32 %v12234_v21, %v5705_v34 }
 0x693   : > { %v5707_v35 = vpop.f32.mrf.mxu1 }
 0x694   : > { %v5754_v47 = vpop.f32.mrf.mxu2  ;;  %v5708_v1 = vadd.f32 %v12234_v21, %v5707_v35 }
 0x695   : > { %v5755_v7 = vadd.f32 %v5754_v47, %v5706_v11 }
 0x698   : > { %v5852_v49 = vpop.f32.mrf.mxu0 }
 0x699   : > { %v5803_v0 = vpop.f32.mrf.mxu3 }
 0x69a   : > { %v5804_v62 = vadd.f32 %v5803_v0, %v5755_v7 }
 0x69c   : > { %v12269_v5 = vadd.f32 %v5852_v49, %v5804_v62  ;;  %v5756_v45 = vpop.f32.mrf.mxu2 }
 0x69d   : > { %v5757_v42 = vadd.f32 %v5756_v45, %v5708_v1 }
 0x69e   : > { %5890 = vadd.xlane.f32.xlu1 %v12269_v5  ;;  %v5934_v20 = vmul.f32 %v12269_v5, %v12269_v5 }
 0x6a0   : > { %5954 = vadd.xlane.f32.xlu0 %v5934_v20  ;;  %v5854_v40 = vpop.f32.mrf.mxu0 }
 0x6a1   : > { %v5805_v60 = vpop.f32.mrf.mxu3 }
 0x6a2   : > { %v5806_v55 = vadd.f32 %v5805_v60, %v5757_v42 }
 0x6a4   : > { %v12275_v28 = vadd.f32 %v5854_v40, %v5806_v55  ;;  %v7236_v55 = vld [vmem:[%s12647_s21 + $0x18] sm:$0xff] }
 0x6a5   : > { %v5710_v4 = vpop.f32.mrf.mxu1  ;;  %6424 = vmatpush.bf16.msra.mxu1 %v7236_v55 }
 0x6a6   : > { %5892 = vadd.xlane.f32.xlu2 %v12275_v28  ;;  %v5935_v38 = vmul.f32 %v12275_v28, %v12275_v28  ;;  %v5711_v3 = vadd.f32 %v12234_v21, %v5710_v4 }
 0x6a8   : > { %5956 = vadd.xlane.f32.xlu1 %v5935_v38 }
 0x6ad   : > { %v5759_v44 = vpop.f32.mrf.mxu2  ;;  %v5712_v6 = vpop.f32.mrf.mxu1 }
 0x6ae   : > { %v5760_v2 = vadd.f32 %v5759_v44, %v5711_v3  ;;  %v5713_v48 = vadd.f32 %v12234_v21, %v5712_v6  ;;  %v13155_v6 = vld [vmem:[#allocation2_spill] sm:$0xff] }
 0x6af   : > { %v5857_v13 = vpop.f32.mrf.mxu0 }
 0x6b0   : > { %v5808_v37 = vpop.f32.mrf.mxu3 }
 0x6b1   : > { %v5809_v51 = vadd.f32 %v5808_v37, %v5760_v2 }
 0x6b3   : > { %v12284_v18 = vadd.f32 %v5857_v13, %v5809_v51 }
 0x6b5   : > { %v5761_v25 = vpop.f32.mrf.mxu2  ;;  %5894 = vadd.xlane.f32.xlu2 %v12284_v18  ;;  %v5936_v23 = vmul.f32 %v12284_v18, %v12284_v18 }
 0x6b6   : > { %v5762_v59 = vadd.f32 %v5761_v25, %v5713_v48 }
 0x6b7   : > { %5958 = vadd.xlane.f32.xlu1 %v5936_v23  ;;  %v5859_v56 = vpop.f32.mrf.mxu0 }
 0x6b8   : > { %v5810_v54 = vpop.f32.mrf.mxu3 }
 0x6b9   : > { %v5811_v41 = vadd.f32 %v5810_v54, %v5762_v59 }
 0x6bb   : > { %v12290_v27 = vadd.f32 %v5859_v56, %v5811_v41  ;;  %v7235_v41 = vld [vmem:[%s12647_s21 + $0x10] sm:$0xff] }
 0x6bc   : > { %6425 = vmatpush.bf16.msra.mxu1 %v7235_v41 }
 0x6bd   : > { %5896 = vadd.xlane.f32.xlu0 %v12290_v27  ;;  %v5937_v50 = vmul.f32 %v12290_v27, %v12290_v27 }
 0x6bf   : > { %5960 = vadd.xlane.f32.xlu2 %v5937_v50 }
 0x6c4   : > { %v5715_v53 = vpop.f32.mrf.mxu1 }
 0x6c5   : > { %v5716_v22 = vadd.f32 %v12234_v21, %v5715_v53 }
 0x6cc   : > { %v5764_v33 = vpop.f32.mrf.mxu2  ;;  %v5717_v15 = vpop.f32.mrf.mxu1 }
 0x6cd   : > { %v5862_v30 = vpop.f32.mrf.mxu0  ;;  %v5765_v36 = vadd.f32 %v5764_v33, %v5716_v22  ;;  %v5718_v26 = vadd.f32 %v12234_v21, %v5717_v15 }
 0x6d1   : > { %v5813_v12 = vpop.f32.mrf.mxu3 }
 0x6d2   : > { %v5814_v43 = vadd.f32 %v5813_v12, %v5765_v36 }
 0x6d4   : > { %v12299_v9 = vadd.f32 %v5862_v30, %v5814_v43  ;;  %v5766_v19 = vpop.f32.mrf.mxu2 }
 0x6d5   : > { %v5864_v17 = vpop.f32.mrf.mxu0  ;;  %v5767_v8 = vadd.f32 %v5766_v19, %v5718_v26 }
 0x6d6   : > { %5898 = vadd.xlane.f32.xlu0 %v12299_v9  ;;  %v5938_v31 = vmul.f32 %v12299_v9, %v12299_v9  ;;  %v5720_v46 = vpop.f32.mrf.mxu1 }
 0x6d7   : > { %v5721_v29 = vadd.f32 %v12234_v21, %v5720_v46 }
 0x6d8   : > { %5962 = vadd.xlane.f32.xlu2 %v5938_v31 }
 0x6d9   : > { %v5815_v57 = vpop.f32.mrf.mxu3 }
 0x6da   : > { %v5816_v61 = vadd.f32 %v5815_v57, %v5767_v8 }
 0x6dc   : > { %v12308_v24 = vadd.f32 %v5864_v17, %v5816_v61 }
 0x6de   : > { %5900 = vadd.xlane.f32.xlu1 %v12308_v24  ;;  %v5939_v34 = vmul.f32 %v12308_v24, %v12308_v24  ;;  %v5769_v11 = vpop.f32.mrf.mxu2  ;;  %v5722_v47 = vpop.f32.mrf.mxu1 }
 0x6df   : > { %v5770_v10 = vadd.f32 %v5769_v11, %v5721_v29  ;;  %v5723_v62 = vadd.f32 %v12234_v21, %v5722_v47  ;;  %v5883_v3 = vpop.xlane.xlu2 %5882 }
 0x6e0   : > { %v5867_v7 = vpop.f32.mrf.mxu0  ;;  %5964 = vadd.xlane.f32.xlu0 %v5939_v34  ;;  %v5947_v44 = vpop.xlane.xlu1 %5946  ;;  %v12327_v13 = vmul.f32 %v5883_v3, %v13155_v6 }
 0x6e1   : > { %v5818_v0 = vpop.f32.mrf.mxu3  ;;  %v5978_v37 = vmul.f32 %v5947_v44, %v13155_v6 }
 0x6e2   : > { %v5819_v35 = vadd.f32 %v5818_v0, %v5770_v10  ;;  %v5994_v23 = vmul.f32 %v12327_v13, %v12327_v13 }
 0x6e4   : > { %v12314_v49 = vadd.f32 %v5867_v7, %v5819_v35  ;;  %v6010_v50 = vsub.f32 %v5978_v37, %v5994_v23  ;;  %v7234_v7 = vld [vmem:[%s12647_s21 + $0x8] sm:$0xff] }
 0x6e5   : > { %6426 = vmatpush.bf16.msra.mxu1 %v7234_v7 }
 0x6e6   : > { %5902 = vadd.xlane.f32.xlu1 %v12314_v49  ;;  %v5771_v1 = vpop.f32.mrf.mxu2  ;;  %v5940_v45 = vmul.f32 %v12314_v49, %v12314_v49  ;;  %v5725_v42 = vpop.f32.mrf.mxu1  ;;  %v6026_v22 = vmax.f32 %v6010_v50, 0.0 }
 0x6e7   : > { %v5772_v60 = vadd.f32 %v5771_v1, %v5723_v62  ;;  %v5726_v2 = vadd.f32 %v12234_v21, %v5725_v42  ;;  %v5885_v54 = vpop.xlane.xlu0 %5884 }
 0x6e8   : > { %v5869_v20 = vpop.f32.mrf.mxu0  ;;  %5966 = vadd.xlane.f32.xlu0 %v5940_v45  ;;  %v12339_v53 = vmul.f32 %v5885_v54, %v13155_v6  ;;  %v5949_v30 = vpop.xlane.xlu2 %5948  ;;  %v12346_v12 = vadd.f32 1e-05, %v6026_v22 }
 0x6e9   : > { %v5820_v40 = vpop.f32.mrf.mxu3  ;;  %v5979_v43 = vmul.f32 %v5949_v30, %v13155_v6 }
 0x6ea   : > { %v5821_v38 = vadd.f32 %v5820_v40, %v5772_v60  ;;  %v5995_v15 = vmul.f32 %v12339_v53, %v12339_v53  ;;  %7730 = vrsqrt.f32 %v12346_v12  ;;  %vm6080_vm5 = vweird.f32 %v12346_v12 }
 0x6ec   : > { %v12323_v4 = vadd.f32 %v5869_v20, %v5821_v38  ;;  %v6011_v46 = vsub.f32 %v5979_v43, %v5995_v15 }
 0x6ee   : > { %5904 = vadd.xlane.f32.xlu2 %v12323_v4  ;;  %v5774_v51 = vpop.f32.mrf.mxu2  ;;  %v5941_v14 = vmul.f32 %v12323_v4, %v12323_v4  ;;  %v5727_v48 = vpop.f32.mrf.mxu1  ;;  %v6027_v34 = vmax.f32 %v6011_v46, 0.0 }
 0x6ef   : > { %v5775_v59 = vadd.f32 %v5774_v51, %v5726_v2  ;;  %v5728_v36 = vadd.f32 %v12234_v21, %v5727_v48  ;;  %v5887_v52 = vpop.xlane.xlu0 %5886 }
 0x6f0   : > { %v5872_v25 = vpop.f32.mrf.mxu0  ;;  %5968 = vadd.xlane.f32.xlu1 %v5941_v14  ;;  %v12354_v61 = vmul.f32 %v5887_v52, %v13155_v6  ;;  %v6059_v0 = vadd.f32 1e-05, %v6027_v34  ;;  %v12366_v1 = vpop.eup %7730 }
 0x6f1   : > { %v5823_v56 = vpop.f32.mrf.mxu3  ;;  %v5951_v35 = vpop.xlane.xlu2 %5950  ;;  %v6075_v55 = vmul.f32 %v12366_v1, %v12346_v12  ;;  %vm6081_vm4 = vweird.f32 %v12366_v1 }
 0x6f2   : > { %v5824_v58 = vadd.f32 %v5823_v56, %v5775_v59  ;;  %v5996_v11 = vmul.f32 %v12354_v61, %v12354_v61  ;;  %v5980_v42 = vmul.f32 %v5951_v35, %v13155_v6  ;;  %7732 = vrsqrt.f32 %v6059_v0  ;;  %vm6082_vm7 = vmor %vm6080_vm5, %vm6081_vm4 }
 0x6f3   : > { %v6076_v3 = vmul.f32 %v12366_v1, %v6075_v55  ;;  %vm6090_vm8 = vweird.f32 %v6059_v0  ;;  %v6042_v35 = vsub.f32 %v12243_v16, %v12327_v13 }
 0x6f4   : > { %v12341_v33 = vadd.f32 %v5872_v25, %v5824_v58  ;;  %v6012_v38 = vsub.f32 %v5980_v42, %v5996_v11 }
 0x6f5   : > { %v6077_v23 = vmul.f32 0.5, %v6076_v3 }
 0x6f6   : > { %5906 = vadd.xlane.f32.xlu2 %v12341_v33  ;;  %v5776_v26 = vpop.f32.mrf.mxu2  ;;  %v5942_v19 = vmul.f32 %v12341_v33, %v12341_v33  ;;  %v5730_v31 = vpop.f32.mrf.mxu1  ;;  %v6028_v14 = vmax.f32 %v6012_v38, 0.0 }
 0x6f7   : > { %v5777_v8 = vadd.f32 %v5776_v26, %v5728_v36  ;;  %v5889_v47 = vpop.xlane.xlu1 %5888  ;;  %v5731_v45 = vadd.f32 %v12234_v21, %v5730_v31  ;;  %v6078_v22 = vsub.f32 1.5, %v6077_v23 }
 0x6f8   : > { %v5874_v17 = vpop.f32.mrf.mxu0  ;;  %5970 = vadd.xlane.f32.xlu1 %v5942_v19  ;;  %v12364_v62 = vmul.f32 %v5889_v47, %v13155_v6  ;;  %v12379_v54 = vadd.f32 1e-05, %v6028_v14  ;;  %v7733_v56 = vpop.eup %7732 }
 0x6f9   : > { %v5825_v57 = vpop.f32.mrf.mxu3  ;;  %v5953_v2 = vpop.xlane.xlu0 %5952  ;;  %v6085_v15 = vmul.f32 %v7733_v56, %v6059_v0  ;;  %v6079_v31 = vmul.f32 %v12366_v1, %v6078_v22  ;;  %vm6091_vm6 = vweird.f32 %v7733_v56  ;;  %v12411_v0 = vld [vmem:[%s12645_s19] ss:$0 sm:$0xff] }
 0x6fa   : > { %v5826_v29 = vadd.f32 %v5825_v57, %v5777_v8  ;;  %v5997_v44 = vmul.f32 %v12364_v62, %v12364_v62  ;;  %v5981_v48 = vmul.f32 %v5953_v2, %v13155_v6  ;;  %7734 = vrsqrt.f32 %v12379_v54  ;;  %vm6092_vm9 = vmor %vm6090_vm8, %vm6091_vm6 }
 0x6fb   : > { %v6086_v19 = vmul.f32 %v7733_v56, %v6085_v15  ;;  %v6083_v11 = vsel %vm6082_vm7, %v12366_v1, %v6079_v31  ;;  %vm6100_vm12 = vweird.f32 %v12379_v54 }
 0x6fc   : > { %v12361_v10 = vadd.f32 %v5874_v17, %v5826_v29  ;;  %v6013_v41 = vsub.f32 %v5981_v48, %v5997_v44  ;;  %v6234_v1 = vmul.f32 %v6083_v11, %v6042_v35  ;;  %v6044_v35 = vsub.f32 %v12254_v63, %v12354_v61 }
 0x6fe   : > { %5908 = vadd.xlane.f32.xlu0 %v12361_v10  ;;  %v5779_v20 = vpop.f32.mrf.mxu2  ;;  %v5943_v60 = vmul.f32 %v12361_v10, %v12361_v10  ;;  %v5732_v59 = vpop.f32.mrf.mxu1  ;;  %v6029_v43 = vmax.f32 %v6013_v41, 0.0 }
 0x6ff   : > { %v5780_v40 = vadd.f32 %v5779_v20, %v5731_v45  ;;  %v5733_v58 = vadd.f32 %v12234_v21, %v5732_v59  ;;  %v6087_v21 = vmul.f32 0.5, %v6086_v19  ;;  %v6043_v45 = vsub.f32 %v12248_v32, %v12339_v53  ;;  %v12419_v32 = vld [vmem:[%s12646_s20] ss:$0 sm:$0xff] }
 0x700   : > { %5972 = vadd.xlane.f32.xlu2 %v5943_v60  ;;  %v5877_v37 = vpop.f32.mrf.mxu0  ;;  %v12388_v17 = vadd.f32 1e-05, %v6029_v43  ;;  %v12393_v52 = vpop.eup %7734  ;;  %v6253_v53 = vmul.f32 %v12411_v0, %v6234_v1 }
 0x701   : > { %v5828_v51 = vpop.f32.mrf.mxu3  ;;  %v6088_v29 = vsub.f32 1.5, %v6087_v21  ;;  %v6095_v7 = vmul.f32 %v12393_v52, %v12379_v54  ;;  %vm6101_vm10 = vweird.f32 %v12393_v52  ;;  %v6045_v54 = vsub.f32 %v12260_v39, %v12364_v62 }
 0x702   : > { %v5829_v25 = vadd.f32 %v5828_v51, %v5780_v40  ;;  %7736 = vrsqrt.f32 %v12388_v17  ;;  %v7233_v51 = vld [vmem:[%s12647_s21] sm:$0xff]  ;;  %v6272_v59 = vadd.f32 %v12419_v32, %v6253_v53  ;;  %vm6102_vm13 = vmor %vm6100_vm12, %vm6101_vm10  ;;  %vm6110_vm14 = vweird.f32 %v12388_v17 }
 0x703   : > { %v6089_v47 = vmul.f32 %v7733_v56, %v6088_v29  ;;  %v6096_v16 = vmul.f32 %v12393_v52, %v6095_v7  ;;  %6427 = vmatpush.bf16.msra.mxu1 %v7233_v51 }
 0x704   : > { %v12381_v50 = vadd.f32 %v5877_v37, %v5829_v25 }
 0x705   : > { %v6093_v42 = vsel %vm6092_vm9, %v7733_v56, %v6089_v47  ;;  %v6097_v44 = vmul.f32 0.5, %v6096_v16 }
 0x706   : > { %5910 = vadd.xlane.f32.xlu0 %v12381_v50  ;;  %v5781_v30 = vpop.f32.mrf.mxu2  ;;  %v5944_v36 = vmul.f32 %v12381_v50, %v12381_v50  ;;  %v6235_v60 = vmul.f32 %v6093_v42, %v6043_v45 }
 0x707   : > { %v5782_v26 = vadd.f32 %v5781_v30, %v5733_v58  ;;  %v6098_v23 = vsub.f32 1.5, %v6097_v44  ;;  %v13156_v58 = vld [vmem:[#allocation20_spill] sm:$0xff] }
 0x708   : > { %5974 = vadd.xlane.f32.xlu2 %v5944_v36  ;;  %v5879_v57 = vpop.f32.mrf.mxu0  ;;  %v7737_v20 = vpop.eup %7736  ;;  %v6254_v55 = vmul.f32 %v12411_v0, %v6235_v60  ;;  %v13157_v36 = vld [vmem:[#allocation23_spill] sm:$0xff] }
 0x709   : > { %v5830_v8 = vpop.f32.mrf.mxu3  ;;  %v6105_v13 = vmul.f32 %v7737_v20, %v12388_v17  ;;  %v6288_v43 = vadd.f32 %v6272_v59, %v13157_v36  ;;  %v6099_v19 = vmul.f32 %v12393_v52, %v6098_v23  ;;  %vm6111_vm11 = vweird.f32 %v7737_v20 }
 0x70a   : > { %v5831_v46 = vadd.f32 %v5830_v8, %v5782_v26  ;;  %v6273_v48 = vadd.f32 %v12419_v32, %v6254_v55  ;;  %vm6112_vm15 = vmor %vm6110_vm14, %vm6111_vm11 }
 0x70b   : > { %v6106_v40 = vmul.f32 %v7737_v20, %v6105_v13  ;;  %v6103_v47 = vsel %vm6102_vm13, %v12393_v52, %v6099_v19 }
 0x70c   : > { %v12396_v34 = vadd.f32 %v5879_v57, %v5831_v46  ;;  %v6289_v22 = vadd.f32 %v6273_v48, %v13156_v58  ;;  %v6236_v1 = vmul.f32 %v6103_v47, %v6044_v35 }
 0x70d   : > { %v6107_v2 = vmul.f32 0.5, %v6106_v40 }
 0x70e   : > { %5912 = vadd.xlane.f32.xlu1 %v12396_v34  ;;  %v5945_v12 = vmul.f32 %v12396_v34, %v12396_v34  ;;  %v6304_v29 = vpack.c.bf16 %v6289_v22, %v6288_v43  ;;  %v6255_v52 = vmul.f32 %v12411_v0, %v6236_v1  ;;  %v13159_v22 = vld [vmem:[#allocation22_spill] sm:$0xff] }
 0x70f   : > { %v6108_v41 = vsub.f32 1.5, %v6107_v2 }
 0x710   : > { %5976 = vadd.xlane.f32.xlu0 %v5945_v12  ;;  %v6312_v45 = vunpack.c.l.bf16 %v6304_v29  ;;  %v6313_v42 = vunpack.c.h.bf16 %v6304_v29  ;;  %v6274_v39 = vadd.f32 %v12419_v32, %v6255_v52 }
 0x711   : > { %v5891_v38 = vpop.xlane.xlu1 %5890  ;;  %v6109_v8 = vmul.f32 %v7737_v20, %v6108_v41 }
 0x712   : > { %v12423_v3 = vmul.f32 %v5891_v38, %v13155_v6 }
 0x713   : > { %v5955_v37 = vpop.xlane.xlu0 %5954  ;;  %v6113_v7 = vsel %vm6112_vm15, %v7737_v20, %v6109_v8 }
 0x714   : > { %v5998_v14 = vmul.f32 %v12423_v3, %v12423_v3  ;;  %v5982_v25 = vmul.f32 %v5955_v37, %v13155_v6  ;;  %v6237_v60 = vmul.f32 %v6113_v7, %v6045_v54 }
 0x716   : > { %v6014_v56 = vsub.f32 %v5982_v25, %v5998_v14  ;;  %v6256_v20 = vmul.f32 %v12411_v0, %v6237_v60 }
 0x718   : > { %v6030_v15 = vmax.f32 %v6014_v56, 0.0  ;;  %v6275_v62 = vadd.f32 %v12419_v32, %v6256_v20  ;;  %v13158_v56 = vld [vmem:[#allocation25_spill] sm:$0xff] }
 0x719   : > { %v5893_v30 = vpop.xlane.xlu2 %5892  ;;  %v6290_v58 = vadd.f32 %v6274_v39, %v13158_v56  ;;  %v13161_v39 = vld [vmem:[#allocation24_spill] sm:$0xff] }
 0x71a   : > { %v12437_v26 = vmul.f32 %v5893_v30, %v13155_v6  ;;  %v6062_v31 = vadd.f32 1e-05, %v6030_v15  ;;  %v6291_v15 = vadd.f32 %v6275_v62, %v13159_v22  ;;  %v6046_v30 = vsub.f32 %v12269_v5, %v12423_v3 }
 0x71b   : > { %v5957_v21 = vpop.xlane.xlu1 %5956 }
 0x71c   : > { %v5999_v46 = vmul.f32 %v12437_v26, %v12437_v26  ;;  %v5983_v57 = vmul.f32 %v5957_v21, %v13155_v6  ;;  %7738 = vrsqrt.f32 %v6062_v31  ;;  %vm6120_vm1 = vweird.f32 %v6062_v31 }
 0x71d   : > { %7740 = vtanh.f32 %v6312_v45  ;;  %v6305_v19 = vpack.c.bf16 %v6291_v15, %v6290_v58  ;;  %v6047_v35 = vsub.f32 %v12275_v28, %v12437_v26 }
 0x71e   : > { %v6015_v11 = vsub.f32 %v5983_v57, %v5999_v46 }
 0x71f   : > { %v6314_v57 = vunpack.c.l.bf16 %v6305_v19  ;;  %v6315_v29 = vunpack.c.h.bf16 %v6305_v19 }
 0x720   : > { %v6031_v12 = vmax.f32 %v6015_v11, 0.0 }
 0x722   : > { %v6063_v16 = vadd.f32 1e-05, %v6031_v12  ;;  %v7739_v13 = vpop.eup %7738 }
 0x723   : > { %v6115_v17 = vmul.f32 %v7739_v13, %v6062_v31  ;;  %v7741_v61 = vpop.eup %7740  ;;  %vm6121_vm0 = vweird.f32 %v7739_v13 }
 0x724   : > { %7742 = vrsqrt.f32 %v6063_v16  ;;  %vm6122_vm2 = vmor %vm6120_vm1, %vm6121_vm0  ;;  %vm6130_vm4 = vweird.f32 %v6063_v16 }
 0x725   : > { %7744 = vtanh.f32 %v6313_v42  ;;  %v6116_v55 = vmul.f32 %v7739_v13, %v6115_v17 }
 0x726   : > { %7746 = vtanh.f32 %v6314_v57 }
 0x727   : > { %v6117_v63 = vmul.f32 0.5, %v6116_v55 }
 0x728   : > { %v5895_v53 = vpop.xlane.xlu2 %5894 }
 0x729   : > { %v6118_v38 = vsub.f32 1.5, %v6117_v63  ;;  %v12455_v37 = vmul.f32 %v5895_v53, %v13155_v6 }
 0x72a   : > { %v7743_v40 = vpop.eup %7742  ;;  %v5959_v14 = vpop.xlane.xlu1 %5958 }
 0x72b   : > { %v7745_v44 = vpop.eup %7744  ;;  %v6125_v2 = vmul.f32 %v7743_v40, %v6063_v16  ;;  %v6119_v51 = vmul.f32 %v7739_v13, %v6118_v38  ;;  %v6000_v59 = vmul.f32 %v12455_v37, %v12455_v37  ;;  %v5984_v23 = vmul.f32 %v5959_v14, %v13155_v6 }
 0x72c   : > { %v6344_v48 = vpack.c.bf16 %v7745_v44, %v7741_v61  ;;  %vm6131_vm3 = vweird.f32 %v7743_v40  ;;  %v7747_v28 = vpop.eup %7746  ;;  %v13160_v61 = vld [vmem:[#allocation27_spill] sm:$0xff]  ;;  %v6048_v22 = vsub.f32 %v12284_v18, %v12455_v37 }
 0x72d   : > { %v6126_v25 = vmul.f32 %v7743_v40, %v6125_v2  ;;  %v6123_v41 = vsel %vm6122_vm2, %v7739_v13, %v6119_v51  ;;  %v6016_v43 = vsub.f32 %v5984_v23, %v6000_v59  ;;  %vm6132_vm5 = vmor %vm6130_vm4, %vm6131_vm3 }
 0x72e   : > { %6428 = vmatmul.bf16.vlgmr.msra.gmra.mxu1 %v6344_v48  ;;  %v6238_v8 = vmul.f32 %v6123_v41, %v6046_v30 }
 0x72f   : > { %v6127_v36 = vmul.f32 0.5, %v6126_v25  ;;  %v6032_v21 = vmax.f32 %v6016_v43, 0.0 }
 0x730   : > { %v5897_v46 = vpop.xlane.xlu0 %5896  ;;  %v6257_v3 = vmul.f32 %v12411_v0, %v6238_v8 }
 0x731   : > { %v6128_v31 = vsub.f32 1.5, %v6127_v36  ;;  %v6064_v47 = vadd.f32 1e-05, %v6032_v21  ;;  %v12465_v7 = vmul.f32 %v5897_v46, %v13155_v6 }
 0x732   : > { %v5961_v5 = vpop.xlane.xlu2 %5960  ;;  %v6276_v16 = vadd.f32 %v12419_v32, %v6257_v3 }
 0x733   : > { %v6129_v11 = vmul.f32 %v7743_v40, %v6128_v31  ;;  %7748 = vrsqrt.f32 %v6064_v47  ;;  %v6001_v12 = vmul.f32 %v12465_v7, %v12465_v7  ;;  %v5985_v42 = vmul.f32 %v5961_v5, %v13155_v6 }
 0x734   : > { %7750 = vtanh.f32 %v6315_v29  ;;  %vm6140_vm7 = vweird.f32 %v6064_v47  ;;  %v6049_v18 = vsub.f32 %v12290_v27, %v12465_v7 }
 0x735   : > { %v6133_v54 = vsel %vm6132_vm5, %v7743_v40, %v6129_v11  ;;  %v6017_v60 = vsub.f32 %v5985_v42, %v6001_v12  ;;  %v6292_v40 = vadd.f32 %v6276_v16, %v13160_v61 }
 0x736   : > { %v6239_v45 = vmul.f32 %v6133_v54, %v6047_v35 }
 0x737   : > { %v6033_v13 = vmax.f32 %v6017_v60, 0.0 }
 0x738   : > { %v6258_v1 = vmul.f32 %v12411_v0, %v6239_v45 }
 0x739   : > { %v7749_v17 = vpop.eup %7748  ;;  %v6065_v55 = vadd.f32 1e-05, %v6033_v13  ;;  %v13163_v13 = vld [vmem:[#allocation29_spill] sm:$0xff] }
 0x73a   : > { %v6277_v26 = vadd.f32 %v12419_v32, %v6258_v1  ;;  %v7751_v52 = vpop.eup %7750  ;;  %v6135_v20 = vmul.f32 %v7749_v17, %v6064_v47  ;;  %vm6141_vm6 = vweird.f32 %v7749_v17 }
 0x73b   : > { %v6345_v63 = vpack.c.bf16 %v7751_v52, %v7747_v28  ;;  %7752 = vrsqrt.f32 %v6065_v55  ;;  %vm6142_vm8 = vmor %vm6140_vm7, %vm6141_vm6  ;;  %vm6150_vm10 = vweird.f32 %v6065_v55  ;;  %v13162_v28 = vld [vmem:[#allocation26_spill] sm:$0xff] }
 0x73c   : > { %v6293_v62 = vadd.f32 %v6277_v26, %v13161_v39  ;;  %v6136_v38 = vmul.f32 %v7749_v17, %v6135_v20 }
 0x73e   : > { %6433 = vmatmul.bf16.gmra.mxu1 %v6345_v63  ;;  %v6306_v53 = vpack.c.bf16 %v6293_v62, %v6292_v40  ;;  %v6137_v44 = vmul.f32 0.5, %v6136_v38 }
 0x740   : > { %v6316_v2 = vunpack.c.l.bf16 %v6306_v53  ;;  %v6317_v51 = vunpack.c.h.bf16 %v6306_v53  ;;  %v6138_v14 = vsub.f32 1.5, %v6137_v44 }
 0x741   : > { %v7753_v48 = vpop.eup %7752 }
 0x742   : > { %7754 = vtanh.f32 %v6316_v2  ;;  %v6139_v25 = vmul.f32 %v7749_v17, %v6138_v14  ;;  %v6145_v59 = vmul.f32 %v7753_v48, %v6065_v55  ;;  %vm6151_vm9 = vweird.f32 %v7753_v48 }
 0x743   : > { %7756 = vtanh.f32 %v6317_v51  ;;  %vm6152_vm11 = vmor %vm6150_vm10, %vm6151_vm9 }
 0x744   : > { %v6143_v41 = vsel %vm6142_vm8, %v7749_v17, %v6139_v25  ;;  %v6146_v56 = vmul.f32 %v7753_v48, %v6145_v59 }
 0x745   : > { %v6240_v8 = vmul.f32 %v6143_v41, %v6048_v22 }
 0x746   : > { %v6147_v36 = vmul.f32 0.5, %v6146_v56 }
 0x747   : > { %v6259_v11 = vmul.f32 %v12411_v0, %v6240_v8 }
 0x748   : > { %v7755_v30 = vpop.eup %7754  ;;  %v6148_v21 = vsub.f32 1.5, %v6147_v36 }
 0x749   : > { %v5899_v23 = vpop.xlane.xlu0 %5898  ;;  %v7757_v19 = vpop.eup %7756  ;;  %v6278_v1 = vadd.f32 %v12419_v32, %v6259_v11 }
 0x74a   : > { %v12479_v58 = vmul.f32 %v5899_v23, %v13155_v6  ;;  %v6346_v46 = vpack.c.bf16 %v7757_v19, %v7755_v30  ;;  %v6149_v29 = vmul.f32 %v7753_v48, %v6148_v21 }
 0x74b   : > { %v5963_v15 = vpop.xlane.xlu2 %5962  ;;  %v6294_v26 = vadd.f32 %v6278_v1, %v13162_v28 }
 0x74c   : > { %v6002_v43 = vmul.f32 %v12479_v58, %v12479_v58  ;;  %v5986_v31 = vmul.f32 %v5963_v15, %v13155_v6  ;;  %v6153_v35 = vsel %vm6152_vm11, %v7753_v48, %v6149_v29 }
 0x74d   : > { %v6241_v3 = vmul.f32 %v6153_v35, %v6049_v18 }
 0x74e   : > { %v6018_v57 = vsub.f32 %v5986_v31, %v6002_v43  ;;  %6438 = vmatmul.bf16.gmra.mxu1 %v6346_v46  ;;  %v6050_v46 = vsub.f32 %v12299_v9, %v12479_v58 }
 0x74f   : > { %v6260_v27 = vmul.f32 %v12411_v0, %v6241_v3 }
 0x750   : > { %v6034_v37 = vmax.f32 %v6018_v57, 0.0 }
 0x751   : > { %v5901_v47 = vpop.xlane.xlu1 %5900  ;;  %v6279_v60 = vadd.f32 %v12419_v32, %v6260_v27 }
 0x752   : > { %v12490_v5 = vmul.f32 %v5901_v47, %v13155_v6  ;;  %v6066_v54 = vadd.f32 1e-05, %v6034_v37 }
 0x753   : > { %v5965_v12 = vpop.xlane.xlu0 %5964  ;;  %v6295_v17 = vadd.f32 %v6279_v60, %v13163_v13 }
 0x754   : > { %v6003_v45 = vmul.f32 %v12490_v5, %v12490_v5  ;;  %v5987_v42 = vmul.f32 %v5965_v12, %v13155_v6  ;;  %7758 = vrsqrt.f32 %v6066_v54  ;;  %vm6160_vm13 = vweird.f32 %v6066_v54 }
 0x755   : > { %v6307_v61 = vpack.c.bf16 %v6295_v17, %v6294_v26 }
 0x756   : > { %v6019_v7 = vsub.f32 %v5987_v42, %v6003_v45  ;;  %v6051_v45 = vsub.f32 %v12308_v24, %v12490_v5 }
 0x757   : > { %v6318_v53 = vunpack.c.l.bf16 %v6307_v61  ;;  %v6319_v2 = vunpack.c.h.bf16 %v6307_v61 }
 0x758   : > { %v6035_v16 = vmax.f32 %v6019_v7, 0.0 }
 0x759   : > { %v5903_v20 = vpop.xlane.xlu1 %5902 }
 0x75a   : > { %v6067_v52 = vadd.f32 1e-05, %v6035_v16  ;;  %v7759_v55 = vpop.eup %7758  ;;  %v12501_v63 = vmul.f32 %v5903_v20, %v13155_v6 }
 0x75b   : > { %v6155_v40 = vmul.f32 %v7759_v55, %v6066_v54  ;;  %v5967_v39 = vpop.xlane.xlu0 %5966  ;;  %vm6161_vm12 = vweird.f32 %v7759_v55 }
 0x75c   : > { %7760 = vrsqrt.f32 %v6067_v52  ;;  %v6004_v62 = vmul.f32 %v12501_v63, %v12501_v63  ;;  %v5988_v38 = vmul.f32 %v5967_v39, %v13155_v6  ;;  %vm6162_vm14 = vmor %vm6160_vm13, %vm6161_vm12  ;;  %vm6170_vm0 = vweird.f32 %v6067_v52 }
 0x75d   : > { %v6156_v44 = vmul.f32 %v7759_v55, %v6155_v40  ;;  %7762 = vtanh.f32 %v6318_v53  ;;  %v13164_v53 = vld [vmem:[#allocation28_spill] sm:$0xff] }
 0x75e   : > { %v6020_v51 = vsub.f32 %v5988_v38, %v6004_v62  ;;  %7764 = vtanh.f32 %v6319_v2 }
 0x75f   : > { %v6157_v14 = vmul.f32 0.5, %v6156_v44 }
 0x760   : > { %v6036_v48 = vmax.f32 %v6020_v51, 0.0  ;;  %v13165_v51 = vld [vmem:[#allocation31_spill] sm:$0xff] }
 0x761   : > { %v6158_v59 = vsub.f32 1.5, %v6157_v14  ;;  %v5905_v23 = vpop.xlane.xlu2 %5904 }
 0x762   : > { %v7761_v25 = vpop.eup %7760  ;;  %v6068_v56 = vadd.f32 1e-05, %v6036_v48  ;;  %v12507_v22 = vmul.f32 %v5905_v23, %v13155_v6 }
 0x763   : > { %v6165_v41 = vmul.f32 %v7761_v25, %v6067_v52  ;;  %v6159_v15 = vmul.f32 %v7759_v55, %v6158_v59  ;;  %v5969_v30 = vpop.xlane.xlu1 %5968  ;;  %v7763_v36 = vpop.eup %7762  ;;  %vm6171_vm15 = vweird.f32 %v7761_v25 }
 0x764   : > { %7766 = vrsqrt.f32 %v6068_v56  ;;  %v6005_v19 = vmul.f32 %v12507_v22, %v12507_v22  ;;  %v7765_v8 = vpop.eup %7764  ;;  %v5989_v21 = vmul.f32 %v5969_v30, %v13155_v6  ;;  %vm6172_vm1 = vmor %vm6170_vm0, %vm6171_vm15  ;;  %vm6180_vm3 = vweird.f32 %v6068_v56 }
 0x765   : > { %v6166_v43 = vmul.f32 %v7761_v25, %v6165_v41  ;;  %v6163_v31 = vsel %vm6162_vm14, %v7759_v55, %v6159_v15  ;;  %v6347_v29 = vpack.c.bf16 %v7765_v8, %v7763_v36  ;;  %v6052_v15 = vsub.f32 %v12314_v49, %v12501_v63 }
 0x766   : > { %v6021_v11 = vsub.f32 %v5989_v21, %v6005_v19  ;;  %v6242_v18 = vmul.f32 %v6163_v31, %v6050_v46 }
 0x767   : > { %v6167_v57 = vmul.f32 0.5, %v6166_v43  ;;  %6443 = vmatmul.bf16.gmra.mxu1 %v6347_v29 }
 0x768   : > { %v6037_v47 = vmax.f32 %v6021_v11, 0.0  ;;  %v6261_v1 = vmul.f32 %v12411_v0, %v6242_v18 }
 0x769   : > { %v6168_v37 = vsub.f32 1.5, %v6167_v57  ;;  %v5907_v35 = vpop.xlane.xlu2 %5906 }
 0x76a   : > { %v7767_v3 = vpop.eup %7766  ;;  %v12515_v12 = vmul.f32 %v5907_v35, %v13155_v6  ;;  %v6069_v58 = vadd.f32 1e-05, %v6037_v47  ;;  %v6280_v24 = vadd.f32 %v12419_v32, %v6261_v1  ;;  %v6053_v35 = vsub.f32 %v12323_v4, %v12507_v22 }
 0x76b   : > { %v6169_v54 = vmul.f32 %v7761_v25, %v6168_v37  ;;  %v6175_v9 = vmul.f32 %v7767_v3, %v6068_v56  ;;  %v5971_v42 = vpop.xlane.xlu1 %5970  ;;  %vm6181_vm2 = vweird.f32 %v7767_v3 }
 0x76c   : > { %v6006_v7 = vmul.f32 %v12515_v12, %v12515_v12  ;;  %v5990_v60 = vmul.f32 %v5971_v42, %v13155_v6  ;;  %7768 = vrsqrt.f32 %v6069_v58  ;;  %v6296_v14 = vadd.f32 %v6280_v24, %v13165_v51  ;;  %vm6182_vm4 = vmor %vm6180_vm3, %vm6181_vm2 }
 0x76d   : > { %v6173_v27 = vsel %vm6172_vm1, %v7761_v25, %v6169_v54  ;;  %v6176_v28 = vmul.f32 %v7767_v3, %v6175_v9  ;;  %vm6190_vm6 = vweird.f32 %v6069_v58  ;;  %v6054_v51 = vsub.f32 %v12341_v33, %v12515_v12 }
 0x76e   : > { %v6243_v16 = vmul.f32 %v6173_v27, %v6051_v45  ;;  %v6022_v26 = vsub.f32 %v5990_v60, %v6006_v7 }
 0x76f   : > { %v6177_v17 = vmul.f32 0.5, %v6176_v28 }
 0x770   : > { %v6262_v13 = vmul.f32 %v12411_v0, %v6243_v16  ;;  %v6038_v5 = vmax.f32 %v6022_v26, 0.0 }
 0x771   : > { %v6178_v20 = vsub.f32 1.5, %v6177_v17  ;;  %v5909_v55 = vpop.xlane.xlu0 %5908 }
 0x772   : > { %v6281_v52 = vadd.f32 %v12419_v32, %v6262_v13  ;;  %v12526_v61 = vadd.f32 1e-05, %v6038_v5  ;;  %v12529_v40 = vmul.f32 %v5909_v55, %v13155_v6  ;;  %v7769_v39 = vpop.eup %7768 }
 0x773   : > { %v6179_v62 = vmul.f32 %v7767_v3, %v6178_v20  ;;  %v5973_v38 = vpop.xlane.xlu2 %5972  ;;  %v6185_v2 = vmul.f32 %v7769_v39, %v6069_v58  ;;  %vm6191_vm5 = vweird.f32 %v7769_v39 }
 0x774   : > { %v6297_v44 = vadd.f32 %v6281_v52, %v13164_v53  ;;  %7770 = vrsqrt.f32 %v12526_v61  ;;  %v6007_v48 = vmul.f32 %v12529_v40, %v12529_v40  ;;  %v5991_v25 = vmul.f32 %v5973_v38, %v13155_v6  ;;  %vm6192_vm7 = vmor %vm6190_vm6, %vm6191_vm5  ;;  %v13166_v38 = vld [vmem:[#allocation30_spill] sm:$0xff] }
 0x775   : > { %v6183_v59 = vsel %vm6182_vm4, %v7767_v3, %v6179_v62  ;;  %v6186_v23 = vmul.f32 %v7769_v39, %v6185_v2  ;;  %vm6200_vm9 = vweird.f32 %v12526_v61  ;;  %v6055_v33 = vsub.f32 %v12361_v10, %v12529_v40 }
 0x776   : > { %v6308_v41 = vpack.c.bf16 %v6297_v44, %v6296_v14  ;;  %v6023_v30 = vsub.f32 %v5991_v25, %v6007_v48  ;;  %v6244_v19 = vmul.f32 %v6183_v59, %v6052_v15  ;;  %v13167_v44 = vld [vmem:[#allocation33_spill] sm:$0xff]  ;;  %vm6469_vm4 = vcmask 97280  }
 0x777   : > { %v6187_v36 = vmul.f32 0.5, %v6186_v23 }
 0x778   : > { %v6320_v56 = vunpack.c.l.bf16 %v6308_v41  ;;  %v6321_v43 = vunpack.c.h.bf16 %v6308_v41  ;;  %v6039_v8 = vmax.f32 %v6023_v30, 0.0  ;;  %v6263_v47 = vmul.f32 %v12411_v0, %v6244_v19 }
 0x779   : > { %v5911_v31 = vpop.xlane.xlu0 %5910  ;;  %v6188_v46 = vsub.f32 1.5, %v6187_v36 }
 0x77a   : > { %v7771_v21 = vpop.eup %7770  ;;  %v12540_v57 = vmul.f32 %v5911_v31, %v13155_v6  ;;  %7772 = vtanh.f32 %v6320_v56  ;;  %v6071_v11 = vadd.f32 1e-05, %v6039_v8  ;;  %v6282_v7 = vadd.f32 %v12419_v32, %v6263_v47  ;;  %v13168_v47 = vld [vmem:[#allocation32_spill] sm:$0xff] }
 0x77b   : > { %v6195_v29 = vmul.f32 %v7771_v21, %v12526_v61  ;;  %v5975_v18 = vpop.xlane.xlu2 %5974  ;;  %7774 = vtanh.f32 %v6321_v43  ;;  %v6189_v49 = vmul.f32 %v7769_v39, %v6188_v46  ;;  %vm6201_vm8 = vweird.f32 %v7771_v21 }
 0x77c   : > { %v6008_v63 = vmul.f32 %v12540_v57, %v12540_v57  ;;  %v5992_v37 = vmul.f32 %v5975_v18, %v13155_v6  ;;  %7776 = vrsqrt.f32 %v6071_v11  ;;  %vm6202_vm10 = vmor %vm6200_vm9, %vm6201_vm8  ;;  %v6298_v53 = vadd.f32 %v6282_v7, %v13166_v38 }
 0x77d   : > { %v6196_v3 = vmul.f32 %v7771_v21, %v6195_v29  ;;  %v6193_v54 = vsel %vm6192_vm7, %v7769_v39, %v6189_v49  ;;  %vm6210_vm12 = vweird.f32 %v6071_v11 }
 0x77e   : > { %v6024_v45 = vsub.f32 %v5992_v37, %v6008_v63  ;;  %v6245_v9 = vmul.f32 %v6193_v54, %v6053_v35 }
 0x77f   : > { %v6197_v42 = vmul.f32 0.5, %v6196_v3  ;;  %v13169_v3 = vld [vmem:[#allocation35_spill] sm:$0xff] }
 0x780   : > { %v7773_v1 = vpop.eup %7772  ;;  %v6040_v27 = vmax.f32 %v6024_v45, 0.0  ;;  %v6264_v60 = vmul.f32 %v12411_v0, %v6245_v9 }
 0x781   : > { %v7775_v58 = vpop.eup %7774  ;;  %v6198_v16 = vsub.f32 1.5, %v6197_v42  ;;  %v5913_v28 = vpop.xlane.xlu1 %5912  ;;  %v6056_v42 = vsub.f32 %v12381_v50, %v12540_v57 }
 0x782   : > { %v6072_v26 = vadd.f32 1e-05, %v6040_v27  ;;  %v12552_v4 = vmul.f32 %v5913_v28, %v13155_v6  ;;  %v6348_v22 = vpack.c.bf16 %v7775_v58, %v7773_v1  ;;  %v7777_v13 = vpop.eup %7776  ;;  %v6283_v17 = vadd.f32 %v12419_v32, %v6264_v60 }
 0x783   : > { %v6199_v24 = vmul.f32 %v7771_v21, %v6198_v16  ;;  %v5977_v5 = vpop.xlane.xlu0 %5976  ;;  %v6205_v52 = vmul.f32 %v7777_v13, %v6071_v11  ;;  %vm6211_vm11 = vweird.f32 %v7777_v13 }
 0x784   : > { %7778 = vrsqrt.f32 %v6072_v26  ;;  %6448 = vmatmul.bf16.gmra.mxu1 %v6348_v22  ;;  %v6009_v20 = vmul.f32 %v12552_v4, %v12552_v4  ;;  %v5993_v55 = vmul.f32 %v5977_v5, %v13155_v6  ;;  %v6299_v2 = vadd.f32 %v6283_v17, %v13167_v44  ;;  %vm6212_vm13 = vmor %vm6210_vm12, %vm6211_vm11  ;;  %v7277_v44 = vld [vmem:[%s12648_s22] ss:$0 sm:$0xff] }
 0x785   : > { %v6203_v39 = vsel %vm6202_vm10, %v7771_v21, %v6199_v24  ;;  %v6206_v62 = vmul.f32 %v7777_v13, %v6205_v52  ;;  %vm6220_vm15 = vweird.f32 %v6072_v26  ;;  %v6057_v22 = vsub.f32 %v12396_v34, %v12552_v4 }
 0x786   : > { %v6025_v14 = vsub.f32 %v5993_v55, %v6009_v20  ;;  %v6309_v48 = vpack.c.bf16 %v6299_v2, %v6298_v53  ;;  %v6246_v25 = vmul.f32 %v6203_v39, %v6054_v51  ;;  %v13170_v55 = vld [vmem:[#allocation34_spill] sm:$0xff] }
 0x787   : > { %v6207_v61 = vmul.f32 0.5, %v6206_v62  ;;  %v13171_v62 = vld [vmem:[#allocation37_spill] sm:$0xff] }
 0x788   : > { %v6041_v59 = vmax.f32 %v6025_v14, 0.0  ;;  %v6322_v15 = vunpack.c.l.bf16 %v6309_v48  ;;  %v6323_v30 = vunpack.c.h.bf16 %v6309_v48  ;;  %v6265_v43 = vmul.f32 %v12411_v0, %v6246_v25 }
 0x789   : > { %v6208_v41 = vsub.f32 1.5, %v6207_v61 }
 0x78a   : > { %v7779_v23 = vpop.eup %7778  ;;  %v6073_v36 = vadd.f32 1e-05, %v6041_v59  ;;  %7780 = vtanh.f32 %v6322_v15  ;;  %v6284_v21 = vadd.f32 %v12419_v32, %v6265_v43 }
 0x78b   : > { %v6215_v6 = vmul.f32 %v7779_v23, %v6072_v26  ;;  %v6209_v56 = vmul.f32 %v7777_v13, %v6208_v41  ;;  %vm6221_vm14 = vweird.f32 %v7779_v23 }
 0x78c   : > { %7782 = vrsqrt.f32 %v6073_v36  ;;  %vm6222_vm0 = vmor %vm6220_vm15, %vm6221_vm14  ;;  %v6300_v35 = vadd.f32 %v6284_v21, %v13168_v47  ;;  %vm6230_vm2 = vweird.f32 %v6073_v36 }
 0x78d   : > { %v6216_v12 = vmul.f32 %v7779_v23, %v6215_v6  ;;  %v6213_v19 = vsel %vm6212_vm13, %v7777_v13, %v6209_v56  ;;  %7784 = vtanh.f32 %v6323_v30 }
 0x78e   : > { %v6247_v8 = vmul.f32 %v6213_v19, %v6055_v33 }
 0x78f   : > { %v6217_v31 = vmul.f32 0.5, %v6216_v12 }
 0x790   : > { %v6266_v46 = vmul.f32 %v12411_v0, %v6247_v8  ;;  %v7781_v18 = vpop.eup %7780 }
 0x791   : > { %v6218_v29 = vsub.f32 1.5, %v6217_v31 }
 0x792   : > { %v7783_v11 = vpop.eup %7782  ;;  %v6285_v49 = vadd.f32 %v12419_v32, %v6266_v46 }
 0x793   : > { %v6219_v63 = vmul.f32 %v7779_v23, %v6218_v29  ;;  %v7785_v37 = vpop.eup %7784  ;;  %v6225_v10 = vmul.f32 %v7783_v11, %v6073_v36  ;;  %vm6231_vm1 = vweird.f32 %v7783_v11 }
 0x794   : > { %v6349_v40 = vpack.c.bf16 %v7785_v37, %v7781_v18  ;;  %v6301_v54 = vadd.f32 %v6285_v49, %v13169_v3  ;;  %vm6232_vm3 = vmor %vm6230_vm2, %vm6231_vm1 }
 0x795   : > { %v6223_v45 = vsel %vm6222_vm0, %v7779_v23, %v6219_v63  ;;  %v6226_v9 = vmul.f32 %v7783_v11, %v6225_v10 }
 0x796   : > { %6453 = vmatmul.bf16.gmra.mxu1 %v6349_v40  ;;  %v6310_v1 = vpack.c.bf16 %v6301_v54, %v6300_v35  ;;  %v6248_v58 = vmul.f32 %v6223_v45, %v6056_v42 }
 0x797   : > { %v6227_v27 = vmul.f32 0.5, %v6226_v9 }
 0x798   : > { %v6324_v7 = vunpack.c.l.bf16 %v6310_v1  ;;  %v6325_v60 = vunpack.c.h.bf16 %v6310_v1  ;;  %v6267_v26 = vmul.f32 %v12411_v0, %v6248_v58 }
 0x799   : > { %v6228_v16 = vsub.f32 1.5, %v6227_v27 }
 0x79a   : > { %7786 = vtanh.f32 %v6324_v7  ;;  %v6286_v17 = vadd.f32 %v12419_v32, %v6267_v26 }
 0x79b   : > { %v6229_v28 = vmul.f32 %v7783_v11, %v6228_v16  ;;  %7788 = vtanh.f32 %v6325_v60 }
 0x79c   : > { %v6302_v39 = vadd.f32 %v6286_v17, %v13170_v55 }
 0x79d   : > { %v6233_v13 = vsel %vm6232_vm3, %v7783_v11, %v6229_v28 }
 0x79e   : > { %v6249_v50 = vmul.f32 %v6233_v13, %v6057_v22 }
 0x7a0   : > { %v7787_v57 = vpop.eup %7786  ;;  %v6268_v24 = vmul.f32 %v12411_v0, %v6249_v50 }
 0x7a1   : > { %v7789_v5 = vpop.eup %7788 }
 0x7a2   : > { %v6287_v52 = vadd.f32 %v12419_v32, %v6268_v24  ;;  %v6350_v20 = vpack.c.bf16 %v7789_v5, %v7787_v57 }
 0x7a4   : > { %v6303_v38 = vadd.f32 %v6287_v52, %v13171_v62 }
 0x7a6   : > { %6458 = vmatmul.bf16.gmra.mxu1 %v6350_v20  ;;  %v6311_v53 = vpack.c.bf16 %v6303_v38, %v6302_v39 }
 0x7a8   : > { %v6326_v34 = vunpack.c.l.bf16 %v6311_v53  ;;  %v6327_v4 = vunpack.c.h.bf16 %v6311_v53 }
 0x7aa   : > { %7790 = vtanh.f32 %v6326_v34 }
 0x7ab   : > { %7792 = vtanh.f32 %v6327_v4  ;;  %v6429_v0 = vpop.f32.mrf.mxu1 }
 0x7ac   : > { %v6430_v32 = vadd.f32 %v7277_v44, %v6429_v0 }
 0x7ae   : > { %6470 = vst.msk [vmem:[%s12589_s7] sm:$0xff] %vm6469_vm4, %v6430_v32 }
 0x7b0   : > { %v7791_v2 = vpop.eup %7790 }
 0x7b1   : > { %v7793_v51 = vpop.eup %7792 }
 0x7b2   : > { %v6351_v14 = vpack.c.bf16 %v7793_v51, %v7791_v2 }
 0x7b3   : > { %v6431_v61 = vpop.f32.mrf.mxu1 }
 0x7b4   : > { %v6432_v48 = vadd.f32 %v7277_v44, %v6431_v61 }
 0x7b6   : > { %6463 = vmatmul.bf16.gmra.mxu1 %v6351_v14  ;;  %6471 = vst.msk [vmem:[%s12589_s7 + $0x8] sm:$0xff] %vm6469_vm4, %v6432_v48 }
 0x7bb   : > { %v6434_v25 = vpop.f32.mrf.mxu1 }
 0x7bc   : > { %v6435_v59 = vadd.f32 %v7277_v44, %v6434_v25 }
 0x7be   : > { %6472 = vst.msk [vmem:[%s12589_s7 + $0x10] sm:$0xff] %vm6469_vm4, %v6435_v59 }
 0x7c3   : > { %v6436_v23 = vpop.f32.mrf.mxu1 }
 0x7c4   : > { %v6437_v41 = vadd.f32 %v7277_v44, %v6436_v23 }
 0x7c6   : > { %6473 = vst.msk [vmem:[%s12589_s7 + $0x18] sm:$0xff] %vm6469_vm4, %v6437_v41 }
 0x7cb   : > { %v6439_v15 = vpop.f32.mrf.mxu1 }
 0x7cc   : > { %v6440_v30 = vadd.f32 %v7277_v44, %v6439_v15 }
 0x7ce   : > { %6474 = vst.msk [vmem:[%s12589_s7 + $0x20] sm:$0xff] %vm6469_vm4, %v6440_v30 }
 0x7d3   : > { %v6441_v6 = vpop.f32.mrf.mxu1 }
 0x7d4   : > { %v6442_v36 = vadd.f32 %v7277_v44, %v6441_v6 }
 0x7d6   : > { %6475 = vst.msk [vmem:[%s12589_s7 + $0x28] sm:$0xff] %vm6469_vm4, %v6442_v36 }
 0x7e4   : > { %v6444_v56 = vpop.f32.mrf.mxu1 }
 0x7e5   : > { %v6445_v43 = vadd.f32 %v7277_v44, %v6444_v56 }
 0x7e7   : > { %6476 = vst.msk [vmem:[%s12589_s7 + $0x30] sm:$0xff] %vm6469_vm4, %v6445_v43 }
 0x7ec   : > { %v6446_v33 = vpop.f32.mrf.mxu1 }
 0x7ed   : > { %v6447_v12 = vadd.f32 %v7277_v44, %v6446_v33 }
 0x7ef   : > { %6477 = vst.msk [vmem:[%s12589_s7 + $0x38] sm:$0xff] %vm6469_vm4, %v6447_v12 }
 0x801   : > { %v6449_v19 = vpop.f32.mrf.mxu1 }
 0x802   : > { %v6450_v8 = vadd.f32 %v7277_v44, %v6449_v19 }
 0x804   : > { %6478 = vst.msk [vmem:[%s12589_s7 + $0x40] sm:$0xff] %vm6469_vm4, %v6450_v8 }
 0x809   : > { %v6451_v31 = vpop.f32.mrf.mxu1 }
 0x80a   : > { %v6452_v21 = vadd.f32 %v7277_v44, %v6451_v31 }
 0x80c   : > { %6479 = vst.msk [vmem:[%s12589_s7 + $0x48] sm:$0xff] %vm6469_vm4, %v6452_v21 }
 0x813   : > { %v6454_v46 = vpop.f32.mrf.mxu1 }
 0x814   : > { %v6455_v29 = vadd.f32 %v7277_v44, %v6454_v46 }
 0x816   : > { %6480 = vst.msk [vmem:[%s12589_s7 + $0x50] sm:$0xff] %vm6469_vm4, %v6455_v29 }
 0x81b   : > { %v6456_v18 = vpop.f32.mrf.mxu1 }
 0x81c   : > { %v6457_v11 = vadd.f32 %v7277_v44, %v6456_v18 }
 0x81e   : > { %6481 = vst.msk [vmem:[%s12589_s7 + $0x58] sm:$0xff] %vm6469_vm4, %v6457_v11 }
 0x823   : > { %v6459_v49 = vpop.f32.mrf.mxu1 }
 0x824   : > { %v6460_v63 = vadd.f32 %v7277_v44, %v6459_v49 }
 0x826   : > { %6482 = vst.msk [vmem:[%s12589_s7 + $0x60] sm:$0xff] %vm6469_vm4, %v6460_v63 }
 0x82b   : > { %v6461_v37 = vpop.f32.mrf.mxu1 }
 0x82c   : > { %v6462_v10 = vadd.f32 %v7277_v44, %v6461_v37 }
 0x82e   : > { %6483 = vst.msk [vmem:[%s12589_s7 + $0x68] sm:$0xff] %vm6469_vm4, %v6462_v10 }
 0x833   : > { %v6464_v40 = vpop.f32.mrf.mxu1 }
 0x834   : > { %v6465_v47 = vadd.f32 %v7277_v44, %v6464_v40 }
 0x836   : > { %6484 = vst.msk [vmem:[%s12589_s7 + $0x70] sm:$0xff] %vm6469_vm4, %v6465_v47 }
 0x83b   : > { %v6466_v35 = vpop.f32.mrf.mxu1 }
 0x83c   : > { %v6467_v3 = vadd.f32 %v7277_v44, %v6466_v35 }
 0x83e   : > { %6485 = vst.msk [vmem:[%s12589_s7 + $0x78] sm:$0xff] %vm6469_vm4, %v6467_v3 }
 0x83f PF: > { %s33_s4 = sadd.s32 1, %s7800_s4  }
 0x840   : > { %p30_p4 = scmp.ge.s32.totalorder %s33_s4, 6  }
 0x842   :  { %32 = sbr.rel (!%p30_p4) target bundleno = 9 (0x9), region = 142 }

</bundles_post_ra>
